<compile_context>
chip_gen: v5e
topology: v5e:2x2
jax: 0.10.0
libtpu: 0.0.40
codegen_flags: <defaults>
</compile_context>

<pallas_src>
import jax
import jax.numpy as jnp
from jax.experimental import pallas as pl
from jax.experimental.pallas import tpu as pltpu


def _sigmoid(x):
    # sigmoid(x) == 0.5 * tanh(0.5 * x) + 0.5 : one EUP tanh push instead of
    # exp + reciprocal.  Computed in f32 only.
    return 0.5 * jnp.tanh(0.5 * x) + 0.5


def _lstm_kernel(x_ref, wih1_ref, b1_ref, whh1_ref,
                 wih2_ref, whh2_ref, b2_ref, wl_ref, bl_ref,
                 out_ref, xw1_ref):
    """Whole stacked-LSTM forward in one kernel (tiny model, fully VMEM-resident).

    x_ref     : (seq*B, C)   bf16   (pre-reshaped host-side)
    wih1_ref  : (C, 4H1)     bf16
    b1_ref    : (1, 4H1)     f32    (b_ih1 + b_hh1, gate-reordered)
    whh1_ref  : (H1, 4H1)    bf16
    wih2_ref  : (H1, 4H2)    bf16
    whh2_ref  : (H2, 4H2)    bf16
    b2_ref    : (1, 4H2)     f32
    wl_ref    : (H2, 1)      f32    (folded linear1 @ linear2)
    bl_ref    : (1, 1)       f32
    out_ref   : (B, 1)       f32
    xw1_ref   : (seq*B, 4H1) f32 scratch (hoisted input projection)
    """
    SB, _ = x_ref.shape
    H1 = whh1_ref.shape[0]
    H2 = whh2_ref.shape[0]
    B = out_ref.shape[0]
    seq_len = SB // B
    bf16 = jnp.bfloat16

    # ---- hoisted input projection for cell 1 (one MXU matmul, M = seq*B) ----
    xw1_ref[...] = jnp.dot(x_ref[...], wih1_ref[...],
                           preferred_element_type=jnp.float32) + b1_ref[...]

    # hoist the cell-2 bias broadcast (JAX does not CSE broadcast_in_dim)
    b2 = jnp.broadcast_to(b2_ref[...], (B, 4 * H2))

    # recurrent state carried as values, not VMEM scratch (matches torch.zeros init)
    h1 = jnp.zeros((B, H1), jnp.float32)
    c1 = jnp.zeros((B, H1), jnp.float32)
    h2 = jnp.zeros((B, H2), jnp.float32)
    c2 = jnp.zeros((B, H2), jnp.float32)

    # static Python loop -> fully unrolled (seq_len is small & known at trace
    # time), giving the scheduler full cross-iteration visibility.
    for t in range(seq_len):
        # ---- cell-2 hidden-hidden matmul: depends only on the PREVIOUS h2,
        #      so it is independent of this step's cell-1 and can overlap it.
        g2_hh = jnp.dot(h2.astype(bf16), whh2_ref[...],
                        preferred_element_type=jnp.float32)

        # ---- LSTMCell 1 (gates packed [i, f, o, g]) ----
        g1 = xw1_ref[t * B:(t + 1) * B, :] + jnp.dot(
            h1.astype(bf16), whh1_ref[...],
            preferred_element_type=jnp.float32)
        s1 = _sigmoid(g1[:, :3 * H1])                 # one bulk sigmoid slab
        i1 = s1[:, 0 * H1:1 * H1]
        f1 = s1[:, 1 * H1:2 * H1]
        o1 = s1[:, 2 * H1:3 * H1]
        gg1 = jnp.tanh(g1[:, 3 * H1:4 * H1])
        c1 = f1 * c1 + i1 * gg1
        h1 = o1 * jnp.tanh(c1)

        # ---- LSTMCell 2 : only the h1-dependent dot is on the critical path ----
        g2 = g2_hh + jnp.dot(h1.astype(bf16), wih2_ref[...],
                             preferred_element_type=jnp.float32) + b2
        s2 = _sigmoid(g2[:, :3 * H2])
        i2 = s2[:, 0 * H2:1 * H2]
        f2 = s2[:, 1 * H2:2 * H2]
        o2 = s2[:, 2 * H2:3 * H2]
        gg2 = jnp.tanh(g2[:, 3 * H2:4 * H2])
        c2 = f2 * c2 + i2 * gg2
        h2 = o2 * jnp.tanh(c2)

    # ---- folded head: linear2(linear1(h2)) == h2 @ wl + bl (f32 epilogue) ----
    out_ref[...] = jnp.dot(h2, wl_ref[...],
                           preferred_element_type=jnp.float32) + bl_ref[...]


def lstm_forward(x, packed):
    """x: (seq, batch, in_channel) f32. Returns (batch,) like .squeeze()."""
    wih1, b1, whh1, wih2, whh2, b2, wl, bl = packed
    seq_len, B, C = x.shape
    H1 = whh1.shape[0]

    # Wrapper-side reshape + bf16 cast: free layout plumbing, avoids an
    # in-kernel relayout of a 32-lane-wide 3D array.
    x2d = x.reshape(seq_len * B, C).astype(jnp.bfloat16)

    out = pl.pallas_call(
        _lstm_kernel,
        out_shape=jax.ShapeDtypeStruct((B, 1), jnp.float32),
        in_specs=[pl.BlockSpec(memory_space=pltpu.MemorySpace.VMEM)] * 9,
        out_specs=pl.BlockSpec(memory_space=pltpu.MemorySpace.VMEM),
        scratch_shapes=[
            pltpu.VMEM((seq_len * B, 4 * H1), jnp.float32),  # hoisted x @ W_ih1 + b1
        ],
    )(x2d, wih1, b1, whh1, wih2, whh2, b2, wl, bl)
    return out[:, 0]


# ----------------------------------------------------------------------------
# Parameters in PyTorch layout + host-side packing for the kernel
# ----------------------------------------------------------------------------
def init_torch_params(key, in_channel, hidden_channel):
    """PyTorch-shaped parameters (LSTMCell gate order [i, f, g, o])."""
    H1 = hidden_channel
    H2 = hidden_channel - 128
    ks = jax.random.split(key, 12)

    def u(k, shape, fan):
        bound = 1.0 / jnp.sqrt(fan)
        return jax.random.uniform(k, shape, jnp.float32, -bound, bound)

    return dict(
        W_ih1=u(ks[0], (4 * H1, in_channel), H1),
        W_hh1=u(ks[1], (4 * H1, H1), H1),
        b_ih1=u(ks[2], (4 * H1,), H1),
        b_hh1=u(ks[3], (4 * H1,), H1),
        W_ih2=u(ks[4], (4 * H2, H1), H2),
        W_hh2=u(ks[5], (4 * H2, H2), H2),
        b_ih2=u(ks[6], (4 * H2,), H2),
        b_hh2=u(ks[7], (4 * H2,), H2),
        W_l1=u(ks[8], (64, H2), H2),
        b_l1=u(ks[9], (64,), H2),
        W_l2=u(ks[10], (1, 64), 64),
        b_l2=u(ks[11], (1,), 64),
    )


def _reorder_gates(w, H):
    """PyTorch gate order [i, f, g, o] -> kernel order [i, f, o, g] (axis 0)."""
    i, f, g, o = w[0 * H:1 * H], w[1 * H:2 * H], w[2 * H:3 * H], w[3 * H:4 * H]
    return jnp.concatenate([i, f, o, g], axis=0)


def pack_params(p, hidden_channel):
    """Host-side packing: transpose, reorder gates, pre-sum biases, cast matmul
    weights to bf16, fold the linear head (kept f32)."""
    H1 = hidden_channel
    H2 = hidden_channel - 128
    # Gate slab-slicing + lane-aligned layouts assume 128-multiples.
    assert H1 % 128 == 0 and H2 % 128 == 0, "hidden sizes must be multiples of 128"
    bf16 = jnp.bfloat16
    wih1 = _reorder_gates(p["W_ih1"], H1).T.astype(bf16)             # (C, 4H1)
    whh1 = _reorder_gates(p["W_hh1"], H1).T.astype(bf16)             # (H1, 4H1)
    b1 = _reorder_gates(p["b_ih1"] + p["b_hh1"], H1)[None, :]        # (1, 4H1) f32
    wih2 = _reorder_gates(p["W_ih2"], H2).T.astype(bf16)             # (H1, 4H2)
    whh2 = _reorder_gates(p["W_hh2"], H2).T.astype(bf16)             # (H2, 4H2)
    b2 = _reorder_gates(p["b_ih2"] + p["b_hh2"], H2)[None, :]        # (1, 4H2) f32
    wl = p["W_l1"].T @ p["W_l2"].T                                   # (H2, 1) f32
    bl = p["b_l1"][None, :] @ p["W_l2"].T + p["b_l2"][None, :]       # (1, 1)  f32
    return (wih1, b1, whh1, wih2, whh2, b2, wl, bl)


# ----------------------------------------------------------------------------
# Pure-JAX reference mirroring the PyTorch forward exactly (f32 throughout)
# ----------------------------------------------------------------------------
def reference_forward(x, p, hidden_channel):
    H1 = hidden_channel
    H2 = hidden_channel - 128
    B = x.shape[1]
    h1 = jnp.zeros((B, H1), jnp.float32)
    c1 = jnp.zeros((B, H1), jnp.float32)
    h2 = jnp.zeros((B, H2), jnp.float32)
    c2 = jnp.zeros((B, H2), jnp.float32)

    def cell(xt, h, c, W_ih, W_hh, b_ih, b_hh, H):
        g = xt @ W_ih.T + b_ih + h @ W_hh.T + b_hh
        i = jax.nn.sigmoid(g[:, 0 * H:1 * H])
        f = jax.nn.sigmoid(g[:, 1 * H:2 * H])
        gg = jnp.tanh(g[:, 2 * H:3 * H])
        o = jax.nn.sigmoid(g[:, 3 * H:4 * H])
        c = f * c + i * gg
        h = o * jnp.tanh(c)
        return h, c

    for t in range(x.shape[0]):
        h1, c1 = cell(x[t], h1, c1, p["W_ih1"], p["W_hh1"],
                      p["b_ih1"], p["b_hh1"], H1)
        h2, c2 = cell(h1, h2, c2, p["W_ih2"], p["W_hh2"],
                      p["b_ih2"], p["b_hh2"], H2)
    h21 = h2 @ p["W_l1"].T + p["b_l1"]
    y = h21 @ p["W_l2"].T + p["b_l2"]
    return y[:, 0]


if __name__ == "__main__":
    seq_len = 8
    batch = 8
    in_channel = 32
    hidden_channel = 256  # hidden_channel_after = 256 - 128 = 128

    key = jax.random.PRNGKey(0)
    kx, kp = jax.random.split(key)
    x = jax.random.normal(kx, (seq_len, batch, in_channel), jnp.float32)
    torch_params = init_torch_params(kp, in_channel, hidden_channel)
    packed = pack_params(torch_params, hidden_channel)

    y = jax.jit(lstm_forward)(x, packed)
    y = jax.block_until_ready(y)

    y_ref = reference_forward(x, torch_params, hidden_channel)
    assert y.shape == (batch,)
    # bf16 matmul operands (f32 accumulation) -> loosened tolerance vs f32 ref.
    assert jnp.allclose(y, y_ref, atol=5e-2, rtol=5e-2), (y, y_ref)

    print("KERNEL_OK")
</pallas_src>

<mosaic_0001>
module attributes {stable_mosaic.version = 11 : i64} {
  func.func @_lstm_kernel(%arg0: memref<64x32xbf16, #tpu.memory_space<vmem>>, %arg1: memref<32x1024xbf16, #tpu.memory_space<vmem>>, %arg2: memref<1x1024xf32, #tpu.memory_space<vmem>>, %arg3: memref<256x1024xbf16, #tpu.memory_space<vmem>>, %arg4: memref<256x512xbf16, #tpu.memory_space<vmem>>, %arg5: memref<128x512xbf16, #tpu.memory_space<vmem>>, %arg6: memref<1x512xf32, #tpu.memory_space<vmem>>, %arg7: memref<128x1xf32, #tpu.memory_space<vmem>>, %arg8: memref<1x1xf32, #tpu.memory_space<vmem>>, %arg9: memref<8x1xf32, #tpu.memory_space<vmem>>, %arg10: memref<64x1024xf32, #tpu.memory_space<vmem>>) attributes {dimension_semantics = [], scalar_prefetch = 0 : i64, scratch_operands = 1 : i64, tpu.core_type = #tpu.core_type<tc>} {
    %c0 = arith.constant 0 : index
    %c0_0 = arith.constant 0 : index
    %0 = vector.load %arg0[%c0, %c0_0] : memref<64x32xbf16, #tpu.memory_space<vmem>>, vector<64x32xbf16>
    %c0_1 = arith.constant 0 : index
    %c0_2 = arith.constant 0 : index
    %1 = vector.load %arg1[%c0_1, %c0_2] : memref<32x1024xbf16, #tpu.memory_space<vmem>>, vector<32x1024xbf16>
    %cst = arith.constant dense<0.000000e+00> : vector<64x1024xf32>
    %2 = tpu.matmul %0, %1, %cst {dimension_numbers = #tpu.dot_dimension_numbers<[1], [0], [0], [1], [0, 0, 1, 1], [], []>} : vector<64x32xbf16>, vector<32x1024xbf16>, vector<64x1024xf32> -> vector<64x1024xf32>
    %c0_3 = arith.constant 0 : index
    %c0_4 = arith.constant 0 : index
    %3 = vector.load %arg2[%c0_3, %c0_4] : memref<1x1024xf32, #tpu.memory_space<vmem>>, vector<1x1024xf32>
    %4 = vector.broadcast %3 : vector<1x1024xf32> to vector<64x1024xf32>
    %5 = arith.addf %2, %4 : vector<64x1024xf32>
    %c0_5 = arith.constant 0 : index
    %c0_6 = arith.constant 0 : index
    %6 = vector.load %arg10[%c0_5, %c0_6] : memref<64x1024xf32, #tpu.memory_space<vmem>>, vector<64x1024xf32>
    tpu.vector_store %arg10[%c0_5, %c0_6], %5 {strides = array<i32>} : memref<64x1024xf32, #tpu.memory_space<vmem>>, vector<64x1024xf32>,
    %c0_7 = arith.constant 0 : index
    %c0_8 = arith.constant 0 : index
    %7 = vector.load %arg6[%c0_7, %c0_8] : memref<1x512xf32, #tpu.memory_space<vmem>>, vector<1x512xf32>
    %8 = vector.shape_cast %7 : vector<1x512xf32> to vector<1x512xf32>
    %9 = vector.broadcast %8 : vector<1x512xf32> to vector<8x512xf32>
    %cst_9 = arith.constant 0.000000e+00 : f32
    %10 = vector.broadcast %cst_9 : f32 to vector<8x256xf32>
    %cst_10 = arith.constant 0.000000e+00 : f32
    %11 = vector.broadcast %cst_10 : f32 to vector<8x256xf32>
    %cst_11 = arith.constant 0.000000e+00 : f32
    %12 = vector.broadcast %cst_11 : f32 to vector<8x128xf32>
    %cst_12 = arith.constant 0.000000e+00 : f32
    %13 = vector.broadcast %cst_12 : f32 to vector<8x128xf32>
    %14 = arith.truncf %12 : vector<8x128xf32> to vector<8x128xbf16>
    %c0_13 = arith.constant 0 : index
    %c0_14 = arith.constant 0 : index
    %15 = vector.load %arg5[%c0_13, %c0_14] : memref<128x512xbf16, #tpu.memory_space<vmem>>, vector<128x512xbf16>
    %cst_15 = arith.constant dense<0.000000e+00> : vector<8x512xf32>
    %16 = tpu.matmul %14, %15, %cst_15 {dimension_numbers = #tpu.dot_dimension_numbers<[1], [0], [0], [1], [0, 0, 1, 1], [], []>} : vector<8x128xbf16>, vector<128x512xbf16>, vector<8x512xf32> -> vector<8x512xf32>
    %c0_16 = arith.constant 0 : index
    %c0_17 = arith.constant 0 : index
    %17 = vector.load %arg10[%c0_16, %c0_17] : memref<64x1024xf32, #tpu.memory_space<vmem>>, vector<8x1024xf32>
    %18 = arith.truncf %10 : vector<8x256xf32> to vector<8x256xbf16>
    %c0_18 = arith.constant 0 : index
    %c0_19 = arith.constant 0 : index
    %19 = vector.load %arg3[%c0_18, %c0_19] : memref<256x1024xbf16, #tpu.memory_space<vmem>>, vector<256x1024xbf16>
    %cst_20 = arith.constant dense<0.000000e+00> : vector<8x1024xf32>
    %20 = tpu.matmul %18, %19, %cst_20 {dimension_numbers = #tpu.dot_dimension_numbers<[1], [0], [0], [1], [0, 0, 1, 1], [], []>} : vector<8x256xbf16>, vector<256x1024xbf16>, vector<8x1024xf32> -> vector<8x1024xf32>
    %21 = arith.addf %17, %20 : vector<8x1024xf32>
    %22 = vector.extract_strided_slice %21 {offsets = [0, 0], sizes = [8, 768], strides = [1, 1]} : vector<8x1024xf32> to vector<8x768xf32>
    %cst_21 = arith.constant 5.000000e-01 : f32
    %23 = vector.broadcast %cst_21 : f32 to vector<8x768xf32>
    %24 = arith.mulf %23, %22 : vector<8x768xf32>
    %25 = math.tanh %24 : vector<8x768xf32>
    %cst_22 = arith.constant 5.000000e-01 : f32
    %26 = vector.broadcast %cst_22 : f32 to vector<8x768xf32>
    %27 = arith.mulf %26, %25 : vector<8x768xf32>
    %cst_23 = arith.constant 5.000000e-01 : f32
    %28 = vector.broadcast %cst_23 : f32 to vector<8x768xf32>
    %29 = arith.addf %27, %28 : vector<8x768xf32>
    %30 = vector.extract_strided_slice %29 {offsets = [0, 0], sizes = [8, 256], strides = [1, 1]} : vector<8x768xf32> to vector<8x256xf32>
    %31 = vector.extract_strided_slice %29 {offsets = [0, 256], sizes = [8, 256], strides = [1, 1]} : vector<8x768xf32> to vector<8x256xf32>
    %32 = vector.extract_strided_slice %29 {offsets = [0, 512], sizes = [8, 256], strides = [1, 1]} : vector<8x768xf32> to vector<8x256xf32>
    %33 = vector.extract_strided_slice %21 {offsets = [0, 768], sizes = [8, 256], strides = [1, 1]} : vector<8x1024xf32> to vector<8x256xf32>
    %34 = math.tanh %33 : vector<8x256xf32>
    %35 = arith.mulf %31, %11 : vector<8x256xf32>
    %36 = arith.mulf %30, %34 : vector<8x256xf32>
    %37 = arith.addf %35, %36 : vector<8x256xf32>
    %38 = math.tanh %37 : vector<8x256xf32>
    %39 = arith.mulf %32, %38 : vector<8x256xf32>
    %40 = arith.truncf %39 : vector<8x256xf32> to vector<8x256xbf16>
    %c0_24 = arith.constant 0 : index
    %c0_25 = arith.constant 0 : index
    %41 = vector.load %arg4[%c0_24, %c0_25] : memref<256x512xbf16, #tpu.memory_space<vmem>>, vector<256x512xbf16>
    %cst_26 = arith.constant dense<0.000000e+00> : vector<8x512xf32>
    %42 = tpu.matmul %40, %41, %cst_26 {dimension_numbers = #tpu.dot_dimension_numbers<[1], [0], [0], [1], [0, 0, 1, 1], [], []>} : vector<8x256xbf16>, vector<256x512xbf16>, vector<8x512xf32> -> vector<8x512xf32>
    %43 = arith.addf %16, %42 : vector<8x512xf32>
    %44 = arith.addf %43, %9 : vector<8x512xf32>
    %45 = vector.extract_strided_slice %44 {offsets = [0, 0], sizes = [8, 384], strides = [1, 1]} : vector<8x512xf32> to vector<8x384xf32>
    %cst_27 = arith.constant 5.000000e-01 : f32
    %46 = vector.broadcast %cst_27 : f32 to vector<8x384xf32>
    %47 = arith.mulf %46, %45 : vector<8x384xf32>
    %48 = math.tanh %47 : vector<8x384xf32>
    %cst_28 = arith.constant 5.000000e-01 : f32
    %49 = vector.broadcast %cst_28 : f32 to vector<8x384xf32>
    %50 = arith.mulf %49, %48 : vector<8x384xf32>
    %cst_29 = arith.constant 5.000000e-01 : f32
    %51 = vector.broadcast %cst_29 : f32 to vector<8x384xf32>
    %52 = arith.addf %50, %51 : vector<8x384xf32>
    %53 = vector.extract_strided_slice %52 {offsets = [0, 0], sizes = [8, 128], strides = [1, 1]} : vector<8x384xf32> to vector<8x128xf32>
    %54 = vector.extract_strided_slice %52 {offsets = [0, 128], sizes = [8, 128], strides = [1, 1]} : vector<8x384xf32> to vector<8x128xf32>
    %55 = vector.extract_strided_slice %52 {offsets = [0, 256], sizes = [8, 128], strides = [1, 1]} : vector<8x384xf32> to vector<8x128xf32>
    %56 = vector.extract_strided_slice %44 {offsets = [0, 384], sizes = [8, 128], strides = [1, 1]} : vector<8x512xf32> to vector<8x128xf32>
    %57 = math.tanh %56 : vector<8x128xf32>
    %58 = arith.mulf %54, %13 : vector<8x128xf32>
    %59 = arith.mulf %53, %57 : vector<8x128xf32>
    %60 = arith.addf %58, %59 : vector<8x128xf32>
    %61 = math.tanh %60 : vector<8x128xf32>
    %62 = arith.mulf %55, %61 : vector<8x128xf32>
    %63 = arith.truncf %62 : vector<8x128xf32> to vector<8x128xbf16>
    %c0_30 = arith.constant 0 : index
    %c0_31 = arith.constant 0 : index
    %64 = vector.load %arg5[%c0_30, %c0_31] : memref<128x512xbf16, #tpu.memory_space<vmem>>, vector<128x512xbf16>
    %cst_32 = arith.constant dense<0.000000e+00> : vector<8x512xf32>
    %65 = tpu.matmul %63, %64, %cst_32 {dimension_numbers = #tpu.dot_dimension_numbers<[1], [0], [0], [1], [0, 0, 1, 1], [], []>} : vector<8x128xbf16>, vector<128x512xbf16>, vector<8x512xf32> -> vector<8x512xf32>
    %c8 = arith.constant 8 : index
    %c0_33 = arith.constant 0 : index
    %66 = vector.load %arg10[%c8, %c0_33] : memref<64x1024xf32, #tpu.memory_space<vmem>>, vector<8x1024xf32>
    %67 = arith.truncf %39 : vector<8x256xf32> to vector<8x256xbf16>
    %c0_34 = arith.constant 0 : index
    %c0_35 = arith.constant 0 : index
    %68 = vector.load %arg3[%c0_34, %c0_35] : memref<256x1024xbf16, #tpu.memory_space<vmem>>, vector<256x1024xbf16>
    %cst_36 = arith.constant dense<0.000000e+00> : vector<8x1024xf32>
    %69 = tpu.matmul %67, %68, %cst_36 {dimension_numbers = #tpu.dot_dimension_numbers<[1], [0], [0], [1], [0, 0, 1, 1], [], []>} : vector<8x256xbf16>, vector<256x1024xbf16>, vector<8x1024xf32> -> vector<8x1024xf32>
    %70 = arith.addf %66, %69 : vector<8x1024xf32>
    %71 = vector.extract_strided_slice %70 {offsets = [0, 0], sizes = [8, 768], strides = [1, 1]} : vector<8x1024xf32> to vector<8x768xf32>
    %cst_37 = arith.constant 5.000000e-01 : f32
    %72 = vector.broadcast %cst_37 : f32 to vector<8x768xf32>
    %73 = arith.mulf %72, %71 : vector<8x768xf32>
    %74 = math.tanh %73 : vector<8x768xf32>
    %cst_38 = arith.constant 5.000000e-01 : f32
    %75 = vector.broadcast %cst_38 : f32 to vector<8x768xf32>
    %76 = arith.mulf %75, %74 : vector<8x768xf32>
    %cst_39 = arith.constant 5.000000e-01 : f32
    %77 = vector.broadcast %cst_39 : f32 to vector<8x768xf32>
    %78 = arith.addf %76, %77 : vector<8x768xf32>
    %79 = vector.extract_strided_slice %78 {offsets = [0, 0], sizes = [8, 256], strides = [1, 1]} : vector<8x768xf32> to vector<8x256xf32>
    %80 = vector.extract_strided_slice %78 {offsets = [0, 256], sizes = [8, 256], strides = [1, 1]} : vector<8x768xf32> to vector<8x256xf32>
    %81 = vector.extract_strided_slice %78 {offsets = [0, 512], sizes = [8, 256], strides = [1, 1]} : vector<8x768xf32> to vector<8x256xf32>
    %82 = vector.extract_strided_slice %70 {offsets = [0, 768], sizes = [8, 256], strides = [1, 1]} : vector<8x1024xf32> to vector<8x256xf32>
    %83 = math.tanh %82 : vector<8x256xf32>
    %84 = arith.mulf %80, %37 : vector<8x256xf32>
    %85 = arith.mulf %79, %83 : vector<8x256xf32>
    %86 = arith.addf %84, %85 : vector<8x256xf32>
    %87 = math.tanh %86 : vector<8x256xf32>
    %88 = arith.mulf %81, %87 : vector<8x256xf32>
    %89 = arith.truncf %88 : vector<8x256xf32> to vector<8x256xbf16>
    %c0_40 = arith.constant 0 : index
    %c0_41 = arith.constant 0 : index
    %90 = vector.load %arg4[%c0_40, %c0_41] : memref<256x512xbf16, #tpu.memory_space<vmem>>, vector<256x512xbf16>
    %cst_42 = arith.constant dense<0.000000e+00> : vector<8x512xf32>
    %91 = tpu.matmul %89, %90, %cst_42 {dimension_numbers = #tpu.dot_dimension_numbers<[1], [0], [0], [1], [0, 0, 1, 1], [], []>} : vector<8x256xbf16>, vector<256x512xbf16>, vector<8x512xf32> -> vector<8x512xf32>
    %92 = arith.addf %65, %91 : vector<8x512xf32>
    %93 = arith.addf %92, %9 : vector<8x512xf32>
    %94 = vector.extract_strided_slice %93 {offsets = [0, 0], sizes = [8, 384], strides = [1, 1]} : vector<8x512xf32> to vector<8x384xf32>
    %cst_43 = arith.constant 5.000000e-01 : f32
    %95 = vector.broadcast %cst_43 : f32 to vector<8x384xf32>
    %96 = arith.mulf %95, %94 : vector<8x384xf32>
    %97 = math.tanh %96 : vector<8x384xf32>
    %cst_44 = arith.constant 5.000000e-01 : f32
    %98 = vector.broadcast %cst_44 : f32 to vector<8x384xf32>
    %99 = arith.mulf %98, %97 : vector<8x384xf32>
    %cst_45 = arith.constant 5.000000e-01 : f32
    %100 = vector.broadcast %cst_45 : f32 to vector<8x384xf32>
    %101 = arith.addf %99, %100 : vector<8x384xf32>
    %102 = vector.extract_strided_slice %101 {offsets = [0, 0], sizes = [8, 128], strides = [1, 1]} : vector<8x384xf32> to vector<8x128xf32>
    %103 = vector.extract_strided_slice %101 {offsets = [0, 128], sizes = [8, 128], strides = [1, 1]} : vector<8x384xf32> to vector<8x128xf32>
    %104 = vector.extract_strided_slice %101 {offsets = [0, 256], sizes = [8, 128], strides = [1, 1]} : vector<8x384xf32> to vector<8x128xf32>
    %105 = vector.extract_strided_slice %93 {offsets = [0, 384], sizes = [8, 128], strides = [1, 1]} : vector<8x512xf32> to vector<8x128xf32>
    %106 = math.tanh %105 : vector<8x128xf32>
    %107 = arith.mulf %103, %60 : vector<8x128xf32>
    %108 = arith.mulf %102, %106 : vector<8x128xf32>
    %109 = arith.addf %107, %108 : vector<8x128xf32>
    %110 = math.tanh %109 : vector<8x128xf32>
    %111 = arith.mulf %104, %110 : vector<8x128xf32>
    %112 = arith.truncf %111 : vector<8x128xf32> to vector<8x128xbf16>
    %c0_46 = arith.constant 0 : index
    %c0_47 = arith.constant 0 : index
    %113 = vector.load %arg5[%c0_46, %c0_47] : memref<128x512xbf16, #tpu.memory_space<vmem>>, vector<128x512xbf16>
    %cst_48 = arith.constant dense<0.000000e+00> : vector<8x512xf32>
    %114 = tpu.matmul %112, %113, %cst_48 {dimension_numbers = #tpu.dot_dimension_numbers<[1], [0], [0], [1], [0, 0, 1, 1], [], []>} : vector<8x128xbf16>, vector<128x512xbf16>, vector<8x512xf32> -> vector<8x512xf32>
    %c16 = arith.constant 16 : index
    %c0_49 = arith.constant 0 : index
    %115 = vector.load %arg10[%c16, %c0_49] : memref<64x1024xf32, #tpu.memory_space<vmem>>, vector<8x1024xf32>
    %116 = arith.truncf %88 : vector<8x256xf32> to vector<8x256xbf16>
    %c0_50 = arith.constant 0 : index
    %c0_51 = arith.constant 0 : index
    %117 = vector.load %arg3[%c0_50, %c0_51] : memref<256x1024xbf16, #tpu.memory_space<vmem>>, vector<256x1024xbf16>
    %cst_52 = arith.constant dense<0.000000e+00> : vector<8x1024xf32>
    %118 = tpu.matmul %116, %117, %cst_52 {dimension_numbers = #tpu.dot_dimension_numbers<[1], [0], [0], [1], [0, 0, 1, 1], [], []>} : vector<8x256xbf16>, vector<256x1024xbf16>, vector<8x1024xf32> -> vector<8x1024xf32>
    %119 = arith.addf %115, %118 : vector<8x1024xf32>
    %120 = vector.extract_strided_slice %119 {offsets = [0, 0], sizes = [8, 768], strides = [1, 1]} : vector<8x1024xf32> to vector<8x768xf32>
    %cst_53 = arith.constant 5.000000e-01 : f32
    %121 = vector.broadcast %cst_53 : f32 to vector<8x768xf32>
    %122 = arith.mulf %121, %120 : vector<8x768xf32>
    %123 = math.tanh %122 : vector<8x768xf32>
    %cst_54 = arith.constant 5.000000e-01 : f32
    %124 = vector.broadcast %cst_54 : f32 to vector<8x768xf32>
    %125 = arith.mulf %124, %123 : vector<8x768xf32>
    %cst_55 = arith.constant 5.000000e-01 : f32
    %126 = vector.broadcast %cst_55 : f32 to vector<8x768xf32>
    %127 = arith.addf %125, %126 : vector<8x768xf32>
    %128 = vector.extract_strided_slice %127 {offsets = [0, 0], sizes = [8, 256], strides = [1, 1]} : vector<8x768xf32> to vector<8x256xf32>
    %129 = vector.extract_strided_slice %127 {offsets = [0, 256], sizes = [8, 256], strides = [1, 1]} : vector<8x768xf32> to vector<8x256xf32>
    %130 = vector.extract_strided_slice %127 {offsets = [0, 512], sizes = [8, 256], strides = [1, 1]} : vector<8x768xf32> to vector<8x256xf32>
    %131 = vector.extract_strided_slice %119 {offsets = [0, 768], sizes = [8, 256], strides = [1, 1]} : vector<8x1024xf32> to vector<8x256xf32>
    %132 = math.tanh %131 : vector<8x256xf32>
    %133 = arith.mulf %129, %86 : vector<8x256xf32>
    %134 = arith.mulf %128, %132 : vector<8x256xf32>
    %135 = arith.addf %133, %134 : vector<8x256xf32>
    %136 = math.tanh %135 : vector<8x256xf32>
    %137 = arith.mulf %130, %136 : vector<8x256xf32>
    %138 = arith.truncf %137 : vector<8x256xf32> to vector<8x256xbf16>
    %c0_56 = arith.constant 0 : index
    %c0_57 = arith.constant 0 : index
    %139 = vector.load %arg4[%c0_56, %c0_57] : memref<256x512xbf16, #tpu.memory_space<vmem>>, vector<256x512xbf16>
    %cst_58 = arith.constant dense<0.000000e+00> : vector<8x512xf32>
    %140 = tpu.matmul %138, %139, %cst_58 {dimension_numbers = #tpu.dot_dimension_numbers<[1], [0], [0], [1], [0, 0, 1, 1], [], []>} : vector<8x256xbf16>, vector<256x512xbf16>, vector<8x512xf32> -> vector<8x512xf32>
    %141 = arith.addf %114, %140 : vector<8x512xf32>
    %142 = arith.addf %141, %9 : vector<8x512xf32>
    %143 = vector.extract_strided_slice %142 {offsets = [0, 0], sizes = [8, 384], strides = [1, 1]} : vector<8x512xf32> to vector<8x384xf32>
    %cst_59 = arith.constant 5.000000e-01 : f32
    %144 = vector.broadcast %cst_59 : f32 to vector<8x384xf32>
    %145 = arith.mulf %144, %143 : vector<8x384xf32>
    %146 = math.tanh %145 : vector<8x384xf32>
    %cst_60 = arith.constant 5.000000e-01 : f32
    %147 = vector.broadcast %cst_60 : f32 to vector<8x384xf32>
    %148 = arith.mulf %147, %146 : vector<8x384xf32>
    %cst_61 = arith.constant 5.000000e-01 : f32
    %149 = vector.broadcast %cst_61 : f32 to vector<8x384xf32>
    %150 = arith.addf %148, %149 : vector<8x384xf32>
    %151 = vector.extract_strided_slice %150 {offsets = [0, 0], sizes = [8, 128], strides = [1, 1]} : vector<8x384xf32> to vector<8x128xf32>
    %152 = vector.extract_strided_slice %150 {offsets = [0, 128], sizes = [8, 128], strides = [1, 1]} : vector<8x384xf32> to vector<8x128xf32>
    %153 = vector.extract_strided_slice %150 {offsets = [0, 256], sizes = [8, 128], strides = [1, 1]} : vector<8x384xf32> to vector<8x128xf32>
    %154 = vector.extract_strided_slice %142 {offsets = [0, 384], sizes = [8, 128], strides = [1, 1]} : vector<8x512xf32> to vector<8x128xf32>
    %155 = math.tanh %154 : vector<8x128xf32>
    %156 = arith.mulf %152, %109 : vector<8x128xf32>
    %157 = arith.mulf %151, %155 : vector<8x128xf32>
    %158 = arith.addf %156, %157 : vector<8x128xf32>
    %159 = math.tanh %158 : vector<8x128xf32>
    %160 = arith.mulf %153, %159 : vector<8x128xf32>
    %161 = arith.truncf %160 : vector<8x128xf32> to vector<8x128xbf16>
    %c0_62 = arith.constant 0 : index
    %c0_63 = arith.constant 0 : index
    %162 = vector.load %arg5[%c0_62, %c0_63] : memref<128x512xbf16, #tpu.memory_space<vmem>>, vector<128x512xbf16>
    %cst_64 = arith.constant dense<0.000000e+00> : vector<8x512xf32>
    %163 = tpu.matmul %161, %162, %cst_64 {dimension_numbers = #tpu.dot_dimension_numbers<[1], [0], [0], [1], [0, 0, 1, 1], [], []>} : vector<8x128xbf16>, vector<128x512xbf16>, vector<8x512xf32> -> vector<8x512xf32>
    %c24 = arith.constant 24 : index
    %c0_65 = arith.constant 0 : index
    %164 = vector.load %arg10[%c24, %c0_65] : memref<64x1024xf32, #tpu.memory_space<vmem>>, vector<8x1024xf32>
    %165 = arith.truncf %137 : vector<8x256xf32> to vector<8x256xbf16>
    %c0_66 = arith.constant 0 : index
    %c0_67 = arith.constant 0 : index
    %166 = vector.load %arg3[%c0_66, %c0_67] : memref<256x1024xbf16, #tpu.memory_space<vmem>>, vector<256x1024xbf16>
    %cst_68 = arith.constant dense<0.000000e+00> : vector<8x1024xf32>
    %167 = tpu.matmul %165, %166, %cst_68 {dimension_numbers = #tpu.dot_dimension_numbers<[1], [0], [0], [1], [0, 0, 1, 1], [], []>} : vector<8x256xbf16>, vector<256x1024xbf16>, vector<8x1024xf32> -> vector<8x1024xf32>
    %168 = arith.addf %164, %167 : vector<8x1024xf32>
    %169 = vector.extract_strided_slice %168 {offsets = [0, 0], sizes = [8, 768], strides = [1, 1]} : vector<8x1024xf32> to vector<8x768xf32>
    %cst_69 = arith.constant 5.000000e-01 : f32
    %170 = vector.broadcast %cst_69 : f32 to vector<8x768xf32>
    %171 = arith.mulf %170, %169 : vector<8x768xf32>
    %172 = math.tanh %171 : vector<8x768xf32>
    %cst_70 = arith.constant 5.000000e-01 : f32
    %173 = vector.broadcast %cst_70 : f32 to vector<8x768xf32>
    %174 = arith.mulf %173, %172 : vector<8x768xf32>
    %cst_71 = arith.constant 5.000000e-01 : f32
    %175 = vector.broadcast %cst_71 : f32 to vector<8x768xf32>
    %176 = arith.addf %174, %175 : vector<8x768xf32>
    %177 = vector.extract_strided_slice %176 {offsets = [0, 0], sizes = [8, 256], strides = [1, 1]} : vector<8x768xf32> to vector<8x256xf32>
    %178 = vector.extract_strided_slice %176 {offsets = [0, 256], sizes = [8, 256], strides = [1, 1]} : vector<8x768xf32> to vector<8x256xf32>
    %179 = vector.extract_strided_slice %176 {offsets = [0, 512], sizes = [8, 256], strides = [1, 1]} : vector<8x768xf32> to vector<8x256xf32>
    %180 = vector.extract_strided_slice %168 {offsets = [0, 768], sizes = [8, 256], strides = [1, 1]} : vector<8x1024xf32> to vector<8x256xf32>
    %181 = math.tanh %180 : vector<8x256xf32>
    %182 = arith.mulf %178, %135 : vector<8x256xf32>
    %183 = arith.mulf %177, %181 : vector<8x256xf32>
    %184 = arith.addf %182, %183 : vector<8x256xf32>
    %185 = math.tanh %184 : vector<8x256xf32>
    %186 = arith.mulf %179, %185 : vector<8x256xf32>
    %187 = arith.truncf %186 : vector<8x256xf32> to vector<8x256xbf16>
    %c0_72 = arith.constant 0 : index
    %c0_73 = arith.constant 0 : index
    %188 = vector.load %arg4[%c0_72, %c0_73] : memref<256x512xbf16, #tpu.memory_space<vmem>>, vector<256x512xbf16>
    %cst_74 = arith.constant dense<0.000000e+00> : vector<8x512xf32>
    %189 = tpu.matmul %187, %188, %cst_74 {dimension_numbers = #tpu.dot_dimension_numbers<[1], [0], [0], [1], [0, 0, 1, 1], [], []>} : vector<8x256xbf16>, vector<256x512xbf16>, vector<8x512xf32> -> vector<8x512xf32>
    %190 = arith.addf %163, %189 : vector<8x512xf32>
    %191 = arith.addf %190, %9 : vector<8x512xf32>
    %192 = vector.extract_strided_slice %191 {offsets = [0, 0], sizes = [8, 384], strides = [1, 1]} : vector<8x512xf32> to vector<8x384xf32>
    %cst_75 = arith.constant 5.000000e-01 : f32
    %193 = vector.broadcast %cst_75 : f32 to vector<8x384xf32>
    %194 = arith.mulf %193, %192 : vector<8x384xf32>
    %195 = math.tanh %194 : vector<8x384xf32>
    %cst_76 = arith.constant 5.000000e-01 : f32
    %196 = vector.broadcast %cst_76 : f32 to vector<8x384xf32>
    %197 = arith.mulf %196, %195 : vector<8x384xf32>
    %cst_77 = arith.constant 5.000000e-01 : f32
    %198 = vector.broadcast %cst_77 : f32 to vector<8x384xf32>
    %199 = arith.addf %197, %198 : vector<8x384xf32>
    %200 = vector.extract_strided_slice %199 {offsets = [0, 0], sizes = [8, 128], strides = [1, 1]} : vector<8x384xf32> to vector<8x128xf32>
    %201 = vector.extract_strided_slice %199 {offsets = [0, 128], sizes = [8, 128], strides = [1, 1]} : vector<8x384xf32> to vector<8x128xf32>
    %202 = vector.extract_strided_slice %199 {offsets = [0, 256], sizes = [8, 128], strides = [1, 1]} : vector<8x384xf32> to vector<8x128xf32>
    %203 = vector.extract_strided_slice %191 {offsets = [0, 384], sizes = [8, 128], strides = [1, 1]} : vector<8x512xf32> to vector<8x128xf32>
    %204 = math.tanh %203 : vector<8x128xf32>
    %205 = arith.mulf %201, %158 : vector<8x128xf32>
    %206 = arith.mulf %200, %204 : vector<8x128xf32>
    %207 = arith.addf %205, %206 : vector<8x128xf32>
    %208 = math.tanh %207 : vector<8x128xf32>
    %209 = arith.mulf %202, %208 : vector<8x128xf32>
    %210 = arith.truncf %209 : vector<8x128xf32> to vector<8x128xbf16>
    %c0_78 = arith.constant 0 : index
    %c0_79 = arith.constant 0 : index
    %211 = vector.load %arg5[%c0_78, %c0_79] : memref<128x512xbf16, #tpu.memory_space<vmem>>, vector<128x512xbf16>
    %cst_80 = arith.constant dense<0.000000e+00> : vector<8x512xf32>
    %212 = tpu.matmul %210, %211, %cst_80 {dimension_numbers = #tpu.dot_dimension_numbers<[1], [0], [0], [1], [0, 0, 1, 1], [], []>} : vector<8x128xbf16>, vector<128x512xbf16>, vector<8x512xf32> -> vector<8x512xf32>
    %c32 = arith.constant 32 : index
    %c0_81 = arith.constant 0 : index
    %213 = vector.load %arg10[%c32, %c0_81] : memref<64x1024xf32, #tpu.memory_space<vmem>>, vector<8x1024xf32>
    %214 = arith.truncf %186 : vector<8x256xf32> to vector<8x256xbf16>
    %c0_82 = arith.constant 0 : index
    %c0_83 = arith.constant 0 : index
    %215 = vector.load %arg3[%c0_82, %c0_83] : memref<256x1024xbf16, #tpu.memory_space<vmem>>, vector<256x1024xbf16>
    %cst_84 = arith.constant dense<0.000000e+00> : vector<8x1024xf32>
    %216 = tpu.matmul %214, %215, %cst_84 {dimension_numbers = #tpu.dot_dimension_numbers<[1], [0], [0], [1], [0, 0, 1, 1], [], []>} : vector<8x256xbf16>, vector<256x1024xbf16>, vector<8x1024xf32> -> vector<8x1024xf32>
    %217 = arith.addf %213, %216 : vector<8x1024xf32>
    %218 = vector.extract_strided_slice %217 {offsets = [0, 0], sizes = [8, 768], strides = [1, 1]} : vector<8x1024xf32> to vector<8x768xf32>
    %cst_85 = arith.constant 5.000000e-01 : f32
    %219 = vector.broadcast %cst_85 : f32 to vector<8x768xf32>
    %220 = arith.mulf %219, %218 : vector<8x768xf32>
    %221 = math.tanh %220 : vector<8x768xf32>
    %cst_86 = arith.constant 5.000000e-01 : f32
    %222 = vector.broadcast %cst_86 : f32 to vector<8x768xf32>
    %223 = arith.mulf %222, %221 : vector<8x768xf32>
    %cst_87 = arith.constant 5.000000e-01 : f32
    %224 = vector.broadcast %cst_87 : f32 to vector<8x768xf32>
    %225 = arith.addf %223, %224 : vector<8x768xf32>
    %226 = vector.extract_strided_slice %225 {offsets = [0, 0], sizes = [8, 256], strides = [1, 1]} : vector<8x768xf32> to vector<8x256xf32>
    %227 = vector.extract_strided_slice %225 {offsets = [0, 256], sizes = [8, 256], strides = [1, 1]} : vector<8x768xf32> to vector<8x256xf32>
    %228 = vector.extract_strided_slice %225 {offsets = [0, 512], sizes = [8, 256], strides = [1, 1]} : vector<8x768xf32> to vector<8x256xf32>
    %229 = vector.extract_strided_slice %217 {offsets = [0, 768], sizes = [8, 256], strides = [1, 1]} : vector<8x1024xf32> to vector<8x256xf32>
    %230 = math.tanh %229 : vector<8x256xf32>
    %231 = arith.mulf %227, %184 : vector<8x256xf32>
    %232 = arith.mulf %226, %230 : vector<8x256xf32>
    %233 = arith.addf %231, %232 : vector<8x256xf32>
    %234 = math.tanh %233 : vector<8x256xf32>
    %235 = arith.mulf %228, %234 : vector<8x256xf32>
    %236 = arith.truncf %235 : vector<8x256xf32> to vector<8x256xbf16>
    %c0_88 = arith.constant 0 : index
    %c0_89 = arith.constant 0 : index
    %237 = vector.load %arg4[%c0_88, %c0_89] : memref<256x512xbf16, #tpu.memory_space<vmem>>, vector<256x512xbf16>
    %cst_90 = arith.constant dense<0.000000e+00> : vector<8x512xf32>
    %238 = tpu.matmul %236, %237, %cst_90 {dimension_numbers = #tpu.dot_dimension_numbers<[1], [0], [0], [1], [0, 0, 1, 1], [], []>} : vector<8x256xbf16>, vector<256x512xbf16>, vector<8x512xf32> -> vector<8x512xf32>
    %239 = arith.addf %212, %238 : vector<8x512xf32>
    %240 = arith.addf %239, %9 : vector<8x512xf32>
    %241 = vector.extract_strided_slice %240 {offsets = [0, 0], sizes = [8, 384], strides = [1, 1]} : vector<8x512xf32> to vector<8x384xf32>
    %cst_91 = arith.constant 5.000000e-01 : f32
    %242 = vector.broadcast %cst_91 : f32 to vector<8x384xf32>
    %243 = arith.mulf %242, %241 : vector<8x384xf32>
    %244 = math.tanh %243 : vector<8x384xf32>
    %cst_92 = arith.constant 5.000000e-01 : f32
    %245 = vector.broadcast %cst_92 : f32 to vector<8x384xf32>
    %246 = arith.mulf %245, %244 : vector<8x384xf32>
    %cst_93 = arith.constant 5.000000e-01 : f32
    %247 = vector.broadcast %cst_93 : f32 to vector<8x384xf32>
    %248 = arith.addf %246, %247 : vector<8x384xf32>
    %249 = vector.extract_strided_slice %248 {offsets = [0, 0], sizes = [8, 128], strides = [1, 1]} : vector<8x384xf32> to vector<8x128xf32>
    %250 = vector.extract_strided_slice %248 {offsets = [0, 128], sizes = [8, 128], strides = [1, 1]} : vector<8x384xf32> to vector<8x128xf32>
    %251 = vector.extract_strided_slice %248 {offsets = [0, 256], sizes = [8, 128], strides = [1, 1]} : vector<8x384xf32> to vector<8x128xf32>
    %252 = vector.extract_strided_slice %240 {offsets = [0, 384], sizes = [8, 128], strides = [1, 1]} : vector<8x512xf32> to vector<8x128xf32>
    %253 = math.tanh %252 : vector<8x128xf32>
    %254 = arith.mulf %250, %207 : vector<8x128xf32>
    %255 = arith.mulf %249, %253 : vector<8x128xf32>
    %256 = arith.addf %254, %255 : vector<8x128xf32>
    %257 = math.tanh %256 : vector<8x128xf32>
    %258 = arith.mulf %251, %257 : vector<8x128xf32>
    %259 = arith.truncf %258 : vector<8x128xf32> to vector<8x128xbf16>
    %c0_94 = arith.constant 0 : index
    %c0_95 = arith.constant 0 : index
    %260 = vector.load %arg5[%c0_94, %c0_95] : memref<128x512xbf16, #tpu.memory_space<vmem>>, vector<128x512xbf16>
    %cst_96 = arith.constant dense<0.000000e+00> : vector<8x512xf32>
    %261 = tpu.matmul %259, %260, %cst_96 {dimension_numbers = #tpu.dot_dimension_numbers<[1], [0], [0], [1], [0, 0, 1, 1], [], []>} : vector<8x128xbf16>, vector<128x512xbf16>, vector<8x512xf32> -> vector<8x512xf32>
    %c40 = arith.constant 40 : index
    %c0_97 = arith.constant 0 : index
    %262 = vector.load %arg10[%c40, %c0_97] : memref<64x1024xf32, #tpu.memory_space<vmem>>, vector<8x1024xf32>
    %263 = arith.truncf %235 : vector<8x256xf32> to vector<8x256xbf16>
    %c0_98 = arith.constant 0 : index
    %c0_99 = arith.constant 0 : index
    %264 = vector.load %arg3[%c0_98, %c0_99] : memref<256x1024xbf16, #tpu.memory_space<vmem>>, vector<256x1024xbf16>
    %cst_100 = arith.constant dense<0.000000e+00> : vector<8x1024xf32>
    %265 = tpu.matmul %263, %264, %cst_100 {dimension_numbers = #tpu.dot_dimension_numbers<[1], [0], [0], [1], [0, 0, 1, 1], [], []>} : vector<8x256xbf16>, vector<256x1024xbf16>, vector<8x1024xf32> -> vector<8x1024xf32>
    %266 = arith.addf %262, %265 : vector<8x1024xf32>
    %267 = vector.extract_strided_slice %266 {offsets = [0, 0], sizes = [8, 768], strides = [1, 1]} : vector<8x1024xf32> to vector<8x768xf32>
    %cst_101 = arith.constant 5.000000e-01 : f32
    %268 = vector.broadcast %cst_101 : f32 to vector<8x768xf32>
    %269 = arith.mulf %268, %267 : vector<8x768xf32>
    %270 = math.tanh %269 : vector<8x768xf32>
    %cst_102 = arith.constant 5.000000e-01 : f32
    %271 = vector.broadcast %cst_102 : f32 to vector<8x768xf32>
    %272 = arith.mulf %271, %270 : vector<8x768xf32>
    %cst_103 = arith.constant 5.000000e-01 : f32
    %273 = vector.broadcast %cst_103 : f32 to vector<8x768xf32>
    %274 = arith.addf %272, %273 : vector<8x768xf32>
    %275 = vector.extract_strided_slice %274 {offsets = [0, 0], sizes = [8, 256], strides = [1, 1]} : vector<8x768xf32> to vector<8x256xf32>
    %276 = vector.extract_strided_slice %274 {offsets = [0, 256], sizes = [8, 256], strides = [1, 1]} : vector<8x768xf32> to vector<8x256xf32>
    %277 = vector.extract_strided_slice %274 {offsets = [0, 512], sizes = [8, 256], strides = [1, 1]} : vector<8x768xf32> to vector<8x256xf32>
    %278 = vector.extract_strided_slice %266 {offsets = [0, 768], sizes = [8, 256], strides = [1, 1]} : vector<8x1024xf32> to vector<8x256xf32>
    %279 = math.tanh %278 : vector<8x256xf32>
    %280 = arith.mulf %276, %233 : vector<8x256xf32>
    %281 = arith.mulf %275, %279 : vector<8x256xf32>
    %282 = arith.addf %280, %281 : vector<8x256xf32>
    %283 = math.tanh %282 : vector<8x256xf32>
    %284 = arith.mulf %277, %283 : vector<8x256xf32>
    %285 = arith.truncf %284 : vector<8x256xf32> to vector<8x256xbf16>
    %c0_104 = arith.constant 0 : index
    %c0_105 = arith.constant 0 : index
    %286 = vector.load %arg4[%c0_104, %c0_105] : memref<256x512xbf16, #tpu.memory_space<vmem>>, vector<256x512xbf16>
    %cst_106 = arith.constant dense<0.000000e+00> : vector<8x512xf32>
    %287 = tpu.matmul %285, %286, %cst_106 {dimension_numbers = #tpu.dot_dimension_numbers<[1], [0], [0], [1], [0, 0, 1, 1], [], []>} : vector<8x256xbf16>, vector<256x512xbf16>, vector<8x512xf32> -> vector<8x512xf32>
    %288 = arith.addf %261, %287 : vector<8x512xf32>
    %289 = arith.addf %288, %9 : vector<8x512xf32>
    %290 = vector.extract_strided_slice %289 {offsets = [0, 0], sizes = [8, 384], strides = [1, 1]} : vector<8x512xf32> to vector<8x384xf32>
    %cst_107 = arith.constant 5.000000e-01 : f32
    %291 = vector.broadcast %cst_107 : f32 to vector<8x384xf32>
    %292 = arith.mulf %291, %290 : vector<8x384xf32>
    %293 = math.tanh %292 : vector<8x384xf32>
    %cst_108 = arith.constant 5.000000e-01 : f32
    %294 = vector.broadcast %cst_108 : f32 to vector<8x384xf32>
    %295 = arith.mulf %294, %293 : vector<8x384xf32>
    %cst_109 = arith.constant 5.000000e-01 : f32
    %296 = vector.broadcast %cst_109 : f32 to vector<8x384xf32>
    %297 = arith.addf %295, %296 : vector<8x384xf32>
    %298 = vector.extract_strided_slice %297 {offsets = [0, 0], sizes = [8, 128], strides = [1, 1]} : vector<8x384xf32> to vector<8x128xf32>
    %299 = vector.extract_strided_slice %297 {offsets = [0, 128], sizes = [8, 128], strides = [1, 1]} : vector<8x384xf32> to vector<8x128xf32>
    %300 = vector.extract_strided_slice %297 {offsets = [0, 256], sizes = [8, 128], strides = [1, 1]} : vector<8x384xf32> to vector<8x128xf32>
    %301 = vector.extract_strided_slice %289 {offsets = [0, 384], sizes = [8, 128], strides = [1, 1]} : vector<8x512xf32> to vector<8x128xf32>
    %302 = math.tanh %301 : vector<8x128xf32>
    %303 = arith.mulf %299, %256 : vector<8x128xf32>
    %304 = arith.mulf %298, %302 : vector<8x128xf32>
    %305 = arith.addf %303, %304 : vector<8x128xf32>
    %306 = math.tanh %305 : vector<8x128xf32>
    %307 = arith.mulf %300, %306 : vector<8x128xf32>
    %308 = arith.truncf %307 : vector<8x128xf32> to vector<8x128xbf16>
    %c0_110 = arith.constant 0 : index
    %c0_111 = arith.constant 0 : index
    %309 = vector.load %arg5[%c0_110, %c0_111] : memref<128x512xbf16, #tpu.memory_space<vmem>>, vector<128x512xbf16>
    %cst_112 = arith.constant dense<0.000000e+00> : vector<8x512xf32>
    %310 = tpu.matmul %308, %309, %cst_112 {dimension_numbers = #tpu.dot_dimension_numbers<[1], [0], [0], [1], [0, 0, 1, 1], [], []>} : vector<8x128xbf16>, vector<128x512xbf16>, vector<8x512xf32> -> vector<8x512xf32>
    %c48 = arith.constant 48 : index
    %c0_113 = arith.constant 0 : index
    %311 = vector.load %arg10[%c48, %c0_113] : memref<64x1024xf32, #tpu.memory_space<vmem>>, vector<8x1024xf32>
    %312 = arith.truncf %284 : vector<8x256xf32> to vector<8x256xbf16>
    %c0_114 = arith.constant 0 : index
    %c0_115 = arith.constant 0 : index
    %313 = vector.load %arg3[%c0_114, %c0_115] : memref<256x1024xbf16, #tpu.memory_space<vmem>>, vector<256x1024xbf16>
    %cst_116 = arith.constant dense<0.000000e+00> : vector<8x1024xf32>
    %314 = tpu.matmul %312, %313, %cst_116 {dimension_numbers = #tpu.dot_dimension_numbers<[1], [0], [0], [1], [0, 0, 1, 1], [], []>} : vector<8x256xbf16>, vector<256x1024xbf16>, vector<8x1024xf32> -> vector<8x1024xf32>
    %315 = arith.addf %311, %314 : vector<8x1024xf32>
    %316 = vector.extract_strided_slice %315 {offsets = [0, 0], sizes = [8, 768], strides = [1, 1]} : vector<8x1024xf32> to vector<8x768xf32>
    %cst_117 = arith.constant 5.000000e-01 : f32
    %317 = vector.broadcast %cst_117 : f32 to vector<8x768xf32>
    %318 = arith.mulf %317, %316 : vector<8x768xf32>
    %319 = math.tanh %318 : vector<8x768xf32>
    %cst_118 = arith.constant 5.000000e-01 : f32
    %320 = vector.broadcast %cst_118 : f32 to vector<8x768xf32>
    %321 = arith.mulf %320, %319 : vector<8x768xf32>
    %cst_119 = arith.constant 5.000000e-01 : f32
    %322 = vector.broadcast %cst_119 : f32 to vector<8x768xf32>
    %323 = arith.addf %321, %322 : vector<8x768xf32>
    %324 = vector.extract_strided_slice %323 {offsets = [0, 0], sizes = [8, 256], strides = [1, 1]} : vector<8x768xf32> to vector<8x256xf32>
    %325 = vector.extract_strided_slice %323 {offsets = [0, 256], sizes = [8, 256], strides = [1, 1]} : vector<8x768xf32> to vector<8x256xf32>
    %326 = vector.extract_strided_slice %323 {offsets = [0, 512], sizes = [8, 256], strides = [1, 1]} : vector<8x768xf32> to vector<8x256xf32>
    %327 = vector.extract_strided_slice %315 {offsets = [0, 768], sizes = [8, 256], strides = [1, 1]} : vector<8x1024xf32> to vector<8x256xf32>
    %328 = math.tanh %327 : vector<8x256xf32>
    %329 = arith.mulf %325, %282 : vector<8x256xf32>
    %330 = arith.mulf %324, %328 : vector<8x256xf32>
    %331 = arith.addf %329, %330 : vector<8x256xf32>
    %332 = math.tanh %331 : vector<8x256xf32>
    %333 = arith.mulf %326, %332 : vector<8x256xf32>
    %334 = arith.truncf %333 : vector<8x256xf32> to vector<8x256xbf16>
    %c0_120 = arith.constant 0 : index
    %c0_121 = arith.constant 0 : index
    %335 = vector.load %arg4[%c0_120, %c0_121] : memref<256x512xbf16, #tpu.memory_space<vmem>>, vector<256x512xbf16>
    %cst_122 = arith.constant dense<0.000000e+00> : vector<8x512xf32>
    %336 = tpu.matmul %334, %335, %cst_122 {dimension_numbers = #tpu.dot_dimension_numbers<[1], [0], [0], [1], [0, 0, 1, 1], [], []>} : vector<8x256xbf16>, vector<256x512xbf16>, vector<8x512xf32> -> vector<8x512xf32>
    %337 = arith.addf %310, %336 : vector<8x512xf32>
    %338 = arith.addf %337, %9 : vector<8x512xf32>
    %339 = vector.extract_strided_slice %338 {offsets = [0, 0], sizes = [8, 384], strides = [1, 1]} : vector<8x512xf32> to vector<8x384xf32>
    %cst_123 = arith.constant 5.000000e-01 : f32
    %340 = vector.broadcast %cst_123 : f32 to vector<8x384xf32>
    %341 = arith.mulf %340, %339 : vector<8x384xf32>
    %342 = math.tanh %341 : vector<8x384xf32>
    %cst_124 = arith.constant 5.000000e-01 : f32
    %343 = vector.broadcast %cst_124 : f32 to vector<8x384xf32>
    %344 = arith.mulf %343, %342 : vector<8x384xf32>
    %cst_125 = arith.constant 5.000000e-01 : f32
    %345 = vector.broadcast %cst_125 : f32 to vector<8x384xf32>
    %346 = arith.addf %344, %345 : vector<8x384xf32>
    %347 = vector.extract_strided_slice %346 {offsets = [0, 0], sizes = [8, 128], strides = [1, 1]} : vector<8x384xf32> to vector<8x128xf32>
    %348 = vector.extract_strided_slice %346 {offsets = [0, 128], sizes = [8, 128], strides = [1, 1]} : vector<8x384xf32> to vector<8x128xf32>
    %349 = vector.extract_strided_slice %346 {offsets = [0, 256], sizes = [8, 128], strides = [1, 1]} : vector<8x384xf32> to vector<8x128xf32>
    %350 = vector.extract_strided_slice %338 {offsets = [0, 384], sizes = [8, 128], strides = [1, 1]} : vector<8x512xf32> to vector<8x128xf32>
    %351 = math.tanh %350 : vector<8x128xf32>
    %352 = arith.mulf %348, %305 : vector<8x128xf32>
    %353 = arith.mulf %347, %351 : vector<8x128xf32>
    %354 = arith.addf %352, %353 : vector<8x128xf32>
    %355 = math.tanh %354 : vector<8x128xf32>
    %356 = arith.mulf %349, %355 : vector<8x128xf32>
    %357 = arith.truncf %356 : vector<8x128xf32> to vector<8x128xbf16>
    %c0_126 = arith.constant 0 : index
    %c0_127 = arith.constant 0 : index
    %358 = vector.load %arg5[%c0_126, %c0_127] : memref<128x512xbf16, #tpu.memory_space<vmem>>, vector<128x512xbf16>
    %cst_128 = arith.constant dense<0.000000e+00> : vector<8x512xf32>
    %359 = tpu.matmul %357, %358, %cst_128 {dimension_numbers = #tpu.dot_dimension_numbers<[1], [0], [0], [1], [0, 0, 1, 1], [], []>} : vector<8x128xbf16>, vector<128x512xbf16>, vector<8x512xf32> -> vector<8x512xf32>
    %c56 = arith.constant 56 : index
    %c0_129 = arith.constant 0 : index
    %360 = vector.load %arg10[%c56, %c0_129] : memref<64x1024xf32, #tpu.memory_space<vmem>>, vector<8x1024xf32>
    %361 = arith.truncf %333 : vector<8x256xf32> to vector<8x256xbf16>
    %c0_130 = arith.constant 0 : index
    %c0_131 = arith.constant 0 : index
    %362 = vector.load %arg3[%c0_130, %c0_131] : memref<256x1024xbf16, #tpu.memory_space<vmem>>, vector<256x1024xbf16>
    %cst_132 = arith.constant dense<0.000000e+00> : vector<8x1024xf32>
    %363 = tpu.matmul %361, %362, %cst_132 {dimension_numbers = #tpu.dot_dimension_numbers<[1], [0], [0], [1], [0, 0, 1, 1], [], []>} : vector<8x256xbf16>, vector<256x1024xbf16>, vector<8x1024xf32> -> vector<8x1024xf32>
    %364 = arith.addf %360, %363 : vector<8x1024xf32>
    %365 = vector.extract_strided_slice %364 {offsets = [0, 0], sizes = [8, 768], strides = [1, 1]} : vector<8x1024xf32> to vector<8x768xf32>
    %cst_133 = arith.constant 5.000000e-01 : f32
    %366 = vector.broadcast %cst_133 : f32 to vector<8x768xf32>
    %367 = arith.mulf %366, %365 : vector<8x768xf32>
    %368 = math.tanh %367 : vector<8x768xf32>
    %cst_134 = arith.constant 5.000000e-01 : f32
    %369 = vector.broadcast %cst_134 : f32 to vector<8x768xf32>
    %370 = arith.mulf %369, %368 : vector<8x768xf32>
    %cst_135 = arith.constant 5.000000e-01 : f32
    %371 = vector.broadcast %cst_135 : f32 to vector<8x768xf32>
    %372 = arith.addf %370, %371 : vector<8x768xf32>
    %373 = vector.extract_strided_slice %372 {offsets = [0, 0], sizes = [8, 256], strides = [1, 1]} : vector<8x768xf32> to vector<8x256xf32>
    %374 = vector.extract_strided_slice %372 {offsets = [0, 256], sizes = [8, 256], strides = [1, 1]} : vector<8x768xf32> to vector<8x256xf32>
    %375 = vector.extract_strided_slice %372 {offsets = [0, 512], sizes = [8, 256], strides = [1, 1]} : vector<8x768xf32> to vector<8x256xf32>
    %376 = vector.extract_strided_slice %364 {offsets = [0, 768], sizes = [8, 256], strides = [1, 1]} : vector<8x1024xf32> to vector<8x256xf32>
    %377 = math.tanh %376 : vector<8x256xf32>
    %378 = arith.mulf %374, %331 : vector<8x256xf32>
    %379 = arith.mulf %373, %377 : vector<8x256xf32>
    %380 = arith.addf %378, %379 : vector<8x256xf32>
    %381 = math.tanh %380 : vector<8x256xf32>
    %382 = arith.mulf %375, %381 : vector<8x256xf32>
    %383 = arith.truncf %382 : vector<8x256xf32> to vector<8x256xbf16>
    %c0_136 = arith.constant 0 : index
    %c0_137 = arith.constant 0 : index
    %384 = vector.load %arg4[%c0_136, %c0_137] : memref<256x512xbf16, #tpu.memory_space<vmem>>, vector<256x512xbf16>
    %cst_138 = arith.constant dense<0.000000e+00> : vector<8x512xf32>
    %385 = tpu.matmul %383, %384, %cst_138 {dimension_numbers = #tpu.dot_dimension_numbers<[1], [0], [0], [1], [0, 0, 1, 1], [], []>} : vector<8x256xbf16>, vector<256x512xbf16>, vector<8x512xf32> -> vector<8x512xf32>
    %386 = arith.addf %359, %385 : vector<8x512xf32>
    %387 = arith.addf %386, %9 : vector<8x512xf32>
    %388 = vector.extract_strided_slice %387 {offsets = [0, 0], sizes = [8, 384], strides = [1, 1]} : vector<8x512xf32> to vector<8x384xf32>
    %cst_139 = arith.constant 5.000000e-01 : f32
    %389 = vector.broadcast %cst_139 : f32 to vector<8x384xf32>
    %390 = arith.mulf %389, %388 : vector<8x384xf32>
    %391 = math.tanh %390 : vector<8x384xf32>
    %cst_140 = arith.constant 5.000000e-01 : f32
    %392 = vector.broadcast %cst_140 : f32 to vector<8x384xf32>
    %393 = arith.mulf %392, %391 : vector<8x384xf32>
    %cst_141 = arith.constant 5.000000e-01 : f32
    %394 = vector.broadcast %cst_141 : f32 to vector<8x384xf32>
    %395 = arith.addf %393, %394 : vector<8x384xf32>
    %396 = vector.extract_strided_slice %395 {offsets = [0, 0], sizes = [8, 128], strides = [1, 1]} : vector<8x384xf32> to vector<8x128xf32>
    %397 = vector.extract_strided_slice %395 {offsets = [0, 128], sizes = [8, 128], strides = [1, 1]} : vector<8x384xf32> to vector<8x128xf32>
    %398 = vector.extract_strided_slice %395 {offsets = [0, 256], sizes = [8, 128], strides = [1, 1]} : vector<8x384xf32> to vector<8x128xf32>
    %399 = vector.extract_strided_slice %387 {offsets = [0, 384], sizes = [8, 128], strides = [1, 1]} : vector<8x512xf32> to vector<8x128xf32>
    %400 = math.tanh %399 : vector<8x128xf32>
    %401 = arith.mulf %397, %354 : vector<8x128xf32>
    %402 = arith.mulf %396, %400 : vector<8x128xf32>
    %403 = arith.addf %401, %402 : vector<8x128xf32>
    %404 = math.tanh %403 : vector<8x128xf32>
    %405 = arith.mulf %398, %404 : vector<8x128xf32>
    %c0_142 = arith.constant 0 : index
    %c0_143 = arith.constant 0 : index
    %406 = vector.load %arg7[%c0_142, %c0_143] : memref<128x1xf32, #tpu.memory_space<vmem>>, vector<128x1xf32>
    %cst_144 = arith.constant dense<0.000000e+00> : vector<8x1xf32>
    %407 = tpu.matmul %405, %406, %cst_144 {dimension_numbers = #tpu.dot_dimension_numbers<[1], [0], [0], [1], [0, 0, 1, 1], [], []>} : vector<8x128xf32>, vector<128x1xf32>, vector<8x1xf32> -> vector<8x1xf32>
    %c0_145 = arith.constant 0 : index
    %c0_146 = arith.constant 0 : index
    %408 = vector.load %arg8[%c0_145, %c0_146] : memref<1x1xf32, #tpu.memory_space<vmem>>, vector<1x1xf32>
    %409 = vector.broadcast %408 : vector<1x1xf32> to vector<8x1xf32>
    %410 = arith.addf %407, %409 : vector<8x1xf32>
    %c0_147 = arith.constant 0 : index
    %c0_148 = arith.constant 0 : index
    %411 = vector.load %arg9[%c0_147, %c0_148] : memref<8x1xf32, #tpu.memory_space<vmem>>, vector<8x1xf32>
    tpu.vector_store %arg9[%c0_147, %c0_148], %410 {strides = array<i32>} : memref<8x1xf32, #tpu.memory_space<vmem>>, vector<8x1xf32>,
    return
  }
}

</mosaic_0001>

<bundles_post_ra>
// kernel: lstm_forward.1
= control target key start
LH: loop header
LB: loop body
LE: loop exit
PB: predicated region body
PF: predicated region fallthrough
CT: control target
= control target key end

     0   :  { %s10276_s0 = inlined_call_operand.vmem [shape: bf16[64,32], index: 0, kind: input, shape index: {}]   ;;  %s10277_s1 = inlined_call_operand.vmem [shape: bf16[32,1024], index: 1, kind: input, shape index: {}]   ;;  %s10278_s2 = inlined_call_operand.vmem [shape: f32[1,1024], index: 2, kind: input, shape index: {}]   ;;  %s10279_s3 = inlined_call_operand.hbm [shape: bf16[256,1024], index: 3, kind: input, shape index: {}]   ;;  %s10280_s4 = inlined_call_operand.hbm [shape: bf16[256,512], index: 4, kind: input, shape index: {}]   ;;  %s10281_s5 = inlined_call_operand.hbm [shape: bf16[128,512], index: 5, kind: input, shape index: {}]   ;;  %s10282_s6 = inlined_call_operand.vmem [shape: f32[1,512], index: 6, kind: input, shape index: {}]   ;;  %s10283_s7 = inlined_call_operand.vmem [shape: f32[128,1], index: 7, kind: input, shape index: {}]   ;;  %s10284_s8 = inlined_call_operand.<no memory space> [shape: f32[1,1], index: 8, kind: input, shape index: {}]   ;;  %s10285_s9 = inlined_call_operand.vmem [shape: f32[8,1], index: 9, kind: output, shape index: {}]  }
   0x1   :  { %v14_v0 = vstv %s10284_s8 }
   0x2   :  { %15 = vst [vmem:[#allocation3] sm:$0x1] %v14_v0 }
   0x3   :  { %16 = vsyncpa [#allocation5], 0 }
   0x4   :  { %17 = vsyncpa [#allocation7], 0  ;;  %s41_s13 = sshll.u32 %s10280_s4, 4  ;;  %s7041_s14 = smov [#allocation6]   ;;  %s42_s13 = int_to_ptr.hbm [resolvable:$true] %s41_s13 }
   0x5   :  { %s43_s15 = sshll.u32 %s7041_s14, 4  ;;  %s28_s18 = sshll.u32 %s10279_s3, 4  ;;  %s44_s15 = int_to_ptr.vmem [resolvable:$true] %s43_s15  ;;  %s29_s18 = int_to_ptr.hbm [resolvable:$true] %s28_s18 }
   0x6   :  { %s7042_s19 = smov 256   ;;  %s7043_s20 = smov 16  }
   0x7   :  { %49 = dma.hbm_to_vmem [thread:$0]  %s42_s13, 8192, %s44_s15, [#allocation7], %s7042_s19, %s7042_s19, %s7043_s20  }
   0x8   :  { %s7044_s8 = smov [#allocation4]   ;;  %s7045_s22 = smov 512  }
   0x9   :  { %s30_s21 = sshll.u32 %s7044_s8, 4  ;;  %s7046_s23 = smov 32   ;;  %s31_s21 = int_to_ptr.vmem [resolvable:$true] %s30_s21 }
   0xa   :  { %36 = dma.hbm_to_vmem [thread:$0]  %s29_s18, 16384, %s31_s21, [#allocation5], %s7045_s22, %s7045_s22, %s7046_s23  }
   0xb   :  { %s54_s25 = sshll.u32 %s10281_s5, 4  ;;  %s7047_s26 = smov [#allocation8]   ;;  %s55_s25 = int_to_ptr.hbm [resolvable:$true] %s54_s25 }
   0xc   :  { %s56_s27 = sshll.u32 %s7047_s26, 4  ;;  %s57_s27 = int_to_ptr.vmem [resolvable:$true] %s56_s27 }
   0xd   :  { %62 = dma.hbm_to_vmem [thread:$0]  %s55_s25, 4096, %s57_s27, [#allocation7], %s7042_s19, %s7042_s19, %s7043_s20  }
   0xe   :  { %7037 = dma.done.wait [#allocation5], 16384  }
   0xf   :  { %7038 = vsyncadd [#allocation5], 4294950912 }
  0x10   :  { %7039 = dma.done.wait [#allocation7], 12288  }
  0x11   :  { %7040 = vsyncadd [#allocation7], 4294955008  ;;  %v5512_v1 = vld [vmem:[%s10277_s1 + $0x40] sm:$0xf]  ;;  %v5520_v3 = vld [vmem:[%s10277_s1 + $0x48] sm:$0xf] }
  0x12   :  { %v6486_v2 = vld [vmem:[%s10277_s1 + $0x5c] sm:$0xf0]  ;;  %v6487_v5 = vld [vmem:[%s10277_s1 + $0x64] sm:$0xf0]  ;;  %v6483_v6 = vld [vmem:[%s10277_s1 + $0x4c] sm:$0xf] }
  0x13   :  { %v5513_v4 = vor.u32 %v6486_v2, %v5512_v1  ;;  %v5522_v7 = vld [vmem:[%s10277_s1 + $0x68] sm:$0xf0]  ;;  %v5521_v8 = vor.u32 %v6487_v5, %v5520_v3  ;;  %v5480_v10 = vld [vmem:[%s10277_s1] sm:$0xf]  ;;  %v5488_v12 = vld [vmem:[%s10277_s1 + $0x8] sm:$0xf] }
  0x14   :  { %v5525_v9 = vor.u32 %v6483_v6, %v5522_v7  ;;  %v6478_v11 = vld [vmem:[%s10277_s1 + $0x1c] sm:$0xf0]  ;;  %v6479_v14 = vld [vmem:[%s10277_s1 + $0x24] sm:$0xf0]  ;;  %v6475_v15 = vld [vmem:[%s10277_s1 + $0xc] sm:$0xf] }
  0x15   :  { %6714 = vmatpush.bf16.msra.mxu1 %v5513_v4  ;;  %v5481_v13 = vor.u32 %v6478_v11, %v5480_v10  ;;  %v5490_v16 = vld [vmem:[%s10277_s1 + $0x28] sm:$0xf0]  ;;  %243 = vmatpush.bf16.msra.mxu0 %v5513_v4  ;;  %v5489_v17 = vor.u32 %v6479_v14, %v5488_v12  ;;  %v6482_v19 = vld [vmem:[%s10277_s1 + $0x44] sm:$0xf]  ;;  %v7153_v20 = vld [vmem:[%s10276_s0 + $0x18] sm:$0xff]  ;;  %vm224_vm0 = vcmask 261120  }
  0x16   :  { %301 = vmatpush.bf16.msra.mxu2 %v5521_v8  ;;  %330 = vmatpush.bf16.msra.mxu3 %v5525_v9  ;;  %v5493_v18 = vor.u32 %v6475_v15, %v5490_v16  ;;  %v5514_v21 = vld [vmem:[%s10277_s1 + $0x60] sm:$0xf0]  ;;  %v7180_v27 = vld [vmem:[%s10276_s0 + $0x8] sm:$0xff]  ;;  %v5536_v28 = vld [vmem:[%s10277_s1 + $0x58] sm:$0xf]  ;;  %vm5454_vm1 = vcmask 7168  }
  0x17   :  { %v5517_v22 = vor.u32 %v6482_v19, %v5514_v21  ;;  %v6474_v23 = vld [vmem:[%s10277_s1 + $0x4] sm:$0xf]  ;;  %v6489_v29 = vld [vmem:[%s10277_s1 + $0x74] sm:$0xf0]  ;;  %v6485_v30 = vld [vmem:[%s10277_s1 + $0x5c] sm:$0xf] }
  0x18   :  { %v5482_v24 = vld [vmem:[%s10277_s1 + $0x20] sm:$0xf0]  ;;  %v5537_v31 = vor.u32 %v6489_v29, %v5536_v28  ;;  %v5538_v32 = vld [vmem:[%s10277_s1 + $0x78] sm:$0xf0]  ;;  %v5504_v33 = vld [vmem:[%s10277_s1 + $0x18] sm:$0xf] }
  0x19   :  { %6715 = vmatpush.bf16.msra.mxu1 %v5481_v13  ;;  %v7167_v25 = vld [vmem:[%s10276_s0] sm:$0xff]  ;;  %244 = vmatpush.bf16.msra.mxu0 %v5481_v13  ;;  %v5485_v26 = vor.u32 %v6474_v23, %v5482_v24  ;;  %v6481_v34 = vld [vmem:[%s10277_s1 + $0x34] sm:$0xf0]  ;;  %v5541_v35 = vor.u32 %v6485_v30, %v5538_v32  ;;  %v6477_v36 = vld [vmem:[%s10277_s1 + $0x1c] sm:$0xf] }
  0x1a   :  { %302 = vmatpush.bf16.msra.mxu2 %v5489_v17  ;;  %331 = vmatpush.bf16.msra.mxu3 %v5493_v18  ;;  %v5506_v37 = vld [vmem:[%s10277_s1 + $0x38] sm:$0xf0]  ;;  %v5505_v38 = vor.u32 %v6481_v34, %v5504_v33  ;;  %v7217_v40 = vld [vmem:[%s10276_s0 + $0x10] sm:$0xff]  ;;  %v6578_v46 = vld [vmem:[#allocation4 + $0x1c4] sm:$0xf] }
  0x1b   :  { %v5509_v39 = vor.u32 %v6477_v36, %v5506_v37  ;;  %v5528_v41 = vld [vmem:[%s10277_s1 + $0x50] sm:$0xf]  ;;  %v5802_v48 = vld [vmem:[#allocation4 + $0x1e0] sm:$0xf0]  ;;  %v6484_v53 = vld [vmem:[%s10277_s1 + $0x54] sm:$0xf] }
  0x1c   :  { %5545 = vmatmul.msk.bf16.vlgmr.msra.gmra.mxu1 %vm224_vm0, %v7153_v20  ;;  %5542 = vmatmul.msk.bf16.vlgmr.msra.gmra.mxu0 %vm224_vm0, %v7167_v25  ;;  %v6488_v42 = vld [vmem:[%s10277_s1 + $0x6c] sm:$0xf0]  ;;  %v6642_v49 = vld [vmem:[#allocation4 + $0x3c4] sm:$0xf]  ;;  %v7239_v51 = vor.u32 %v6578_v46, %v5802_v48  ;;  %v5530_v54 = vld [vmem:[%s10277_s1 + $0x70] sm:$0xf0] }
  0x1d   :  { %272 = vmatpush.bf16.msrb.mxu1 %v5517_v22  ;;  %5550 = vmatmul.msk.bf16.vlgmr.msra.gmra.mxu2 %vm224_vm0, %v7167_v25  ;;  %v5529_v43 = vor.u32 %v6488_v42, %v5528_v41  ;;  %v5496_v44 = vld [vmem:[%s10277_s1 + $0x10] sm:$0xf]  ;;  %v6058_v50 = vld [vmem:[#allocation4 + $0x3e0] sm:$0xf0]  ;;  %v5533_v56 = vor.u32 %v6484_v53, %v5530_v54  ;;  %v6476_v62 = vld [vmem:[%s10277_s1 + $0x14] sm:$0xf] }
  0x1e   :  { %5554 = vmatmul.msk.bf16.vlgmr.msra.gmra.mxu3 %vm224_vm0, %v7167_v25  ;;  %417 = vmatpush.bf16.msrb.mxu2 %v5537_v31  ;;  %v6480_v45 = vld [vmem:[%s10277_s1 + $0x2c] sm:$0xf0]  ;;  %v7241_v52 = vor.u32 %v6642_v49, %v6058_v50  ;;  %v6570_v55 = vld [vmem:[#allocation4 + $0x184] sm:$0xf]  ;;  %v5498_v63 = vld [vmem:[%s10277_s1 + $0x30] sm:$0xf0] }
  0x1f   :  { %446 = vmatpush.bf16.msrb.mxu3 %v5541_v35  ;;  %359 = vmatpush.bf16.msrb.mxu0 %v5529_v43  ;;  %v5497_v47 = vor.u32 %v6480_v45, %v5496_v44  ;;  %v5770_v57 = vld [vmem:[#allocation4 + $0x1a0] sm:$0xf0]  ;;  %v5800_v0 = vld [vmem:[#allocation4 + $0x1c0] sm:$0xf]  ;;  %v5501_v1 = vor.u32 %v6476_v62, %v5498_v63 }
  0x20   :  { %10738 = vst [vmem:[#allocation11_spill] sm:$0xff] %v7241_v52  ;;  %v6634_v58 = vld [vmem:[#allocation4 + $0x384] sm:$0xf]  ;;  %v7251_v60 = vor.u32 %v6570_v55, %v5770_v57  ;;  %v6582_v2 = vld [vmem:[#allocation4 + $0x1dc] sm:$0xf0] }
  0x21   :  { %273 = vmatpush.bf16.msrb.mxu1 %v5485_v26  ;;  %v6026_v59 = vld [vmem:[#allocation4 + $0x3a0] sm:$0xf0]  ;;  %v7261_v5 = vor.u32 %v6582_v2, %v5800_v0  ;;  %v5768_v10 = vld [vmem:[#allocation4 + $0x180] sm:$0xf] }
  0x22   :  { %418 = vmatpush.bf16.msrb.mxu2 %v5505_v38  ;;  %10739 = vst [vmem:[#allocation12_spill] sm:$0xff] %v7251_v60  ;;  %v7253_v61 = vor.u32 %v6634_v58, %v6026_v59  ;;  %v6562_v3 = vld [vmem:[#allocation4 + $0x144] sm:$0xf]  ;;  %v6574_v11 = vld [vmem:[#allocation4 + $0x19c] sm:$0xf0] }
  0x23   :  { %447 = vmatpush.bf16.msrb.mxu3 %v5509_v39  ;;  %360 = vmatpush.bf16.msrb.mxu0 %v5497_v47  ;;  %v5738_v4 = vld [vmem:[#allocation4 + $0x160] sm:$0xf0]  ;;  %v7280_v13 = vor.u32 %v6574_v11, %v5768_v10  ;;  %v5736_v19 = vld [vmem:[#allocation4 + $0x140] sm:$0xf] }
  0x24   :  { %10740 = vst [vmem:[#allocation13_spill] sm:$0xff] %v7253_v61  ;;  %v6626_v6 = vld [vmem:[#allocation4 + $0x344] sm:$0xf]  ;;  %v7265_v8 = vor.u32 %v6562_v3, %v5738_v4  ;;  %v6566_v21 = vld [vmem:[#allocation4 + $0x15c] sm:$0xf0] }
  0x25   :  { %388 = vmatpush.bf16.msra.mxu1 %v5533_v56  ;;  %v5994_v7 = vld [vmem:[#allocation4 + $0x360] sm:$0xf0]  ;;  %10743 = vst [vmem:[#allocation16_spill] sm:$0xff] %v7280_v13  ;;  %v6056_v22 = vld [vmem:[#allocation4 + $0x3c0] sm:$0xf]  ;;  %v7287_v23 = vor.u32 %v6566_v21, %v5736_v19 }
  0x26   :  { %1377 = vmatpush.bf16.msra.mxu2 %v7239_v51  ;;  %10741 = vst [vmem:[#allocation14_spill] sm:$0xff] %v7265_v8  ;;  %v7267_v9 = vor.u32 %v6626_v6, %v5994_v7  ;;  %v6554_v12 = vld [vmem:[#allocation4 + $0x104] sm:$0xf]  ;;  %v6646_v24 = vld [vmem:[#allocation4 + $0x3dc] sm:$0xf0] }
  0x27   :  { %1390 = vmatpush.bf16.msra.mxu3 %v7241_v52  ;;  %1351 = vmatpush.bf16.msra.mxu0 %v7261_v5  ;;  %v5706_v14 = vld [vmem:[#allocation4 + $0x120] sm:$0xf0]  ;;  %10746 = vst [vmem:[#allocation19_spill] sm:$0xff] %v7287_v23  ;;  %v7291_v29 = vor.u32 %v6646_v24, %v6056_v22  ;;  %v5704_v33 = vld [vmem:[#allocation4 + $0x100] sm:$0xf] }
  0x28   :  { %10742 = vst [vmem:[#allocation15_spill] sm:$0xff] %v7267_v9  ;;  %v6618_v15 = vld [vmem:[#allocation4 + $0x304] sm:$0xf]  ;;  %v7282_v17 = vor.u32 %v6554_v12, %v5706_v14  ;;  %v6558_v35 = vld [vmem:[#allocation4 + $0x11c] sm:$0xf0] }
  0x29   :  { %389 = vmatpush.bf16.msra.mxu1 %v5501_v1  ;;  %v5962_v16 = vld [vmem:[#allocation4 + $0x320] sm:$0xf0]  ;;  %10747 = vst [vmem:[#allocation20_spill] sm:$0xff] %v7291_v29  ;;  %v6024_v36 = vld [vmem:[#allocation4 + $0x380] sm:$0xf]  ;;  %v7301_v43 = vor.u32 %v6558_v35, %v5704_v33 }
  0x2a   :  { %1378 = vmatpush.bf16.msra.mxu2 %v7251_v60  ;;  %10744 = vst [vmem:[#allocation17_spill] sm:$0xff] %v7282_v17  ;;  %v7284_v18 = vor.u32 %v6618_v15, %v5962_v16  ;;  %v6546_v26 = vld [vmem:[#allocation4 + $0xc4] sm:$0xf]  ;;  %v6638_v37 = vld [vmem:[#allocation4 + $0x39c] sm:$0xf0] }
  0x2b   :  { %1391 = vmatpush.bf16.msra.mxu3 %v7253_v61  ;;  %1352 = vmatpush.bf16.msra.mxu0 %v7280_v13  ;;  %v5674_v28 = vld [vmem:[#allocation4 + $0xe0] sm:$0xf0]  ;;  %v7298_v38 = vor.u32 %v6638_v37, %v6024_v36  ;;  %10751 = vst [vmem:[#allocation24_spill] sm:$0xff] %v7301_v43  ;;  %v5672_v45 = vld [vmem:[#allocation4 + $0xc0] sm:$0xf] }
  0x2c   :  { %5546 = vmatmul.msk.bf16.vlgmr.msrb.gmra.mxu1 %vm224_vm0, %v7167_v25  ;;  %5543 = vmatmul.msk.bf16.gmra.mxu0 %vm224_vm0, %v7180_v27  ;;  %10745 = vst [vmem:[#allocation18_spill] sm:$0xff] %v7284_v18  ;;  %v7293_v30 = vor.u32 %v6546_v26, %v5674_v28  ;;  %v6610_v31 = vld [vmem:[#allocation4 + $0x2c4] sm:$0xf]  ;;  %v6550_v48 = vld [vmem:[#allocation4 + $0xdc] sm:$0xf0] }
  0x2d   :  { %5551 = vmatmul.msk.bf16.gmra.mxu2 %vm224_vm0, %v7180_v27  ;;  %v5930_v32 = vld [vmem:[#allocation4 + $0x2e0] sm:$0xf0]  ;;  %1364 = vmatpush.bf16.msrb.mxu1 %v7291_v29  ;;  %10750 = vst [vmem:[#allocation23_spill] sm:$0xff] %v7298_v38  ;;  %v5992_v49 = vld [vmem:[#allocation4 + $0x340] sm:$0xf]  ;;  %v7313_v55 = vor.u32 %v6550_v48, %v5672_v45 }
  0x2e   :  { %5555 = vmatmul.msk.bf16.gmra.mxu3 %vm224_vm0, %v7180_v27  ;;  %1379 = vmatpush.bf16.msra.mxu2 %v7265_v8  ;;  %10748 = vst [vmem:[#allocation21_spill] sm:$0xff] %v7293_v30  ;;  %v7295_v34 = vor.u32 %v6610_v31, %v5930_v32  ;;  %v6538_v39 = vld [vmem:[#allocation4 + $0x84] sm:$0xf]  ;;  %v6630_v50 = vld [vmem:[#allocation4 + $0x35c] sm:$0xf0] }
  0x2f   :  { %1392 = vmatpush.bf16.msra.mxu3 %v7267_v9  ;;  %v5642_v41 = vld [vmem:[#allocation4 + $0xa0] sm:$0xf0]  ;;  %1353 = vmatpush.bf16.msra.mxu0 %v7287_v23  ;;  %v7310_v53 = vor.u32 %v6630_v50, %v5992_v49  ;;  %10755 = vst [vmem:[#allocation28_spill] sm:$0xff] %v7313_v55  ;;  %v5640_v63 = vld [vmem:[#allocation4 + $0x80] sm:$0xf] }
  0x30   :  { %10749 = vst [vmem:[#allocation22_spill] sm:$0xff] %v7295_v34  ;;  %v6602_v42 = vld [vmem:[#allocation4 + $0x284] sm:$0xf]  ;;  %v7305_v46 = vor.u32 %v6538_v39, %v5642_v41  ;;  %v6542_v0 = vld [vmem:[#allocation4 + $0x9c] sm:$0xf0] }
  0x31   :  { %v5898_v44 = vld [vmem:[#allocation4 + $0x2a0] sm:$0xf0]  ;;  %1365 = vmatpush.bf16.msrb.mxu1 %v7298_v38  ;;  %10754 = vst [vmem:[#allocation27_spill] sm:$0xff] %v7310_v53  ;;  %v5960_v1 = vld [vmem:[#allocation4 + $0x300] sm:$0xf]  ;;  %v7331_v2 = vor.u32 %v6542_v0, %v5640_v63 }
  0x32   :  { %1380 = vmatpush.bf16.msra.mxu2 %v7282_v17  ;;  %10752 = vst [vmem:[#allocation25_spill] sm:$0xff] %v7305_v46  ;;  %v7307_v47 = vor.u32 %v6602_v42, %v5898_v44  ;;  %v6530_v54 = vld [vmem:[#allocation4 + $0x44] sm:$0xf]  ;;  %v6622_v3 = vld [vmem:[#allocation4 + $0x31c] sm:$0xf0] }
  0x33   :  { %1393 = vmatpush.bf16.msra.mxu3 %v7284_v18  ;;  %1354 = vmatpush.bf16.msra.mxu0 %v7301_v43  ;;  %v5610_v56 = vld [vmem:[#allocation4 + $0x60] sm:$0xf0]  ;;  %10758 = vst [vmem:[#allocation31_spill] sm:$0xff] %v7331_v2  ;;  %v7335_v7 = vor.u32 %v6622_v3, %v5960_v1  ;;  %v6579_v14 = vld [vmem:[#allocation4 + $0x1cc] sm:$0xf] }
  0x34   :  { %10753 = vst [vmem:[#allocation26_spill] sm:$0xff] %v7307_v47  ;;  %v6594_v57 = vld [vmem:[#allocation4 + $0x244] sm:$0xf]  ;;  %v7318_v59 = vor.u32 %v6530_v54, %v5610_v56  ;;  %v5810_v16 = vld [vmem:[#allocation4 + $0x1e8] sm:$0xf0] }
  0x35   :  { %v5866_v58 = vld [vmem:[#allocation4 + $0x260] sm:$0xf0]  ;;  %1366 = vmatpush.bf16.msrb.mxu1 %v7310_v53  ;;  %10759 = vst [vmem:[#allocation32_spill] sm:$0xff] %v7335_v7  ;;  %v6643_v19 = vld [vmem:[#allocation4 + $0x3cc] sm:$0xf]  ;;  %v7343_v22 = vor.u32 %v6579_v14, %v5810_v16 }
  0x36   :  { %1381 = vmatpush.bf16.msra.mxu2 %v7293_v30  ;;  %10756 = vst [vmem:[#allocation29_spill] sm:$0xff] %v7318_v59  ;;  %v7320_v62 = vor.u32 %v6594_v57, %v5866_v58  ;;  %v6522_v4 = vld [vmem:[#allocation4 + $0x4] sm:$0xf]  ;;  %v6066_v21 = vld [vmem:[#allocation4 + $0x3e8] sm:$0xf0] }
  0x37   :  { %1394 = vmatpush.bf16.msra.mxu3 %v7295_v34  ;;  %1355 = vmatpush.bf16.msra.mxu0 %v7313_v55  ;;  %v5578_v6 = vld [vmem:[#allocation4 + $0x20] sm:$0xf0]  ;;  %10762 = vst [vmem:[#allocation35_spill] sm:$0xff] %v7343_v22  ;;  %v7345_v24 = vor.u32 %v6643_v19, %v6066_v21  ;;  %v5608_v26 = vld [vmem:[#allocation4 + $0x40] sm:$0xf] }
  0x38   :  { %10757 = vst [vmem:[#allocation30_spill] sm:$0xff] %v7320_v62  ;;  %v7337_v10 = vor.u32 %v6522_v4, %v5578_v6  ;;  %v6586_v11 = vld [vmem:[#allocation4 + $0x204] sm:$0xf]  ;;  %v6534_v28 = vld [vmem:[#allocation4 + $0x5c] sm:$0xf0] }
  0x39   :  { %v5834_v12 = vld [vmem:[#allocation4 + $0x220] sm:$0xf0]  ;;  %1367 = vmatpush.bf16.msrb.mxu1 %v7335_v7  ;;  %10763 = vst [vmem:[#allocation36_spill] sm:$0xff] %v7345_v24  ;;  %v5928_v31 = vld [vmem:[#allocation4 + $0x2c0] sm:$0xf]  ;;  %v7347_v32 = vor.u32 %v6534_v28, %v5608_v26 }
  0x3a   :  { %1382 = vmatpush.bf16.msra.mxu2 %v7305_v46  ;;  %10760 = vst [vmem:[#allocation33_spill] sm:$0xff] %v7337_v10  ;;  %v7340_v15 = vor.u32 %v6586_v11, %v5834_v12  ;;  %v6614_v33 = vld [vmem:[#allocation4 + $0x2dc] sm:$0xf0]  ;;  %v6571_v35 = vld [vmem:[#allocation4 + $0x18c] sm:$0xf] }
  0x3b   :  { %1395 = vmatpush.bf16.msra.mxu3 %v7307_v47  ;;  %1356 = vmatpush.bf16.msra.mxu0 %v7331_v2  ;;  %10764 = vst [vmem:[#allocation37_spill] sm:$0xff] %v7347_v32  ;;  %v5778_v36 = vld [vmem:[#allocation4 + $0x1a8] sm:$0xf0]  ;;  %v7351_v37 = vor.u32 %v6614_v33, %v5928_v31  ;;  %v5576_v42 = vld [vmem:[#allocation4] sm:$0xf] }
  0x3c   :  { %5547 = vmatmul.msk.bf16.gmra.mxu1 %vm224_vm0, %v7180_v27  ;;  %5544 = vmatmul.msk.bf16.gmra.mxu0 %vm224_vm0, %v7217_v40  ;;  %10761 = vst [vmem:[#allocation34_spill] sm:$0xff] %v7340_v15  ;;  %v6635_v39 = vld [vmem:[#allocation4 + $0x38c] sm:$0xf]  ;;  %v7355_v44 = vor.u32 %v6571_v35, %v5778_v36  ;;  %v6526_v48 = vld [vmem:[#allocation4 + $0x1c] sm:$0xf0] }
  0x3d   :  { %5552 = vmatmul.msk.bf16.gmra.mxu2 %vm224_vm0, %v7217_v40  ;;  %10765 = vst [vmem:[#allocation38_spill] sm:$0xff] %v7351_v37  ;;  %v6034_v41 = vld [vmem:[#allocation4 + $0x3a8] sm:$0xf0]  ;;  %v5896_v49 = vld [vmem:[#allocation4 + $0x280] sm:$0xf]  ;;  %1368 = vmatpush.bf16.msrb.mxu1 %v7351_v37  ;;  %v7361_v54 = vor.u32 %v6526_v48, %v5576_v42 }
  0x3e   :  { %5556 = vmatmul.msk.bf16.gmra.mxu3 %vm224_vm0, %v7217_v40  ;;  %1383 = vmatpush.bf16.msra.mxu2 %v7318_v59  ;;  %10766 = vst [vmem:[#allocation39_spill] sm:$0xff] %v7355_v44  ;;  %v7357_v45 = vor.u32 %v6635_v39, %v6034_v41  ;;  %v6606_v50 = vld [vmem:[#allocation4 + $0x29c] sm:$0xf0]  ;;  %v5808_v57 = vld [vmem:[#allocation4 + $0x1c8] sm:$0xf] }
  0x3f   :  { %1396 = vmatpush.bf16.msra.mxu3 %v7320_v62  ;;  %1357 = vmatpush.bf16.msra.mxu0 %v7347_v32  ;;  %10768 = vst [vmem:[#allocation41_spill] sm:$0xff] %v7361_v54  ;;  %v7363_v56 = vor.u32 %v6606_v50, %v5896_v49  ;;  %v6583_v58 = vld [vmem:[#allocation4 + $0x1e4] sm:$0xf0]  ;;  %v6563_v63 = vld [vmem:[#allocation4 + $0x14c] sm:$0xf] }
  0x40   :  { %10767 = vst [vmem:[#allocation40_spill] sm:$0xff] %v7357_v45  ;;  %v7365_v0 = vor.u32 %v6583_v58, %v5808_v57  ;;  %v5746_v1 = vld [vmem:[#allocation4 + $0x168] sm:$0xf0]  ;;  %v5864_v6 = vld [vmem:[#allocation4 + $0x240] sm:$0xf] }
  0x41   :  { %10769 = vst [vmem:[#allocation42_spill] sm:$0xff] %v7363_v56  ;;  %v6627_v3 = vld [vmem:[#allocation4 + $0x34c] sm:$0xf]  ;;  %v6598_v11 = vld [vmem:[#allocation4 + $0x25c] sm:$0xf0]  ;;  %v7369_v12 = vor.u32 %v6563_v63, %v5746_v1  ;;  %1369 = vmatpush.bf16.msrb.mxu1 %v7363_v56 }
  0x42   :  { %1384 = vmatpush.bf16.msra.mxu2 %v7337_v10  ;;  %10770 = vst [vmem:[#allocation43_spill] sm:$0xff] %v7365_v0  ;;  %v6002_v4 = vld [vmem:[#allocation4 + $0x368] sm:$0xf0]  ;;  %v5776_v16 = vld [vmem:[#allocation4 + $0x188] sm:$0xf]  ;;  %v7376_v33 = vor.u32 %v6598_v11, %v5864_v6 }
  0x43   :  { %1397 = vmatpush.bf16.msra.mxu3 %v7340_v15  ;;  %10771 = vst [vmem:[#allocation44_spill] sm:$0xff] %v7369_v12  ;;  %v7371_v14 = vor.u32 %v6627_v3, %v6002_v4  ;;  %v6575_v19 = vld [vmem:[#allocation4 + $0x1a4] sm:$0xf0]  ;;  %v6555_v21 = vld [vmem:[#allocation4 + $0x10c] sm:$0xf]  ;;  %1358 = vmatpush.bf16.msra.mxu0 %v7361_v54 }
  0x44   :  { %v5714_v26 = vld [vmem:[#allocation4 + $0x128] sm:$0xf0]  ;;  %10773 = vst [vmem:[#allocation46_spill] sm:$0xff] %v7376_v33  ;;  %v7378_v35 = vor.u32 %v6575_v19, %v5776_v16  ;;  %v5832_v41 = vld [vmem:[#allocation4 + $0x200] sm:$0xf] }
  0x45   :  { %10772 = vst [vmem:[#allocation45_spill] sm:$0xff] %v7371_v14  ;;  %v6619_v28 = vld [vmem:[#allocation4 + $0x30c] sm:$0xf]  ;;  %v7382_v36 = vor.u32 %v6555_v21, %v5714_v26  ;;  %v6590_v42 = vld [vmem:[#allocation4 + $0x21c] sm:$0xf0]  ;;  %1370 = vmatpush.bf16.msrb.mxu1 %v7376_v33 }
  0x46   :  { %v5970_v31 = vld [vmem:[#allocation4 + $0x328] sm:$0xf0]  ;;  %10774 = vst [vmem:[#allocation47_spill] sm:$0xff] %v7378_v35  ;;  %v5744_v48 = vld [vmem:[#allocation4 + $0x148] sm:$0xf]  ;;  %v7396_v57 = vor.u32 %v6590_v42, %v5832_v41 }
  0x47   :  { %10775 = vst [vmem:[#allocation48_spill] sm:$0xff] %v7382_v36  ;;  %v7384_v39 = vor.u32 %v6619_v28, %v5970_v31  ;;  %v6567_v49 = vld [vmem:[#allocation4 + $0x164] sm:$0xf0]  ;;  %v6547_v63 = vld [vmem:[#allocation4 + $0xcc] sm:$0xf] }
  0x48   :  { %v6064_v50 = vld [vmem:[#allocation4 + $0x3c8] sm:$0xf]  ;;  %10777 = vst [vmem:[#allocation50_spill] sm:$0xff] %v7396_v57  ;;  %v5682_v1 = vld [vmem:[#allocation4 + $0xe8] sm:$0xf0] }
  0x49   :  { %10776 = vst [vmem:[#allocation49_spill] sm:$0xff] %v7384_v39  ;;  %v6647_v58 = vld [vmem:[#allocation4 + $0x3e4] sm:$0xf0]  ;;  %v7404_v4 = vor.u32 %v6547_v63, %v5682_v1  ;;  %v6611_v6 = vld [vmem:[#allocation4 + $0x2cc] sm:$0xf]  ;;  %1371 = vmatpush.bf16.msrb.mxu1 %v7396_v57 }
  0x4a   :  { %v7402_v3 = vor.u32 %v6647_v58, %v6064_v50  ;;  %v5938_v11 = vld [vmem:[#allocation4 + $0x2e8] sm:$0xf0]  ;;  %v5712_v16 = vld [vmem:[#allocation4 + $0x108] sm:$0xf]  ;;  %v6612_v10 = vld [vmem:[#allocation4 + $0x2d4] sm:$0xf] }
  0x4b   :  { %10780 = vst [vmem:[#allocation53_spill] sm:$0xff] %v7404_v4  ;;  %v7406_v19 = vor.u32 %v6611_v6, %v5938_v11  ;;  %v6559_v21 = vld [vmem:[#allocation4 + $0x124] sm:$0xf0]  ;;  %v6539_v31 = vld [vmem:[#allocation4 + $0x8c] sm:$0xf] }
  0x4c   :  { %5548 = vmatmul.msk.bf16.gmra.mxu1 %vm224_vm0, %v7217_v40  ;;  %5558 = vmatmul.msk.bf16.vlgmr.msrb.gmra.mxu0 %vm224_vm0, %v7167_v25  ;;  %10779 = vst [vmem:[#allocation52_spill] sm:$0xff] %v7402_v3  ;;  %v6032_v26 = vld [vmem:[#allocation4 + $0x388] sm:$0xf]  ;;  %v5650_v41 = vld [vmem:[#allocation4 + $0xa8] sm:$0xf0] }
  0x4d   :  { %5553 = vmatmul.msk.bf16.gmra.mxu2 %vm224_vm0, %v7153_v20  ;;  %1403 = vmatpush.bf16.msrb.mxu0 %v7365_v0  ;;  %10781 = vst [vmem:[#allocation54_spill] sm:$0xff] %v7406_v19  ;;  %v6639_v28 = vld [vmem:[#allocation4 + $0x3a4] sm:$0xf0]  ;;  %v6603_v42 = vld [vmem:[#allocation4 + $0x28c] sm:$0xf]  ;;  %v7416_v58 = vor.u32 %v6539_v31, %v5650_v41 }
  0x4e   :  { %5557 = vmatmul.msk.bf16.gmra.mxu3 %vm224_vm0, %v7153_v20  ;;  %v7414_v50 = vor.u32 %v6639_v28, %v6032_v26  ;;  %v5680_v63 = vld [vmem:[#allocation4 + $0xc8] sm:$0xf]  ;;  %v6595_v31 = vld [vmem:[#allocation4 + $0x24c] sm:$0xf]  ;;  %v5824_v0 = vld [vmem:[#allocation4 + $0x1d8] sm:$0xf] }
  0x4f   :  { %10784 = vst [vmem:[#allocation57_spill] sm:$0xff] %v7416_v58  ;;  %v6551_v1 = vld [vmem:[#allocation4 + $0xe4] sm:$0xf0]  ;;  %v5874_v41 = vld [vmem:[#allocation4 + $0x268] sm:$0xf0] }
  0x50   :  { %10783 = vst [vmem:[#allocation56_spill] sm:$0xff] %v7414_v50  ;;  %v6000_v6 = vld [vmem:[#allocation4 + $0x348] sm:$0xf]  ;;  %v6596_v59 = vld [vmem:[#allocation4 + $0x254] sm:$0xf] }
  0x51   :  { %1404 = vmatpush.bf16.msrb.mxu0 %v7378_v35  ;;  %v6544_v35 = vld [vmem:[#allocation4 + $0xac] sm:$0xf0]  ;;  %v5826_v32 = vld [vmem:[#allocation4 + $0x1f8] sm:$0xf0]  ;;  %v6200_v2 = vld [vmem:[#allocation6 + $0xe0] sm:$0xf] }
  0x52   :  { %v6336_v15 = vld [vmem:[#allocation6 + $0x1e8] sm:$0xf] }
  0x5c   :  { %5549 = vmatmul.msk.bf16.gmra.mxu1 %vm224_vm0, %v7153_v20  ;;  %5559 = vmatmul.msk.bf16.gmra.mxu0 %vm224_vm0, %v7180_v27 }
  0x5d   :  { %5566 = vmatmul.msk.bf16.vlgmr.msrb.gmra.mxu2 %vm224_vm0, %v7167_v25 }
  0x5e   :  { %5570 = vmatmul.msk.bf16.vlgmr.msrb.gmra.mxu3 %vm224_vm0, %v7167_v25  ;;  %1429 = vmatpush.bf16.msrb.mxu2 %v7343_v22  ;;  %v5592_v22 = vld [vmem:[#allocation4 + $0x10] sm:$0xf] }
  0x5f   :  { %1442 = vmatpush.bf16.msrb.mxu3 %v7345_v24 }
  0x62   :  { %1430 = vmatpush.bf16.msrb.mxu2 %v7355_v44  ;;  %v5656_v44 = vld [vmem:[#allocation4 + $0x90] sm:$0xf] }
  0x63   :  { %1443 = vmatpush.bf16.msrb.mxu3 %v7357_v45  ;;  %v6702_v45 = vld [vmem:[#allocation6 + $0x1a4] sm:$0xf] }
  0x66   :  { %1431 = vmatpush.bf16.msrb.mxu2 %v7369_v12  ;;  %v6531_v12 = vld [vmem:[#allocation4 + $0x4c] sm:$0xf] }
  0x67   :  { %1444 = vmatpush.bf16.msrb.mxu3 %v7371_v14  ;;  %v5914_v14 = vld [vmem:[#allocation4 + $0x2b0] sm:$0xf0] }
  0x6a   :  { %1432 = vmatpush.bf16.msrb.mxu2 %v7382_v36  ;;  %v6631_v36 = vld [vmem:[#allocation4 + $0x364] sm:$0xf0] }
  0x6b   :  { %1445 = vmatpush.bf16.msrb.mxu3 %v7384_v39  ;;  %v7426_v26 = vor.u32 %v6631_v36, %v6000_v6  ;;  %v6587_v6 = vld [vmem:[#allocation4 + $0x20c] sm:$0xf]  ;;  %v10809_v39 = vmov 0  }
  0x6c   :  { %5562 = vmatmul.msk.bf16.vlgmr.msra.gmra.mxu1 %vm224_vm0, %v7167_v25  ;;  %5560 = vmatmul.msk.bf16.gmra.mxu0 %vm224_vm0, %v7217_v40  ;;  %v7398_v25 = vor.u32 %v6567_v49, %v5744_v48  ;;  %v7410_v48 = vor.u32 %v6559_v21, %v5712_v16  ;;  %v5906_v49 = vld [vmem:[#allocation4 + $0x2a8] sm:$0xf0]  ;;  %v7422_v21 = vor.u32 %v6551_v1, %v5680_v63  ;;  %v6623_v1 = vld [vmem:[#allocation4 + $0x324] sm:$0xf0] }
  0x6d   :  { %5567 = vmatmul.msk.bf16.gmra.mxu2 %vm224_vm0, %v7180_v27  ;;  %1416 = vmatpush.bf16.msra.mxu1 %v7402_v3  ;;  %v7419_v11 = vor.u32 %v6603_v42, %v5906_v49  ;;  %v5618_v16 = vld [vmem:[#allocation4 + $0x68] sm:$0xf0]  ;;  %10787 = vst [vmem:[#allocation60_spill] sm:$0xff] %v7426_v26  ;;  %v5648_v42 = vld [vmem:[#allocation4 + $0x88] sm:$0xf] }
  0x6e   :  { %5571 = vmatmul.msk.bf16.gmra.mxu3 %vm224_vm0, %v7180_v27  ;;  %10778 = vst [vmem:[#allocation51_spill] sm:$0xff] %v7398_v25  ;;  %1405 = vmatpush.bf16.msrb.mxu0 %v7398_v25  ;;  %v7428_v28 = vor.u32 %v6531_v12, %v5618_v16  ;;  %v6543_v49 = vld [vmem:[#allocation4 + $0xa4] sm:$0xf0]  ;;  %v6523_v25 = vld [vmem:[#allocation4 + $0xc] sm:$0xf] }
  0x6f   :  { %10782 = vst [vmem:[#allocation55_spill] sm:$0xff] %v7410_v48  ;;  %1433 = vmatpush.bf16.msrb.mxu2 %v7404_v4  ;;  %1446 = vmatpush.bf16.msrb.mxu3 %v7406_v19  ;;  %v5968_v4 = vld [vmem:[#allocation4 + $0x308] sm:$0xf]  ;;  %v7434_v63 = vor.u32 %v6543_v49, %v5648_v42  ;;  %v5842_v16 = vld [vmem:[#allocation4 + $0x228] sm:$0xf0] }
  0x70   :  { %10785 = vst [vmem:[#allocation58_spill] sm:$0xff] %v7419_v11  ;;  %v7438_v12 = vor.u32 %v6623_v1, %v5968_v4  ;;  %v5616_v4 = vld [vmem:[#allocation4 + $0x48] sm:$0xf]  ;;  %v6572_v19 = vld [vmem:[#allocation4 + $0x194] sm:$0xf] }
  0x71   :  { %10786 = vst [vmem:[#allocation59_spill] sm:$0xff] %v7422_v21  ;;  %1417 = vmatpush.bf16.msra.mxu1 %v7414_v50  ;;  %v5584_v49 = vld [vmem:[#allocation4 + $0x8] sm:$0xf] }
  0x72   :  { %1406 = vmatpush.bf16.msrb.mxu0 %v7410_v48  ;;  %10788 = vst [vmem:[#allocation61_spill] sm:$0xff] %v7428_v28  ;;  %v7432_v48 = vor.u32 %v6595_v31, %v5874_v41  ;;  %v5936_v31 = vld [vmem:[#allocation4 + $0x2c8] sm:$0xf] }
  0x73   :  { %1434 = vmatpush.bf16.msrb.mxu2 %v7416_v58  ;;  %1447 = vmatpush.bf16.msrb.mxu3 %v7419_v11  ;;  %10790 = vst [vmem:[#allocation63_spill] sm:$0xff] %v7434_v63  ;;  %v5586_v58 = vld [vmem:[#allocation4 + $0x28] sm:$0xf0]  ;;  %v6615_v41 = vld [vmem:[#allocation4 + $0x2e4] sm:$0xf0] }
  0x74   :  { %10789 = vst [vmem:[#allocation62_spill] sm:$0xff] %v7432_v48  ;;  %v7440_v36 = vor.u32 %v6523_v25, %v5586_v58  ;;  %v7452_v25 = vor.u32 %v6587_v6, %v5842_v16  ;;  %v6535_v58 = vld [vmem:[#allocation4 + $0x64] sm:$0xf0]  ;;  %v7458_v42 = vor.u32 %v6615_v41, %v5936_v31  ;;  %v5816_v31 = vld [vmem:[#allocation4 + $0x1d0] sm:$0xf] }
  0x75   :  { %1418 = vmatpush.bf16.msra.mxu1 %v7426_v26  ;;  %10791 = vst [vmem:[#allocation64_spill] sm:$0xff] %v7438_v12  ;;  %v6527_v1 = vld [vmem:[#allocation4 + $0x24] sm:$0xf0]  ;;  %v6584_v41 = vld [vmem:[#allocation4 + $0x1ec] sm:$0xf0] }
  0x76   :  { %1407 = vmatpush.bf16.msrb.mxu0 %v7422_v21  ;;  %10792 = vst [vmem:[#allocation65_spill] sm:$0xff] %v7440_v36  ;;  %v5904_v6 = vld [vmem:[#allocation4 + $0x288] sm:$0xf]  ;;  %v7463_v16 = vor.u32 %v6527_v1, %v5584_v49  ;;  %v5784_v49 = vld [vmem:[#allocation4 + $0x190] sm:$0xf] }
  0x77   :  { %1435 = vmatpush.bf16.msrb.mxu2 %v7428_v28  ;;  %1448 = vmatpush.bf16.msrb.mxu3 %v7432_v48  ;;  %10793 = vst [vmem:[#allocation66_spill] sm:$0xff] %v7452_v25  ;;  %v6607_v28 = vld [vmem:[#allocation4 + $0x2a4] sm:$0xf0]  ;;  %v6576_v1 = vld [vmem:[#allocation4 + $0x1ac] sm:$0xf0] }
  0x78   :  { %10795 = vst [vmem:[#allocation68_spill] sm:$0xff] %v7458_v42  ;;  %v6591_v21 = vld [vmem:[#allocation4 + $0x224] sm:$0xf0] }
  0x79   :  { %1419 = vmatpush.bf16.msra.mxu1 %v7438_v12  ;;  %10796 = vst [vmem:[#allocation69_spill] sm:$0xff] %v7463_v16 }
  0x7a   :  { %1408 = vmatpush.bf16.msrb.mxu0 %v7434_v63  ;;  %v7465_v63 = vor.u32 %v6607_v28, %v5904_v6  ;;  %v10310_v6 = vmov 0  }
  0x7b   :  { %1436 = vmatpush.bf16.msrb.mxu2 %v7440_v36  ;;  %1449 = vmatpush.bf16.msrb.mxu3 %v7452_v25  ;;  %v5840_v25 = vld [vmem:[#allocation4 + $0x208] sm:$0xf] }
  0x7c   :  { %5563 = vmatmul.msk.bf16.gmra.mxu1 %vm224_vm0, %v7180_v27  ;;  %5561 = vmatmul.msk.bf16.gmra.mxu0 %vm224_vm0, %v7153_v20  ;;  %v7456_v27 = vor.u32 %v6535_v58, %v5616_v4  ;;  %10797 = vst [vmem:[#allocation70_spill] sm:$0xff] %v7465_v63  ;;  %v5872_v4 = vld [vmem:[#allocation4 + $0x248] sm:$0xf]  ;;  %v7474_v28 = vor.u32 %v6591_v21, %v5840_v25  ;;  %v5752_v21 = vld [vmem:[#allocation4 + $0x150] sm:$0xf] }
  0x7d   :  { %5568 = vmatmul.msk.bf16.gmra.mxu2 %vm224_vm0, %v7217_v40  ;;  %1420 = vmatpush.bf16.msra.mxu1 %v7458_v42  ;;  %v6599_v58 = vld [vmem:[#allocation4 + $0x264] sm:$0xf0]  ;;  %v6568_v25 = vld [vmem:[#allocation4 + $0x16c] sm:$0xf0] }
  0x7e   :  { %5572 = vmatmul.msk.bf16.gmra.mxu3 %vm224_vm0, %v7217_v40  ;;  %10794 = vst [vmem:[#allocation67_spill] sm:$0xff] %v7456_v27  ;;  %1409 = vmatpush.bf16.msrb.mxu0 %v7456_v27  ;;  %v7469_v36 = vor.u32 %v6599_v58, %v5872_v4  ;;  %v7471_v27 = vor.u32 %v6584_v41, %v5816_v31  ;;  %v7493_v58 = vld [vmem:[%s10278_s2] sm:$0xff]  ;;  %v5720_v31 = vld [vmem:[#allocation4 + $0x110] sm:$0xf] }
  0x7f   :  { %10800 = vst [vmem:[#allocation73_spill] sm:$0xff] %v7474_v28  ;;  %v7484_v4 = vor.u32 %v6576_v1, %v5784_v49  ;;  %v6560_v41 = vld [vmem:[#allocation4 + $0x12c] sm:$0xf0]  ;;  %v6580_v49 = vld [vmem:[#allocation4 + $0x1d4] sm:$0xf] }
  0x80   :  { %10798 = vst [vmem:[#allocation71_spill] sm:$0xff] %v7469_v36  ;;  %v7499_v1 = vor.u32 %v6560_v41, %v5720_v31  ;;  %v5786_v31 = vld [vmem:[#allocation4 + $0x1b0] sm:$0xf0] }
  0x81   :  { %1421 = vmatpush.bf16.msra.mxu1 %v7465_v63  ;;  %10799 = vst [vmem:[#allocation72_spill] sm:$0xff] %v7471_v27  ;;  %v6636_v41 = vld [vmem:[#allocation4 + $0x394] sm:$0xf] }
  0x82   :  { %1410 = vmatpush.bf16.msrb.mxu0 %v7463_v16  ;;  %10801 = vst [vmem:[#allocation74_spill] sm:$0xff] %v7484_v4  ;;  %v6644_v16 = vld [vmem:[#allocation4 + $0x3d4] sm:$0xf] }
  0x83   :  { %10804 = vst [vmem:[#allocation77_spill] sm:$0xff] %v7499_v1 }
  0x85   :  { %1422 = vmatpush.bf16.msra.mxu1 %v7469_v36 }
  0x89   :  { %1423 = vmatpush.bf16.msra.mxu1 %v7474_v28 }
  0x8c   :  { %5564 = vmatmul.msk.bf16.gmra.mxu1 %vm224_vm0, %v7217_v40  ;;  %1359 = vmatmul.bf16.vlgmr.msra.gmra.mxu0 %v10310_v6  ;;  %v7488_v40 = vor.u32 %v6568_v25, %v5752_v21  ;;  %v7496_v6 = vperm.slane %v7493_v58, 0  ;;  %v5688_v21 = vld [vmem:[#allocation4 + $0xd0] sm:$0xf] }
  0x8d   :  { %5569 = vmatmul.msk.bf16.gmra.mxu2 %vm224_vm0, %v7153_v20  ;;  %1455 = vmatpush.bf16.msra.mxu0 %v7471_v27  ;;  %v5818_v27 = vld [vmem:[#allocation4 + $0x1f0] sm:$0xf0]  ;;  %v6552_v25 = vld [vmem:[#allocation4 + $0xec] sm:$0xf0] }
  0x8e   :  { %5573 = vmatmul.msk.bf16.gmra.mxu3 %vm224_vm0, %v7153_v20  ;;  %10802 = vst [vmem:[#allocation75_spill] sm:$0xff] %v7488_v40  ;;  %v7506_v11 = vor.u32 %v6580_v49, %v5818_v27  ;;  %v7511_v42 = vor.u32 %v6552_v25, %v5688_v21  ;;  %v7520_v27 = vor.u32 %v6572_v19, %v5786_v31  ;;  %v6628_v49 = vld [vmem:[#allocation4 + $0x354] sm:$0xf] }
  0x8f   :  { %10803 = vst [vmem:[#allocation76_spill] sm:$0xff] %v7496_v6  ;;  %v7525_v21 = vor.u32 %v6544_v35, %v5656_v44  ;;  %v6556_v44 = vld [vmem:[#allocation4 + $0x114] sm:$0xf] }
  0x90   :  { %10806 = vst [vmem:[#allocation79_spill] sm:$0xff] %v7506_v11  ;;  %v5722_v35 = vld [vmem:[#allocation4 + $0x130] sm:$0xf0] }
  0x91   :  { %1456 = vmatpush.bf16.msra.mxu0 %v7484_v4  ;;  %v6074_v4 = vld [vmem:[#allocation4 + $0x3f0] sm:$0xf0]  ;;  %10808 = vst [vmem:[#allocation81_spill] sm:$0xff] %v7511_v42 }
  0x92   :  { %v7508_v63 = vor.u32 %v6644_v16, %v6074_v4  ;;  %10810 = vst [vmem:[#allocation82_spill] sm:$0xff] %v7520_v27  ;;  %v5754_v4 = vld [vmem:[#allocation4 + $0x170] sm:$0xf0] }
  0x93   :  { %10812 = vst [vmem:[#allocation84_spill] sm:$0xff] %v7525_v21 }
  0x94   :  { %10807 = vst [vmem:[#allocation80_spill] sm:$0xff] %v7508_v63 }
  0x95   :  { %1457 = vmatpush.bf16.msra.mxu0 %v7488_v40  ;;  %v6042_v40 = vld [vmem:[#allocation4 + $0x3b0] sm:$0xf0] }
  0x96   :  { %v7522_v16 = vor.u32 %v6636_v41, %v6042_v40  ;;  %v6620_v41 = vld [vmem:[#allocation4 + $0x314] sm:$0xf] }
  0x98   :  { %10811 = vst [vmem:[#allocation83_spill] sm:$0xff] %v7522_v16 }
  0x99   :  { %v261_v28 = vpop.f32.mrf.mxu1  ;;  %v7501_v48 = vpop.f32.mrf.mxu0  ;;  %1458 = vmatpush.bf16.msra.mxu0 %v7499_v1  ;;  %v5624_v1 = vld [vmem:[#allocation4 + $0x50] sm:$0xf] }
  0x9a   :  { %v7504_v36 = vadd.f32 %v261_v28, %v7496_v6  ;;  %v6564_v28 = vld [vmem:[#allocation4 + $0x154] sm:$0xf] }
  0x9b   :  { %v7537_v40 = vor.u32 %v6564_v28, %v5754_v4  ;;  %v7546_v28 = vor.u32 %v6556_v44, %v5722_v35  ;;  %v5792_v35 = vld [vmem:[#allocation4 + $0x198] sm:$0xf] }
  0x9c   :  { %10805 = vst [vmem:[#allocation78_spill] sm:$0xff] %v7504_v36  ;;  %5565 = vmatmul.msk.bf16.gmra.mxu1 %vm224_vm0, %v7153_v20  ;;  %1411 = vmatmul.bf16.vlgmr.msrb.gmra.mxu0 %v10809_v39  ;;  %v6010_v20 = vld [vmem:[#allocation4 + $0x370] sm:$0xf0] }
  0x9d   :  { %1385 = vmatmul.bf16.vlgmr.msra.gmra.mxu2 %v10809_v39  ;;  %1459 = vmatpush.bf16.msra.mxu0 %v7511_v42  ;;  %10815 = vst [vmem:[#allocation87_spill] sm:$0xff] %v7537_v40  ;;  %v7539_v31 = vor.u32 %v6628_v49, %v6010_v20  ;;  %v5978_v42 = vld [vmem:[#allocation4 + $0x330] sm:$0xf0]  ;;  %v6072_v49 = vld [vmem:[#allocation4 + $0x3d0] sm:$0xf] }
  0x9e   :  { %1398 = vmatmul.bf16.vlgmr.msra.gmra.mxu3 %v10809_v39  ;;  %1481 = vmatpush.bf16.msra.mxu2 %v7506_v11  ;;  %v6536_v11 = vld [vmem:[#allocation4 + $0x6c] sm:$0xf0]  ;;  %10818 = vst [vmem:[#allocation90_spill] sm:$0xff] %v7546_v28  ;;  %v7548_v4 = vor.u32 %v6620_v41, %v5978_v42  ;;  %v6577_v41 = vld [vmem:[#allocation4 + $0x1b4] sm:$0xf0] }
  0x9f   :  { %1494 = vmatpush.bf16.msra.mxu3 %v7508_v63  ;;  %10816 = vst [vmem:[#allocation88_spill] sm:$0xff] %v7539_v31  ;;  %v7542_v63 = vor.u32 %v6536_v11, %v5624_v1  ;;  %v6648_v20 = vld [vmem:[#allocation4 + $0x3ec] sm:$0xf0] }
  0xa0   :  { %v7527_v25 = vpop.f32.mrf.mxu2  ;;  %10819 = vst [vmem:[#allocation91_spill] sm:$0xff] %v7548_v4 }
  0xa1   :  { %v7529_v36 = vpop.f32.mrf.mxu3  ;;  %v7531_v12 = vpop.f32.mrf.mxu1  ;;  %1460 = vmatpush.bf16.msra.mxu0 %v7525_v21  ;;  %10817 = vst [vmem:[#allocation89_spill] sm:$0xff] %v7542_v63 }
  0xa2   :  { %10813 = vst [vmem:[#allocation85_spill] sm:$0xff] %v7531_v12  ;;  %v7533_v19 = vpop.f32.mrf.mxu0  ;;  %1482 = vmatpush.bf16.msra.mxu2 %v7520_v27  ;;  %v6528_v12 = vld [vmem:[#allocation4 + $0x2c] sm:$0xf0]  ;;  %v6548_v27 = vld [vmem:[#allocation4 + $0xd4] sm:$0xf] }
  0xa3   :  { %10814 = vst [vmem:[#allocation86_spill] sm:$0xff] %v7533_v19  ;;  %1495 = vmatpush.bf16.msra.mxu3 %v7522_v16  ;;  %v6585_v19 = vld [vmem:[#allocation4 + $0x1f4] sm:$0xf0]  ;;  %v5690_v16 = vld [vmem:[#allocation4 + $0xf0] sm:$0xf0]  ;;  %v7551_v11 = vor.u32 %v6528_v12, %v5592_v22 }
  0xa4   :  { %v7557_v54 = vor.u32 %v6585_v19, %v5824_v0  ;;  %v7565_v22 = vor.u32 %v6548_v27, %v5690_v16  ;;  %v6040_v12 = vld [vmem:[#allocation4 + $0x390] sm:$0xf]  ;;  %v6540_v19 = vld [vmem:[#allocation4 + $0x94] sm:$0xf]  ;;  %v5760_v27 = vld [vmem:[#allocation4 + $0x158] sm:$0xf] }
  0xa5   :  { %1461 = vmatpush.bf16.msra.mxu0 %v7542_v63  ;;  %10820 = vst [vmem:[#allocation92_spill] sm:$0xff] %v7551_v11  ;;  %v7563_v63 = vor.u32 %v6648_v20, %v6072_v49  ;;  %v6640_v0 = vld [vmem:[#allocation4 + $0x3ac] sm:$0xf0]  ;;  %v7575_v49 = vor.u32 %v6577_v41, %v5792_v35  ;;  %v7580_v16 = vperm.slane %v7493_v58, 2 }
  0xa6   :  { %1483 = vmatpush.bf16.msra.mxu2 %v7537_v40  ;;  %v5946_v40 = vld [vmem:[#allocation4 + $0x2f0] sm:$0xf0]  ;;  %10823 = vst [vmem:[#allocation95_spill] sm:$0xff] %v7557_v54  ;;  %v7587_v20 = vor.u32 %v6640_v0, %v6040_v12  ;;  %v6008_v35 = vld [vmem:[#allocation4 + $0x350] sm:$0xf] }
  0xa7   :  { %1496 = vmatpush.bf16.msra.mxu3 %v7539_v31  ;;  %10824 = vst [vmem:[#allocation96_spill] sm:$0xff] %v7563_v63  ;;  %v5658_v31 = vld [vmem:[#allocation4 + $0xb0] sm:$0xf0] }
  0xa8   :  { %v7553_v1 = vpop.f32.mrf.mxu2  ;;  %10825 = vst [vmem:[#allocation97_spill] sm:$0xff] %v7565_v22 }
  0xa9   :  { %10821 = vst [vmem:[#allocation93_spill] sm:$0xff] %v7553_v1  ;;  %v7555_v21 = vpop.f32.mrf.mxu3  ;;  %v7559_v44 = vpop.f32.mrf.mxu1  ;;  %v7570_v1 = vor.u32 %v6612_v10, %v5946_v40  ;;  %1462 = vmatpush.bf16.msra.mxu0 %v7551_v11  ;;  %v6569_v10 = vld [vmem:[#allocation4 + $0x174] sm:$0xf0]  ;;  %v7583_v40 = vperm.slane %v7493_v58, 3  ;;  %v5626_v11 = vld [vmem:[#allocation4 + $0x70] sm:$0xf0] }
  0xaa   :  { %10822 = vst [vmem:[#allocation94_spill] sm:$0xff] %v7555_v21  ;;  %v251_v42 = vpop.f32.mrf.mxu0  ;;  %1484 = vmatpush.bf16.msra.mxu2 %v7546_v28  ;;  %v6604_v28 = vld [vmem:[#allocation4 + $0x294] sm:$0xf]  ;;  %v7596_v12 = vor.u32 %v6569_v10, %v5760_v27  ;;  %v5976_v10 = vld [vmem:[#allocation4 + $0x310] sm:$0xf] }
  0xab   :  { %1497 = vmatpush.bf16.msra.mxu3 %v7548_v4  ;;  %v7568_v21 = vadd.f32 %v251_v42, %v7496_v6  ;;  %10827 = vst [vmem:[#allocation99_spill] sm:$0xff] %v7570_v1  ;;  %v7589_v42 = vor.u32 %v6540_v19, %v5658_v31  ;;  %v7592_v41 = vor.u32 %v6604_v28, %v5914_v14  ;;  %v5728_v19 = vld [vmem:[#allocation4 + $0x118] sm:$0xf] }
  0xac   :  { %1372 = vmatmul.bf16.vlgmr.msrb.gmra.mxu1 %v10809_v39  ;;  %10828 = vst [vmem:[#allocation100_spill] sm:$0xff] %v7575_v49  ;;  %1463 = vmatmul.bf16.vlgmr.msra.gmra.mxu0 %v10809_v39 }
  0xad   :  { %10826 = vst [vmem:[#allocation98_spill] sm:$0xff] %v7568_v21  ;;  %1507 = vmatpush.bf16.msrb.mxu0 %v7557_v54  ;;  %1437 = vmatmul.bf16.vlgmr.msrb.gmra.mxu2 %v10809_v39  ;;  %v6632_v21 = vld [vmem:[#allocation4 + $0x36c] sm:$0xf0]  ;;  %v6532_v54 = vld [vmem:[#allocation4 + $0x54] sm:$0xf] }
  0xae   :  { %1450 = vmatmul.bf16.vlgmr.msrb.gmra.mxu3 %v10809_v39  ;;  %10829 = vst [vmem:[#allocation101_spill] sm:$0xff] %v7580_v16  ;;  %1468 = vmatpush.bf16.msrb.mxu1 %v7563_v63  ;;  %v5882_v63 = vld [vmem:[#allocation4 + $0x270] sm:$0xf0]  ;;  %v7612_v27 = vor.u32 %v6532_v54, %v5626_v11  ;;  %v6553_v11 = vld [vmem:[#allocation4 + $0xf4] sm:$0xf0] }
  0xaf   :  { %10830 = vst [vmem:[#allocation102_spill] sm:$0xff] %v7583_v40  ;;  %1485 = vmatpush.bf16.msra.mxu2 %v7565_v22  ;;  %1498 = vmatpush.bf16.msra.mxu3 %v7570_v1  ;;  %v6561_v22 = vld [vmem:[#allocation4 + $0x134] sm:$0xf0]  ;;  %v7610_v1 = vor.u32 %v6632_v21, %v6008_v35  ;;  %v6645_v21 = vld [vmem:[#allocation4 + $0x3dc] sm:$0xf] }
  0xb0   :  { %10831 = vst [vmem:[#allocation103_spill] sm:$0xff] %v7587_v20  ;;  %v309_v4 = vpop.f32.mrf.mxu2  ;;  %v6082_v35 = vld [vmem:[#allocation4 + $0x3f8] sm:$0xf0] }
  0xb1   :  { %10832 = vst [vmem:[#allocation104_spill] sm:$0xff] %v7589_v42  ;;  %v338_v26 = vpop.f32.mrf.mxu3  ;;  %1508 = vmatpush.bf16.msrb.mxu0 %v7575_v49  ;;  %v7599_v31 = vadd.f32 %v309_v4, %v7580_v16  ;;  %v7604_v14 = vpop.f32.mrf.mxu1  ;;  %v6624_v4 = vld [vmem:[#allocation4 + $0x32c] sm:$0xf0]  ;;  %v6581_v49 = vld [vmem:[#allocation4 + $0x1dc] sm:$0xf] }
  0xb2   :  { %10833 = vst [vmem:[#allocation105_spill] sm:$0xff] %v7592_v41  ;;  %v7602_v0 = vadd.f32 %v338_v26, %v7583_v40  ;;  %v7606_v28 = vpop.f32.mrf.mxu0  ;;  %1469 = vmatpush.bf16.msrb.mxu1 %v7587_v20  ;;  %v7615_v26 = vor.u32 %v6596_v59, %v5882_v63  ;;  %v7618_v20 = vor.u32 %v6561_v22, %v5728_v19  ;;  %v5696_v63 = vld [vmem:[#allocation4 + $0xd8] sm:$0xf]  ;;  %v5944_v22 = vld [vmem:[#allocation4 + $0x2d0] sm:$0xf] }
  0xb3   :  { %10834 = vst [vmem:[#allocation106_spill] sm:$0xff] %v7596_v12  ;;  %1486 = vmatpush.bf16.msra.mxu2 %v7589_v42  ;;  %1499 = vmatpush.bf16.msra.mxu3 %v7592_v41  ;;  %v7622_v54 = vor.u32 %v6624_v4, %v5976_v10  ;;  %v7629_v41 = vor.u32 %v6581_v49, %v5826_v32  ;;  %v6616_v19 = vld [vmem:[#allocation4 + $0x2ec] sm:$0xf0] }
  0xb4   :  { %10835 = vst [vmem:[#allocation107_spill] sm:$0xff] %v7599_v31  ;;  %v5594_v31 = vld [vmem:[#allocation4 + $0x30] sm:$0xf0]  ;;  %v7638_v10 = vor.u32 %v6645_v21, %v6082_v35  ;;  %v7641_v49 = vor.u32 %v6553_v11, %v5696_v63  ;;  %v5664_v35 = vld [vmem:[#allocation4 + $0x98] sm:$0xf] }
  0xb5   :  { %10836 = vst [vmem:[#allocation108_spill] sm:$0xff] %v7602_v0  ;;  %v6524_v0 = vld [vmem:[#allocation4 + $0x14] sm:$0xf]  ;;  %1509 = vmatpush.bf16.msrb.mxu0 %v7596_v12  ;;  %v7632_v12 = vperm.slane %v7493_v58, 1  ;;  %v5912_v11 = vld [vmem:[#allocation4 + $0x290] sm:$0xf] }
  0xb6   :  { %10837 = vst [vmem:[#allocation109_spill] sm:$0xff] %v7604_v14  ;;  %v6588_v14 = vld [vmem:[#allocation4 + $0x214] sm:$0xf]  ;;  %1470 = vmatpush.bf16.msrb.mxu1 %v7610_v1  ;;  %v7624_v59 = vor.u32 %v6524_v0, %v5594_v31  ;;  %v6573_v31 = vld [vmem:[#allocation4 + $0x19c] sm:$0xf] }
  0xb7   :  { %10838 = vst [vmem:[#allocation110_spill] sm:$0xff] %v7606_v28  ;;  %v5850_v28 = vld [vmem:[#allocation4 + $0x230] sm:$0xf0]  ;;  %1487 = vmatpush.bf16.msra.mxu2 %v7612_v27  ;;  %1500 = vmatpush.bf16.msra.mxu3 %v7615_v26  ;;  %v5794_v0 = vld [vmem:[#allocation4 + $0x1b8] sm:$0xf0] }
  0xb8   :  { %10839 = vst [vmem:[#allocation111_spill] sm:$0xff] %v7610_v1  ;;  %v7627_v42 = vor.u32 %v6588_v14, %v5850_v28  ;;  %v7634_v1 = vpop.f32.mrf.mxu2  ;;  %v6637_v14 = vld [vmem:[#allocation4 + $0x39c] sm:$0xf]  ;;  %v7655_v63 = vor.u32 %v6573_v31, %v5794_v0  ;;  %v5632_v0 = vld [vmem:[#allocation4 + $0x58] sm:$0xf] }
  0xb9   :  { %10840 = vst [vmem:[#allocation112_spill] sm:$0xff] %v7612_v27  ;;  %v7636_v27 = vpop.f32.mrf.mxu3  ;;  %1510 = vmatpush.bf16.msrb.mxu0 %v7618_v20  ;;  %v280_v4 = vpop.f32.mrf.mxu1  ;;  %v6050_v28 = vld [vmem:[#allocation4 + $0x3b8] sm:$0xf0] }
  0xba   :  { %10841 = vst [vmem:[#allocation113_spill] sm:$0xff] %v7615_v26  ;;  %v256_v32 = vpop.f32.mrf.mxu0  ;;  %1471 = vmatpush.bf16.msrb.mxu1 %v7622_v54  ;;  %v6608_v26 = vld [vmem:[#allocation4 + $0x2ac] sm:$0xf0] }
  0xbb   :  { %10842 = vst [vmem:[#allocation114_spill] sm:$0xff] %v7618_v20  ;;  %1488 = vmatpush.bf16.msra.mxu2 %v7624_v59  ;;  %v7651_v21 = vadd.f32 %v256_v32, %v7496_v6  ;;  %v6545_v20 = vld [vmem:[#allocation4 + $0xb4] sm:$0xf0]  ;;  %1501 = vmatpush.bf16.msra.mxu3 %v7627_v42  ;;  %v6629_v32 = vld [vmem:[#allocation4 + $0x35c] sm:$0xf]  ;;  %v7667_v31 = vor.u32 %v6608_v26, %v5912_v11 }
  0xbc   :  { %10843 = vst [vmem:[#allocation115_spill] sm:$0xff] %v7622_v54  ;;  %1424 = vmatmul.bf16.vlgmr.msra.gmra.mxu1 %v10809_v39  ;;  %v6613_v54 = vld [vmem:[#allocation4 + $0x2dc] sm:$0xf] }
  0xbd   :  { %10844 = vst [vmem:[#allocation116_spill] sm:$0xff] %v7624_v59  ;;  %1511 = vmatpush.bf16.msrb.mxu0 %v7641_v49  ;;  %v6600_v59 = vld [vmem:[#allocation4 + $0x26c] sm:$0xf0] }
  0xbe   :  { %10845 = vst [vmem:[#allocation117_spill] sm:$0xff] %v7627_v42  ;;  %1489 = vmatmul.bf16.vlgmr.msra.gmra.mxu2 %v10809_v39  ;;  %1502 = vmatmul.bf16.vlgmr.msra.gmra.mxu3 %v10809_v39  ;;  %v5730_v42 = vld [vmem:[#allocation4 + $0x138] sm:$0xf0] }
  0xbf   :  { %10846 = vst [vmem:[#allocation118_spill] sm:$0xff] %v7629_v41  ;;  %1533 = vmatpush.bf16.msrb.mxu2 %v7629_v41  ;;  %1546 = vmatpush.bf16.msrb.mxu3 %v7638_v10  ;;  %v6537_v41 = vld [vmem:[#allocation4 + $0x74] sm:$0xf0] }
  0xc0   :  { %10847 = vst [vmem:[#allocation119_spill] sm:$0xff] %v7632_v12 }
  0xc1   :  { %10848 = vst [vmem:[#allocation120_spill] sm:$0xff] %v7634_v1  ;;  %v7646_v1 = vadd.f32 %v280_v4, %v7632_v12  ;;  %v7659_v4 = vor.u32 %v6637_v14, %v6050_v28  ;;  %v5880_v28 = vld [vmem:[#allocation4 + $0x250] sm:$0xf]  ;;  %v7681_v11 = vpop.f32.mrf.mxu1 }
  0xc2   :  { %10849 = vst [vmem:[#allocation121_spill] sm:$0xff] %v7636_v27  ;;  %v7648_v27 = vor.u32 %v6616_v19, %v5944_v22  ;;  %v6565_v22 = vld [vmem:[#allocation4 + $0x15c] sm:$0xf] }
  0xc3   :  { %10850 = vst [vmem:[#allocation122_spill] sm:$0xff] %v7638_v10  ;;  %v5762_v19 = vld [vmem:[#allocation4 + $0x178] sm:$0xf0]  ;;  %1534 = vmatpush.bf16.msrb.mxu2 %v7655_v63  ;;  %1547 = vmatpush.bf16.msrb.mxu3 %v7659_v4  ;;  %v314_v10 = vpop.f32.mrf.mxu2 }
  0xc4   :  { %10851 = vst [vmem:[#allocation123_spill] sm:$0xff] %v7641_v49  ;;  %1472 = vmatpush.bf16.msrb.mxu1 %v7648_v27  ;;  %v7670_v14 = vor.u32 %v6565_v22, %v5762_v19  ;;  %v343_v49 = vpop.f32.mrf.mxu3  ;;  %v6621_v22 = vld [vmem:[#allocation4 + $0x31c] sm:$0xf] }
  0xc5   :  { %10852 = vst [vmem:[#allocation124_spill] sm:$0xff] %v7646_v1  ;;  %v7663_v1 = vor.u32 %v6545_v20, %v5664_v35  ;;  %v6557_v35 = vld [vmem:[#allocation4 + $0x11c] sm:$0xf]  ;;  %v7679_v26 = vadd.f32 %v343_v49, %v7583_v40 }
  0xc6   :  { %10853 = vst [vmem:[#allocation125_spill] sm:$0xff] %v7648_v27  ;;  %v7676_v27 = vadd.f32 %v314_v10, %v7580_v16  ;;  %v5986_v19 = vld [vmem:[#allocation4 + $0x338] sm:$0xf0]  ;;  %v6529_v10 = vld [vmem:[#allocation4 + $0x34] sm:$0xf0]  ;;  %v7692_v49 = vor.u32 %v6557_v35, %v5730_v42 }
  0xc7   :  { %10854 = vst [vmem:[#allocation126_spill] sm:$0xff] %v7651_v21  ;;  %v6018_v21 = vld [vmem:[#allocation4 + $0x378] sm:$0xf0]  ;;  %1512 = vmatpush.bf16.msrb.mxu0 %v7663_v1  ;;  %1535 = vmatpush.bf16.msrb.mxu2 %v7670_v14 }
  0xc8   :  { %10855 = vst [vmem:[#allocation127_spill] sm:$0xff] %v7655_v63  ;;  %v7673_v20 = vor.u32 %v6629_v32, %v6018_v21  ;;  %v7684_v63 = vpop.f32.mrf.mxu0  ;;  %1473 = vmatpush.bf16.msrb.mxu1 %v7667_v31  ;;  %v7689_v21 = vor.u32 %v6600_v59, %v5880_v28  ;;  %v5600_v32 = vld [vmem:[#allocation4 + $0x18] sm:$0xf] }
  0xc9   :  { %10856 = vst [vmem:[#allocation128_spill] sm:$0xff] %v7659_v4  ;;  %v7686_v4 = vor.u32 %v6537_v41, %v5632_v0  ;;  %v6549_v41 = vld [vmem:[#allocation4 + $0xdc] sm:$0xf]  ;;  %v7698_v59 = vor.u32 %v6529_v10, %v5600_v32  ;;  %v6641_v32 = vld [vmem:[#allocation4 + $0x3b4] sm:$0xf0] }
  0xca   :  { %10857 = vst [vmem:[#allocation129_spill] sm:$0xff] %v7663_v1  ;;  %1548 = vmatpush.bf16.msrb.mxu3 %v7673_v20  ;;  %v7695_v1 = vor.u32 %v6621_v22, %v5986_v19  ;;  %v5698_v0 = vld [vmem:[#allocation4 + $0xf8] sm:$0xf0]  ;;  %v6048_v22 = vld [vmem:[#allocation4 + $0x398] sm:$0xf] }
  0xcb   :  { %10858 = vst [vmem:[#allocation130_spill] sm:$0xff] %v7667_v31  ;;  %v5954_v31 = vld [vmem:[#allocation4 + $0x2f8] sm:$0xf0]  ;;  %1513 = vmatpush.bf16.msrb.mxu0 %v7686_v4  ;;  %1536 = vmatpush.bf16.msrb.mxu2 %v7692_v49  ;;  %v7706_v35 = vor.u32 %v6549_v41, %v5698_v0  ;;  %v7709_v19 = vpop.f32.mrf.mxu2  ;;  %v6016_v41 = vld [vmem:[#allocation4 + $0x358] sm:$0xf] }
  0xcc   :  { %10859 = vst [vmem:[#allocation131_spill] sm:$0xff] %v7670_v14  ;;  %1474 = vmatpush.bf16.msrb.mxu1 %v7689_v21  ;;  %v7711_v14 = vpop.f32.mrf.mxu3  ;;  %v6541_v10 = vld [vmem:[#allocation4 + $0x9c] sm:$0xf] }
  0xcd   :  { %10860 = vst [vmem:[#allocation132_spill] sm:$0xff] %v7673_v20  ;;  %v5666_v20 = vld [vmem:[#allocation4 + $0xb8] sm:$0xf0] }
  0xce   :  { %10861 = vst [vmem:[#allocation133_spill] sm:$0xff] %v7676_v27  ;;  %v6592_v27 = vld [vmem:[#allocation4 + $0x22c] sm:$0xf0]  ;;  %1549 = vmatpush.bf16.msrb.mxu3 %v7695_v1 }
  0xcf   :  { %10862 = vst [vmem:[#allocation134_spill] sm:$0xff] %v7679_v26  ;;  %v5848_v26 = vld [vmem:[#allocation4 + $0x210] sm:$0xf]  ;;  %1514 = vmatpush.bf16.msrb.mxu0 %v7698_v59  ;;  %1537 = vmatpush.bf16.msrb.mxu2 %v7706_v35 }
  0xd0   :  { %10863 = vst [vmem:[#allocation135_spill] sm:$0xff] %v7681_v11  ;;  %v6080_v11 = vld [vmem:[#allocation4 + $0x3d8] sm:$0xf]  ;;  %v7701_v42 = vor.u32 %v6592_v27, %v5848_v26  ;;  %v285_v27 = vpop.f32.mrf.mxu1  ;;  %v6605_v26 = vld [vmem:[#allocation4 + $0x29c] sm:$0xf] }
  0xd1   :  { %10864 = vst [vmem:[#allocation136_spill] sm:$0xff] %v7684_v63  ;;  %v6649_v63 = vld [vmem:[#allocation4 + $0x3f4] sm:$0xf0] }
  0xd2   :  { %10865 = vst [vmem:[#allocation137_spill] sm:$0xff] %v7686_v4  ;;  %v7704_v28 = vor.u32 %v6649_v63, %v6080_v11  ;;  %v7713_v4 = vor.u32 %v6613_v54, %v5954_v31  ;;  %v7716_v63 = vpop.f32.mrf.mxu0  ;;  %1475 = vmatpush.bf16.msrb.mxu1 %v7701_v42  ;;  %v7720_v11 = vadd.f32 %v285_v27, %v7632_v12  ;;  %v6597_v27 = vld [vmem:[#allocation4 + $0x25c] sm:$0xf] }
  0xd3   :  { %10866 = vst [vmem:[#allocation138_spill] sm:$0xff] %v7689_v21  ;;  %v5922_v21 = vld [vmem:[#allocation4 + $0x2b8] sm:$0xf0]  ;;  %v7724_v54 = vor.u32 %v6641_v32, %v6048_v22  ;;  %v7726_v31 = vor.u32 %v6541_v10, %v5666_v20  ;;  %1515 = vmatmul.bf16.vlgmr.msrb.gmra.mxu0 %v10809_v39  ;;  %v5984_v32 = vld [vmem:[#allocation4 + $0x318] sm:$0xf] }
  0xd4   :  { %10867 = vst [vmem:[#allocation139_spill] sm:$0xff] %v7692_v49  ;;  %1550 = vmatpush.bf16.msrb.mxu3 %v7713_v4  ;;  %v7729_v0 = vor.u32 %v6605_v26, %v5922_v21  ;;  %v319_v21 = vpop.f32.mrf.mxu2  ;;  %v348_v10 = vpop.f32.mrf.mxu3  ;;  %v6525_v49 = vld [vmem:[#allocation4 + $0x1c] sm:$0xf] }
  0xd5   :  { %10868 = vst [vmem:[#allocation140_spill] sm:$0xff] %v7695_v1  ;;  %1476 = vmatmul.bf16.vlgmr.msrb.gmra.mxu1 %v10809_v39  ;;  %1538 = vmatpush.bf16.msrb.mxu2 %v7726_v31  ;;  %v7743_v1 = vadd.f32 %v319_v21, %v7580_v16 }
  0xd6   :  { %10869 = vst [vmem:[#allocation141_spill] sm:$0xff] %v7698_v59  ;;  %1520 = vmatpush.bf16.msra.mxu1 %v7704_v28  ;;  %v5634_v59 = vld [vmem:[#allocation4 + $0x78] sm:$0xf0] }
  0xd7   :  { %10870 = vst [vmem:[#allocation142_spill] sm:$0xff] %v7701_v42 }
  0xd8   :  { %10871 = vst [vmem:[#allocation143_spill] sm:$0xff] %v7704_v28  ;;  %1551 = vmatpush.bf16.msrb.mxu3 %v7729_v0  ;;  %v6712_v28 = vld [vmem:[#allocation6 + $0x1ec] sm:$0xf0] }
  0xd9   :  { %10872 = vst [vmem:[#allocation144_spill] sm:$0xff] %v7706_v35  ;;  %v6625_v35 = vld [vmem:[#allocation4 + $0x334] sm:$0xf0] }
  0xda   :  { %10873 = vst [vmem:[#allocation145_spill] sm:$0xff] %v7709_v19  ;;  %v6533_v19 = vld [vmem:[#allocation4 + $0x5c] sm:$0xf]  ;;  %1521 = vmatpush.bf16.msra.mxu1 %v7724_v54 }
  0xdb   :  { %10874 = vst [vmem:[#allocation146_spill] sm:$0xff] %v7711_v14  ;;  %v6633_v14 = vld [vmem:[#allocation4 + $0x374] sm:$0xf0]  ;;  %v7737_v22 = vor.u32 %v6533_v19, %v5634_v59  ;;  %v6589_v59 = vld [vmem:[#allocation4 + $0x21c] sm:$0xf] }
  0xdc   :  { %10875 = vst [vmem:[#allocation147_spill] sm:$0xff] %v7713_v4  ;;  %v7735_v20 = vor.u32 %v6633_v14, %v6016_v41  ;;  %v5602_v4 = vld [vmem:[#allocation4 + $0x38] sm:$0xf0]  ;;  %v7748_v14 = vpop.f32.mrf.mxu1  ;;  %v7750_v41 = vpop.f32.mrf.mxu0 }
  0xdd   :  { %10876 = vst [vmem:[#allocation148_spill] sm:$0xff] %v7720_v11  ;;  %v5890_v11 = vld [vmem:[#allocation4 + $0x278] sm:$0xf0]  ;;  %1539 = vmatpush.bf16.msrb.mxu2 %v7737_v22 }
  0xde   :  { %10877 = vst [vmem:[#allocation149_spill] sm:$0xff] %v7724_v54  ;;  %v7740_v26 = vor.u32 %v6597_v27, %v5890_v11  ;;  %v7746_v54 = vadd.f32 %v348_v10, %v7583_v40  ;;  %v5858_v19 = vld [vmem:[#allocation4 + $0x238] sm:$0xf0]  ;;  %1522 = vmatpush.bf16.msra.mxu1 %v7735_v20  ;;  %v7754_v11 = vor.u32 %v6625_v35, %v5984_v32  ;;  %v5952_v10 = vld [vmem:[#allocation4 + $0x2d8] sm:$0xf]  ;;  %v7768_v35 = vpop.f32.mrf.mxu3  ;;  %v7771_v32 = vperm.slane %v7493_v58, 4 }
  0xdf   :  { %10878 = vst [vmem:[#allocation150_spill] sm:$0xff] %v7726_v31  ;;  %v7756_v27 = vor.u32 %v6525_v49, %v5602_v4  ;;  %v7759_v21 = vor.u32 %v6589_v59, %v5858_v19  ;;  %v5920_v4 = vld [vmem:[#allocation4 + $0x298] sm:$0xf] }
  0xe0   :  { %10879 = vst [vmem:[#allocation151_spill] sm:$0xff] %v7729_v0  ;;  %1552 = vmatpush.bf16.msrb.mxu3 %v7740_v26  ;;  %v6609_v49 = vld [vmem:[#allocation4 + $0x2b4] sm:$0xf0] }
  0xe1   :  { %10880 = vst [vmem:[#allocation152_spill] sm:$0xff] %v7735_v20  ;;  %1540 = vmatpush.bf16.msrb.mxu2 %v7756_v27 }
  0xe2   :  { %10881 = vst [vmem:[#allocation153_spill] sm:$0xff] %v7737_v22  ;;  %1523 = vmatpush.bf16.msra.mxu1 %v7754_v11 }
  0xe3   :  { %10882 = vst [vmem:[#allocation154_spill] sm:$0xff] %v7740_v26 }
  0xe4   :  { %10883 = vst [vmem:[#allocation155_spill] sm:$0xff] %v7743_v1  ;;  %1553 = vmatpush.bf16.msrb.mxu3 %v7759_v21  ;;  %v290_v59 = vpop.f32.mrf.mxu1  ;;  %v367_v19 = vpop.f32.mrf.mxu0  ;;  %1541 = vmatmul.bf16.vlgmr.msrb.gmra.mxu2 %v10809_v39 }
  0xe5   :  { %10884 = vst [vmem:[#allocation156_spill] sm:$0xff] %v7746_v54  ;;  %v6617_v54 = vld [vmem:[#allocation4 + $0x2f4] sm:$0xf0] }
  0xe6   :  { %10885 = vst [vmem:[#allocation157_spill] sm:$0xff] %v7748_v14  ;;  %v7763_v1 = vor.u32 %v6617_v54, %v5952_v10  ;;  %v7766_v14 = vpop.f32.mrf.mxu2  ;;  %v7778_v54 = vadd.f32 %v367_v19, %v7771_v32  ;;  %v7782_v10 = vor.u32 %v6609_v49, %v5920_v4  ;;  %v7789_v31 = vpop.f32.mrf.mxu3 }
  0xe7   :  { %10886 = vst [vmem:[#allocation158_spill] sm:$0xff] %v7750_v41  ;;  %v7775_v41 = vadd.f32 %v290_v59, %v7632_v12  ;;  %1554 = vmatmul.bf16.vlgmr.msrb.gmra.mxu3 %v10809_v39  ;;  %v5856_v59 = vld [vmem:[#allocation4 + $0x218] sm:$0xf] }
  0xe8   :  { %10887 = vst [vmem:[#allocation159_spill] sm:$0xff] %v7754_v11  ;;  %1524 = vmatpush.bf16.msra.mxu1 %v7763_v1 }
  0xe9   :  { %10888 = vst [vmem:[#allocation160_spill] sm:$0xff] %v7756_v27 }
  0xea   :  { %10889 = vst [vmem:[#allocation161_spill] sm:$0xff] %v7759_v21 }
  0xeb   :  { %10890 = vst [vmem:[#allocation162_spill] sm:$0xff] %v7763_v1 }
  0xec   :  { %10891 = vst [vmem:[#allocation163_spill] sm:$0xff] %v7766_v14  ;;  %v6601_v14 = vld [vmem:[#allocation4 + $0x274] sm:$0xf0]  ;;  %1525 = vmatpush.bf16.msra.mxu1 %v7782_v10  ;;  %v7791_v19 = vpop.f32.mrf.mxu1 }
  0xed   :  { %10892 = vst [vmem:[#allocation164_spill] sm:$0xff] %v7768_v35  ;;  %v5888_v35 = vld [vmem:[#allocation4 + $0x258] sm:$0xf] }
  0xee   :  { %10893 = vst [vmem:[#allocation165_spill] sm:$0xff] %v7771_v32  ;;  %v7785_v27 = vor.u32 %v6601_v14, %v5888_v35  ;;  %v7787_v22 = vpop.f32.mrf.mxu2  ;;  %v7801_v14 = vpop.f32.mrf.mxu3 }
  0xef   :  { %10894 = vst [vmem:[#allocation166_spill] sm:$0xff] %v7775_v41  ;;  %v6593_v41 = vld [vmem:[#allocation4 + $0x234] sm:$0xf0] }
  0xf0   :  { %10895 = vst [vmem:[#allocation167_spill] sm:$0xff] %v7778_v54  ;;  %v7793_v54 = vpop.f32.mrf.mxu0  ;;  %1526 = vmatpush.bf16.msra.mxu1 %v7785_v27  ;;  %v7796_v4 = vor.u32 %v6593_v41, %v5856_v59  ;;  %v7813_v41 = vperm.slane %v7493_v58, 7 }
  0xf1   :  { %10896 = vst [vmem:[#allocation168_spill] sm:$0xff] %v7782_v10 }
  0xf2   :  { %10897 = vst [vmem:[#allocation169_spill] sm:$0xff] %v7785_v27 }
  0xf3   :  { %10898 = vst [vmem:[#allocation170_spill] sm:$0xff] %v7791_v19  ;;  %v7810_v19 = vperm.slane %v7493_v58, 6 }
  0xf4   :  { %10899 = vst [vmem:[#allocation171_spill] sm:$0xff] %v7793_v54  ;;  %1527 = vmatpush.bf16.msra.mxu1 %v7796_v4  ;;  %v7803_v35 = vpop.f32.mrf.mxu1 }
  0xf5   :  { %10900 = vst [vmem:[#allocation172_spill] sm:$0xff] %v7796_v4 }
  0xf6   :  { %v7799_v49 = vpop.f32.mrf.mxu2  ;;  %10902 = vst [vmem:[#allocation174_spill] sm:$0xff] %v7801_v14  ;;  %v454_v54 = vpop.f32.mrf.mxu3 }
  0xf7   :  { %10901 = vst [vmem:[#allocation173_spill] sm:$0xff] %v7799_v49  ;;  %1528 = vmatmul.bf16.vlgmr.msra.gmra.mxu1 %v10809_v39  ;;  %v7819_v14 = vadd.f32 %v454_v54, %v7813_v41 }
  0xf8   :  { %v372_v21 = vpop.f32.mrf.mxu0  ;;  %10904 = vst [vmem:[#allocation176_spill] sm:$0xff] %v7810_v19 }
  0xf9   :  { %v7807_v26 = vadd.f32 %v372_v21, %v7771_v32  ;;  %10905 = vst [vmem:[#allocation177_spill] sm:$0xff] %v7813_v41  ;;  %v7826_v21 = vperm.slane %v7493_v58, 5 }
  0xfa   :  { %10907 = vst [vmem:[#allocation179_spill] sm:$0xff] %v7819_v14 }
  0xfb   :  { %10903 = vst [vmem:[#allocation175_spill] sm:$0xff] %v7807_v26 }
  0xfc   :  { %v7821_v4 = vpop.f32.mrf.mxu1  ;;  %10910 = vst [vmem:[#allocation182_spill] sm:$0xff] %v7826_v21 }
  0xfd   :  { %10908 = vst [vmem:[#allocation180_spill] sm:$0xff] %v7821_v4 }
  0xfe   :  { %v425_v59 = vpop.f32.mrf.mxu2  ;;  %v7830_v0 = vpop.f32.mrf.mxu3 }
  0xff   :  { %v7816_v49 = vadd.f32 %v425_v59, %v7810_v19  ;;  %10912 = vst [vmem:[#allocation184_spill] sm:$0xff] %v7830_v0 }
 0x100   :  { %v7823_v27 = vpop.f32.mrf.mxu0 }
 0x101   :  { %10906 = vst [vmem:[#allocation178_spill] sm:$0xff] %v7816_v49 }
 0x102   :  { %10909 = vst [vmem:[#allocation181_spill] sm:$0xff] %v7823_v27 }
 0x104   :  { %v396_v10 = vpop.f32.mrf.mxu1 }
 0x105   :  { %v7833_v11 = vadd.f32 %v396_v10, %v7826_v21 }
 0x106   :  { %v7828_v26 = vpop.f32.mrf.mxu2  ;;  %v459_v14 = vpop.f32.mrf.mxu3 }
 0x107   :  { %10911 = vst [vmem:[#allocation183_spill] sm:$0xff] %v7828_v26  ;;  %v7842_v58 = vadd.f32 %v459_v14, %v7813_v41 }
 0x108   :  { %v377_v1 = vpop.f32.mrf.mxu0  ;;  %10913 = vst [vmem:[#allocation185_spill] sm:$0xff] %v7833_v11 }
 0x109   :  { %v7836_v59 = vadd.f32 %v377_v1, %v7771_v32  ;;  %10916 = vst [vmem:[#allocation188_spill] sm:$0xff] %v7842_v58 }
 0x10b   :  { %10914 = vst [vmem:[#allocation186_spill] sm:$0xff] %v7836_v59 }
 0x10c   :  { %v7844_v27 = vpop.f32.mrf.mxu1 }
 0x10d   :  { %10917 = vst [vmem:[#allocation189_spill] sm:$0xff] %v7844_v27 }
 0x10e   :  { %v430_v54 = vpop.f32.mrf.mxu2  ;;  %v7850_v4 = vpop.f32.mrf.mxu3 }
 0x10f   :  { %v7839_v49 = vadd.f32 %v430_v54, %v7810_v19  ;;  %10920 = vst [vmem:[#allocation192_spill] sm:$0xff] %v7850_v4 }
 0x110   :  { %v7846_v26 = vpop.f32.mrf.mxu0 }
 0x111   :  { %10915 = vst [vmem:[#allocation187_spill] sm:$0xff] %v7839_v49 }
 0x112   :  { %10918 = vst [vmem:[#allocation190_spill] sm:$0xff] %v7846_v26 }
 0x114   :  { %v401_v10 = vpop.f32.mrf.mxu1 }
 0x115   :  { %v7853_v1 = vadd.f32 %v401_v10, %v7826_v21 }
 0x116   :  { %v7848_v0 = vpop.f32.mrf.mxu2  ;;  %v464_v20 = vpop.f32.mrf.mxu3 }
 0x117   :  { %10919 = vst [vmem:[#allocation191_spill] sm:$0xff] %v7848_v0  ;;  %v7859_v14 = vadd.f32 %v464_v20, %v7813_v41  ;;  %v6330_v20 = vld [vmem:[#allocation6 + $0x1f0] sm:$0xf0] }
 0x118   :  { %v1360_v11 = vpop.f32.mrf.mxu0  ;;  %10921 = vst [vmem:[#allocation193_spill] sm:$0xff] %v7853_v1  ;;  %v6328_v1 = vld [vmem:[#allocation6 + $0x1e0] sm:$0xf] }
 0x119   :  { %10923 = vst [vmem:[#allocation195_spill] sm:$0xff] %v7859_v14 }
 0x11c   :  { %v7861_v58 = vpop.f32.mrf.mxu1 }
 0x11d   :  { %10924 = vst [vmem:[#allocation196_spill] sm:$0xff] %v7861_v58 }
 0x11e   :  { %v435_v59 = vpop.f32.mrf.mxu2  ;;  %v7865_v0 = vpop.f32.mrf.mxu3 }
 0x11f   :  { %v7856_v54 = vadd.f32 %v435_v59, %v7810_v19  ;;  %10926 = vst [vmem:[#allocation198_spill] sm:$0xff] %v7865_v0  ;;  %v6710_v59 = vld [vmem:[#allocation6 + $0x1e4] sm:$0xf]  ;;  %v6708_v0 = vld [vmem:[#allocation6 + $0x1cc] sm:$0xf0] }
 0x120   :  { %v1362_v26 = vpop.f32.mrf.mxu0  ;;  %v7874_v14 = vor.u32 %v6710_v59, %v6330_v20  ;;  %v6296_v20 = vld [vmem:[#allocation6 + $0x1a0] sm:$0xf] }
 0x121   :  { %10922 = vst [vmem:[#allocation194_spill] sm:$0xff] %v7856_v54  ;;  %v7872_v54 = vor.u32 %v6712_v28, %v6328_v1  ;;  %v6314_v28 = vld [vmem:[#allocation6 + $0x1d0] sm:$0xf0] }
 0x122   :  { %10929 = vst [vmem:[#allocation201_spill] sm:$0xff] %v7874_v14  ;;  %2028 = vmatpush.bf16.msra.mxu3 %v7874_v14  ;;  %v6298_v14 = vld [vmem:[#allocation6 + $0x1b0] sm:$0xf0] }
 0x123   :  { %10928 = vst [vmem:[#allocation200_spill] sm:$0xff] %v7872_v54  ;;  %2002 = vmatpush.bf16.msrb.mxu1 %v7872_v54  ;;  %v6704_v54 = vld [vmem:[#allocation6 + $0x1ac] sm:$0xf0]  ;;  %v7892_v46 = vor.u32 %v6702_v45, %v6298_v14  ;;  %v6282_v14 = vld [vmem:[#allocation6 + $0x190] sm:$0xf0] }
 0x124   :  { %v406_v4 = vpop.f32.mrf.mxu1  ;;  %v7890_v50 = vor.u32 %v6704_v54, %v6296_v20  ;;  %v6700_v54 = vld [vmem:[#allocation6 + $0x18c] sm:$0xf0]  ;;  %v6698_v20 = vld [vmem:[#allocation6 + $0x184] sm:$0xf] }
 0x125   :  { %v7868_v27 = vadd.f32 %v406_v4, %v7826_v21  ;;  %v6312_v4 = vld [vmem:[#allocation6 + $0x1c0] sm:$0xf]  ;;  %10934 = vst [vmem:[#allocation206_spill] sm:$0xff] %v7892_v46 }
 0x126   :  { %v7863_v49 = vpop.f32.mrf.mxu2  ;;  %v7884_v42 = vor.u32 %v6708_v0, %v6312_v4  ;;  %10933 = vst [vmem:[#allocation205_spill] sm:$0xff] %v7890_v50  ;;  %v6678_v0 = vld [vmem:[#allocation6 + $0xe4] sm:$0xf]  ;;  %v6202_v4 = vld [vmem:[#allocation6 + $0xf0] sm:$0xf0] }
 0x127   :  { %10925 = vst [vmem:[#allocation197_spill] sm:$0xff] %v7863_v49  ;;  %v7879_v49 = vpop.f32.mrf.mxu3 }
 0x128   :  { %10927 = vst [vmem:[#allocation199_spill] sm:$0xff] %v7868_v27  ;;  %v7870_v10 = vpop.f32.mrf.mxu0  ;;  %v6706_v27 = vld [vmem:[#allocation6 + $0x1c4] sm:$0xf]  ;;  %2003 = vmatpush.bf16.msrb.mxu1 %v7884_v42 }
 0x129   :  { %10931 = vst [vmem:[#allocation203_spill] sm:$0xff] %v7884_v42  ;;  %v7886_v1 = vor.u32 %v6706_v27, %v6314_v28 }
 0x12b   :  { %10932 = vst [vmem:[#allocation204_spill] sm:$0xff] %v7886_v1  ;;  %2029 = vmatpush.bf16.msra.mxu3 %v7886_v1  ;;  %v6280_v1 = vld [vmem:[#allocation6 + $0x180] sm:$0xf] }
 0x12c   :  { %v7882_v58 = vpop.f32.mrf.mxu1  ;;  %2004 = vmatpush.bf16.msrb.mxu1 %v7890_v50  ;;  %v7901_v45 = vor.u32 %v6700_v54, %v6280_v1  ;;  %v6186_v50 = vld [vmem:[#allocation6 + $0xd0] sm:$0xf0]  ;;  %v6694_v54 = vld [vmem:[#allocation6 + $0x164] sm:$0xf] }
 0x12d   :  { %10930 = vst [vmem:[#allocation202_spill] sm:$0xff] %v7882_v58  ;;  %v6680_v58 = vld [vmem:[#allocation6 + $0xec] sm:$0xf0] }
 0x12e   :  { %v7877_v26 = vpop.f32.mrf.mxu2  ;;  %v7895_v27 = vor.u32 %v6680_v58, %v6200_v2  ;;  %10937 = vst [vmem:[#allocation209_spill] sm:$0xff] %v7901_v45  ;;  %v247_v2 = vadd.f32 %v7501_v48, %v7496_v6 }
 0x12f   :  { %v1401_v42 = vpop.f32.mrf.mxu3  ;;  %2030 = vmatpush.bf16.msra.mxu3 %v7892_v46 }
 0x130   :  { %v1414_v59 = vpop.f32.mrf.mxu0  ;;  %10935 = vst [vmem:[#allocation207_spill] sm:$0xff] %v7895_v27  ;;  %1989 = vmatpush.bf16.msra.mxu0 %v7895_v27  ;;  %v7906_v42 = vor.u32 %v6698_v20, %v6282_v14  ;;  %2005 = vmatpush.bf16.msrb.mxu1 %v7901_v45  ;;  %v6266_v14 = vld [vmem:[#allocation6 + $0x170] sm:$0xf0]  ;;  %v6692_v45 = vld [vmem:[#allocation6 + $0x14c] sm:$0xf0] }
 0x131   :  { %v7898_v59 = vor.u32 %v6678_v0, %v6202_v4  ;;  %v6676_v0 = vld [vmem:[#allocation6 + $0xcc] sm:$0xf0]  ;;  %v6674_v4 = vld [vmem:[#allocation6 + $0xc4] sm:$0xf] }
 0x132   :  { %10938 = vst [vmem:[#allocation210_spill] sm:$0xff] %v7906_v42  ;;  %v7916_v48 = vor.u32 %v6674_v4, %v6186_v50  ;;  %v6670_v50 = vld [vmem:[#allocation6 + $0xa4] sm:$0xf]  ;;  %v6170_v4 = vld [vmem:[#allocation6 + $0xb0] sm:$0xf0] }
 0x133   :  { %10936 = vst [vmem:[#allocation208_spill] sm:$0xff] %v7898_v59  ;;  %2015 = vmatpush.bf16.msra.mxu2 %v7898_v59  ;;  %2031 = vmatpush.bf16.msra.mxu3 %v7906_v42  ;;  %v6666_v59 = vld [vmem:[#allocation6 + $0x84] sm:$0xf] }
 0x134   :  { %v1373_v24 = vpop.f32.mrf.mxu1  ;;  %10940 = vst [vmem:[#allocation212_spill] sm:$0xff] %v7916_v48 }
 0x135   :  { %v1374_v58 = vadd.f32 %v1373_v24, %v1360_v11  ;;  %v6264_v24 = vld [vmem:[#allocation6 + $0x160] sm:$0xf]  ;;  %v6696_v11 = vld [vmem:[#allocation6 + $0x16c] sm:$0xf0] }
 0x136   :  { %v1388_v28 = vpop.f32.mrf.mxu2  ;;  %v7919_v20 = vor.u32 %v6696_v11, %v6264_v24  ;;  %v7932_v24 = vor.u32 %v6670_v50, %v6170_v4  ;;  %v6248_v11 = vld [vmem:[#allocation6 + $0x140] sm:$0xf]  ;;  %v6154_v4 = vld [vmem:[#allocation6 + $0x90] sm:$0xf0] }
 0x137   :  { %v6184_v28 = vld [vmem:[#allocation6 + $0xc0] sm:$0xf]  ;;  %v7911_v27 = vadd.f32 %v1374_v58, %v247_v2  ;;  %2016 = vmatpush.bf16.msra.mxu2 %v7916_v48  ;;  %v6672_v58 = vld [vmem:[#allocation6 + $0xac] sm:$0xf0]  ;;  %v7929_v42 = vpop.f32.mrf.mxu3 }
 0x138   :  { %v7909_v46 = vor.u32 %v6676_v0, %v6184_v28  ;;  %v7914_v1 = vpop.f32.mrf.mxu0  ;;  %10941 = vst [vmem:[#allocation213_spill] sm:$0xff] %v7919_v20  ;;  %v7922_v28 = vor.u32 %v6694_v54, %v6266_v14  ;;  %v6168_v2 = vld [vmem:[#allocation6 + $0xa0] sm:$0xf]  ;;  %2006 = vmatpush.bf16.msrb.mxu1 %v7919_v20  ;;  %v7935_v14 = vor.u32 %v6692_v45, %v6248_v11  ;;  %v6690_v20 = vld [vmem:[#allocation6 + $0x144] sm:$0xf] }
 0x139   :  { %v7925_v0 = vor.u32 %v6672_v58, %v6168_v2  ;;  %10944 = vst [vmem:[#allocation216_spill] sm:$0xff] %v7932_v24  ;;  %v6250_v2 = vld [vmem:[#allocation6 + $0x150] sm:$0xf0]  ;;  %v6152_v48 = vld [vmem:[#allocation6 + $0x80] sm:$0xf] }
 0x13a   :  { %10939 = vst [vmem:[#allocation211_spill] sm:$0xff] %v7909_v46  ;;  %1990 = vmatpush.bf16.msra.mxu0 %v7909_v46  ;;  %2032 = vmatpush.bf16.msra.mxu3 %v7922_v28  ;;  %v7938_v58 = vor.u32 %v6690_v20, %v6250_v2  ;;  %v6668_v46 = vld [vmem:[#allocation6 + $0x8c] sm:$0xf0]  ;;  %v6232_v45 = vld [vmem:[#allocation6 + $0x120] sm:$0xf] }
 0x13b   :  { %10942 = vst [vmem:[#allocation214_spill] sm:$0xff] %v7922_v28  ;;  %2017 = vmatpush.bf16.msra.mxu2 %v7932_v24  ;;  %v7941_v50 = vor.u32 %v6668_v46, %v6152_v48  ;;  %v6688_v11 = vld [vmem:[#allocation6 + $0x12c] sm:$0xf0]  ;;  %v6686_v28 = vld [vmem:[#allocation6 + $0x124] sm:$0xf] }
 0x13c   :  { %10943 = vst [vmem:[#allocation215_spill] sm:$0xff] %v7925_v0  ;;  %v1375_v54 = vpop.f32.mrf.mxu1  ;;  %2007 = vmatpush.bf16.msrb.mxu1 %v7935_v14  ;;  %v7947_v20 = vor.u32 %v6688_v11, %v6232_v45  ;;  %v6234_v2 = vld [vmem:[#allocation6 + $0x130] sm:$0xf0]  ;;  %v6136_v46 = vld [vmem:[#allocation6 + $0x60] sm:$0xf] }
 0x13d   :  { %10945 = vst [vmem:[#allocation217_spill] sm:$0xff] %v7935_v14  ;;  %v7944_v54 = vor.u32 %v6666_v59, %v6154_v4  ;;  %v7950_v24 = vor.u32 %v6686_v28, %v6234_v2  ;;  %v6664_v48 = vld [vmem:[#allocation6 + $0x6c] sm:$0xf0]  ;;  %v6662_v14 = vld [vmem:[#allocation6 + $0x64] sm:$0xf] }
 0x13e   :  { %v7927_v6 = vpop.f32.mrf.mxu2  ;;  %1991 = vmatpush.bf16.msra.mxu0 %v7925_v0  ;;  %10946 = vst [vmem:[#allocation218_spill] sm:$0xff] %v7938_v58  ;;  %2033 = vmatpush.bf16.msra.mxu3 %v7938_v58  ;;  %v7953_v59 = vor.u32 %v6664_v48, %v6136_v46  ;;  %v6138_v4 = vld [vmem:[#allocation6 + $0x70] sm:$0xf0]  ;;  %v6216_v45 = vld [vmem:[#allocation6 + $0x100] sm:$0xf]  ;;  %v305_v46 = vadd.f32 %v7527_v25, %v7580_v16 }
 0x13f   :  { %10947 = vst [vmem:[#allocation219_spill] sm:$0xff] %v7941_v50  ;;  %2018 = vmatpush.bf16.msra.mxu2 %v7944_v54  ;;  %v1453_v3 = vpop.f32.mrf.mxu3  ;;  %v6684_v11 = vld [vmem:[#allocation6 + $0x10c] sm:$0xf0]  ;;  %v6218_v2 = vld [vmem:[#allocation6 + $0x110] sm:$0xf0] }
 0x140   :  { %10948 = vst [vmem:[#allocation220_spill] sm:$0xff] %v7944_v54  ;;  %v1466_v0 = vpop.f32.mrf.mxu0  ;;  %2008 = vmatpush.bf16.msrb.mxu1 %v7947_v20  ;;  %v7959_v28 = vor.u32 %v6684_v11, %v6216_v45  ;;  %v6711_v48 = vld [vmem:[#allocation6 + $0x1ec] sm:$0xf]  ;;  %v6120_v11 = vld [vmem:[#allocation6 + $0x40] sm:$0xf] }
 0x141   :  { %10949 = vst [vmem:[#allocation221_spill] sm:$0xff] %v7947_v20  ;;  %v7956_v0 = vor.u32 %v6662_v14, %v6138_v4  ;;  %v6713_v14 = vld [vmem:[#allocation6 + $0x1f4] sm:$0xf0]  ;;  %v6338_v4 = vld [vmem:[#allocation6 + $0x1f8] sm:$0xf0] }
 0x142   :  { %1992 = vmatpush.bf16.msra.mxu0 %v7941_v50  ;;  %10950 = vst [vmem:[#allocation222_spill] sm:$0xff] %v7950_v24  ;;  %2034 = vmatpush.bf16.msra.mxu3 %v7950_v24  ;;  %v6682_v50 = vld [vmem:[#allocation6 + $0x104] sm:$0xf]  ;;  %v7968_v24 = vor.u32 %v6713_v14, %v6336_v15  ;;  %v7970_v45 = vor.u32 %v6711_v48, %v6338_v4  ;;  %v6660_v20 = vld [vmem:[#allocation6 + $0x4c] sm:$0xf0] }
 0x143   :  { %10951 = vst [vmem:[#allocation223_spill] sm:$0xff] %v7953_v59  ;;  %2019 = vmatpush.bf16.msra.mxu2 %v7956_v0  ;;  %v7965_v3 = vor.u32 %v6682_v50, %v6218_v2  ;;  %v7975_v25 = vor.u32 %v6660_v20, %v6120_v11  ;;  %v6320_v15 = vld [vmem:[#allocation6 + $0x1c8] sm:$0xf]  ;;  %v6707_v2 = vld [vmem:[#allocation6 + $0x1cc] sm:$0xf] }
 0x144   :  { %10952 = vst [vmem:[#allocation224_spill] sm:$0xff] %v7956_v0  ;;  %v1425_v54 = vpop.f32.mrf.mxu1  ;;  %2009 = vmatpush.bf16.msrb.mxu1 %v7959_v28  ;;  %v6656_v48 = vld [vmem:[#allocation6 + $0x2c] sm:$0xf0]  ;;  %v6654_v4 = vld [vmem:[#allocation6 + $0x24] sm:$0xf] }
 0x145   :  { %10953 = vst [vmem:[#allocation225_spill] sm:$0xff] %v7959_v28  ;;  %v6106_v11 = vld [vmem:[#allocation6 + $0x30] sm:$0xf0]  ;;  %v6088_v28 = vld [vmem:[#allocation6] sm:$0xf] }
 0x146   :  { %v1440_v58 = vpop.f32.mrf.mxu2  ;;  %1993 = vmatpush.bf16.msra.mxu0 %v7953_v59  ;;  %10954 = vst [vmem:[#allocation226_spill] sm:$0xff] %v7965_v3  ;;  %v6658_v59 = vld [vmem:[#allocation6 + $0x44] sm:$0xf]  ;;  %2035 = vmatpush.bf16.msra.mxu3 %v7965_v3  ;;  %v6306_v3 = vld [vmem:[#allocation6 + $0x1b8] sm:$0xf0] }
 0x147   :  { %v1426_v58 = vadd.f32 %v1425_v54, %v7870_v10  ;;  %10955 = vst [vmem:[#allocation227_spill] sm:$0xff] %v7968_v24  ;;  %v6122_v10 = vld [vmem:[#allocation6 + $0x50] sm:$0xf0]  ;;  %v6709_v54 = vld [vmem:[#allocation6 + $0x1d4] sm:$0xf0] }
 0x148   :  { %10956 = vst [vmem:[#allocation228_spill] sm:$0xff] %v7970_v45  ;;  %2054 = vmatpush.bf16.msra.mxu1 %v7968_v24  ;;  %v7979_v50 = vor.u32 %v6658_v59, %v6122_v10  ;;  %v7982_v14 = vor.u32 %v6709_v54, %v6320_v15  ;;  %v7991_v10 = vor.u32 %v6654_v4, %v6106_v11  ;;  %v6304_v15 = vld [vmem:[#allocation6 + $0x1a8] sm:$0xf]  ;;  %v6705_v54 = vld [vmem:[#allocation6 + $0x1b4] sm:$0xf0] }
 0x149   :  { %v7972_v57 = vadd.f32 %v1426_v58, %v305_v46  ;;  %10957 = vst [vmem:[#allocation229_spill] sm:$0xff] %v7975_v25  ;;  %v6322_v46 = vld [vmem:[#allocation6 + $0x1d8] sm:$0xf0]  ;;  %v6104_v58 = vld [vmem:[#allocation6 + $0x20] sm:$0xf] }
 0x14a   :  { %2080 = vmatpush.bf16.msrb.mxu3 %v7970_v45  ;;  %10958 = vst [vmem:[#allocation230_spill] sm:$0xff] %v7979_v50  ;;  %1994 = vmatpush.bf16.msra.mxu0 %v7975_v25  ;;  %v7985_v20 = vor.u32 %v6707_v2, %v6322_v46  ;;  %v7989_v59 = vor.u32 %v6656_v48, %v6104_v58  ;;  %v7993_v45 = vpop.f32.mrf.mxu3  ;;  %v6703_v2 = vld [vmem:[#allocation6 + $0x1ac] sm:$0xf]  ;;  %v6652_v48 = vld [vmem:[#allocation6 + $0xc] sm:$0xf0] }
 0x14b   :  { %10959 = vst [vmem:[#allocation231_spill] sm:$0xff] %v7982_v14  ;;  %2020 = vmatpush.bf16.msra.mxu2 %v7979_v50  ;;  %v7998_v46 = vor.u32 %v6705_v54, %v6304_v15  ;;  %v8001_v58 = vor.u32 %v6703_v2, %v6306_v3  ;;  %v6650_v4 = vld [vmem:[#allocation6 + $0x4] sm:$0xf]  ;;  %v8003_v11 = vor.u32 %v6652_v48, %v6088_v28  ;;  %v6681_v50 = vld [vmem:[#allocation6 + $0xf4] sm:$0xf0] }
 0x14c   :  { %10960 = vst [vmem:[#allocation232_spill] sm:$0xff] %v7985_v20  ;;  %v1427_v24 = vpop.f32.mrf.mxu1  ;;  %2055 = vmatpush.bf16.msra.mxu1 %v7982_v14  ;;  %v6679_v25 = vld [vmem:[#allocation6 + $0xec] sm:$0xf]  ;;  %v6210_v54 = vld [vmem:[#allocation6 + $0xf8] sm:$0xf0] }
 0x14d   :  { %10961 = vst [vmem:[#allocation233_spill] sm:$0xff] %v7989_v59  ;;  %v6090_v24 = vld [vmem:[#allocation6 + $0x10] sm:$0xf0]  ;;  %v6701_v3 = vld [vmem:[#allocation6 + $0x194] sm:$0xf0]  ;;  %v8012_v2 = vor.u32 %v6679_v25, %v6210_v54 }
 0x14e   :  { %v7987_v16 = vpop.f32.mrf.mxu2  ;;  %10962 = vst [vmem:[#allocation234_spill] sm:$0xff] %v7991_v10  ;;  %2081 = vmatpush.bf16.msrb.mxu3 %v7985_v20  ;;  %1995 = vmatpush.bf16.msra.mxu0 %v7989_v59  ;;  %v8005_v14 = vor.u32 %v6650_v4, %v6090_v24  ;;  %v6208_v20 = vld [vmem:[#allocation6 + $0xe8] sm:$0xf]  ;;  %v6699_v48 = vld [vmem:[#allocation6 + $0x18c] sm:$0xf] }
 0x14f   :  { %10963 = vst [vmem:[#allocation235_spill] sm:$0xff] %v7998_v46  ;;  %2021 = vmatpush.bf16.msra.mxu2 %v7991_v10  ;;  %v8009_v15 = vor.u32 %v6681_v50, %v6208_v20  ;;  %v6288_v10 = vld [vmem:[#allocation6 + $0x188] sm:$0xf]  ;;  %v6290_v4 = vld [vmem:[#allocation6 + $0x198] sm:$0xf0] }
 0x150   :  { %10964 = vst [vmem:[#allocation236_spill] sm:$0xff] %v8001_v58  ;;  %2056 = vmatpush.bf16.msra.mxu1 %v7998_v46  ;;  %v8014_v28 = vor.u32 %v6701_v3, %v6288_v10  ;;  %v8018_v24 = vor.u32 %v6699_v48, %v6290_v4  ;;  %v6677_v50 = vld [vmem:[#allocation6 + $0xd4] sm:$0xf0]  ;;  %v6194_v25 = vld [vmem:[#allocation6 + $0xd8] sm:$0xf0]  ;;  %v8023_v10 = vpop.f32.mrf.mxu0 }
 0x151   :  { %10965 = vst [vmem:[#allocation237_spill] sm:$0xff] %v8003_v11  ;;  %v6272_v48 = vld [vmem:[#allocation6 + $0x168] sm:$0xf]  ;;  %v6697_v4 = vld [vmem:[#allocation6 + $0x174] sm:$0xf0] }
 0x152   :  { %10966 = vst [vmem:[#allocation238_spill] sm:$0xff] %v8005_v14  ;;  %2082 = vmatpush.bf16.msrb.mxu3 %v8001_v58  ;;  %1996 = vmatpush.bf16.msra.mxu0 %v8003_v11  ;;  %v6192_v58 = vld [vmem:[#allocation6 + $0xc8] sm:$0xf]  ;;  %v6675_v11 = vld [vmem:[#allocation6 + $0xcc] sm:$0xf]  ;;  %v1505_v54 = vpop.f32.mrf.mxu3 }
 0x153   :  { %10967 = vst [vmem:[#allocation239_spill] sm:$0xff] %v8009_v15  ;;  %2022 = vmatpush.bf16.msra.mxu2 %v8005_v14  ;;  %v8021_v46 = vor.u32 %v6677_v50, %v6192_v58  ;;  %v8027_v3 = vor.u32 %v6675_v11, %v6194_v25  ;;  %v8029_v14 = vor.u32 %v6697_v4, %v6272_v48  ;;  %v6671_v48 = vld [vmem:[#allocation6 + $0xac] sm:$0xf]  ;;  %v6178_v4 = vld [vmem:[#allocation6 + $0xb8] sm:$0xf0] }
 0x154   :  { %10968 = vst [vmem:[#allocation240_spill] sm:$0xff] %v8012_v2  ;;  %2057 = vmatpush.bf16.msra.mxu1 %v8014_v28  ;;  %v363_v58 = vadd.f32 %v7716_v63, %v7771_v32  ;;  %v1452_v11 = vadd.f32 %v7929_v42, %v7927_v6  ;;  %v8046_v63 = vor.u32 %v6671_v48, %v6178_v4  ;;  %v6667_v32 = vld [vmem:[#allocation6 + $0x8c] sm:$0xf] }
 0x155   :  { %10969 = vst [vmem:[#allocation241_spill] sm:$0xff] %v8014_v28  ;;  %v6176_v28 = vld [vmem:[#allocation6 + $0xa8] sm:$0xf]  ;;  %v334_v6 = vadd.f32 %v7529_v36, %v7583_v40  ;;  %v276_v36 = vadd.f32 %v7559_v44, %v7632_v12  ;;  %v6663_v40 = vld [vmem:[#allocation6 + $0x6c] sm:$0xf] }
 0x156   :  { %2041 = vmatpush.bf16.msrb.mxu0 %v8009_v15  ;;  %10970 = vst [vmem:[#allocation242_spill] sm:$0xff] %v8018_v24  ;;  %v1492_v20 = vpop.f32.mrf.mxu2  ;;  %2083 = vmatpush.bf16.msrb.mxu3 %v8018_v24  ;;  %v1477_v15 = vpop.f32.mrf.mxu1  ;;  %v6673_v24 = vld [vmem:[#allocation6 + $0xb4] sm:$0xf0]  ;;  %v6144_v44 = vld [vmem:[#allocation6 + $0x68] sm:$0xf] }
 0x157   :  { %2067 = vmatpush.bf16.msrb.mxu2 %v8012_v2  ;;  %10971 = vst [vmem:[#allocation243_spill] sm:$0xff] %v8021_v46  ;;  %v6695_v20 = vld [vmem:[#allocation6 + $0x16c] sm:$0xf]  ;;  %v6274_v2 = vld [vmem:[#allocation6 + $0x178] sm:$0xf0]  ;;  %v1478_v50 = vadd.f32 %v1477_v15, %v7914_v1  ;;  %v8040_v25 = vor.u32 %v6673_v24, %v6176_v28  ;;  %v1400_v24 = vadd.f32 %v7879_v49, %v7877_v26 }
 0x158   :  { %10972 = vst [vmem:[#allocation244_spill] sm:$0xff] %v8027_v3  ;;  %v8035_v54 = vor.u32 %v6695_v20, %v6274_v2  ;;  %2058 = vmatpush.bf16.msra.mxu1 %v8029_v14  ;;  %v6256_v1 = vld [vmem:[#allocation6 + $0x148] sm:$0xf]  ;;  %v6693_v15 = vld [vmem:[#allocation6 + $0x154] sm:$0xf0]  ;;  %v1562_v48 = vadd.f32 %v1452_v11, %v334_v6 }
 0x159   :  { %10973 = vst [vmem:[#allocation245_spill] sm:$0xff] %v8029_v14  ;;  %v8042_v59 = vadd.f32 %v1478_v50, %v363_v58  ;;  %v6691_v2 = vld [vmem:[#allocation6 + $0x14c] sm:$0xf]  ;;  %v8050_v42 = vor.u32 %v6693_v15, %v6256_v1  ;;  %v6258_v28 = vld [vmem:[#allocation6 + $0x158] sm:$0xf0]  ;;  %v1518_v1 = vpop.f32.mrf.mxu0 }
 0x15a   :  { %2042 = vmatpush.bf16.msrb.mxu0 %v8021_v46  ;;  %10974 = vst [vmem:[#allocation246_spill] sm:$0xff] %v8035_v54  ;;  %2084 = vmatpush.bf16.msrb.mxu3 %v8035_v54  ;;  %v8055_v20 = vor.u32 %v6691_v2, %v6258_v28  ;;  %v6160_v58 = vld [vmem:[#allocation6 + $0x88] sm:$0xf]  ;;  %v6669_v50 = vld [vmem:[#allocation6 + $0x94] sm:$0xf0]  ;;  %v1570_v12 = vmul.f32 0.5, %v1562_v48 }
 0x15b   :  { %2068 = vmatpush.bf16.msrb.mxu2 %v8027_v3  ;;  %10975 = vst [vmem:[#allocation247_spill] sm:$0xff] %v8040_v25  ;;  %v8058_v4 = vor.u32 %v6669_v50, %v6160_v58  ;;  %v6162_v54 = vld [vmem:[#allocation6 + $0x98] sm:$0xf0]  ;;  %v6240_v26 = vld [vmem:[#allocation6 + $0x128] sm:$0xf]  ;;  %v1560_v58 = vadd.f32 %v1400_v24, %v276_v36 }
 0x15c   :  { %10976 = vst [vmem:[#allocation248_spill] sm:$0xff] %v8046_v63  ;;  %2059 = vmatpush.bf16.msra.mxu1 %v8050_v42  ;;  %v8064_v49 = vor.u32 %v6667_v32, %v6162_v54  ;;  %v6689_v15 = vld [vmem:[#allocation6 + $0x134] sm:$0xf0]  ;;  %v6687_v6 = vld [vmem:[#allocation6 + $0x12c] sm:$0xf]  ;;  %6725 = vtanh.f32 %v1570_v12 }
 0x15d   :  { %10977 = vst [vmem:[#allocation249_spill] sm:$0xff] %v8050_v42  ;;  %v8066_v11 = vor.u32 %v6689_v15, %v6240_v26  ;;  %v6242_v28 = vld [vmem:[#allocation6 + $0x138] sm:$0xf0]  ;;  %v6665_v1 = vld [vmem:[#allocation6 + $0x74] sm:$0xf0] }
 0x15e   :  { %2043 = vmatpush.bf16.msrb.mxu0 %v8040_v25  ;;  %10978 = vst [vmem:[#allocation250_spill] sm:$0xff] %v8055_v20  ;;  %2085 = vmatpush.bf16.msrb.mxu3 %v8055_v20  ;;  %v1479_v2 = vpop.f32.mrf.mxu1  ;;  %v8069_v50 = vor.u32 %v6687_v6, %v6242_v28  ;;  %v8072_v32 = vor.u32 %v6665_v1, %v6144_v44  ;;  %v6146_v54 = vld [vmem:[#allocation6 + $0x78] sm:$0xf0]  ;;  %v6224_v24 = vld [vmem:[#allocation6 + $0x108] sm:$0xf]  ;;  %v1568_v28 = vmul.f32 0.5, %v1560_v58 }
 0x15f   :  { %2069 = vmatpush.bf16.msrb.mxu2 %v8046_v63  ;;  %10979 = vst [vmem:[#allocation251_spill] sm:$0xff] %v8058_v4  ;;  %v8076_v26 = vor.u32 %v6663_v40, %v6146_v54  ;;  %v6685_v36 = vld [vmem:[#allocation6 + $0x114] sm:$0xf0]  ;;  %v6683_v15 = vld [vmem:[#allocation6 + $0x10c] sm:$0xf]  ;;  %v1504_v40 = vadd.f32 %v7993_v45, %v7987_v16  ;;  %v1569_v45 = vmul.f32 0.5, %v7972_v57 }
 0x160   :  { %10980 = vst [vmem:[#allocation252_spill] sm:$0xff] %v8064_v49  ;;  %2060 = vmatpush.bf16.msra.mxu1 %v8066_v11  ;;  %v8078_v2 = vor.u32 %v6685_v36, %v6224_v24  ;;  %v6226_v6 = vld [vmem:[#allocation6 + $0x118] sm:$0xf0]  ;;  %v6128_v44 = vld [vmem:[#allocation6 + $0x48] sm:$0xf]  ;;  %6727 = vtanh.f32 %v1568_v28 }
 0x161   :  { %10981 = vst [vmem:[#allocation253_spill] sm:$0xff] %v8066_v11  ;;  %v8081_v48 = vor.u32 %v6683_v15, %v6226_v6  ;;  %v6661_v1 = vld [vmem:[#allocation6 + $0x54] sm:$0xf0]  ;;  %v6659_v24 = vld [vmem:[#allocation6 + $0x4c] sm:$0xf]  ;;  %v392_v15 = vadd.f32 %v7803_v35, %v7826_v21  ;;  %v450_v35 = vadd.f32 %v7789_v31, %v7813_v41  ;;  %v1567_v21 = vmul.f32 0.5, %v7911_v27 }
 0x162   :  { %2044 = vmatpush.bf16.msrb.mxu0 %v8058_v4  ;;  %10982 = vst [vmem:[#allocation254_spill] sm:$0xff] %v8069_v50  ;;  %2086 = vmatpush.bf16.msrb.mxu3 %v8069_v50  ;;  %v8088_v54 = vor.u32 %v6661_v1, %v6128_v44  ;;  %v6130_v58 = vld [vmem:[#allocation6 + $0x58] sm:$0xf0]  ;;  %v6112_v12 = vld [vmem:[#allocation6 + $0x28] sm:$0xf]  ;;  %v6726_v50 = vpop.eup %6725  ;;  %6729 = vtanh.f32 %v1569_v45 }
 0x163   :  { %2070 = vmatpush.bf16.msrb.mxu2 %v8064_v49  ;;  %10983 = vst [vmem:[#allocation255_spill] sm:$0xff] %v8072_v32  ;;  %v8090_v36 = vor.u32 %v6659_v24, %v6130_v58  ;;  %v6657_v16 = vld [vmem:[#allocation6 + $0x34] sm:$0xf0]  ;;  %v1564_v6 = vadd.f32 %v1504_v40, %v392_v15  ;;  %v6655_v1 = vld [vmem:[#allocation6 + $0x2c] sm:$0xf] }
 0x164   :  { %10984 = vst [vmem:[#allocation256_spill] sm:$0xff] %v8076_v26  ;;  %2061 = vmatpush.bf16.msra.mxu1 %v8078_v2  ;;  %v8097_v44 = vor.u32 %v6657_v16, %v6112_v12  ;;  %v6096_v57 = vld [vmem:[#allocation6 + $0x8] sm:$0xf]  ;;  %v6653_v40 = vld [vmem:[#allocation6 + $0x14] sm:$0xf0] }
 0x165   :  { %10985 = vst [vmem:[#allocation257_spill] sm:$0xff] %v8078_v2  ;;  %v6114_v2 = vld [vmem:[#allocation6 + $0x38] sm:$0xf0]  ;;  %v1572_v12 = vmul.f32 0.5, %v1564_v6 }
 0x166   :  { %2045 = vmatpush.bf16.msrb.mxu0 %v8072_v32  ;;  %10986 = vst [vmem:[#allocation258_spill] sm:$0xff] %v8081_v48  ;;  %2087 = vmatpush.bf16.msrb.mxu3 %v8081_v48  ;;  %v8099_v58 = vor.u32 %v6655_v1, %v6114_v2  ;;  %v6728_v15 = vpop.eup %6727  ;;  %v6651_v2 = vld [vmem:[#allocation6 + $0xc] sm:$0xf]  ;;  %v6098_v1 = vld [vmem:[#allocation6 + $0x18] sm:$0xf0] }
 0x167   :  { %2071 = vmatpush.bf16.msrb.mxu2 %v8076_v26  ;;  %10987 = vst [vmem:[#allocation259_spill] sm:$0xff] %v8088_v54  ;;  %v1542_v48 = vpop.f32.mrf.mxu2  ;;  %v8108_v11 = vor.u32 %v6651_v2, %v6098_v1  ;;  %v1580_v31 = vmul.f32 0.5, %v6728_v15 }
 0x168   :  { %10988 = vst [vmem:[#allocation260_spill] sm:$0xff] %v8090_v36  ;;  %v6730_v6 = vpop.eup %6729 }
 0x169   :  { %10989 = vst [vmem:[#allocation261_spill] sm:$0xff] %v8097_v44  ;;  %v1581_v2 = vmul.f32 0.5, %v6730_v6  ;;  %v6518_v6 = vld [vmem:[#allocation8 + $0xe4] sm:$0xf] }
 0x16a   :  { %2046 = vmatpush.bf16.msrb.mxu0 %v8088_v54  ;;  %v1555_v24 = vpop.f32.mrf.mxu3  ;;  %10990 = vst [vmem:[#allocation262_spill] sm:$0xff] %v8099_v58  ;;  %v1582_v54 = vmul.f32 0.5, %v6726_v50 }
 0x16b   :  { %2072 = vmatpush.bf16.msrb.mxu2 %v8090_v36  ;;  %v1556_v28 = vadd.f32 %v1555_v24, %v1542_v48  ;;  %v8106_v36 = vor.u32 %v6653_v40, %v6096_v57  ;;  %10992 = vst [vmem:[#allocation264_spill] sm:$0xff] %v8108_v11 }
 0x16c   :  { %v1588_v48 = vadd.f32 0.5, %v1582_v54 }
 0x16d   :  { %v1566_v16 = vadd.f32 %v1556_v28, %v450_v35  ;;  %10991 = vst [vmem:[#allocation263_spill] sm:$0xff] %v8106_v36  ;;  %v421_v35 = vadd.f32 %v7787_v22, %v7810_v19  ;;  %v1586_v28 = vadd.f32 0.5, %v1580_v31 }
 0x16e   :  { %2047 = vmatpush.bf16.msrb.mxu0 %v8097_v44 }
 0x16f   :  { %2073 = vmatpush.bf16.msrb.mxu2 %v8099_v58  ;;  %6731 = vtanh.f32 %v1566_v16  ;;  %v1544_v27 = vpop.f32.mrf.mxu2  ;;  %v1594_v16 = vmul.f32 0.0, %v1588_v48 }
 0x170   :  { %6733 = vtanh.f32 %v1567_v21 }
 0x171   :  { %6735 = vtanh.f32 %v1572_v12  ;;  %v1571_v12 = vmul.f32 0.5, %v8042_v59 }
 0x172   :  { %2048 = vmatpush.bf16.msrb.mxu0 %v8106_v36  ;;  %v1557_v45 = vpop.f32.mrf.mxu3 }
 0x173   :  { %2074 = vmatpush.bf16.msrb.mxu2 %v8108_v11  ;;  %v1587_v45 = vadd.f32 0.5, %v1581_v2  ;;  %v6440_v11 = vld [vmem:[#allocation8 + $0xc0] sm:$0xf] }
 0x174   :  { %v1529_v24 = vpop.f32.mrf.mxu1 }
 0x175   :  { %v1530_v50 = vadd.f32 %v1529_v24, %v8023_v10  ;;  %v6732_v57 = vpop.eup %6731  ;;  %v1593_v24 = vmul.f32 0.0, %v1587_v45  ;;  %v6450_v45 = vld [vmem:[#allocation8 + $0xd8] sm:$0xf0] }
 0x176   :  { %v6734_v40 = vpop.eup %6733  ;;  %v1596_v15 = vmul.f32 %v6732_v57, %v1586_v28  ;;  %v6466_v57 = vld [vmem:[#allocation8 + $0xf8] sm:$0xf0] }
 0x177   :  { %v1565_v21 = vadd.f32 %v1530_v50, %v421_v35  ;;  %v6736_v1 = vpop.eup %6735  ;;  %v1579_v54 = vmul.f32 0.5, %v6734_v40  ;;  %v6458_v35 = vld [vmem:[#allocation8 + $0xf0] sm:$0xf0]  ;;  %v6519_v50 = vld [vmem:[#allocation8 + $0xec] sm:$0xf] }
 0x178   :  { %v8116_v27 = vadd.f32 %v1596_v15, %v1594_v16  ;;  %v1584_v41 = vmul.f32 0.5, %v6736_v1  ;;  %v8121_v40 = vor.u32 %v6518_v6, %v6458_v35  ;;  %v8123_v2 = vor.u32 %v6519_v50, %v6466_v57  ;;  %v6514_v1 = vld [vmem:[#allocation8 + $0xc4] sm:$0xf]  ;;  %v6511_v6 = vld [vmem:[#allocation8 + $0xac] sm:$0xf] }
 0x179   :  { %6737 = vtanh.f32 %v1565_v21  ;;  %v1585_v10 = vadd.f32 0.5, %v1579_v54  ;;  %v6515_v54 = vld [vmem:[#allocation8 + $0xcc] sm:$0xf]  ;;  %v6456_v50 = vld [vmem:[#allocation8 + $0xe0] sm:$0xf] }
 0x17a   :  { %10993 = vst [vmem:[#allocation265_spill] sm:$0xff] %v8116_v27  ;;  %6739 = vtanh.f32 %v8116_v27  ;;  %v1590_v48 = vadd.f32 0.5, %v1584_v41  ;;  %v6442_v41 = vld [vmem:[#allocation8 + $0xd0] sm:$0xf0] }
 0x17b   :  { %6741 = vtanh.f32 %v1571_v12  ;;  %10995 = vst [vmem:[#allocation267_spill] sm:$0xff] %v8121_v40 }
 0x17c   :  { %v1531_v22 = vpop.f32.mrf.mxu1  ;;  %10996 = vst [vmem:[#allocation268_spill] sm:$0xff] %v8123_v2 }
 0x17f   :  { %v6738_v31 = vpop.eup %6737 }
 0x180   :  { %v1595_v28 = vmul.f32 %v6738_v31, %v1585_v10  ;;  %v6740_v59 = vpop.eup %6739  ;;  %v8132_v10 = vor.u32 %v6514_v1, %v6442_v41  ;;  %v8134_v31 = vor.u32 %v6515_v54, %v6450_v45  ;;  %v6506_v41 = vld [vmem:[#allocation8 + $0x84] sm:$0xf]  ;;  %v6410_v54 = vld [vmem:[#allocation8 + $0x90] sm:$0xf0]  ;;  %v6507_v45 = vld [vmem:[#allocation8 + $0x8c] sm:$0xf] }
 0x181   :  { %v6742_v16 = vpop.eup %6741  ;;  %v1602_v15 = vmul.f32 %v6740_v59, %v1590_v48  ;;  %v6426_v48 = vld [vmem:[#allocation8 + $0xb0] sm:$0xf0]  ;;  %v6520_v59 = vld [vmem:[#allocation8 + $0xec] sm:$0xf0] }
 0x182   :  { %v8119_v21 = vadd.f32 %v1595_v28, %v1593_v24  ;;  %v1583_v22 = vmul.f32 0.5, %v6742_v16  ;;  %10997 = vst [vmem:[#allocation269_spill] sm:$0xff] %v8132_v10  ;;  %v6510_v24 = vld [vmem:[#allocation8 + $0xa4] sm:$0xf]  ;;  %v6434_v28 = vld [vmem:[#allocation8 + $0xb8] sm:$0xf0] }
 0x183   :  { %v8125_v12 = vpack.c.bf16 %v1602_v15, %v1602_v15  ;;  %10998 = vst [vmem:[#allocation270_spill] sm:$0xff] %v8134_v31  ;;  %v6464_v16 = vld [vmem:[#allocation8 + $0xe8] sm:$0xf]  ;;  %v6521_v15 = vld [vmem:[#allocation8 + $0xf4] sm:$0xf0]  ;;  %v8140_v1 = vor.u32 %v6511_v6, %v6434_v28 }
 0x184   :  { %10994 = vst [vmem:[#allocation266_spill] sm:$0xff] %v8119_v21  ;;  %6743 = vtanh.f32 %v8119_v21  ;;  %v1589_v35 = vadd.f32 0.5, %v1583_v22  ;;  %v8144_v22 = vor.u32 %v6520_v59, %v6456_v50  ;;  %v8146_v19 = vor.u32 %v6521_v15, %v6464_v16  ;;  %v6502_v6 = vld [vmem:[#allocation8 + $0x64] sm:$0xf]  ;;  %v6503_v28 = vld [vmem:[#allocation8 + $0x6c] sm:$0xf] }
 0x185   :  { %2010 = vmatmul.bf16.vlgmr.msrb.gmra.mxu1 %v8125_v12  ;;  %2036 = vmatmul.bf16.vlgmr.msra.gmra.mxu3 %v8125_v12  ;;  %11000 = vst [vmem:[#allocation272_spill] sm:$0xff] %v8140_v1  ;;  %v6402_v50 = vld [vmem:[#allocation8 + $0x78] sm:$0xf0]  ;;  %v6424_v15 = vld [vmem:[#allocation8 + $0xa0] sm:$0xf] }
 0x186   :  { %2266 = vmatpush.bf16.msrb.mxu1 %v8121_v40  ;;  %2292 = vmatpush.bf16.msra.mxu3 %v8123_v2  ;;  %v8138_v2 = vor.u32 %v6510_v24, %v6426_v48  ;;  %v6418_v40 = vld [vmem:[#allocation8 + $0x98] sm:$0xf0]  ;;  %11001 = vst [vmem:[#allocation273_spill] sm:$0xff] %v8144_v22  ;;  %v8150_v24 = vor.u32 %v6506_v41, %v6410_v54  ;;  %v6512_v41 = vld [vmem:[#allocation8 + $0xac] sm:$0xf0] }
 0x187   :  { %11002 = vst [vmem:[#allocation274_spill] sm:$0xff] %v8146_v19  ;;  %v8152_v48 = vor.u32 %v6507_v45, %v6418_v40  ;;  %v6432_v40 = vld [vmem:[#allocation8 + $0xa8] sm:$0xf]  ;;  %v6513_v54 = vld [vmem:[#allocation8 + $0xb4] sm:$0xf0] }
 0x188   :  { %10999 = vst [vmem:[#allocation271_spill] sm:$0xff] %v8138_v2 }
 0x189   :  { %11003 = vst [vmem:[#allocation275_spill] sm:$0xff] %v8150_v24 }
 0x18a   :  { %v6744_v57 = vpop.eup %6743  ;;  %2267 = vmatpush.bf16.msrb.mxu1 %v8132_v10  ;;  %2293 = vmatpush.bf16.msra.mxu3 %v8134_v31  ;;  %v6517_v10 = vld [vmem:[#allocation8 + $0xd4] sm:$0xf0]  ;;  %11004 = vst [vmem:[#allocation276_spill] sm:$0xff] %v8152_v48  ;;  %v6378_v31 = vld [vmem:[#allocation8 + $0x50] sm:$0xf0] }
 0x18b   :  { %v1601_v27 = vmul.f32 %v6744_v57, %v1589_v35  ;;  %v6516_v35 = vld [vmem:[#allocation8 + $0xcc] sm:$0xf0]  ;;  %v6448_v57 = vld [vmem:[#allocation8 + $0xc8] sm:$0xf] }
 0x18c   :  { %v8158_v59 = vor.u32 %v6516_v35, %v6440_v11  ;;  %v8160_v16 = vor.u32 %v6517_v10, %v6448_v57  ;;  %v8170_v11 = vor.u32 %v6512_v41, %v6424_v15  ;;  %v8172_v10 = vor.u32 %v6513_v54, %v6432_v40  ;;  %v6408_v35 = vld [vmem:[#allocation8 + $0x80] sm:$0xf]  ;;  %v6508_v57 = vld [vmem:[#allocation8 + $0x8c] sm:$0xf0]  ;;  %v6494_v15 = vld [vmem:[#allocation8 + $0x24] sm:$0xf] }
 0x18d   :  { %v8142_v21 = vpack.c.bf16 %v1601_v27, %v1601_v27  ;;  %v6394_v27 = vld [vmem:[#allocation8 + $0x70] sm:$0xf0]  ;;  %v6495_v40 = vld [vmem:[#allocation8 + $0x2c] sm:$0xf]  ;;  %v6370_v54 = vld [vmem:[#allocation8 + $0x38] sm:$0xf0] }
 0x18e   :  { %2268 = vmatpush.bf16.msrb.mxu1 %v8138_v2  ;;  %2294 = vmatpush.bf16.msra.mxu3 %v8140_v1  ;;  %11005 = vst [vmem:[#allocation277_spill] sm:$0xff] %v8158_v59  ;;  %v8164_v45 = vor.u32 %v6502_v6, %v6394_v27  ;;  %v8166_v1 = vor.u32 %v6503_v28, %v6402_v50  ;;  %v6498_v2 = vld [vmem:[#allocation8 + $0x44] sm:$0xf]  ;;  %v6416_v6 = vld [vmem:[#allocation8 + $0x88] sm:$0xf] }
 0x18f   :  { %1997 = vmatmul.bf16.vlgmr.msra.gmra.mxu0 %v8142_v21  ;;  %2023 = vmatmul.bf16.vlgmr.msra.gmra.mxu2 %v8142_v21  ;;  %11006 = vst [vmem:[#allocation278_spill] sm:$0xff] %v8160_v16  ;;  %v6509_v27 = vld [vmem:[#allocation8 + $0x94] sm:$0xf0]  ;;  %v8178_v28 = vor.u32 %v6498_v2, %v6378_v31  ;;  %v6362_v41 = vld [vmem:[#allocation8 + $0x30] sm:$0xf0]  ;;  %v8192_v2 = vor.u32 %v6495_v40, %v6370_v54 }
 0x190   :  { %2253 = vmatpush.bf16.msra.mxu0 %v8144_v22  ;;  %2279 = vmatpush.bf16.msra.mxu2 %v8146_v19  ;;  %11007 = vst [vmem:[#allocation279_spill] sm:$0xff] %v8164_v45  ;;  %v6499_v22 = vld [vmem:[#allocation8 + $0x4c] sm:$0xf]  ;;  %v6386_v19 = vld [vmem:[#allocation8 + $0x58] sm:$0xf0] }
 0x191   :  { %11008 = vst [vmem:[#allocation280_spill] sm:$0xff] %v8166_v1  ;;  %v8180_v50 = vor.u32 %v6499_v22, %v6386_v19  ;;  %v8190_v19 = vor.u32 %v6494_v15, %v6362_v41  ;;  %v6490_v31 = vld [vmem:[#allocation8 + $0x4] sm:$0xf]  ;;  %v6346_v22 = vld [vmem:[#allocation8 + $0x10] sm:$0xf0] }
 0x192   :  { %2269 = vmatpush.bf16.msrb.mxu1 %v8150_v24  ;;  %2295 = vmatpush.bf16.msra.mxu3 %v8152_v48  ;;  %11009 = vst [vmem:[#allocation281_spill] sm:$0xff] %v8170_v11  ;;  %v8184_v48 = vor.u32 %v6508_v57, %v6408_v35  ;;  %v8186_v24 = vor.u32 %v6509_v27, %v6416_v6  ;;  %v6376_v6 = vld [vmem:[#allocation8 + $0x40] sm:$0xf]  ;;  %v6500_v27 = vld [vmem:[#allocation8 + $0x4c] sm:$0xf0] }
 0x193   :  { %11010 = vst [vmem:[#allocation282_spill] sm:$0xff] %v8172_v10  ;;  %v8202_v15 = vor.u32 %v6490_v31, %v6346_v22  ;;  %v6368_v40 = vld [vmem:[#allocation8 + $0x28] sm:$0xf]  ;;  %v6497_v54 = vld [vmem:[#allocation8 + $0x34] sm:$0xf0] }
 0x194   :  { %2254 = vmatpush.bf16.msra.mxu0 %v8158_v59  ;;  %2280 = vmatpush.bf16.msra.mxu2 %v8160_v16  ;;  %11011 = vst [vmem:[#allocation283_spill] sm:$0xff] %v8178_v28  ;;  %v6392_v16 = vld [vmem:[#allocation8 + $0x60] sm:$0xf]  ;;  %v6400_v59 = vld [vmem:[#allocation8 + $0x68] sm:$0xf] }
 0x195   :  { %2062 = vmatmul.bf16.vlgmr.msra.gmra.mxu1 %v8125_v12  ;;  %2088 = vmatmul.bf16.vlgmr.msrb.gmra.mxu3 %v8125_v12  ;;  %11012 = vst [vmem:[#allocation284_spill] sm:$0xff] %v8180_v50  ;;  %v6352_v31 = vld [vmem:[#allocation8 + $0x8] sm:$0xf]  ;;  %v6493_v22 = vld [vmem:[#allocation8 + $0x14] sm:$0xf0] }
 0x196   :  { %2270 = vmatpush.bf16.msrb.mxu1 %v8164_v45  ;;  %2296 = vmatpush.bf16.msra.mxu3 %v8166_v1  ;;  %v6504_v45 = vld [vmem:[#allocation8 + $0x6c] sm:$0xf0]  ;;  %v6505_v1 = vld [vmem:[#allocation8 + $0x74] sm:$0xf0]  ;;  %11013 = vst [vmem:[#allocation285_spill] sm:$0xff] %v8190_v19 }
 0x197   :  { %11014 = vst [vmem:[#allocation286_spill] sm:$0xff] %v8192_v2  ;;  %v8196_v35 = vor.u32 %v6504_v45, %v6392_v16  ;;  %v8198_v57 = vor.u32 %v6505_v1, %v6400_v59  ;;  %v8210_v1 = vor.u32 %v6500_v27, %v6376_v6  ;;  %v6360_v16 = vld [vmem:[#allocation8 + $0x20] sm:$0xf]  ;;  %v6496_v45 = vld [vmem:[#allocation8 + $0x2c] sm:$0xf0]  ;;  %v8232_v27 = vor.u32 %v6493_v22, %v6352_v31  ;;  %v11024_v31 = vld [vmem:[#allocation40_spill] sm:$0xff] }
 0x198   :  { %2255 = vmatpush.bf16.msra.mxu0 %v8170_v11  ;;  %2281 = vmatpush.bf16.msra.mxu2 %v8172_v10  ;;  %v6491_v11 = vld [vmem:[#allocation8 + $0xc] sm:$0xf]  ;;  %v6354_v10 = vld [vmem:[#allocation8 + $0x18] sm:$0xf0]  ;;  %11015 = vst [vmem:[#allocation287_spill] sm:$0xff] %v8202_v15  ;;  %v11025_v22 = vld [vmem:[#allocation37_spill] sm:$0xff] }
 0x199   :  { %v8204_v41 = vor.u32 %v6491_v11, %v6354_v10  ;;  %v8220_v11 = vor.u32 %v6496_v45, %v6360_v16  ;;  %v8222_v10 = vor.u32 %v6497_v54, %v6368_v40  ;;  %v11018_v16 = vld [vmem:[#allocation34_spill] sm:$0xff]  ;;  %v11019_v45 = vld [vmem:[#allocation52_spill] sm:$0xff]  ;;  %v11021_v54 = vld [vmem:[#allocation31_spill] sm:$0xff] }
 0x19a   :  { %2271 = vmatpush.bf16.msrb.mxu1 %v8178_v28  ;;  %2297 = vmatpush.bf16.msra.mxu3 %v8180_v50  ;;  %v6384_v28 = vld [vmem:[#allocation8 + $0x48] sm:$0xf]  ;;  %v6501_v50 = vld [vmem:[#allocation8 + $0x54] sm:$0xf0] }
 0x19b   :  { %11016 = vst [vmem:[#allocation288_spill] sm:$0xff] %v8204_v41  ;;  %v8212_v59 = vor.u32 %v6501_v50, %v6384_v28  ;;  %v6344_v28 = vld [vmem:[#allocation8] sm:$0xf]  ;;  %v6492_v50 = vld [vmem:[#allocation8 + $0xc] sm:$0xf0]  ;;  %v11020_v40 = vld [vmem:[#allocation36_spill] sm:$0xff] }
 0x19c   :  { %2256 = vmatpush.bf16.msra.mxu0 %v8184_v48  ;;  %2282 = vmatpush.bf16.msra.mxu2 %v8186_v24  ;;  %v8230_v6 = vor.u32 %v6492_v50, %v6344_v28  ;;  %v11022_v28 = vld [vmem:[#allocation25_spill] sm:$0xff]  ;;  %v11023_v50 = vld [vmem:[#allocation56_spill] sm:$0xff] }
 0x19e   :  { %2272 = vmatpush.bf16.msrb.mxu1 %v8190_v19  ;;  %2298 = vmatpush.bf16.msra.mxu3 %v8192_v2 }
 0x19f   :  { %2049 = vmatmul.bf16.vlgmr.msrb.gmra.mxu0 %v8142_v21  ;;  %2075 = vmatmul.bf16.vlgmr.msrb.gmra.mxu2 %v8142_v21 }
 0x1a0   :  { %2257 = vmatpush.bf16.msra.mxu0 %v8196_v35  ;;  %2283 = vmatpush.bf16.msra.mxu2 %v8198_v57 }
 0x1a2   :  { %2273 = vmatpush.bf16.msrb.mxu1 %v8202_v15  ;;  %2299 = vmatpush.bf16.msra.mxu3 %v8204_v41 }
 0x1a4   :  { %2258 = vmatpush.bf16.msra.mxu0 %v8210_v1  ;;  %2284 = vmatpush.bf16.msra.mxu2 %v8212_v59 }
 0x1a5   :  { %2274 = vmatmul.bf16.vlgmr.msrb.gmra.mxu1 %v10809_v39  ;;  %2300 = vmatmul.bf16.vlgmr.msra.gmra.mxu3 %v10809_v39 }
 0x1a6   :  { %2349 = vmatpush.bf16.msra.mxu1 %v7291_v29  ;;  %2375 = vmatpush.bf16.msrb.mxu3 %v7241_v52 }
 0x1a8   :  { %2259 = vmatpush.bf16.msra.mxu0 %v8220_v11  ;;  %2285 = vmatpush.bf16.msra.mxu2 %v8222_v10 }
 0x1aa   :  { %2350 = vmatpush.bf16.msra.mxu1 %v7298_v38  ;;  %2376 = vmatpush.bf16.msrb.mxu3 %v7253_v61 }
 0x1ac   :  { %2260 = vmatpush.bf16.msra.mxu0 %v8230_v6  ;;  %2286 = vmatpush.bf16.msra.mxu2 %v8232_v27 }
 0x1ae   :  { %2351 = vmatpush.bf16.msra.mxu1 %v7310_v53  ;;  %2377 = vmatpush.bf16.msrb.mxu3 %v7267_v9 }
 0x1af   :  { %2261 = vmatmul.bf16.vlgmr.msra.gmra.mxu0 %v10809_v39  ;;  %2287 = vmatmul.bf16.vlgmr.msra.gmra.mxu2 %v10809_v39  ;;  %v11017_v39 = vld [vmem:[#allocation50_spill] sm:$0xff] }
 0x1b0   :  { %2336 = vmatpush.bf16.msrb.mxu0 %v7261_v5  ;;  %2362 = vmatpush.bf16.msrb.mxu2 %v7239_v51 }
 0x1b2   :  { %2352 = vmatpush.bf16.msra.mxu1 %v7335_v7  ;;  %2378 = vmatpush.bf16.msrb.mxu3 %v7284_v18 }
 0x1b4   :  { %2337 = vmatpush.bf16.msrb.mxu0 %v7280_v13  ;;  %2363 = vmatpush.bf16.msrb.mxu2 %v7251_v60 }
 0x1b6   :  { %2353 = vmatpush.bf16.msra.mxu1 %v7351_v37  ;;  %2379 = vmatpush.bf16.msrb.mxu3 %v7295_v34  ;;  %v11103_v34 = vld [vmem:[#allocation106_spill] sm:$0xff]  ;;  %v11104_v37 = vld [vmem:[#allocation131_spill] sm:$0xff] }
 0x1b8   :  { %2338 = vmatpush.bf16.msrb.mxu0 %v7287_v23  ;;  %2364 = vmatpush.bf16.msrb.mxu2 %v7265_v8 }
 0x1ba   :  { %2354 = vmatpush.bf16.msra.mxu1 %v7363_v56  ;;  %2380 = vmatpush.bf16.msrb.mxu3 %v7307_v47  ;;  %v11032_v47 = vld [vmem:[#allocation35_spill] sm:$0xff] }
 0x1bb   :  { %v11035_v56 = vld [vmem:[#allocation47_spill] sm:$0xff] }
 0x1bc   :  { %2339 = vmatpush.bf16.msrb.mxu0 %v7301_v43  ;;  %2365 = vmatpush.bf16.msrb.mxu2 %v7282_v17 }
 0x1be   :  { %2355 = vmatpush.bf16.msra.mxu1 %v7376_v33  ;;  %2381 = vmatpush.bf16.msrb.mxu3 %v7320_v62  ;;  %v11030_v62 = vld [vmem:[#allocation33_spill] sm:$0xff]  ;;  %v11031_v33 = vld [vmem:[#allocation43_spill] sm:$0xff] }
 0x1c0   :  { %2340 = vmatpush.bf16.msrb.mxu0 %v7313_v55  ;;  %2366 = vmatpush.bf16.msrb.mxu2 %v7293_v30 }
 0x1c2   :  { %2356 = vmatpush.bf16.msra.mxu1 %v11017_v39  ;;  %2382 = vmatpush.bf16.msrb.mxu3 %v11018_v16  ;;  %v11026_v39 = vld [vmem:[#allocation29_spill] sm:$0xff]  ;;  %v11027_v16 = vld [vmem:[#allocation60_spill] sm:$0xff] }
 0x1c4   :  { %2341 = vmatpush.bf16.msrb.mxu0 %v11021_v54  ;;  %2367 = vmatpush.bf16.msrb.mxu2 %v11022_v28 }
 0x1c5   :  { %2357 = vmatmul.bf16.vlgmr.msra.gmra.mxu1 %v8125_v12  ;;  %2383 = vmatmul.bf16.vlgmr.msrb.gmra.mxu3 %v8125_v12 }
 0x1c6   :  { %2401 = vmatpush.bf16.msrb.mxu1 %v11019_v45  ;;  %2427 = vmatpush.bf16.msra.mxu3 %v11020_v40  ;;  %v11028_v45 = vld [vmem:[#allocation45_spill] sm:$0xff] }
 0x1c7   :  { %v11029_v40 = vld [vmem:[#allocation41_spill] sm:$0xff] }
 0x1c8   :  { %2342 = vmatpush.bf16.msrb.mxu0 %v11025_v22  ;;  %2368 = vmatpush.bf16.msrb.mxu2 %v11026_v39  ;;  %v11042_v39 = vld [vmem:[#allocation58_spill] sm:$0xff]  ;;  %v11043_v22 = vld [vmem:[#allocation55_spill] sm:$0xff] }
 0x1ca   :  { %2402 = vmatpush.bf16.msrb.mxu1 %v11023_v50  ;;  %2428 = vmatpush.bf16.msra.mxu3 %v11024_v31  ;;  %v11033_v31 = vld [vmem:[#allocation64_spill] sm:$0xff]  ;;  %v11034_v50 = vld [vmem:[#allocation49_spill] sm:$0xff] }
 0x1cc   :  { %2343 = vmatpush.bf16.msrb.mxu0 %v11029_v40  ;;  %2369 = vmatpush.bf16.msrb.mxu2 %v11030_v62  ;;  %v11038_v40 = vld [vmem:[#allocation54_spill] sm:$0xff]  ;;  %v11039_v62 = vld [vmem:[#allocation51_spill] sm:$0xff] }
 0x1ce   :  { %2403 = vmatpush.bf16.msrb.mxu1 %v11027_v16  ;;  %2429 = vmatpush.bf16.msra.mxu3 %v11028_v45  ;;  %v11036_v16 = vld [vmem:[#allocation39_spill] sm:$0xff]  ;;  %v11037_v45 = vld [vmem:[#allocation68_spill] sm:$0xff] }
 0x1cf   :  { %2344 = vmatmul.bf16.vlgmr.msrb.gmra.mxu0 %v8142_v21  ;;  %2370 = vmatmul.bf16.vlgmr.msrb.gmra.mxu2 %v8142_v21 }
 0x1d0   :  { %2388 = vmatpush.bf16.msra.mxu0 %v11031_v33  ;;  %2414 = vmatpush.bf16.msra.mxu2 %v11032_v47  ;;  %v11040_v33 = vld [vmem:[#allocation44_spill] sm:$0xff]  ;;  %v11041_v47 = vld [vmem:[#allocation70_spill] sm:$0xff] }
 0x1d2   :  { %2404 = vmatpush.bf16.msrb.mxu1 %v11033_v31  ;;  %2430 = vmatpush.bf16.msra.mxu3 %v11034_v50  ;;  %v11044_v31 = vld [vmem:[#allocation48_spill] sm:$0xff]  ;;  %v11045_v50 = vld [vmem:[#allocation71_spill] sm:$0xff] }
 0x1d4   :  { %2389 = vmatpush.bf16.msra.mxu0 %v11035_v56  ;;  %2415 = vmatpush.bf16.msra.mxu2 %v11036_v16  ;;  %v11046_v56 = vld [vmem:[#allocation62_spill] sm:$0xff]  ;;  %v11047_v16 = vld [vmem:[#allocation59_spill] sm:$0xff] }
 0x1d6   :  { %2405 = vmatpush.bf16.msrb.mxu1 %v11037_v45  ;;  %2431 = vmatpush.bf16.msra.mxu3 %v11038_v40  ;;  %v11048_v45 = vld [vmem:[#allocation53_spill] sm:$0xff] }
 0x1d7   :  { %v11049_v40 = vld [vmem:[#allocation73_spill] sm:$0xff] }
 0x1d8   :  { %2390 = vmatpush.bf16.msra.mxu0 %v11039_v62  ;;  %2416 = vmatpush.bf16.msra.mxu2 %v11040_v33  ;;  %v11050_v62 = vld [vmem:[#allocation66_spill] sm:$0xff]  ;;  %v11051_v33 = vld [vmem:[#allocation96_spill] sm:$0xff] }
 0x1da   :  { %2406 = vmatpush.bf16.msrb.mxu1 %v11041_v47  ;;  %2432 = vmatpush.bf16.msra.mxu3 %v11042_v39  ;;  %v11052_v47 = vld [vmem:[#allocation80_spill] sm:$0xff]  ;;  %v11053_v39 = vld [vmem:[#allocation63_spill] sm:$0xff] }
 0x1dc   :  { %2391 = vmatpush.bf16.msra.mxu0 %v11043_v22  ;;  %2417 = vmatpush.bf16.msra.mxu2 %v11044_v31  ;;  %v11054_v22 = vld [vmem:[#allocation57_spill] sm:$0xff] }
 0x1dd   :  { %v11075_v31 = vld [vmem:[#allocation77_spill] sm:$0xff] }
 0x1de   :  { %2407 = vmatpush.bf16.msrb.mxu1 %v11045_v50  ;;  %2433 = vmatpush.bf16.msra.mxu3 %v11046_v56  ;;  %v11055_v56 = vld [vmem:[#allocation103_spill] sm:$0xff] }
 0x1df   :  { %v11056_v50 = vld [vmem:[#allocation83_spill] sm:$0xff] }
 0x1e0   :  { %2392 = vmatpush.bf16.msra.mxu0 %v11047_v16  ;;  %2418 = vmatpush.bf16.msra.mxu2 %v11048_v45  ;;  %v11057_v45 = vld [vmem:[#allocation67_spill] sm:$0xff] }
 0x1e1   :  { %v11064_v16 = vld [vmem:[#allocation79_spill] sm:$0xff] }
 0x1e2   :  { %2408 = vmatpush.bf16.msrb.mxu1 %v11049_v40  ;;  %2434 = vmatpush.bf16.msra.mxu3 %v11050_v62  ;;  %v11058_v40 = vld [vmem:[#allocation61_spill] sm:$0xff]  ;;  %v11059_v62 = vld [vmem:[#allocation111_spill] sm:$0xff] }
 0x1e4   :  { %2393 = vmatpush.bf16.msra.mxu0 %v11053_v39  ;;  %2419 = vmatpush.bf16.msra.mxu2 %v11054_v22  ;;  %v11062_v39 = vld [vmem:[#allocation65_spill] sm:$0xff]  ;;  %v11063_v22 = vld [vmem:[#allocation72_spill] sm:$0xff] }
 0x1e5   :  { %2409 = vmatmul.bf16.vlgmr.msrb.gmra.mxu1 %v8125_v12  ;;  %2435 = vmatmul.bf16.vlgmr.msra.gmra.mxu3 %v8125_v12 }
 0x1e6   :  { %2453 = vmatpush.bf16.msra.mxu1 %v11051_v33  ;;  %2479 = vmatpush.bf16.msrb.mxu3 %v11052_v47  ;;  %v11060_v33 = vld [vmem:[#allocation88_spill] sm:$0xff]  ;;  %v11061_v47 = vld [vmem:[#allocation69_spill] sm:$0xff] }
 0x1e8   :  { %2394 = vmatpush.bf16.msra.mxu0 %v11057_v45  ;;  %2420 = vmatpush.bf16.msra.mxu2 %v11058_v40  ;;  %v11067_v40 = vld [vmem:[#allocation74_spill] sm:$0xff]  ;;  %v11074_v45 = vld [vmem:[#allocation105_spill] sm:$0xff] }
 0x1ea   :  { %2454 = vmatpush.bf16.msra.mxu1 %v11055_v56  ;;  %2480 = vmatpush.bf16.msrb.mxu3 %v11056_v50  ;;  %v11065_v50 = vld [vmem:[#allocation115_spill] sm:$0xff] }
 0x1eb   :  { %v11066_v56 = vld [vmem:[#allocation91_spill] sm:$0xff] }
 0x1ec   :  { %2395 = vmatpush.bf16.msra.mxu0 %v11061_v47  ;;  %2421 = vmatpush.bf16.msra.mxu2 %v11062_v39  ;;  %v11070_v47 = vld [vmem:[#allocation99_spill] sm:$0xff] }
 0x1ed   :  { %v11071_v39 = vld [vmem:[#allocation75_spill] sm:$0xff] }
 0x1ee   :  { %2455 = vmatpush.bf16.msra.mxu1 %v11059_v62  ;;  %2481 = vmatpush.bf16.msrb.mxu3 %v11060_v33  ;;  %v11068_v62 = vld [vmem:[#allocation82_spill] sm:$0xff]  ;;  %v11069_v33 = vld [vmem:[#allocation125_spill] sm:$0xff] }
 0x1ef   :  { %2396 = vmatmul.bf16.vlgmr.msra.gmra.mxu0 %v8142_v21  ;;  %2422 = vmatmul.bf16.vlgmr.msra.gmra.mxu2 %v8142_v21 }
 0x1f0   :  { %2440 = vmatpush.bf16.msrb.mxu0 %v11063_v22  ;;  %2466 = vmatpush.bf16.msrb.mxu2 %v11064_v16  ;;  %v11072_v22 = vld [vmem:[#allocation87_spill] sm:$0xff]  ;;  %v11073_v16 = vld [vmem:[#allocation130_spill] sm:$0xff] }
 0x1f2   :  { %2456 = vmatpush.bf16.msra.mxu1 %v11065_v50  ;;  %2482 = vmatpush.bf16.msrb.mxu3 %v11066_v56  ;;  %v11076_v50 = vld [vmem:[#allocation90_spill] sm:$0xff] }
 0x1f3   :  { %v11077_v56 = vld [vmem:[#allocation138_spill] sm:$0xff] }
 0x1f4   :  { %2441 = vmatpush.bf16.msrb.mxu0 %v11067_v40  ;;  %2467 = vmatpush.bf16.msrb.mxu2 %v11068_v62  ;;  %v11078_v40 = vld [vmem:[#allocation113_spill] sm:$0xff] }
 0x1f5   :  { %v11079_v62 = vld [vmem:[#allocation81_spill] sm:$0xff] }
 0x1f6   :  { %2457 = vmatpush.bf16.msra.mxu1 %v11069_v33  ;;  %2483 = vmatpush.bf16.msrb.mxu3 %v11070_v47  ;;  %v11080_v33 = vld [vmem:[#allocation97_spill] sm:$0xff]  ;;  %v11081_v47 = vld [vmem:[#allocation142_spill] sm:$0xff] }
 0x1f8   :  { %2442 = vmatpush.bf16.msrb.mxu0 %v11071_v39  ;;  %2468 = vmatpush.bf16.msrb.mxu2 %v11072_v22  ;;  %v11082_v39 = vld [vmem:[#allocation117_spill] sm:$0xff]  ;;  %v11083_v22 = vld [vmem:[#allocation143_spill] sm:$0xff] }
 0x1fa   :  { %2458 = vmatpush.bf16.msra.mxu1 %v11073_v16  ;;  %2484 = vmatpush.bf16.msrb.mxu3 %v11074_v45  ;;  %v11084_v16 = vld [vmem:[#allocation122_spill] sm:$0xff]  ;;  %v11085_v45 = vld [vmem:[#allocation84_spill] sm:$0xff] }
 0x1fc   :  { %2443 = vmatpush.bf16.msrb.mxu0 %v11075_v31  ;;  %2469 = vmatpush.bf16.msrb.mxu2 %v11076_v50  ;;  %v11086_v31 = vld [vmem:[#allocation104_spill] sm:$0xff]  ;;  %v11096_v50 = vld [vmem:[#allocation118_spill] sm:$0xff] }
 0x1fe   :  { %2459 = vmatpush.bf16.msra.mxu1 %v11077_v56  ;;  %2485 = vmatpush.bf16.msrb.mxu3 %v11078_v40  ;;  %v11087_v40 = vld [vmem:[#allocation149_spill] sm:$0xff]  ;;  %v11088_v56 = vld [vmem:[#allocation128_spill] sm:$0xff] }
 0x200   :  { %2444 = vmatpush.bf16.msrb.mxu0 %v11079_v62  ;;  %2470 = vmatpush.bf16.msrb.mxu2 %v11080_v33  ;;  %v11089_v33 = vld [vmem:[#allocation89_spill] sm:$0xff]  ;;  %v11095_v62 = vld [vmem:[#allocation95_spill] sm:$0xff] }
 0x202   :  { %2460 = vmatpush.bf16.msra.mxu1 %v11081_v47  ;;  %2486 = vmatpush.bf16.msrb.mxu3 %v11082_v39  ;;  %v11090_v47 = vld [vmem:[#allocation112_spill] sm:$0xff]  ;;  %v2011_v39 = vpop.f32.mrf.mxu1 }
 0x204   :  { %2445 = vmatpush.bf16.msrb.mxu0 %v11085_v45  ;;  %2471 = vmatpush.bf16.msrb.mxu2 %v11086_v31  ;;  %v11093_v45 = vld [vmem:[#allocation92_spill] sm:$0xff] }
 0x205   :  { %2461 = vmatmul.bf16.vlgmr.msra.gmra.mxu1 %v8125_v12  ;;  %2487 = vmatmul.bf16.vlgmr.msrb.gmra.mxu3 %v8125_v12  ;;  %v11094_v31 = vld [vmem:[#allocation116_spill] sm:$0xff] }
 0x206   :  { %2505 = vmatpush.bf16.msrb.mxu1 %v11083_v22  ;;  %2531 = vmatpush.bf16.msra.mxu3 %v11084_v16  ;;  %v11091_v22 = vld [vmem:[#allocation152_spill] sm:$0xff] }
 0x207   :  { %v11092_v16 = vld [vmem:[#allocation132_spill] sm:$0xff] }
 0x208   :  { %2446 = vmatpush.bf16.msrb.mxu0 %v11089_v33  ;;  %2472 = vmatpush.bf16.msrb.mxu2 %v11090_v47  ;;  %v11098_v47 = vld [vmem:[#allocation140_spill] sm:$0xff] }
 0x20a   :  { %2506 = vmatpush.bf16.msrb.mxu1 %v11087_v40  ;;  %2532 = vmatpush.bf16.msra.mxu3 %v11088_v56  ;;  %v2037_v56 = vpop.f32.mrf.mxu3  ;;  %v11097_v40 = vld [vmem:[#allocation159_spill] sm:$0xff] }
 0x20c   :  { %2447 = vmatpush.bf16.msrb.mxu0 %v11093_v45  ;;  %2473 = vmatpush.bf16.msrb.mxu2 %v11094_v31  ;;  %v2013_v45 = vpop.f32.mrf.mxu1  ;;  %v1998_v33 = vpop.f32.mrf.mxu0  ;;  %v11101_v31 = vld [vmem:[#allocation162_spill] sm:$0xff] }
 0x20e   :  { %2507 = vmatpush.bf16.msrb.mxu1 %v11091_v22  ;;  %2533 = vmatpush.bf16.msra.mxu3 %v11092_v16  ;;  %v11099_v22 = vld [vmem:[#allocation100_spill] sm:$0xff]  ;;  %v11100_v16 = vld [vmem:[#allocation127_spill] sm:$0xff] }
 0x20f   :  { %2448 = vmatmul.bf16.vlgmr.msrb.gmra.mxu0 %v8142_v21  ;;  %2474 = vmatmul.bf16.vlgmr.msrb.gmra.mxu2 %v8142_v21 }
 0x210   :  { %2492 = vmatpush.bf16.msra.mxu0 %v11095_v62  ;;  %2518 = vmatpush.bf16.msra.mxu2 %v11096_v50  ;;  %v11102_v62 = vld [vmem:[#allocation147_spill] sm:$0xff]  ;;  %v8356_v50 = vadd.f32 %v2011_v39, %v1998_v33  ;;  %v11110_v33 = vld [vmem:[#allocation154_spill] sm:$0xff] }
 0x211   :  { %v11111_v39 = vld [vmem:[#allocation123_spill] sm:$0xff] }
 0x212   :  { %2508 = vmatpush.bf16.msrb.mxu1 %v11097_v40  ;;  %2534 = vmatpush.bf16.msra.mxu3 %v11098_v47  ;;  %v2039_v28 = vpop.f32.mrf.mxu3  ;;  %v11105_v40 = vld [vmem:[#allocation168_spill] sm:$0xff]  ;;  %v11106_v47 = vld [vmem:[#allocation151_spill] sm:$0xff]  ;;  %v2024_v45 = vpop.f32.mrf.mxu2 }
 0x214   :  { %2493 = vmatpush.bf16.msra.mxu0 %v11099_v22  ;;  %2519 = vmatpush.bf16.msra.mxu2 %v11100_v16  ;;  %v11107_v22 = vld [vmem:[#allocation114_spill] sm:$0xff]  ;;  %v11108_v16 = vld [vmem:[#allocation139_spill] sm:$0xff]  ;;  %v2063_v54 = vpop.f32.mrf.mxu1  ;;  %v2000_v18 = vpop.f32.mrf.mxu0 }
 0x215   :  { %v11117_v18 = vld [vmem:[#allocation200_spill] sm:$0xff] }
 0x216   :  { %2509 = vmatpush.bf16.msrb.mxu1 %v11101_v31  ;;  %2535 = vmatpush.bf16.msra.mxu3 %v11102_v62  ;;  %v2038_v31 = vadd.f32 %v2037_v56, %v2024_v45  ;;  %v11109_v62 = vld [vmem:[#allocation169_spill] sm:$0xff] }
 0x217   :  { %v11118_v45 = vld [vmem:[#allocation201_spill] sm:$0xff] }
 0x218   :  { %2494 = vmatpush.bf16.msra.mxu0 %v11103_v34  ;;  %2520 = vmatpush.bf16.msra.mxu2 %v11104_v37  ;;  %v11112_v37 = vld [vmem:[#allocation144_spill] sm:$0xff] }
 0x21a   :  { %2510 = vmatpush.bf16.msrb.mxu1 %v11105_v40  ;;  %2536 = vmatpush.bf16.msra.mxu3 %v11106_v47  ;;  %v2089_v28 = vpop.f32.mrf.mxu3  ;;  %v11113_v40 = vld [vmem:[#allocation172_spill] sm:$0xff]  ;;  %v11114_v47 = vld [vmem:[#allocation161_spill] sm:$0xff]  ;;  %v2026_v34 = vpop.f32.mrf.mxu2 }
 0x21b   :  { %v11121_v34 = vld [vmem:[#allocation203_spill] sm:$0xff] }
 0x21c   :  { %2495 = vmatpush.bf16.msra.mxu0 %v11107_v22  ;;  %2521 = vmatpush.bf16.msra.mxu2 %v11108_v16  ;;  %v11115_v22 = vld [vmem:[#allocation129_spill] sm:$0xff]  ;;  %v11116_v16 = vld [vmem:[#allocation150_spill] sm:$0xff]  ;;  %v2065_v56 = vpop.f32.mrf.mxu1 }
 0x21d   :  { %v11122_v56 = vld [vmem:[#allocation204_spill] sm:$0xff] }
 0x21e   :  { %2511 = vmatpush.bf16.msrb.mxu1 %v11109_v62  ;;  %2537 = vmatpush.bf16.msra.mxu3 %v11110_v33  ;;  %v2050_v33 = vpop.f32.mrf.mxu0 }
 0x21f   :  { %v2064_v62 = vadd.f32 %v2063_v54, %v2050_v33 }
 0x220   :  { %2496 = vmatpush.bf16.msra.mxu0 %v11111_v39  ;;  %2522 = vmatpush.bf16.msra.mxu2 %v11112_v37  ;;  %v11119_v37 = vld [vmem:[#allocation137_spill] sm:$0xff]  ;;  %v11127_v39 = vld [vmem:[#allocation208_spill] sm:$0xff] }
 0x222   :  { %2512 = vmatpush.bf16.msrb.mxu1 %v11113_v40  ;;  %2538 = vmatpush.bf16.msra.mxu3 %v11114_v47  ;;  %v11120_v40 = vld [vmem:[#allocation153_spill] sm:$0xff]  ;;  %v8381_v47 = vld [vmem:[%s10282_s6] sm:$0xf] }
 0x223   :  { %v8388_v54 = vperm.slane %v8381_v47, 1 }
 0x224   :  { %2497 = vmatpush.bf16.msra.mxu0 %v11115_v22  ;;  %2523 = vmatpush.bf16.msra.mxu2 %v11116_v16  ;;  %v11124_v16 = vld [vmem:[#allocation160_spill] sm:$0xff]  ;;  %v2275_v33 = vpop.f32.mrf.mxu1  ;;  %v11126_v22 = vld [vmem:[#allocation207_spill] sm:$0xff] }
 0x225   :  { %2513 = vmatmul.bf16.vlgmr.msrb.gmra.mxu1 %v8125_v12  ;;  %2539 = vmatmul.bf16.vlgmr.msra.gmra.mxu3 %v8125_v12  ;;  %v2076_v12 = vpop.f32.mrf.mxu2  ;;  %11125 = vst [vmem:[#allocation289_spill] sm:$0xff] %v8388_v54 }
 0x226   :  { %2603 = vmatpush.bf16.msra.mxu1 %v11117_v18  ;;  %2629 = vmatpush.bf16.msrb.mxu3 %v11118_v45  ;;  %v2091_v45 = vpop.f32.mrf.mxu3  ;;  %v11123_v18 = vld [vmem:[#allocation141_spill] sm:$0xff]  ;;  %v2052_v7 = vpop.f32.mrf.mxu0 }
 0x228   :  { %2498 = vmatpush.bf16.msra.mxu0 %v11119_v37  ;;  %2524 = vmatpush.bf16.msra.mxu2 %v11120_v40  ;;  %v2090_v40 = vadd.f32 %v2089_v28, %v2076_v12  ;;  %v2276_v37 = vadd.f32 %v2275_v33, %v2038_v31  ;;  %v11132_v28 = vld [vmem:[#allocation209_spill] sm:$0xff]  ;;  %v11133_v12 = vld [vmem:[#allocation210_spill] sm:$0xff] }
 0x22a   :  { %2604 = vmatpush.bf16.msra.mxu1 %v11121_v34  ;;  %2630 = vmatpush.bf16.msrb.mxu3 %v11122_v56  ;;  %v11128_v34 = vld [vmem:[#allocation205_spill] sm:$0xff]  ;;  %v11129_v56 = vld [vmem:[#allocation206_spill] sm:$0xff]  ;;  %v2306_v45 = vadd.f32 %v2276_v37, %v8388_v54 }
 0x22b   :  { %v11137_v37 = vld [vmem:[#allocation213_spill] sm:$0xff]  ;;  %v11138_v54 = vld [vmem:[#allocation214_spill] sm:$0xff] }
 0x22c   :  { %2499 = vmatpush.bf16.msra.mxu0 %v11123_v18  ;;  %2525 = vmatpush.bf16.msra.mxu2 %v11124_v16  ;;  %v11130_v16 = vld [vmem:[#allocation211_spill] sm:$0xff]  ;;  %v11131_v18 = vld [vmem:[#allocation212_spill] sm:$0xff]  ;;  %v2310_v33 = vmul.f32 0.5, %v2306_v45 }
 0x22e   :  { %2605 = vmatpush.bf16.msra.mxu1 %v11128_v34  ;;  %2631 = vmatpush.bf16.msrb.mxu3 %v11129_v56  ;;  %v2301_v31 = vpop.f32.mrf.mxu3  ;;  %v2078_v34 = vpop.f32.mrf.mxu2  ;;  %v11134_v56 = vld [vmem:[#allocation215_spill] sm:$0xff]  ;;  %6745 = vtanh.f32 %v2310_v33 }
 0x22f   :  { %2500 = vmatmul.bf16.vlgmr.msra.gmra.mxu0 %v8142_v21  ;;  %2526 = vmatmul.bf16.vlgmr.msra.gmra.mxu2 %v8142_v21  ;;  %v2302_v7 = vadd.f32 %v2301_v31, %v2090_v40  ;;  %v8404_v21 = vperm.slane %v8381_v47, 0  ;;  %v11140_v40 = vld [vmem:[#allocation220_spill] sm:$0xff]  ;;  %v11142_v31 = vld [vmem:[#allocation217_spill] sm:$0xff] }
 0x230   :  { %2590 = vmatpush.bf16.msrb.mxu0 %v11126_v22  ;;  %2616 = vmatpush.bf16.msrb.mxu2 %v11127_v39  ;;  %v2277_v39 = vpop.f32.mrf.mxu1  ;;  %v11135_v22 = vld [vmem:[#allocation216_spill] sm:$0xff] }
 0x231   :  { %11136 = vst [vmem:[#allocation290_spill] sm:$0xff] %v8404_v21  ;;  %v8412_v39 = vperm.slane %v8381_v47, 3 }
 0x232   :  { %2606 = vmatpush.bf16.msra.mxu1 %v11132_v28  ;;  %2632 = vmatpush.bf16.msrb.mxu3 %v11133_v12  ;;  %v11139_v12 = vld [vmem:[#allocation219_spill] sm:$0xff] }
 0x233   :  { %11141 = vst [vmem:[#allocation291_spill] sm:$0xff] %v8412_v39 }
 0x234   :  { %2591 = vmatpush.bf16.msrb.mxu0 %v11130_v16  ;;  %2617 = vmatpush.bf16.msrb.mxu2 %v11131_v18  ;;  %v2262_v18 = vpop.f32.mrf.mxu0 }
 0x235   :  { %v2263_v28 = vadd.f32 %v2262_v18, %v8356_v50  ;;  %v6746_v50 = vpop.eup %6745  ;;  %v2308_v18 = vadd.f32 %v2302_v7, %v8412_v39  ;;  %v11152_v7 = vld [vmem:[#allocation228_spill] sm:$0xff]  ;;  %v11155_v39 = vld [vmem:[#allocation231_spill] sm:$0xff] }
 0x236   :  { %2607 = vmatpush.bf16.msra.mxu1 %v11137_v37  ;;  %2633 = vmatpush.bf16.msrb.mxu3 %v11138_v54  ;;  %v2303_v45 = vpop.f32.mrf.mxu3  ;;  %v2288_v54 = vpop.f32.mrf.mxu2 }
 0x237   :  { %v2305_v34 = vadd.f32 %v2263_v28, %v8404_v21  ;;  %v8420_v33 = vadd.f32 %v2288_v54, %v2064_v62  ;;  %v11146_v28 = vld [vmem:[#allocation222_spill] sm:$0xff] }
 0x238   :  { %2592 = vmatpush.bf16.msrb.mxu0 %v11134_v56  ;;  %2618 = vmatpush.bf16.msrb.mxu2 %v11135_v22  ;;  %v11143_v22 = vld [vmem:[#allocation218_spill] sm:$0xff]  ;;  %v11144_v56 = vld [vmem:[#allocation223_spill] sm:$0xff] }
 0x239   :  { %v2309_v37 = vmul.f32 0.5, %v2305_v34  ;;  %v11148_v34 = vld [vmem:[#allocation230_spill] sm:$0xff] }
 0x23a   :  { %2608 = vmatpush.bf16.msra.mxu1 %v11142_v31  ;;  %2634 = vmatpush.bf16.msrb.mxu3 %v11143_v22  ;;  %v2316_v31 = vmul.f32 0.5, %v6746_v50  ;;  %v11149_v22 = vld [vmem:[#allocation225_spill] sm:$0xff]  ;;  %v11154_v50 = vld [vmem:[#allocation234_spill] sm:$0xff] }
 0x23b   :  { %6747 = vtanh.f32 %v2309_v37 }
 0x23c   :  { %2593 = vmatpush.bf16.msrb.mxu0 %v11139_v12  ;;  %2619 = vmatpush.bf16.msrb.mxu2 %v11140_v40  ;;  %v11145_v40 = vld [vmem:[#allocation221_spill] sm:$0xff]  ;;  %v2264_v45 = vpop.f32.mrf.mxu0  ;;  %6749 = vtanh.f32 %v2308_v18  ;;  %v2319_v54 = vadd.f32 0.5, %v2316_v31  ;;  %v11156_v18 = vld [vmem:[#allocation232_spill] sm:$0xff]  ;;  %v11159_v31 = vld [vmem:[#allocation239_spill] sm:$0xff] }
 0x23d   :  { %v11147_v12 = vld [vmem:[#allocation229_spill] sm:$0xff] }
 0x23e   :  { %2609 = vmatpush.bf16.msra.mxu1 %v11145_v40  ;;  %2635 = vmatpush.bf16.msrb.mxu3 %v11146_v28  ;;  %v2290_v40 = vpop.f32.mrf.mxu2  ;;  %v11153_v28 = vld [vmem:[#allocation233_spill] sm:$0xff] }
 0x23f   :  { %v11160_v40 = vld [vmem:[#allocation240_spill] sm:$0xff] }
 0x240   :  { %2594 = vmatpush.bf16.msrb.mxu0 %v11144_v56  ;;  %2620 = vmatpush.bf16.msrb.mxu2 %v7956_v0  ;;  %v11150_v0 = vld [vmem:[#allocation226_spill] sm:$0xff]  ;;  %v11151_v56 = vld [vmem:[#allocation227_spill] sm:$0xff] }
 0x241   :  { %v6748_v62 = vpop.eup %6747 }
 0x242   :  { %2610 = vmatpush.bf16.msra.mxu1 %v11149_v22  ;;  %2636 = vmatpush.bf16.msrb.mxu3 %v11150_v0  ;;  %v2315_v37 = vmul.f32 0.5, %v6748_v62  ;;  %v6750_v22 = vpop.eup %6749 }
 0x244   :  { %2595 = vmatpush.bf16.msrb.mxu0 %v11147_v12  ;;  %2621 = vmatpush.bf16.msrb.mxu2 %v11148_v34  ;;  %v2318_v45 = vadd.f32 0.5, %v2315_v37  ;;  %v2322_v34 = vmul.f32 0.0, %v2319_v54  ;;  %v2358_v12 = vpop.f32.mrf.mxu1  ;;  %v11162_v37 = vld [vmem:[#allocation236_spill] sm:$0xff]  ;;  %v11163_v54 = vld [vmem:[#allocation241_spill] sm:$0xff] }
 0x246   :  { %2655 = vmatpush.bf16.msrb.mxu1 %v11151_v56  ;;  %2681 = vmatpush.bf16.msra.mxu3 %v11152_v7  ;;  %v2323_v0 = vmul.f32 %v6750_v22, %v2318_v45  ;;  %v11157_v56 = vld [vmem:[#allocation237_spill] sm:$0xff]  ;;  %v11158_v7 = vld [vmem:[#allocation238_spill] sm:$0xff] }
 0x247   :  { %v11164_v45 = vld [vmem:[#allocation242_spill] sm:$0xff] }
 0x248   :  { %2596 = vmatpush.bf16.msrb.mxu0 %v11153_v28  ;;  %2622 = vmatpush.bf16.msrb.mxu2 %v11154_v50  ;;  %v8438_v62 = vadd.f32 %v2323_v0, %v2322_v34  ;;  %v11161_v50 = vld [vmem:[#allocation235_spill] sm:$0xff]  ;;  %v2384_v22 = vpop.f32.mrf.mxu3  ;;  %v11165_v34 = vld [vmem:[#allocation246_spill] sm:$0xff] }
 0x24a   :  { %2656 = vmatpush.bf16.msrb.mxu1 %v11155_v39  ;;  %2682 = vmatpush.bf16.msra.mxu3 %v11156_v18 }
 0x24c   :  { %2597 = vmatpush.bf16.msrb.mxu0 %v11157_v56  ;;  %2623 = vmatpush.bf16.msrb.mxu2 %v11158_v7  ;;  %v2360_v18 = vpop.f32.mrf.mxu1  ;;  %v2345_v0 = vpop.f32.mrf.mxu0 }
 0x24e   :  { %2657 = vmatpush.bf16.msrb.mxu1 %v11161_v50  ;;  %2683 = vmatpush.bf16.msra.mxu3 %v11162_v37  ;;  %v11166_v37 = vld [vmem:[#allocation76_spill] sm:$0xff]  ;;  %v11167_v50 = vld [vmem:[#allocation86_spill] sm:$0xff] }
 0x24f   :  { %v249_v39 = vadd.f32 %v11167_v50, %v11166_v37  ;;  %v11174_v37 = vld [vmem:[#allocation257_spill] sm:$0xff] }
 0x250   :  { %2642 = vmatpush.bf16.msra.mxu0 %v11159_v31  ;;  %2668 = vmatpush.bf16.msra.mxu2 %v11160_v40  ;;  %v11180_v40 = vld [vmem:[#allocation94_spill] sm:$0xff] }
 0x252   :  { %2658 = vmatpush.bf16.msrb.mxu1 %v11163_v54  ;;  %2684 = vmatpush.bf16.msra.mxu3 %v11164_v45  ;;  %v2386_v45 = vpop.f32.mrf.mxu3  ;;  %v2371_v18 = vpop.f32.mrf.mxu2  ;;  %v11168_v54 = vld [vmem:[#allocation119_spill] sm:$0xff] }
 0x253   :  { %v11172_v45 = vld [vmem:[#allocation259_spill] sm:$0xff] }
 0x254   :  { %2643 = vmatpush.bf16.msra.mxu0 %v8021_v46  ;;  %2669 = vmatpush.bf16.msra.mxu2 %v8027_v3  ;;  %v2359_v46 = vadd.f32 %v2358_v12, %v2345_v0  ;;  %v2347_v12 = vpop.f32.mrf.mxu0  ;;  %v11173_v0 = vld [vmem:[#allocation260_spill] sm:$0xff] }
 0x256   :  { %2659 = vmatpush.bf16.msrb.mxu1 %v8029_v14  ;;  %2685 = vmatpush.bf16.msra.mxu3 %v11165_v34  ;;  %v2544_v3 = vadd.f32 %v2359_v46, %v249_v39  ;;  %v11170_v46 = vld [vmem:[#allocation253_spill] sm:$0xff]  ;;  %v11171_v39 = vld [vmem:[#allocation254_spill] sm:$0xff] }
 0x258   :  { %2644 = vmatpush.bf16.msra.mxu0 %v8040_v25  ;;  %2670 = vmatpush.bf16.msra.mxu2 %v8046_v63  ;;  %v11169_v63 = vld [vmem:[#allocation109_spill] sm:$0xff]  ;;  %v2385_v25 = vadd.f32 %v2384_v22, %v2371_v18  ;;  %v11176_v22 = vld [vmem:[#allocation264_spill] sm:$0xff] }
 0x259   :  { %v278_v14 = vadd.f32 %v11169_v63, %v11168_v54 }
 0x25a   :  { %2660 = vmatpush.bf16.msrb.mxu1 %v8050_v42  ;;  %2686 = vmatpush.bf16.msra.mxu3 %v8055_v20  ;;  %v11175_v20 = vld [vmem:[#allocation258_spill] sm:$0xff]  ;;  %v2373_v63 = vpop.f32.mrf.mxu2 }
 0x25b   :  { %v2545_v50 = vadd.f32 %v2385_v25, %v278_v14 }
 0x25c   :  { %2645 = vmatpush.bf16.msra.mxu0 %v8058_v4  ;;  %2671 = vmatpush.bf16.msra.mxu2 %v8064_v49 }
 0x25d   :  { %v2553_v28 = vmul.f32 0.5, %v2545_v50 }
 0x25e   :  { %2661 = vmatpush.bf16.msrb.mxu1 %v11170_v46  ;;  %2687 = vmatpush.bf16.msra.mxu3 %v11171_v39 }
 0x260   :  { %2646 = vmatpush.bf16.msra.mxu0 %v8072_v32  ;;  %2672 = vmatpush.bf16.msra.mxu2 %v8076_v26  ;;  %v11177_v26 = vld [vmem:[#allocation101_spill] sm:$0xff] }
 0x262   :  { %2662 = vmatpush.bf16.msrb.mxu1 %v11174_v37  ;;  %2688 = vmatpush.bf16.msra.mxu3 %v11175_v20  ;;  %v2410_v18 = vpop.f32.mrf.mxu1 }
 0x264   :  { %2647 = vmatpush.bf16.msra.mxu0 %v11172_v45  ;;  %2673 = vmatpush.bf16.msra.mxu2 %v11173_v0 }
 0x268   :  { %2648 = vmatpush.bf16.msra.mxu0 %v8097_v44  ;;  %2674 = vmatpush.bf16.msra.mxu2 %v8099_v58  ;;  %v2436_v12 = vpop.f32.mrf.mxu3 }
 0x26a   :  { %v2412_v14 = vpop.f32.mrf.mxu1 }
 0x26b   :  { %v11179_v14 = vld [vmem:[#allocation102_spill] sm:$0xff] }
 0x26c   :  { %2649 = vmatpush.bf16.msra.mxu0 %v8106_v36  ;;  %2675 = vmatpush.bf16.msra.mxu2 %v11176_v22  ;;  %v2397_v25 = vpop.f32.mrf.mxu0  ;;  %v11178_v36 = vld [vmem:[#allocation93_spill] sm:$0xff] }
 0x26d   :  { %v2411_v58 = vadd.f32 %v2410_v18, %v2397_v25  ;;  %v307_v32 = vadd.f32 %v11178_v36, %v11177_v26  ;;  %v11182_v18 = vld [vmem:[#allocation158_spill] sm:$0xff]  ;;  %v11216_v26 = vld [vmem:[#allocation29_spill] sm:$0xff] }
 0x26f   :  { %v2546_v49 = vadd.f32 %v2411_v58, %v307_v32 }
 0x270   :  { %v2438_v54 = vpop.f32.mrf.mxu3 }
 0x271   :  { %v336_v54 = vadd.f32 %v11180_v40, %v11179_v14  ;;  %v2554_v31 = vmul.f32 0.5, %v2546_v49  ;;  %v11188_v14 = vld [vmem:[#allocation174_spill] sm:$0xff] }
 0x272   :  { %v2423_v39 = vpop.f32.mrf.mxu2 }
 0x273   :  { %v2437_v4 = vadd.f32 %v2436_v12, %v2423_v39  ;;  %6751 = vtanh.f32 %v2554_v31  ;;  %v11183_v39 = vld [vmem:[#allocation176_spill] sm:$0xff]  ;;  %v11184_v12 = vld [vmem:[#allocation173_spill] sm:$0xff] }
 0x274   :  { %v2399_v46 = vpop.f32.mrf.mxu0  ;;  %v423_v40 = vadd.f32 %v11184_v12, %v11183_v39  ;;  %v11215_v39 = vld [vmem:[#allocation37_spill] sm:$0xff] }
 0x275   :  { %v2547_v7 = vadd.f32 %v2437_v4, %v336_v54 }
 0x279   :  { %v6752_v58 = vpop.eup %6751 }
 0x27a   :  { %v2425_v42 = vpop.f32.mrf.mxu2  ;;  %v2566_v54 = vmul.f32 0.5, %v6752_v58 }
 0x27b   :  { %v2552_v42 = vmul.f32 0.5, %v2544_v3 }
 0x27d   :  { %6753 = vtanh.f32 %v2552_v42 }
 0x282   :  { %v2462_v37 = vpop.f32.mrf.mxu1 }
 0x283   :  { %v6754_v4 = vpop.eup %6753 }
 0x288   :  { %v2488_v34 = vpop.f32.mrf.mxu3 }
 0x28a   :  { %v2464_v20 = vpop.f32.mrf.mxu1 }
 0x28c   :  { %v2449_v63 = vpop.f32.mrf.mxu0 }
 0x28d   :  { %v2463_v20 = vadd.f32 %v2462_v37, %v2449_v63  ;;  %v11185_v37 = vld [vmem:[#allocation182_spill] sm:$0xff] }
 0x290   :  { %v2490_v0 = vpop.f32.mrf.mxu3 }
 0x291   :  { %v2555_v0 = vmul.f32 0.5, %v2547_v7  ;;  %v11186_v7 = vld [vmem:[#allocation180_spill] sm:$0xff] }
 0x292   :  { %v2475_v44 = vpop.f32.mrf.mxu2  ;;  %v394_v63 = vadd.f32 %v11186_v7, %v11185_v37  ;;  %v11214_v37 = vld [vmem:[#allocation22_spill] sm:$0xff] }
 0x293   :  { %6755 = vtanh.f32 %v2555_v0  ;;  %v2489_v3 = vadd.f32 %v2488_v34, %v2475_v44 }
 0x294   :  { %v2451_v45 = vpop.f32.mrf.mxu0  ;;  %6757 = vtanh.f32 %v2553_v28 }
 0x295   :  { %v11181_v45 = vld [vmem:[#allocation165_spill] sm:$0xff] }
 0x296   :  { %v365_v25 = vadd.f32 %v11182_v18, %v11181_v45  ;;  %v2564_v18 = vmul.f32 0.5, %v6754_v4  ;;  %v11187_v45 = vld [vmem:[#allocation177_spill] sm:$0xff] }
 0x297   :  { %v452_v12 = vadd.f32 %v11188_v14, %v11187_v45 }
 0x29a   :  { %v2477_v22 = vpop.f32.mrf.mxu2 }
 0x29b   :  { %v2548_v22 = vadd.f32 %v2463_v20, %v365_v25  ;;  %v2549_v20 = vadd.f32 %v2489_v3, %v394_v63 }
 0x29d   :  { %v2556_v42 = vmul.f32 0.5, %v2548_v22 }
 0x2a2   :  { %v2514_v46 = vpop.f32.mrf.mxu1 }
 0x2a8   :  { %v2540_v56 = vpop.f32.mrf.mxu3 }
 0x2aa   :  { %v2516_v36 = vpop.f32.mrf.mxu1 }
 0x2ab   :  { %v6756_v36 = vpop.eup %6755 }
 0x2ac   :  { %v2501_v32 = vpop.f32.mrf.mxu0  ;;  %v6758_v28 = vpop.eup %6757 }
 0x2ad   :  { %v2515_v49 = vadd.f32 %v2514_v46, %v2501_v32  ;;  %v2572_v46 = vadd.f32 0.5, %v2566_v54  ;;  %v2570_v32 = vadd.f32 0.5, %v2564_v18  ;;  %v2565_v22 = vmul.f32 0.5, %v6758_v28  ;;  %v11190_v18 = vld [vmem:[#allocation265_spill] sm:$0xff] }
 0x2af   :  { %v2550_v31 = vadd.f32 %v2515_v49, %v423_v40  ;;  %v2567_v40 = vmul.f32 0.5, %v6756_v36  ;;  %v2557_v49 = vmul.f32 0.5, %v2549_v20  ;;  %v2571_v14 = vadd.f32 0.5, %v2565_v22  ;;  %v11192_v22 = vld [vmem:[#allocation274_spill] sm:$0xff] }
 0x2b0   :  { %v2542_v50 = vpop.f32.mrf.mxu3 }
 0x2b1   :  { %6759 = vtanh.f32 %v2550_v31  ;;  %v11189_v31 = vld [vmem:[#allocation266_spill] sm:$0xff]  ;;  %v2573_v63 = vadd.f32 0.5, %v2567_v40 }
 0x2b2   :  { %v2527_v25 = vpop.f32.mrf.mxu2  ;;  %6761 = vtanh.f32 %v2556_v42  ;;  %v2578_v4 = vmul.f32 %v2572_v46, %v11189_v31 }
 0x2b3   :  { %v2541_v0 = vadd.f32 %v2540_v56, %v2527_v25  ;;  %v2579_v25 = vmul.f32 %v2573_v63, %v11190_v18  ;;  %v11200_v18 = vld [vmem:[#allocation270_spill] sm:$0xff] }
 0x2b4   :  { %v2503_v44 = vpop.f32.mrf.mxu0 }
 0x2b5   :  { %v2551_v34 = vadd.f32 %v2541_v0, %v452_v12 }
 0x2b7   :  { %v6760_v58 = vpop.eup %6759  ;;  %6763 = vtanh.f32 %v2551_v34 }
 0x2b8   :  { %v2580_v3 = vmul.f32 %v6760_v58, %v2570_v32  ;;  %v6762_v7 = vpop.eup %6761  ;;  %6765 = vtanh.f32 %v2557_v49  ;;  %v8493_v32 = vperm.slane %v8381_v47, 2  ;;  %v11191_v58 = vld [vmem:[#allocation273_spill] sm:$0xff]  ;;  %v11194_v47 = vld [vmem:[#allocation278_spill] sm:$0xff] }
 0x2b9   :  { %v2568_v42 = vmul.f32 0.5, %v6762_v7  ;;  %v11193_v7 = vld [vmem:[#allocation277_spill] sm:$0xff] }
 0x2ba   :  { %v8483_v50 = vadd.f32 %v2580_v3, %v2578_v4  ;;  %v2529_v56 = vpop.f32.mrf.mxu2  ;;  %v2307_v4 = vadd.f32 %v8420_v33, %v8493_v32  ;;  %v11199_v33 = vld [vmem:[#allocation269_spill] sm:$0xff] }
 0x2bb   :  { %v2574_v0 = vadd.f32 0.5, %v2568_v42  ;;  %v11195_v56 = vld [vmem:[#allocation267_spill] sm:$0xff]  ;;  %v11198_v42 = vld [vmem:[#allocation282_spill] sm:$0xff] }
 0x2bc   :  { %6767 = vtanh.f32 %v8483_v50  ;;  %v2311_v63 = vmul.f32 0.5, %v2307_v4 }
 0x2bd   :  { %v6764_v54 = vpop.eup %6763 }
 0x2be   :  { %v2581_v20 = vmul.f32 %v6764_v54, %v2571_v14  ;;  %v6766_v36 = vpop.eup %6765  ;;  %v11196_v14 = vld [vmem:[#allocation268_spill] sm:$0xff]  ;;  %v11197_v54 = vld [vmem:[#allocation281_spill] sm:$0xff] }
 0x2bf   :  { %v2569_v44 = vmul.f32 0.5, %v6766_v36 }
 0x2c0   :  { %v8487_v12 = vadd.f32 %v2581_v20, %v2579_v25  ;;  %v11201_v25 = vld [vmem:[#allocation271_spill] sm:$0xff]  ;;  %v11202_v20 = vld [vmem:[#allocation272_spill] sm:$0xff] }
 0x2c1   :  { %v2575_v40 = vadd.f32 0.5, %v2569_v44 }
 0x2c2   :  { %v6768_v46 = vpop.eup %6767  ;;  %6769 = vtanh.f32 %v8487_v12 }
 0x2c3   :  { %v2586_v28 = vmul.f32 %v6768_v46, %v2574_v0  ;;  %6771 = vtanh.f32 %v2311_v63  ;;  %v11203_v0 = vld [vmem:[#allocation275_spill] sm:$0xff]  ;;  %v11204_v46 = vld [vmem:[#allocation276_spill] sm:$0xff] }
 0x2c4   :  { %6773 = vtanh.f32 %v8438_v62  ;;  %v11207_v63 = vld [vmem:[#allocation283_spill] sm:$0xff] }
 0x2c5   :  { %v8490_v34 = vpack.c.bf16 %v2586_v28, %v2586_v28 }
 0x2c7   :  { %2598 = vmatmul.bf16.vlgmr.msrb.gmra.mxu0 %v8490_v34  ;;  %2624 = vmatmul.bf16.vlgmr.msrb.gmra.mxu2 %v8490_v34 }
 0x2c8   :  { %v6770_v49 = vpop.eup %6769  ;;  %2694 = vmatpush.bf16.msrb.mxu0 %v11191_v58  ;;  %2720 = vmatpush.bf16.msrb.mxu2 %v11192_v22 }
 0x2c9   :  { %v2587_v31 = vmul.f32 %v6770_v49, %v2575_v40  ;;  %v6772_v36 = vpop.eup %6771  ;;  %v11205_v40 = vld [vmem:[#allocation279_spill] sm:$0xff]  ;;  %v11206_v49 = vld [vmem:[#allocation280_spill] sm:$0xff] }
 0x2ca   :  { %v2317_v44 = vmul.f32 0.5, %v6772_v36  ;;  %v6774_v28 = vpop.eup %6773  ;;  %v11208_v36 = vld [vmem:[#allocation284_spill] sm:$0xff] }
 0x2cb   :  { %v8501_v3 = vpack.c.bf16 %v2587_v31, %v2587_v31 }
 0x2cc   :  { %2695 = vmatpush.bf16.msrb.mxu0 %v11193_v7  ;;  %2721 = vmatpush.bf16.msrb.mxu2 %v11194_v47  ;;  %v2320_v31 = vadd.f32 0.5, %v2317_v44  ;;  %v11209_v44 = vld [vmem:[#allocation32_spill] sm:$0xff] }
 0x2cd   :  { %2611 = vmatmul.bf16.vlgmr.msra.gmra.mxu1 %v8501_v3  ;;  %2637 = vmatmul.bf16.vlgmr.msrb.gmra.mxu3 %v8501_v3 }
 0x2ce   :  { %2707 = vmatpush.bf16.msra.mxu1 %v11195_v56  ;;  %2733 = vmatpush.bf16.msrb.mxu3 %v11196_v14  ;;  %v2326_v4 = vmul.f32 %v6774_v28, %v2320_v31  ;;  %v11210_v28 = vld [vmem:[#allocation18_spill] sm:$0xff]  ;;  %v11212_v31 = vld [vmem:[#allocation25_spill] sm:$0xff] }
 0x2d0   :  { %2696 = vmatpush.bf16.msrb.mxu0 %v11197_v54  ;;  %2722 = vmatpush.bf16.msrb.mxu2 %v11198_v42  ;;  %v2327_v45 = vpack.c.bf16 %v2326_v4, %v2326_v4  ;;  %v11213_v4 = vld [vmem:[#allocation38_spill] sm:$0xff] }
 0x2d2   :  { %2708 = vmatpush.bf16.msra.mxu1 %v11199_v33  ;;  %2734 = vmatpush.bf16.msrb.mxu3 %v11200_v18 }
 0x2d4   :  { %2697 = vmatpush.bf16.msrb.mxu0 %v8184_v48  ;;  %2723 = vmatpush.bf16.msrb.mxu2 %v8186_v24 }
 0x2d6   :  { %2709 = vmatpush.bf16.msra.mxu1 %v11201_v25  ;;  %2735 = vmatpush.bf16.msrb.mxu3 %v11202_v20 }
 0x2d7   :  { %2650 = vmatmul.bf16.vlgmr.msra.gmra.mxu0 %v8490_v34  ;;  %2676 = vmatmul.bf16.vlgmr.msra.gmra.mxu2 %v8490_v34 }
 0x2d8   :  { %2698 = vmatpush.bf16.msrb.mxu0 %v8196_v35  ;;  %2724 = vmatpush.bf16.msrb.mxu2 %v8198_v57 }
 0x2da   :  { %2710 = vmatpush.bf16.msra.mxu1 %v11203_v0  ;;  %2736 = vmatpush.bf16.msrb.mxu3 %v11204_v46 }
 0x2dc   :  { %2699 = vmatpush.bf16.msrb.mxu0 %v8210_v1  ;;  %2725 = vmatpush.bf16.msrb.mxu2 %v8212_v59 }
 0x2dd   :  { %2663 = vmatmul.bf16.vlgmr.msrb.gmra.mxu1 %v8501_v3  ;;  %2689 = vmatmul.bf16.vlgmr.msra.gmra.mxu3 %v8501_v3 }
 0x2de   :  { %2711 = vmatpush.bf16.msra.mxu1 %v11205_v40  ;;  %2737 = vmatpush.bf16.msrb.mxu3 %v11206_v49 }
 0x2e0   :  { %2700 = vmatpush.bf16.msrb.mxu0 %v8220_v11  ;;  %2726 = vmatpush.bf16.msrb.mxu2 %v8222_v10 }
 0x2e2   :  { %2712 = vmatpush.bf16.msra.mxu1 %v11207_v63  ;;  %2738 = vmatpush.bf16.msrb.mxu3 %v11208_v36 }
 0x2e4   :  { %2701 = vmatpush.bf16.msrb.mxu0 %v8230_v6  ;;  %2727 = vmatpush.bf16.msrb.mxu2 %v8232_v27 }
 0x2e6   :  { %2713 = vmatpush.bf16.msra.mxu1 %v8190_v19  ;;  %2739 = vmatpush.bf16.msrb.mxu3 %v8192_v2 }
 0x2e7   :  { %2702 = vmatmul.bf16.vlgmr.msrb.gmra.mxu0 %v2327_v45  ;;  %2728 = vmatmul.bf16.vlgmr.msrb.gmra.mxu2 %v2327_v45 }
 0x2e8   :  { %2777 = vmatpush.bf16.msra.mxu0 %v7261_v5  ;;  %2803 = vmatpush.bf16.msra.mxu2 %v7239_v51 }
 0x2ea   :  { %2714 = vmatpush.bf16.msra.mxu1 %v8202_v15  ;;  %2740 = vmatpush.bf16.msrb.mxu3 %v8204_v41  ;;  %v11389_v15 = vld [vmem:[#allocation108_spill] sm:$0xff] }
 0x2ec   :  { %2778 = vmatpush.bf16.msra.mxu0 %v7280_v13  ;;  %2804 = vmatpush.bf16.msra.mxu2 %v7251_v60  ;;  %v11390_v13 = vld [vmem:[#allocation167_spill] sm:$0xff] }
 0x2ed   :  { %2715 = vmatmul.bf16.vlgmr.msra.gmra.mxu1 %v2327_v45  ;;  %2741 = vmatmul.bf16.vlgmr.msrb.gmra.mxu3 %v2327_v45  ;;  %v11211_v45 = vld [vmem:[#allocation31_spill] sm:$0xff] }
 0x2ee   :  { %2790 = vmatpush.bf16.msrb.mxu1 %v7291_v29  ;;  %2816 = vmatpush.bf16.msra.mxu3 %v7241_v52 }
 0x2f0   :  { %2779 = vmatpush.bf16.msra.mxu0 %v7287_v23  ;;  %2805 = vmatpush.bf16.msra.mxu2 %v7265_v8  ;;  %v11307_v8 = vld [vmem:[#allocation129_spill] sm:$0xff] }
 0x2f2   :  { %2791 = vmatpush.bf16.msrb.mxu1 %v7298_v38  ;;  %2817 = vmatpush.bf16.msra.mxu3 %v7253_v61 }
 0x2f4   :  { %2780 = vmatpush.bf16.msra.mxu0 %v7301_v43  ;;  %2806 = vmatpush.bf16.msra.mxu2 %v7282_v17  ;;  %v11303_v43 = vld [vmem:[#allocation123_spill] sm:$0xff] }
 0x2f6   :  { %2792 = vmatpush.bf16.msrb.mxu1 %v7310_v53  ;;  %2818 = vmatpush.bf16.msra.mxu3 %v7267_v9  ;;  %v11217_v9 = vld [vmem:[#allocation42_spill] sm:$0xff]  ;;  %v11302_v53 = vld [vmem:[#allocation132_spill] sm:$0xff] }
 0x2f8   :  { %2781 = vmatpush.bf16.msra.mxu0 %v7313_v55  ;;  %2807 = vmatpush.bf16.msra.mxu2 %v7293_v30  ;;  %v11218_v55 = vld [vmem:[#allocation26_spill] sm:$0xff]  ;;  %v11219_v30 = vld [vmem:[#allocation41_spill] sm:$0xff] }
 0x2fa   :  { %2793 = vmatpush.bf16.msrb.mxu1 %v11209_v44  ;;  %2819 = vmatpush.bf16.msra.mxu3 %v11210_v28  ;;  %v11220_v44 = vld [vmem:[#allocation33_spill] sm:$0xff]  ;;  %v11221_v28 = vld [vmem:[#allocation43_spill] sm:$0xff] }
 0x2fc   :  { %2782 = vmatpush.bf16.msra.mxu0 %v11211_v45  ;;  %2808 = vmatpush.bf16.msra.mxu2 %v11212_v31  ;;  %v11222_v45 = vld [vmem:[#allocation35_spill] sm:$0xff]  ;;  %v11223_v31 = vld [vmem:[#allocation46_spill] sm:$0xff] }
 0x2fe   :  { %2794 = vmatpush.bf16.msrb.mxu1 %v11213_v4  ;;  %2820 = vmatpush.bf16.msra.mxu3 %v11214_v37  ;;  %v11224_v4 = vld [vmem:[#allocation30_spill] sm:$0xff]  ;;  %v11241_v37 = vld [vmem:[#allocation64_spill] sm:$0xff] }
 0x300   :  { %2783 = vmatpush.bf16.msra.mxu0 %v11215_v39  ;;  %2809 = vmatpush.bf16.msra.mxu2 %v11216_v26  ;;  %v11225_v26 = vld [vmem:[#allocation47_spill] sm:$0xff]  ;;  %v11240_v39 = vld [vmem:[#allocation53_spill] sm:$0xff] }
 0x302   :  { %2795 = vmatpush.bf16.msrb.mxu1 %v11217_v9  ;;  %2821 = vmatpush.bf16.msra.mxu3 %v11218_v55  ;;  %v11226_v9 = vld [vmem:[#allocation39_spill] sm:$0xff]  ;;  %v11227_v55 = vld [vmem:[#allocation50_spill] sm:$0xff] }
 0x304   :  { %2784 = vmatpush.bf16.msra.mxu0 %v11219_v30  ;;  %2810 = vmatpush.bf16.msra.mxu2 %v11220_v44  ;;  %v11228_v30 = vld [vmem:[#allocation34_spill] sm:$0xff]  ;;  %v11229_v44 = vld [vmem:[#allocation52_spill] sm:$0xff] }
 0x306   :  { %2796 = vmatpush.bf16.msrb.mxu1 %v11223_v31  ;;  %2822 = vmatpush.bf16.msra.mxu3 %v11224_v4  ;;  %v11231_v4 = vld [vmem:[#allocation51_spill] sm:$0xff]  ;;  %v11232_v31 = vld [vmem:[#allocation44_spill] sm:$0xff] }
 0x307   :  { %2785 = vmatmul.bf16.vlgmr.msra.gmra.mxu0 %v8490_v34  ;;  %2811 = vmatmul.bf16.vlgmr.msra.gmra.mxu2 %v8490_v34 }
 0x308   :  { %2829 = vmatpush.bf16.msrb.mxu0 %v11221_v28  ;;  %2855 = vmatpush.bf16.msrb.mxu2 %v11222_v45  ;;  %v11230_v28 = vld [vmem:[#allocation36_spill] sm:$0xff] }
 0x309   :  { %v11233_v45 = vld [vmem:[#allocation56_spill] sm:$0xff] }
 0x30a   :  { %2797 = vmatpush.bf16.msrb.mxu1 %v11227_v55  ;;  %2823 = vmatpush.bf16.msra.mxu3 %v11228_v30  ;;  %v11236_v55 = vld [vmem:[#allocation48_spill] sm:$0xff] }
 0x30b   :  { %v11237_v30 = vld [vmem:[#allocation60_spill] sm:$0xff] }
 0x30c   :  { %2830 = vmatpush.bf16.msrb.mxu0 %v11225_v26  ;;  %2856 = vmatpush.bf16.msrb.mxu2 %v11226_v9  ;;  %v11234_v26 = vld [vmem:[#allocation40_spill] sm:$0xff]  ;;  %v11235_v9 = vld [vmem:[#allocation55_spill] sm:$0xff] }
 0x30d   :  { %2798 = vmatmul.bf16.vlgmr.msrb.gmra.mxu1 %v8501_v3  ;;  %2824 = vmatmul.bf16.vlgmr.msra.gmra.mxu3 %v8501_v3 }
 0x30e   :  { %2842 = vmatpush.bf16.msra.mxu1 %v11229_v44  ;;  %2868 = vmatpush.bf16.msrb.mxu3 %v11230_v28  ;;  %v11238_v44 = vld [vmem:[#allocation45_spill] sm:$0xff]  ;;  %v11239_v28 = vld [vmem:[#allocation59_spill] sm:$0xff] }
 0x310   :  { %2831 = vmatpush.bf16.msrb.mxu0 %v11231_v4  ;;  %2857 = vmatpush.bf16.msrb.mxu2 %v11232_v31  ;;  %v11242_v4 = vld [vmem:[#allocation49_spill] sm:$0xff]  ;;  %v11243_v31 = vld [vmem:[#allocation63_spill] sm:$0xff] }
 0x312   :  { %2843 = vmatpush.bf16.msra.mxu1 %v11233_v45  ;;  %2869 = vmatpush.bf16.msrb.mxu3 %v11234_v26  ;;  %v11244_v45 = vld [vmem:[#allocation57_spill] sm:$0xff]  ;;  %v11245_v26 = vld [vmem:[#allocation68_spill] sm:$0xff] }
 0x314   :  { %2832 = vmatpush.bf16.msrb.mxu0 %v11235_v9  ;;  %2858 = vmatpush.bf16.msrb.mxu2 %v11236_v55  ;;  %v11246_v9 = vld [vmem:[#allocation54_spill] sm:$0xff]  ;;  %v11247_v55 = vld [vmem:[#allocation67_spill] sm:$0xff] }
 0x316   :  { %2844 = vmatpush.bf16.msra.mxu1 %v11237_v30  ;;  %2870 = vmatpush.bf16.msrb.mxu3 %v11238_v44  ;;  %v11248_v30 = vld [vmem:[#allocation61_spill] sm:$0xff]  ;;  %v11249_v44 = vld [vmem:[#allocation70_spill] sm:$0xff] }
 0x318   :  { %2833 = vmatpush.bf16.msrb.mxu0 %v11239_v28  ;;  %2859 = vmatpush.bf16.msrb.mxu2 %v11240_v39  ;;  %v11250_v28 = vld [vmem:[#allocation58_spill] sm:$0xff]  ;;  %v11251_v39 = vld [vmem:[#allocation69_spill] sm:$0xff] }
 0x31a   :  { %2845 = vmatpush.bf16.msra.mxu1 %v11241_v37  ;;  %2871 = vmatpush.bf16.msrb.mxu3 %v11242_v4  ;;  %v11252_v37 = vld [vmem:[#allocation65_spill] sm:$0xff]  ;;  %v11253_v4 = vld [vmem:[#allocation72_spill] sm:$0xff] }
 0x31c   :  { %2834 = vmatpush.bf16.msrb.mxu0 %v11243_v31  ;;  %2860 = vmatpush.bf16.msrb.mxu2 %v11244_v45  ;;  %v11254_v31 = vld [vmem:[#allocation79_spill] sm:$0xff] }
 0x31d   :  { %v11255_v45 = vld [vmem:[#allocation71_spill] sm:$0xff] }
 0x31e   :  { %2846 = vmatpush.bf16.msra.mxu1 %v11245_v26  ;;  %2872 = vmatpush.bf16.msrb.mxu3 %v11246_v9  ;;  %v11256_v26 = vld [vmem:[#allocation62_spill] sm:$0xff]  ;;  %v11273_v9 = vld [vmem:[#allocation115_spill] sm:$0xff] }
 0x320   :  { %2835 = vmatpush.bf16.msrb.mxu0 %v11247_v55  ;;  %2861 = vmatpush.bf16.msrb.mxu2 %v11248_v30  ;;  %v11257_v30 = vld [vmem:[#allocation74_spill] sm:$0xff]  ;;  %v11272_v55 = vld [vmem:[#allocation97_spill] sm:$0xff] }
 0x322   :  { %2847 = vmatpush.bf16.msra.mxu1 %v11249_v44  ;;  %2873 = vmatpush.bf16.msrb.mxu3 %v11250_v28  ;;  %v11258_v44 = vld [vmem:[#allocation82_spill] sm:$0xff]  ;;  %v11259_v28 = vld [vmem:[#allocation73_spill] sm:$0xff] }
 0x324   :  { %2836 = vmatpush.bf16.msrb.mxu0 %v11251_v39  ;;  %2862 = vmatpush.bf16.msrb.mxu2 %v11252_v37  ;;  %v11260_v39 = vld [vmem:[#allocation66_spill] sm:$0xff]  ;;  %v11261_v37 = vld [vmem:[#allocation96_spill] sm:$0xff] }
 0x326   :  { %2848 = vmatpush.bf16.msra.mxu1 %v11255_v45  ;;  %2874 = vmatpush.bf16.msrb.mxu3 %v11256_v26  ;;  %v11263_v26 = vld [vmem:[#allocation75_spill] sm:$0xff] }
 0x327   :  { %2837 = vmatmul.bf16.vlgmr.msrb.gmra.mxu0 %v8490_v34  ;;  %2863 = vmatmul.bf16.vlgmr.msrb.gmra.mxu2 %v8490_v34  ;;  %v11264_v45 = vld [vmem:[#allocation87_spill] sm:$0xff] }
 0x328   :  { %2881 = vmatpush.bf16.msra.mxu0 %v11253_v4  ;;  %2907 = vmatpush.bf16.msra.mxu2 %v11254_v31  ;;  %v11262_v4 = vld [vmem:[#allocation80_spill] sm:$0xff]  ;;  %v11265_v31 = vld [vmem:[#allocation103_spill] sm:$0xff] }
 0x32a   :  { %2849 = vmatpush.bf16.msra.mxu1 %v11259_v28  ;;  %2875 = vmatpush.bf16.msrb.mxu3 %v11260_v39  ;;  %v11268_v28 = vld [vmem:[#allocation90_spill] sm:$0xff]  ;;  %v11269_v39 = vld [vmem:[#allocation111_spill] sm:$0xff] }
 0x32c   :  { %2882 = vmatpush.bf16.msra.mxu0 %v11257_v30  ;;  %2908 = vmatpush.bf16.msra.mxu2 %v11258_v44  ;;  %v11266_v30 = vld [vmem:[#allocation83_spill] sm:$0xff]  ;;  %v11267_v44 = vld [vmem:[#allocation77_spill] sm:$0xff] }
 0x32d   :  { %2850 = vmatmul.bf16.vlgmr.msra.gmra.mxu1 %v8501_v3  ;;  %2876 = vmatmul.bf16.vlgmr.msrb.gmra.mxu3 %v8501_v3 }
 0x32e   :  { %2894 = vmatpush.bf16.msrb.mxu1 %v11261_v37  ;;  %2920 = vmatpush.bf16.msra.mxu3 %v11262_v4  ;;  %v11270_v37 = vld [vmem:[#allocation88_spill] sm:$0xff]  ;;  %v11271_v4 = vld [vmem:[#allocation81_spill] sm:$0xff] }
 0x330   :  { %2883 = vmatpush.bf16.msra.mxu0 %v11263_v26  ;;  %2909 = vmatpush.bf16.msra.mxu2 %v11264_v45  ;;  %v11274_v26 = vld [vmem:[#allocation91_spill] sm:$0xff]  ;;  %v11275_v45 = vld [vmem:[#allocation84_spill] sm:$0xff] }
 0x332   :  { %2895 = vmatpush.bf16.msrb.mxu1 %v11265_v31  ;;  %2921 = vmatpush.bf16.msra.mxu3 %v11266_v30  ;;  %v11276_v31 = vld [vmem:[#allocation104_spill] sm:$0xff]  ;;  %v11277_v30 = vld [vmem:[#allocation125_spill] sm:$0xff] }
 0x334   :  { %2884 = vmatpush.bf16.msra.mxu0 %v11267_v44  ;;  %2910 = vmatpush.bf16.msra.mxu2 %v11268_v28  ;;  %v11278_v44 = vld [vmem:[#allocation99_spill] sm:$0xff]  ;;  %v11279_v28 = vld [vmem:[#allocation89_spill] sm:$0xff] }
 0x336   :  { %2896 = vmatpush.bf16.msrb.mxu1 %v11269_v39  ;;  %2922 = vmatpush.bf16.msra.mxu3 %v11270_v37  ;;  %v11280_v39 = vld [vmem:[#allocation112_spill] sm:$0xff]  ;;  %v11281_v37 = vld [vmem:[#allocation130_spill] sm:$0xff] }
 0x338   :  { %2885 = vmatpush.bf16.msra.mxu0 %v11271_v4  ;;  %2911 = vmatpush.bf16.msra.mxu2 %v11272_v55  ;;  %v11282_v4 = vld [vmem:[#allocation105_spill] sm:$0xff]  ;;  %v11283_v55 = vld [vmem:[#allocation92_spill] sm:$0xff] }
 0x33a   :  { %2897 = vmatpush.bf16.msrb.mxu1 %v11273_v9  ;;  %2923 = vmatpush.bf16.msra.mxu3 %v11274_v26  ;;  %v11284_v9 = vld [vmem:[#allocation116_spill] sm:$0xff]  ;;  %v11285_v26 = vld [vmem:[#allocation95_spill] sm:$0xff] }
 0x33c   :  { %2886 = vmatpush.bf16.msra.mxu0 %v11275_v45  ;;  %2912 = vmatpush.bf16.msra.mxu2 %v11276_v31  ;;  %v11286_v45 = vld [vmem:[#allocation118_spill] sm:$0xff] }
 0x33d   :  { %v11287_v31 = vld [vmem:[#allocation138_spill] sm:$0xff] }
 0x33e   :  { %2898 = vmatpush.bf16.msrb.mxu1 %v11277_v30  ;;  %2924 = vmatpush.bf16.msra.mxu3 %v11278_v44  ;;  %v11288_v30 = vld [vmem:[#allocation113_spill] sm:$0xff]  ;;  %v11301_v44 = vld [vmem:[#allocation152_spill] sm:$0xff] }
 0x340   :  { %2887 = vmatpush.bf16.msra.mxu0 %v11279_v28  ;;  %2913 = vmatpush.bf16.msra.mxu2 %v11280_v39  ;;  %v11289_v39 = vld [vmem:[#allocation100_spill] sm:$0xff] }
 0x342   :  { %2899 = vmatpush.bf16.msrb.mxu1 %v11281_v37  ;;  %2925 = vmatpush.bf16.msra.mxu3 %v11282_v4  ;;  %v11290_v37 = vld [vmem:[#allocation127_spill] sm:$0xff]  ;;  %v11291_v4 = vld [vmem:[#allocation142_spill] sm:$0xff] }
 0x344   :  { %2888 = vmatpush.bf16.msra.mxu0 %v11283_v55  ;;  %2914 = vmatpush.bf16.msra.mxu2 %v11284_v9  ;;  %v11292_v55 = vld [vmem:[#allocation117_spill] sm:$0xff]  ;;  %v11293_v9 = vld [vmem:[#allocation143_spill] sm:$0xff] }
 0x346   :  { %2900 = vmatpush.bf16.msrb.mxu1 %v11287_v31  ;;  %2926 = vmatpush.bf16.msra.mxu3 %v11288_v30  ;;  %v11295_v30 = vld [vmem:[#allocation106_spill] sm:$0xff]  ;;  %v11296_v31 = vld [vmem:[#allocation131_spill] sm:$0xff] }
 0x347   :  { %2889 = vmatmul.bf16.vlgmr.msra.gmra.mxu0 %v8490_v34  ;;  %2915 = vmatmul.bf16.vlgmr.msra.gmra.mxu2 %v8490_v34 }
 0x348   :  { %2933 = vmatpush.bf16.msrb.mxu0 %v11285_v26  ;;  %2959 = vmatpush.bf16.msrb.mxu2 %v11286_v45  ;;  %v11294_v26 = vld [vmem:[#allocation122_spill] sm:$0xff]  ;;  %v2599_v45 = vpop.f32.mrf.mxu0 }
 0x34a   :  { %2901 = vmatpush.bf16.msrb.mxu1 %v11291_v4  ;;  %2927 = vmatpush.bf16.msra.mxu3 %v11292_v55  ;;  %v2612_v4 = vpop.f32.mrf.mxu1  ;;  %v2625_v28 = vpop.f32.mrf.mxu2  ;;  %v11299_v55 = vld [vmem:[#allocation114_spill] sm:$0xff] }
 0x34c   :  { %2934 = vmatpush.bf16.msrb.mxu0 %v11289_v39  ;;  %2960 = vmatpush.bf16.msrb.mxu2 %v11290_v37  ;;  %v11297_v39 = vld [vmem:[#allocation149_spill] sm:$0xff]  ;;  %v11298_v37 = vld [vmem:[#allocation128_spill] sm:$0xff] }
 0x34d   :  { %2902 = vmatmul.bf16.vlgmr.msrb.gmra.mxu1 %v8501_v3  ;;  %2928 = vmatmul.bf16.vlgmr.msra.gmra.mxu3 %v8501_v3 }
 0x34e   :  { %2946 = vmatpush.bf16.msra.mxu1 %v11293_v9  ;;  %2972 = vmatpush.bf16.msrb.mxu3 %v11294_v26  ;;  %v11300_v9 = vld [vmem:[#allocation139_spill] sm:$0xff]  ;;  %v2613_v26 = vadd.f32 %v2612_v4, %v2599_v45  ;;  %v11308_v45 = vld [vmem:[#allocation150_spill] sm:$0xff] }
 0x34f   :  { %v11309_v4 = vld [vmem:[#allocation162_spill] sm:$0xff] }
 0x350   :  { %2935 = vmatpush.bf16.msrb.mxu0 %v11295_v30  ;;  %2961 = vmatpush.bf16.msrb.mxu2 %v11296_v31  ;;  %v2601_v17 = vpop.f32.mrf.mxu0  ;;  %v11304_v30 = vld [vmem:[#allocation144_spill] sm:$0xff]  ;;  %v11305_v31 = vld [vmem:[#allocation159_spill] sm:$0xff] }
 0x352   :  { %2947 = vmatpush.bf16.msra.mxu1 %v11297_v39  ;;  %2973 = vmatpush.bf16.msrb.mxu3 %v11298_v37  ;;  %v11306_v39 = vld [vmem:[#allocation140_spill] sm:$0xff]  ;;  %v2638_v37 = vpop.f32.mrf.mxu3  ;;  %v2614_v38 = vpop.f32.mrf.mxu1 }
 0x353   :  { %v2639_v61 = vadd.f32 %v2638_v37, %v2625_v28  ;;  %v11315_v28 = vld [vmem:[#allocation141_spill] sm:$0xff] }
 0x354   :  { %2936 = vmatpush.bf16.msrb.mxu0 %v11299_v55  ;;  %2962 = vmatpush.bf16.msrb.mxu2 %v11300_v9  ;;  %v2627_v55 = vpop.f32.mrf.mxu2 }
 0x356   :  { %2948 = vmatpush.bf16.msra.mxu1 %v11301_v44  ;;  %2974 = vmatpush.bf16.msrb.mxu3 %v11302_v53  ;;  %v11310_v53 = vld [vmem:[#allocation147_spill] sm:$0xff] }
 0x358   :  { %2937 = vmatpush.bf16.msrb.mxu0 %v11303_v43  ;;  %2963 = vmatpush.bf16.msrb.mxu2 %v11304_v30  ;;  %v2651_v17 = vpop.f32.mrf.mxu0  ;;  %v11311_v43 = vld [vmem:[#allocation137_spill] sm:$0xff] }
 0x359   :  { %v11312_v30 = vld [vmem:[#allocation153_spill] sm:$0xff] }
 0x35a   :  { %2949 = vmatpush.bf16.msra.mxu1 %v11305_v31  ;;  %2975 = vmatpush.bf16.msrb.mxu3 %v11306_v39  ;;  %v11313_v31 = vld [vmem:[#allocation168_spill] sm:$0xff]  ;;  %v11314_v39 = vld [vmem:[#allocation151_spill] sm:$0xff]  ;;  %v2640_v37 = vpop.f32.mrf.mxu3  ;;  %v2664_v38 = vpop.f32.mrf.mxu1 }
 0x35b   :  { %v11321_v37 = vld [vmem:[#allocation172_spill] sm:$0xff] }
 0x35c   :  { %2938 = vmatpush.bf16.msrb.mxu0 %v11307_v8  ;;  %2964 = vmatpush.bf16.msrb.mxu2 %v11308_v45  ;;  %v2677_v55 = vpop.f32.mrf.mxu2  ;;  %v11316_v8 = vld [vmem:[#allocation160_spill] sm:$0xff]  ;;  %v2665_v45 = vadd.f32 %v2664_v38, %v2651_v17 }
 0x35d   :  { %v11323_v17 = vld [vmem:[#allocation212_spill] sm:$0xff] }
 0x35e   :  { %2950 = vmatpush.bf16.msra.mxu1 %v11309_v4  ;;  %2976 = vmatpush.bf16.msrb.mxu3 %v11310_v53  ;;  %v11317_v4 = vld [vmem:[#allocation169_spill] sm:$0xff]  ;;  %v11318_v53 = vld [vmem:[#allocation154_spill] sm:$0xff] }
 0x360   :  { %2939 = vmatpush.bf16.msrb.mxu0 %v11311_v43  ;;  %2965 = vmatpush.bf16.msrb.mxu2 %v11312_v30  ;;  %v2653_v44 = vpop.f32.mrf.mxu0  ;;  %v11319_v43 = vld [vmem:[#allocation207_spill] sm:$0xff]  ;;  %v11320_v30 = vld [vmem:[#allocation208_spill] sm:$0xff] }
 0x362   :  { %2951 = vmatpush.bf16.msra.mxu1 %v11313_v31  ;;  %2977 = vmatpush.bf16.msrb.mxu3 %v11314_v39  ;;  %v11322_v39 = vld [vmem:[#allocation161_spill] sm:$0xff]  ;;  %v2666_v38 = vpop.f32.mrf.mxu1 }
 0x364   :  { %2940 = vmatpush.bf16.msrb.mxu0 %v11315_v28  ;;  %2966 = vmatpush.bf16.msrb.mxu2 %v11316_v8  ;;  %v2690_v28 = vpop.f32.mrf.mxu3  ;;  %v2679_v44 = vpop.f32.mrf.mxu2 }
 0x365   :  { %v2691_v8 = vadd.f32 %v2690_v28, %v2677_v55  ;;  %v11328_v55 = vld [vmem:[#allocation203_spill] sm:$0xff]  ;;  %v11329_v28 = vld [vmem:[#allocation204_spill] sm:$0xff] }
 0x366   :  { %2952 = vmatpush.bf16.msra.mxu1 %v11317_v4  ;;  %2978 = vmatpush.bf16.msrb.mxu3 %v11318_v53  ;;  %v11324_v53 = vld [vmem:[#allocation200_spill] sm:$0xff]  ;;  %v11334_v4 = vld [vmem:[#allocation223_spill] sm:$0xff] }
 0x367   :  { %2941 = vmatmul.bf16.vlgmr.msrb.gmra.mxu0 %v8490_v34  ;;  %2967 = vmatmul.bf16.vlgmr.msrb.gmra.mxu2 %v8490_v34 }
 0x368   :  { %3031 = vmatpush.bf16.msra.mxu0 %v11319_v43  ;;  %3057 = vmatpush.bf16.msra.mxu2 %v11320_v30  ;;  %v11325_v43 = vld [vmem:[#allocation201_spill] sm:$0xff]  ;;  %v2703_v34 = vpop.f32.mrf.mxu0  ;;  %v11326_v30 = vld [vmem:[#allocation215_spill] sm:$0xff] }
 0x36a   :  { %2953 = vmatpush.bf16.msra.mxu1 %v11321_v37  ;;  %2979 = vmatpush.bf16.msrb.mxu3 %v11322_v39  ;;  %v2704_v37 = vadd.f32 %v2703_v34, %v2613_v26  ;;  %v11327_v39 = vld [vmem:[#allocation216_spill] sm:$0xff]  ;;  %v11333_v26 = vld [vmem:[#allocation206_spill] sm:$0xff]  ;;  %v2716_v34 = vpop.f32.mrf.mxu1 }
 0x36c   :  { %3032 = vmatpush.bf16.msra.mxu0 %v11130_v16  ;;  %3058 = vmatpush.bf16.msra.mxu2 %v11323_v17  ;;  %v2746_v38 = vadd.f32 %v2704_v37, %v8404_v21  ;;  %v2692_v44 = vpop.f32.mrf.mxu3  ;;  %v2729_v16 = vpop.f32.mrf.mxu2  ;;  %v11336_v37 = vld [vmem:[#allocation289_spill] sm:$0xff] }
 0x36d   :  { %2954 = vmatmul.bf16.vlgmr.msra.gmra.mxu1 %v8501_v3  ;;  %2980 = vmatmul.bf16.vlgmr.msrb.gmra.mxu3 %v8501_v3  ;;  %v11332_v3 = vld [vmem:[#allocation205_spill] sm:$0xff] }
 0x36e   :  { %3044 = vmatpush.bf16.msrb.mxu1 %v11324_v53  ;;  %3070 = vmatpush.bf16.msra.mxu3 %v11325_v43  ;;  %v11330_v53 = vld [vmem:[#allocation219_spill] sm:$0xff]  ;;  %v11331_v43 = vld [vmem:[#allocation220_spill] sm:$0xff]  ;;  %v2750_v17 = vmul.f32 0.5, %v2746_v38  ;;  %v11338_v38 = vld [vmem:[#allocation210_spill] sm:$0xff] }
 0x36f   :  { %v11339_v21 = vld [vmem:[#allocation229_spill] sm:$0xff] }
 0x370   :  { %3033 = vmatpush.bf16.msra.mxu0 %v11326_v30  ;;  %3059 = vmatpush.bf16.msra.mxu2 %v11327_v39  ;;  %v8699_v30 = vadd.f32 %v2729_v16, %v2665_v45  ;;  %v2717_v39 = vadd.f32 %v2716_v34, %v2639_v61  ;;  %6775 = vtanh.f32 %v2750_v17  ;;  %v11341_v45 = vld [vmem:[#allocation213_spill] sm:$0xff] }
 0x372   :  { %3045 = vmatpush.bf16.msrb.mxu1 %v11328_v55  ;;  %3071 = vmatpush.bf16.msra.mxu3 %v11329_v28  ;;  %v2705_v55 = vpop.f32.mrf.mxu0  ;;  %v11335_v28 = vld [vmem:[#allocation224_spill] sm:$0xff]  ;;  %v2747_v44 = vadd.f32 %v2717_v39, %v11336_v37  ;;  %v2718_v17 = vpop.f32.mrf.mxu1  ;;  %v11343_v39 = vld [vmem:[#allocation291_spill] sm:$0xff] }
 0x373   :  { %v11342_v55 = vld [vmem:[#allocation214_spill] sm:$0xff]  ;;  %v11350_v17 = vld [vmem:[#allocation239_spill] sm:$0xff] }
 0x374   :  { %3034 = vmatpush.bf16.msra.mxu0 %v11330_v53  ;;  %3060 = vmatpush.bf16.msra.mxu2 %v11331_v43  ;;  %v11337_v53 = vld [vmem:[#allocation209_spill] sm:$0xff]  ;;  %v2751_v43 = vmul.f32 0.5, %v2747_v44  ;;  %v2731_v16 = vpop.f32.mrf.mxu2 }
 0x375   :  { %v11346_v44 = vld [vmem:[#allocation217_spill] sm:$0xff] }
 0x376   :  { %3046 = vmatpush.bf16.msrb.mxu1 %v11332_v3  ;;  %3072 = vmatpush.bf16.msra.mxu3 %v11333_v26  ;;  %v2742_v3 = vpop.f32.mrf.mxu3  ;;  %v11340_v26 = vld [vmem:[#allocation230_spill] sm:$0xff]  ;;  %6777 = vtanh.f32 %v2751_v43  ;;  %v6776_v34 = vpop.eup %6775 }
 0x377   :  { %v2743_v61 = vadd.f32 %v2742_v3, %v2691_v8  ;;  %v2756_v43 = vmul.f32 0.5, %v6776_v34 }
 0x378   :  { %3035 = vmatpush.bf16.msra.mxu0 %v11334_v4  ;;  %3061 = vmatpush.bf16.msra.mxu2 %v11335_v28  ;;  %v11376_v28 = vld [vmem:[#allocation245_spill] sm:$0xff] }
 0x379   :  { %v2749_v37 = vadd.f32 %v2743_v61, %v11343_v39  ;;  %v11351_v61 = vld [vmem:[#allocation240_spill] sm:$0xff] }
 0x37a   :  { %3047 = vmatpush.bf16.msrb.mxu1 %v11337_v53  ;;  %3073 = vmatpush.bf16.msra.mxu3 %v11338_v38  ;;  %v11344_v53 = vld [vmem:[#allocation233_spill] sm:$0xff]  ;;  %v11345_v38 = vld [vmem:[#allocation234_spill] sm:$0xff] }
 0x37b   :  { %6779 = vtanh.f32 %v2749_v37  ;;  %v11353_v37 = vld [vmem:[#allocation222_spill] sm:$0xff] }
 0x37c   :  { %3036 = vmatpush.bf16.msra.mxu0 %v11339_v21  ;;  %3062 = vmatpush.bf16.msra.mxu2 %v11340_v26  ;;  %v11347_v21 = vld [vmem:[#allocation218_spill] sm:$0xff]  ;;  %v6778_v8 = vpop.eup %6777  ;;  %v11373_v26 = vld [vmem:[#allocation259_spill] sm:$0xff] }
 0x37d   :  { %v2757_v3 = vmul.f32 0.5, %v6778_v8  ;;  %v11354_v8 = vld [vmem:[#allocation243_spill] sm:$0xff] }
 0x37e   :  { %3048 = vmatpush.bf16.msrb.mxu1 %v11341_v45  ;;  %3074 = vmatpush.bf16.msra.mxu3 %v11342_v55  ;;  %v2744_v16 = vpop.f32.mrf.mxu3  ;;  %v11348_v45 = vld [vmem:[#allocation237_spill] sm:$0xff]  ;;  %v11349_v55 = vld [vmem:[#allocation238_spill] sm:$0xff] }
 0x37f   :  { %v2760_v39 = vadd.f32 0.5, %v2757_v3  ;;  %v11355_v16 = vld [vmem:[#allocation244_spill] sm:$0xff] }
 0x380   :  { %3037 = vmatpush.bf16.msra.mxu0 %v11344_v53  ;;  %3063 = vmatpush.bf16.msra.mxu2 %v11345_v38  ;;  %v2759_v53 = vadd.f32 0.5, %v2756_v43  ;;  %v11352_v38 = vld [vmem:[#allocation221_spill] sm:$0xff]  ;;  %v11358_v43 = vld [vmem:[#allocation227_spill] sm:$0xff]  ;;  %v11359_v3 = vld [vmem:[#allocation228_spill] sm:$0xff] }
 0x381   :  { %v2763_v34 = vmul.f32 %v2760_v39, %v8438_v62  ;;  %v11363_v62 = vld [vmem:[#allocation232_spill] sm:$0xff]  ;;  %v11364_v39 = vld [vmem:[#allocation251_spill] sm:$0xff] }
 0x382   :  { %3049 = vmatpush.bf16.msrb.mxu1 %v11346_v44  ;;  %3075 = vmatpush.bf16.msra.mxu3 %v11347_v21  ;;  %v6780_v44 = vpop.eup %6779 }
 0x383   :  { %v2764_v21 = vmul.f32 %v6780_v44, %v2759_v53  ;;  %v11362_v53 = vld [vmem:[#allocation231_spill] sm:$0xff] }
 0x384   :  { %3038 = vmatpush.bf16.msra.mxu0 %v11348_v45  ;;  %3064 = vmatpush.bf16.msra.mxu2 %v11349_v55  ;;  %v11356_v55 = vld [vmem:[#allocation225_spill] sm:$0xff] }
 0x385   :  { %v8724_v45 = vadd.f32 %v2764_v21, %v2763_v34  ;;  %v11365_v21 = vld [vmem:[#allocation252_spill] sm:$0xff] }
 0x386   :  { %3050 = vmatpush.bf16.msrb.mxu1 %v11352_v38  ;;  %3076 = vmatpush.bf16.msra.mxu3 %v11353_v37  ;;  %v2786_v38 = vpop.f32.mrf.mxu0  ;;  %v11360_v37 = vld [vmem:[#allocation247_spill] sm:$0xff] }
 0x388   :  { %3083 = vmatpush.bf16.msrb.mxu0 %v11350_v17  ;;  %3109 = vmatpush.bf16.msrb.mxu2 %v11351_v61  ;;  %v11357_v17 = vld [vmem:[#allocation226_spill] sm:$0xff]  ;;  %v11361_v61 = vld [vmem:[#allocation248_spill] sm:$0xff] }
 0x38a   :  { %3051 = vmatpush.bf16.msrb.mxu1 %v11356_v55  ;;  %3077 = vmatpush.bf16.msra.mxu3 %v11357_v17  ;;  %v2799_v44 = vpop.f32.mrf.mxu1  ;;  %v2812_v34 = vpop.f32.mrf.mxu2  ;;  %v11366_v55 = vld [vmem:[#allocation235_spill] sm:$0xff] }
 0x38b   :  { %v2800_v17 = vadd.f32 %v2799_v44, %v2786_v38  ;;  %v11374_v38 = vld [vmem:[#allocation260_spill] sm:$0xff] }
 0x38c   :  { %3084 = vmatpush.bf16.msrb.mxu0 %v11354_v8  ;;  %3110 = vmatpush.bf16.msrb.mxu2 %v11355_v16  ;;  %v11368_v16 = vld [vmem:[#allocation98_spill] sm:$0xff]  ;;  %v11369_v8 = vld [vmem:[#allocation255_spill] sm:$0xff] }
 0x38e   :  { %3096 = vmatpush.bf16.msra.mxu1 %v11358_v43  ;;  %3122 = vmatpush.bf16.msrb.mxu3 %v11359_v3  ;;  %v11367_v43 = vld [vmem:[#allocation236_spill] sm:$0xff]  ;;  %v2788_v3 = vpop.f32.mrf.mxu0 }
 0x390   :  { %3085 = vmatpush.bf16.msrb.mxu0 %v11360_v37  ;;  %3111 = vmatpush.bf16.msrb.mxu2 %v11361_v61  ;;  %v2985_v37 = vadd.f32 %v2800_v17, %v11368_v16  ;;  %v11370_v61 = vld [vmem:[#allocation256_spill] sm:$0xff]  ;;  %v11377_v17 = vld [vmem:[#allocation246_spill] sm:$0xff]  ;;  %v11378_v16 = vld [vmem:[#allocation261_spill] sm:$0xff] }
 0x392   :  { %3097 = vmatpush.bf16.msra.mxu1 %v11362_v53  ;;  %3123 = vmatpush.bf16.msrb.mxu3 %v11363_v62  ;;  %v11371_v53 = vld [vmem:[#allocation241_spill] sm:$0xff]  ;;  %v11372_v62 = vld [vmem:[#allocation242_spill] sm:$0xff]  ;;  %v2801_v44 = vpop.f32.mrf.mxu1  ;;  %v2993_v41 = vmul.f32 0.5, %v2985_v37 }
 0x393   :  { %v11387_v44 = vld [vmem:[#allocation258_spill] sm:$0xff] }
 0x394   :  { %3086 = vmatpush.bf16.msrb.mxu0 %v11364_v39  ;;  %3112 = vmatpush.bf16.msrb.mxu2 %v11365_v21  ;;  %v2825_v39 = vpop.f32.mrf.mxu3 }
 0x395   :  { %v2826_v21 = vadd.f32 %v2825_v39, %v2812_v34  ;;  %v11382_v34 = vld [vmem:[#allocation263_spill] sm:$0xff] }
 0x396   :  { %3098 = vmatpush.bf16.msra.mxu1 %v11366_v55  ;;  %3124 = vmatpush.bf16.msrb.mxu3 %v11367_v43  ;;  %v2814_v55 = vpop.f32.mrf.mxu2  ;;  %v11375_v43 = vld [vmem:[#allocation124_spill] sm:$0xff] }
 0x397   :  { %v2986_v3 = vadd.f32 %v2826_v21, %v11375_v43  ;;  %v11384_v55 = vld [vmem:[#allocation253_spill] sm:$0xff]  ;;  %v11385_v43 = vld [vmem:[#allocation254_spill] sm:$0xff] }
 0x398   :  { %3087 = vmatpush.bf16.msrb.mxu0 %v11369_v8  ;;  %3113 = vmatpush.bf16.msrb.mxu2 %v11370_v61  ;;  %v11379_v61 = vld [vmem:[#allocation262_spill] sm:$0xff]  ;;  %v11386_v21 = vld [vmem:[#allocation257_spill] sm:$0xff] }
 0x399   :  { %v2994_v60 = vmul.f32 0.5, %v2986_v3 }
 0x39a   :  { %3099 = vmatpush.bf16.msra.mxu1 %v11371_v53  ;;  %3125 = vmatpush.bf16.msrb.mxu3 %v11372_v62  ;;  %v11380_v53 = vld [vmem:[#allocation249_spill] sm:$0xff]  ;;  %v11381_v62 = vld [vmem:[#allocation250_spill] sm:$0xff] }
 0x39c   :  { %3088 = vmatpush.bf16.msrb.mxu0 %v11373_v26  ;;  %3114 = vmatpush.bf16.msrb.mxu2 %v11374_v38  ;;  %v2827_v39 = vpop.f32.mrf.mxu3  ;;  %v11383_v38 = vld [vmem:[#allocation264_spill] sm:$0xff] }
 0x39e   :  { %3100 = vmatpush.bf16.msra.mxu1 %v11376_v28  ;;  %3126 = vmatpush.bf16.msrb.mxu3 %v11377_v17 }
 0x3a0   :  { %3089 = vmatpush.bf16.msrb.mxu0 %v11378_v16  ;;  %3115 = vmatpush.bf16.msrb.mxu2 %v11379_v61 }
 0x3a2   :  { %3101 = vmatpush.bf16.msra.mxu1 %v11380_v53  ;;  %3127 = vmatpush.bf16.msrb.mxu3 %v11381_v62 }
 0x3a4   :  { %3090 = vmatpush.bf16.msrb.mxu0 %v11382_v34  ;;  %3116 = vmatpush.bf16.msrb.mxu2 %v11383_v38  ;;  %v2838_v16 = vpop.f32.mrf.mxu0 }
 0x3a6   :  { %3102 = vmatpush.bf16.msra.mxu1 %v11384_v55  ;;  %3128 = vmatpush.bf16.msrb.mxu3 %v11385_v43 }
 0x3aa   :  { %3103 = vmatpush.bf16.msra.mxu1 %v11386_v21  ;;  %3129 = vmatpush.bf16.msrb.mxu3 %v11387_v44  ;;  %v2851_v17 = vpop.f32.mrf.mxu1  ;;  %v2864_v61 = vpop.f32.mrf.mxu2  ;;  %v11388_v21 = vld [vmem:[#allocation107_spill] sm:$0xff] }
 0x3ab   :  { %v2852_v43 = vadd.f32 %v2851_v17, %v2838_v16 }
 0x3ac   :  { %v2840_v28 = vpop.f32.mrf.mxu0 }
 0x3ad   :  { %v2987_v52 = vadd.f32 %v2852_v43, %v11388_v21 }
 0x3af   :  { %v2995_v29 = vmul.f32 0.5, %v2987_v52  ;;  %v11391_v52 = vld [vmem:[#allocation178_spill] sm:$0xff] }
 0x3b0   :  { %v2877_v53 = vpop.f32.mrf.mxu3 }
 0x3b1   :  { %v2878_v44 = vadd.f32 %v2877_v53, %v2864_v61  ;;  %6781 = vtanh.f32 %v2995_v29 }
 0x3b2   :  { %v2853_v26 = vpop.f32.mrf.mxu1  ;;  %v2866_v62 = vpop.f32.mrf.mxu2  ;;  %6783 = vtanh.f32 %v2993_v41  ;;  %v11392_v41 = vld [vmem:[#allocation185_spill] sm:$0xff] }
 0x3b3   :  { %v2988_v28 = vadd.f32 %v2878_v44, %v11389_v15  ;;  %v11393_v44 = vld [vmem:[#allocation179_spill] sm:$0xff] }
 0x3b8   :  { %v2879_v39 = vpop.f32.mrf.mxu3 }
 0x3b9   :  { %v2996_v39 = vmul.f32 0.5, %v2988_v28 }
 0x3bb   :  { %6785 = vtanh.f32 %v2996_v39 }
 0x3bc   :  { %6787 = vtanh.f32 %v2994_v60 }
 0x3c4   :  { %v2890_v8 = vpop.f32.mrf.mxu0 }
 0x3ca   :  { %v2903_v34 = vpop.f32.mrf.mxu1  ;;  %v2916_v4 = vpop.f32.mrf.mxu2 }
 0x3cb   :  { %v2904_v62 = vadd.f32 %v2903_v34, %v2890_v8 }
 0x3cc   :  { %v2892_v38 = vpop.f32.mrf.mxu0 }
 0x3cd   :  { %v2989_v38 = vadd.f32 %v2904_v62, %v11390_v13 }
 0x3cf   :  { %v2997_v29 = vmul.f32 0.5, %v2989_v38 }
 0x3d0   :  { %v2929_v31 = vpop.f32.mrf.mxu3 }
 0x3d1   :  { %v2930_v17 = vadd.f32 %v2929_v31, %v2916_v4 }
 0x3d2   :  { %v2905_v55 = vpop.f32.mrf.mxu1  ;;  %v2918_v9 = vpop.f32.mrf.mxu2 }
 0x3d3   :  { %v6782_v55 = vpop.eup %6781  ;;  %v2990_v53 = vadd.f32 %v2930_v17, %v11392_v41 }
 0x3d4   :  { %v6784_v16 = vpop.eup %6783  ;;  %v3007_v15 = vmul.f32 0.5, %v6782_v55 }
 0x3d5   :  { %v3005_v8 = vmul.f32 0.5, %v6784_v16  ;;  %v6786_v34 = vpop.eup %6785 }
 0x3d6   :  { %v3013_v43 = vadd.f32 0.5, %v3007_v15  ;;  %v3008_v28 = vmul.f32 0.5, %v6786_v34 }
 0x3d7   :  { %v3011_v60 = vadd.f32 0.5, %v3005_v8 }
 0x3d8   :  { %v2931_v23 = vpop.f32.mrf.mxu3  ;;  %v3019_v38 = vmul.f32 %v3013_v43, %v8483_v50  ;;  %v3014_v17 = vadd.f32 0.5, %v3008_v28 }
 0x3da   :  { %v3020_v15 = vmul.f32 %v3014_v17, %v8487_v12  ;;  %v11398_v17 = vld [vmem:[#allocation288_spill] sm:$0xff] }
 0x3e4   :  { %v2942_v26 = vpop.f32.mrf.mxu0 }
 0x3ea   :  { %v2955_v2 = vpop.f32.mrf.mxu1  ;;  %v2968_v23 = vpop.f32.mrf.mxu2 }
 0x3eb   :  { %v2956_v9 = vadd.f32 %v2955_v2, %v2942_v26  ;;  %v6788_v2 = vpop.eup %6787  ;;  %v2998_v26 = vmul.f32 0.5, %v2990_v53 }
 0x3ec   :  { %v2944_v37 = vpop.f32.mrf.mxu0  ;;  %v3006_v39 = vmul.f32 0.5, %v6788_v2  ;;  %v2748_v2 = vadd.f32 %v8699_v30, %v8493_v32 }
 0x3ed   :  { %v2991_v61 = vadd.f32 %v2956_v9, %v11391_v52 }
 0x3ee   :  { %v3012_v52 = vadd.f32 0.5, %v3006_v39  ;;  %v11394_v39 = vld [vmem:[#allocation286_spill] sm:$0xff] }
 0x3ef   :  { %6789 = vtanh.f32 %v2991_v61 }
 0x3f0   :  { %v2981_v3 = vpop.f32.mrf.mxu3  ;;  %6791 = vtanh.f32 %v2997_v29 }
 0x3f1   :  { %v2982_v13 = vadd.f32 %v2981_v3, %v2968_v23 }
 0x3f2   :  { %v2957_v21 = vpop.f32.mrf.mxu1  ;;  %v2970_v4 = vpop.f32.mrf.mxu2 }
 0x3f3   :  { %v2992_v31 = vadd.f32 %v2982_v13, %v11393_v44 }
 0x3f5   :  { %v6790_v62 = vpop.eup %6789  ;;  %6793 = vtanh.f32 %v2992_v31  ;;  %v2752_v31 = vmul.f32 0.5, %v2748_v2  ;;  %v11413_v2 = vld [vmem:[#allocation31_spill] sm:$0xff] }
 0x3f6   :  { %v3021_v55 = vmul.f32 %v6790_v62, %v3011_v60  ;;  %v6792_v9 = vpop.eup %6791  ;;  %6795 = vtanh.f32 %v2998_v26 }
 0x3f7   :  { %v3009_v37 = vmul.f32 0.5, %v6792_v9  ;;  %v11397_v9 = vld [vmem:[#allocation287_spill] sm:$0xff] }
 0x3f8   :  { %v8765_v23 = vadd.f32 %v3021_v55, %v3019_v38  ;;  %v2983_v16 = vpop.f32.mrf.mxu3  ;;  %v11395_v38 = vld [vmem:[#allocation16_spill] sm:$0xff] }
 0x3f9   :  { %v3015_v53 = vadd.f32 0.5, %v3009_v37  ;;  %v11396_v55 = vld [vmem:[#allocation12_spill] sm:$0xff]  ;;  %v11402_v37 = vld [vmem:[#allocation14_spill] sm:$0xff] }
 0x3fa   :  { %6797 = vtanh.f32 %v8765_v23  ;;  %v11399_v16 = vld [vmem:[#allocation20_spill] sm:$0xff] }
 0x3fb   :  { %v6794_v61 = vpop.eup %6793 }
 0x3fc   :  { %v3022_v29 = vmul.f32 %v6794_v61, %v3012_v52  ;;  %v6796_v8 = vpop.eup %6795  ;;  %v11400_v52 = vld [vmem:[#allocation11_spill] sm:$0xff] }
 0x3fd   :  { %v3010_v3 = vmul.f32 0.5, %v6796_v8  ;;  %v11401_v61 = vld [vmem:[#allocation19_spill] sm:$0xff]  ;;  %v11405_v8 = vld [vmem:[#allocation24_spill] sm:$0xff] }
 0x3fe   :  { %v8769_v41 = vadd.f32 %v3022_v29, %v3020_v15  ;;  %v11403_v15 = vld [vmem:[#allocation23_spill] sm:$0xff]  ;;  %v11404_v29 = vld [vmem:[#allocation13_spill] sm:$0xff] }
 0x3ff   :  { %v3016_v43 = vadd.f32 0.5, %v3010_v3  ;;  %v11408_v3 = vld [vmem:[#allocation15_spill] sm:$0xff] }
 0x400   :  { %v6798_v50 = vpop.eup %6797  ;;  %6799 = vtanh.f32 %v8769_v41 }
 0x401   :  { %v3027_v34 = vmul.f32 %v6798_v50, %v3015_v53  ;;  %6801 = vtanh.f32 %v2752_v31  ;;  %v11406_v53 = vld [vmem:[#allocation17_spill] sm:$0xff]  ;;  %v11407_v50 = vld [vmem:[#allocation27_spill] sm:$0xff] }
 0x402   :  { %6803 = vtanh.f32 %v8724_v45  ;;  %v11414_v31 = vld [vmem:[#allocation25_spill] sm:$0xff] }
 0x403   :  { %v8772_v13 = vpack.c.bf16 %v3027_v34, %v3027_v34  ;;  %v11409_v34 = vld [vmem:[#allocation28_spill] sm:$0xff] }
 0x405   :  { %3039 = vmatmul.bf16.vlgmr.msra.gmra.mxu0 %v8772_v13  ;;  %3065 = vmatmul.bf16.vlgmr.msra.gmra.mxu2 %v8772_v13 }
 0x406   :  { %v6800_v21 = vpop.eup %6799  ;;  %3135 = vmatpush.bf16.msra.mxu0 %v11191_v58  ;;  %3161 = vmatpush.bf16.msra.mxu2 %v11192_v22 }
 0x407   :  { %v3028_v12 = vmul.f32 %v6800_v21, %v3016_v43  ;;  %v6802_v30 = vpop.eup %6801  ;;  %v11410_v43 = vld [vmem:[#allocation21_spill] sm:$0xff]  ;;  %v11411_v21 = vld [vmem:[#allocation32_spill] sm:$0xff] }
 0x408   :  { %v2758_v4 = vmul.f32 0.5, %v6802_v30  ;;  %v6804_v60 = vpop.eup %6803  ;;  %v11415_v30 = vld [vmem:[#allocation38_spill] sm:$0xff] }
 0x409   :  { %v8780_v44 = vpack.c.bf16 %v3028_v12, %v3028_v12  ;;  %v11412_v12 = vld [vmem:[#allocation18_spill] sm:$0xff] }
 0x40a   :  { %3136 = vmatpush.bf16.msra.mxu0 %v11193_v7  ;;  %3162 = vmatpush.bf16.msra.mxu2 %v11194_v47  ;;  %v2761_v28 = vadd.f32 0.5, %v2758_v4  ;;  %v11416_v4 = vld [vmem:[#allocation22_spill] sm:$0xff] }
 0x40b   :  { %3052 = vmatmul.bf16.vlgmr.msrb.gmra.mxu1 %v8780_v44  ;;  %3078 = vmatmul.bf16.vlgmr.msra.gmra.mxu3 %v8780_v44 }
 0x40c   :  { %3148 = vmatpush.bf16.msrb.mxu1 %v11195_v56  ;;  %3174 = vmatpush.bf16.msra.mxu3 %v11196_v14  ;;  %v2767_v26 = vmul.f32 %v6804_v60, %v2761_v28  ;;  %v11417_v60 = vld [vmem:[#allocation37_spill] sm:$0xff] }
 0x40d   :  { %v11418_v28 = vld [vmem:[#allocation29_spill] sm:$0xff] }
 0x40e   :  { %3137 = vmatpush.bf16.msra.mxu0 %v11197_v54  ;;  %3163 = vmatpush.bf16.msra.mxu2 %v11198_v42  ;;  %v2768_v62 = vpack.c.bf16 %v2767_v26, %v2767_v26  ;;  %v11419_v26 = vld [vmem:[#allocation42_spill] sm:$0xff] }
 0x410   :  { %3149 = vmatpush.bf16.msrb.mxu1 %v11199_v33  ;;  %3175 = vmatpush.bf16.msra.mxu3 %v11200_v18 }
 0x412   :  { %3138 = vmatpush.bf16.msra.mxu0 %v8184_v48  ;;  %3164 = vmatpush.bf16.msra.mxu2 %v8186_v24 }
 0x414   :  { %3150 = vmatpush.bf16.msrb.mxu1 %v11201_v25  ;;  %3176 = vmatpush.bf16.msra.mxu3 %v11202_v20 }
 0x415   :  { %3091 = vmatmul.bf16.vlgmr.msrb.gmra.mxu0 %v8772_v13  ;;  %3117 = vmatmul.bf16.vlgmr.msrb.gmra.mxu2 %v8772_v13 }
 0x416   :  { %3139 = vmatpush.bf16.msra.mxu0 %v8196_v35  ;;  %3165 = vmatpush.bf16.msra.mxu2 %v8198_v57 }
 0x418   :  { %3151 = vmatpush.bf16.msrb.mxu1 %v11203_v0  ;;  %3177 = vmatpush.bf16.msra.mxu3 %v11204_v46 }
 0x41a   :  { %3140 = vmatpush.bf16.msra.mxu0 %v8210_v1  ;;  %3166 = vmatpush.bf16.msra.mxu2 %v8212_v59 }
 0x41b   :  { %3104 = vmatmul.bf16.vlgmr.msra.gmra.mxu1 %v8780_v44  ;;  %3130 = vmatmul.bf16.vlgmr.msrb.gmra.mxu3 %v8780_v44 }
 0x41c   :  { %3152 = vmatpush.bf16.msrb.mxu1 %v11205_v40  ;;  %3178 = vmatpush.bf16.msra.mxu3 %v11206_v49 }
 0x41e   :  { %3141 = vmatpush.bf16.msra.mxu0 %v8220_v11  ;;  %3167 = vmatpush.bf16.msra.mxu2 %v8222_v10 }
 0x420   :  { %3153 = vmatpush.bf16.msrb.mxu1 %v11207_v63  ;;  %3179 = vmatpush.bf16.msra.mxu3 %v11208_v36 }
 0x422   :  { %3142 = vmatpush.bf16.msra.mxu0 %v8230_v6  ;;  %3168 = vmatpush.bf16.msra.mxu2 %v8232_v27 }
 0x424   :  { %3154 = vmatpush.bf16.msrb.mxu1 %v8190_v19  ;;  %3180 = vmatpush.bf16.msra.mxu3 %v11394_v39 }
 0x425   :  { %3143 = vmatmul.bf16.vlgmr.msra.gmra.mxu0 %v2768_v62  ;;  %3169 = vmatmul.bf16.vlgmr.msra.gmra.mxu2 %v2768_v62 }
 0x426   :  { %3218 = vmatpush.bf16.msrb.mxu0 %v7261_v5  ;;  %3244 = vmatpush.bf16.msrb.mxu2 %v7239_v51 }
 0x428   :  { %3155 = vmatpush.bf16.msrb.mxu1 %v11397_v9  ;;  %3181 = vmatpush.bf16.msra.mxu3 %v11398_v17  ;;  %v11596_v9 = vld [vmem:[#allocation102_spill] sm:$0xff] }
 0x42a   :  { %3219 = vmatpush.bf16.msrb.mxu0 %v11395_v38  ;;  %3245 = vmatpush.bf16.msrb.mxu2 %v11396_v55 }
 0x42b   :  { %3156 = vmatmul.bf16.vlgmr.msrb.gmra.mxu1 %v2768_v62  ;;  %3182 = vmatmul.bf16.vlgmr.msra.gmra.mxu3 %v2768_v62  ;;  %v11420_v62 = vld [vmem:[#allocation26_spill] sm:$0xff] }
 0x42c   :  { %3231 = vmatpush.bf16.msra.mxu1 %v11399_v16  ;;  %3257 = vmatpush.bf16.msrb.mxu3 %v11400_v52 }
 0x42e   :  { %3220 = vmatpush.bf16.msrb.mxu0 %v11401_v61  ;;  %3246 = vmatpush.bf16.msrb.mxu2 %v11402_v37  ;;  %v11594_v61 = vld [vmem:[#allocation101_spill] sm:$0xff] }
 0x430   :  { %3232 = vmatpush.bf16.msra.mxu1 %v11403_v15  ;;  %3258 = vmatpush.bf16.msrb.mxu3 %v11404_v29  ;;  %v11509_v29 = vld [vmem:[#allocation129_spill] sm:$0xff] }
 0x432   :  { %3221 = vmatpush.bf16.msrb.mxu0 %v11405_v8  ;;  %3247 = vmatpush.bf16.msrb.mxu2 %v11406_v53 }
 0x434   :  { %3233 = vmatpush.bf16.msra.mxu1 %v11407_v50  ;;  %3259 = vmatpush.bf16.msrb.mxu3 %v11408_v3  ;;  %v11505_v50 = vld [vmem:[#allocation123_spill] sm:$0xff] }
 0x436   :  { %3222 = vmatpush.bf16.msrb.mxu0 %v11409_v34  ;;  %3248 = vmatpush.bf16.msrb.mxu2 %v11410_v43  ;;  %v11421_v43 = vld [vmem:[#allocation41_spill] sm:$0xff]  ;;  %v11504_v34 = vld [vmem:[#allocation132_spill] sm:$0xff] }
 0x438   :  { %3234 = vmatpush.bf16.msra.mxu1 %v11411_v21  ;;  %3260 = vmatpush.bf16.msrb.mxu3 %v11412_v12  ;;  %v11422_v21 = vld [vmem:[#allocation33_spill] sm:$0xff]  ;;  %v11423_v12 = vld [vmem:[#allocation43_spill] sm:$0xff] }
 0x43a   :  { %3223 = vmatpush.bf16.msrb.mxu0 %v11413_v2  ;;  %3249 = vmatpush.bf16.msrb.mxu2 %v11414_v31  ;;  %v11424_v2 = vld [vmem:[#allocation35_spill] sm:$0xff]  ;;  %v11425_v31 = vld [vmem:[#allocation46_spill] sm:$0xff] }
 0x43c   :  { %3235 = vmatpush.bf16.msra.mxu1 %v11415_v30  ;;  %3261 = vmatpush.bf16.msrb.mxu3 %v11416_v4  ;;  %v11426_v30 = vld [vmem:[#allocation30_spill] sm:$0xff]  ;;  %v11443_v4 = vld [vmem:[#allocation64_spill] sm:$0xff] }
 0x43e   :  { %3224 = vmatpush.bf16.msrb.mxu0 %v11417_v60  ;;  %3250 = vmatpush.bf16.msrb.mxu2 %v11418_v28  ;;  %v11427_v28 = vld [vmem:[#allocation47_spill] sm:$0xff]  ;;  %v11442_v60 = vld [vmem:[#allocation53_spill] sm:$0xff] }
 0x440   :  { %3236 = vmatpush.bf16.msra.mxu1 %v11419_v26  ;;  %3262 = vmatpush.bf16.msrb.mxu3 %v11420_v62  ;;  %v11428_v26 = vld [vmem:[#allocation39_spill] sm:$0xff]  ;;  %v11429_v62 = vld [vmem:[#allocation50_spill] sm:$0xff] }
 0x442   :  { %3225 = vmatpush.bf16.msrb.mxu0 %v11421_v43  ;;  %3251 = vmatpush.bf16.msrb.mxu2 %v11422_v21  ;;  %v11430_v43 = vld [vmem:[#allocation34_spill] sm:$0xff]  ;;  %v11431_v21 = vld [vmem:[#allocation52_spill] sm:$0xff] }
 0x444   :  { %3237 = vmatpush.bf16.msra.mxu1 %v11425_v31  ;;  %3263 = vmatpush.bf16.msrb.mxu3 %v11426_v30  ;;  %v11433_v30 = vld [vmem:[#allocation51_spill] sm:$0xff]  ;;  %v11434_v31 = vld [vmem:[#allocation44_spill] sm:$0xff] }
 0x445   :  { %3226 = vmatmul.bf16.vlgmr.msrb.gmra.mxu0 %v8772_v13  ;;  %3252 = vmatmul.bf16.vlgmr.msrb.gmra.mxu2 %v8772_v13 }
 0x446   :  { %3270 = vmatpush.bf16.msra.mxu0 %v11423_v12  ;;  %3296 = vmatpush.bf16.msra.mxu2 %v11424_v2  ;;  %v11432_v12 = vld [vmem:[#allocation36_spill] sm:$0xff] }
 0x447   :  { %v11435_v2 = vld [vmem:[#allocation56_spill] sm:$0xff] }
 0x448   :  { %3238 = vmatpush.bf16.msra.mxu1 %v11429_v62  ;;  %3264 = vmatpush.bf16.msrb.mxu3 %v11430_v43  ;;  %v11438_v62 = vld [vmem:[#allocation48_spill] sm:$0xff] }
 0x449   :  { %v11439_v43 = vld [vmem:[#allocation60_spill] sm:$0xff] }
 0x44a   :  { %3271 = vmatpush.bf16.msra.mxu0 %v11427_v28  ;;  %3297 = vmatpush.bf16.msra.mxu2 %v11428_v26  ;;  %v11436_v28 = vld [vmem:[#allocation40_spill] sm:$0xff]  ;;  %v11437_v26 = vld [vmem:[#allocation55_spill] sm:$0xff] }
 0x44b   :  { %3239 = vmatmul.bf16.vlgmr.msra.gmra.mxu1 %v8780_v44  ;;  %3265 = vmatmul.bf16.vlgmr.msrb.gmra.mxu3 %v8780_v44 }
 0x44c   :  { %3283 = vmatpush.bf16.msrb.mxu1 %v11431_v21  ;;  %3309 = vmatpush.bf16.msra.mxu3 %v11432_v12  ;;  %v11440_v21 = vld [vmem:[#allocation45_spill] sm:$0xff]  ;;  %v11441_v12 = vld [vmem:[#allocation59_spill] sm:$0xff] }
 0x44e   :  { %3272 = vmatpush.bf16.msra.mxu0 %v11433_v30  ;;  %3298 = vmatpush.bf16.msra.mxu2 %v11434_v31  ;;  %v11444_v30 = vld [vmem:[#allocation49_spill] sm:$0xff]  ;;  %v11445_v31 = vld [vmem:[#allocation63_spill] sm:$0xff] }
 0x450   :  { %3284 = vmatpush.bf16.msrb.mxu1 %v11435_v2  ;;  %3310 = vmatpush.bf16.msra.mxu3 %v11436_v28  ;;  %v11446_v2 = vld [vmem:[#allocation57_spill] sm:$0xff]  ;;  %v11447_v28 = vld [vmem:[#allocation68_spill] sm:$0xff] }
 0x452   :  { %3273 = vmatpush.bf16.msra.mxu0 %v11437_v26  ;;  %3299 = vmatpush.bf16.msra.mxu2 %v11438_v62  ;;  %v11448_v26 = vld [vmem:[#allocation54_spill] sm:$0xff]  ;;  %v11449_v62 = vld [vmem:[#allocation67_spill] sm:$0xff] }
 0x454   :  { %3285 = vmatpush.bf16.msrb.mxu1 %v11439_v43  ;;  %3311 = vmatpush.bf16.msra.mxu3 %v11440_v21  ;;  %v11450_v43 = vld [vmem:[#allocation61_spill] sm:$0xff]  ;;  %v11451_v21 = vld [vmem:[#allocation70_spill] sm:$0xff] }
 0x456   :  { %3274 = vmatpush.bf16.msra.mxu0 %v11441_v12  ;;  %3300 = vmatpush.bf16.msra.mxu2 %v11442_v60  ;;  %v11452_v12 = vld [vmem:[#allocation58_spill] sm:$0xff]  ;;  %v11453_v60 = vld [vmem:[#allocation69_spill] sm:$0xff] }
 0x458   :  { %3286 = vmatpush.bf16.msrb.mxu1 %v11443_v4  ;;  %3312 = vmatpush.bf16.msra.mxu3 %v11444_v30  ;;  %v11454_v4 = vld [vmem:[#allocation65_spill] sm:$0xff]  ;;  %v11455_v30 = vld [vmem:[#allocation72_spill] sm:$0xff] }
 0x45a   :  { %3275 = vmatpush.bf16.msra.mxu0 %v11445_v31  ;;  %3301 = vmatpush.bf16.msra.mxu2 %v11446_v2  ;;  %v11456_v31 = vld [vmem:[#allocation79_spill] sm:$0xff] }
 0x45b   :  { %v11457_v2 = vld [vmem:[#allocation71_spill] sm:$0xff] }
 0x45c   :  { %3287 = vmatpush.bf16.msrb.mxu1 %v11447_v28  ;;  %3313 = vmatpush.bf16.msra.mxu3 %v11448_v26  ;;  %v11458_v28 = vld [vmem:[#allocation62_spill] sm:$0xff]  ;;  %v11475_v26 = vld [vmem:[#allocation115_spill] sm:$0xff] }
 0x45e   :  { %3276 = vmatpush.bf16.msra.mxu0 %v11449_v62  ;;  %3302 = vmatpush.bf16.msra.mxu2 %v11450_v43  ;;  %v11459_v43 = vld [vmem:[#allocation74_spill] sm:$0xff]  ;;  %v11474_v62 = vld [vmem:[#allocation97_spill] sm:$0xff] }
 0x460   :  { %3288 = vmatpush.bf16.msrb.mxu1 %v11451_v21  ;;  %3314 = vmatpush.bf16.msra.mxu3 %v11452_v12  ;;  %v11460_v21 = vld [vmem:[#allocation82_spill] sm:$0xff]  ;;  %v11461_v12 = vld [vmem:[#allocation73_spill] sm:$0xff] }
 0x462   :  { %3277 = vmatpush.bf16.msra.mxu0 %v11453_v60  ;;  %3303 = vmatpush.bf16.msra.mxu2 %v11454_v4  ;;  %v11462_v60 = vld [vmem:[#allocation66_spill] sm:$0xff]  ;;  %v11463_v4 = vld [vmem:[#allocation96_spill] sm:$0xff] }
 0x464   :  { %3289 = vmatpush.bf16.msrb.mxu1 %v11457_v2  ;;  %3315 = vmatpush.bf16.msra.mxu3 %v11458_v28  ;;  %v11465_v28 = vld [vmem:[#allocation75_spill] sm:$0xff] }
 0x465   :  { %3278 = vmatmul.bf16.vlgmr.msra.gmra.mxu0 %v8772_v13  ;;  %3304 = vmatmul.bf16.vlgmr.msra.gmra.mxu2 %v8772_v13  ;;  %v11466_v2 = vld [vmem:[#allocation87_spill] sm:$0xff] }
 0x466   :  { %3322 = vmatpush.bf16.msrb.mxu0 %v11455_v30  ;;  %3348 = vmatpush.bf16.msrb.mxu2 %v11456_v31  ;;  %v11464_v30 = vld [vmem:[#allocation80_spill] sm:$0xff]  ;;  %v11467_v31 = vld [vmem:[#allocation103_spill] sm:$0xff] }
 0x468   :  { %3290 = vmatpush.bf16.msrb.mxu1 %v11461_v12  ;;  %3316 = vmatpush.bf16.msra.mxu3 %v11462_v60  ;;  %v11470_v12 = vld [vmem:[#allocation90_spill] sm:$0xff]  ;;  %v11471_v60 = vld [vmem:[#allocation111_spill] sm:$0xff] }
 0x46a   :  { %3323 = vmatpush.bf16.msrb.mxu0 %v11459_v43  ;;  %3349 = vmatpush.bf16.msrb.mxu2 %v11460_v21  ;;  %v11468_v43 = vld [vmem:[#allocation83_spill] sm:$0xff]  ;;  %v11469_v21 = vld [vmem:[#allocation77_spill] sm:$0xff] }
 0x46b   :  { %3291 = vmatmul.bf16.vlgmr.msrb.gmra.mxu1 %v8780_v44  ;;  %3317 = vmatmul.bf16.vlgmr.msra.gmra.mxu3 %v8780_v44 }
 0x46c   :  { %3335 = vmatpush.bf16.msra.mxu1 %v11463_v4  ;;  %3361 = vmatpush.bf16.msrb.mxu3 %v11464_v30  ;;  %v11472_v4 = vld [vmem:[#allocation88_spill] sm:$0xff]  ;;  %v11473_v30 = vld [vmem:[#allocation81_spill] sm:$0xff] }
 0x46e   :  { %3324 = vmatpush.bf16.msrb.mxu0 %v11465_v28  ;;  %3350 = vmatpush.bf16.msrb.mxu2 %v11466_v2  ;;  %v11476_v28 = vld [vmem:[#allocation91_spill] sm:$0xff]  ;;  %v11477_v2 = vld [vmem:[#allocation84_spill] sm:$0xff] }
 0x470   :  { %3336 = vmatpush.bf16.msra.mxu1 %v11467_v31  ;;  %3362 = vmatpush.bf16.msrb.mxu3 %v11468_v43  ;;  %v11478_v31 = vld [vmem:[#allocation104_spill] sm:$0xff]  ;;  %v11479_v43 = vld [vmem:[#allocation125_spill] sm:$0xff] }
 0x472   :  { %3325 = vmatpush.bf16.msrb.mxu0 %v11469_v21  ;;  %3351 = vmatpush.bf16.msrb.mxu2 %v11470_v12  ;;  %v11480_v21 = vld [vmem:[#allocation99_spill] sm:$0xff]  ;;  %v11481_v12 = vld [vmem:[#allocation89_spill] sm:$0xff] }
 0x474   :  { %3337 = vmatpush.bf16.msra.mxu1 %v11471_v60  ;;  %3363 = vmatpush.bf16.msrb.mxu3 %v11472_v4  ;;  %v11482_v60 = vld [vmem:[#allocation112_spill] sm:$0xff]  ;;  %v11483_v4 = vld [vmem:[#allocation130_spill] sm:$0xff] }
 0x476   :  { %3326 = vmatpush.bf16.msrb.mxu0 %v11473_v30  ;;  %3352 = vmatpush.bf16.msrb.mxu2 %v11474_v62  ;;  %v11484_v30 = vld [vmem:[#allocation105_spill] sm:$0xff]  ;;  %v11485_v62 = vld [vmem:[#allocation92_spill] sm:$0xff] }
 0x478   :  { %3338 = vmatpush.bf16.msra.mxu1 %v11475_v26  ;;  %3364 = vmatpush.bf16.msrb.mxu3 %v11476_v28  ;;  %v11486_v26 = vld [vmem:[#allocation116_spill] sm:$0xff]  ;;  %v11487_v28 = vld [vmem:[#allocation95_spill] sm:$0xff] }
 0x47a   :  { %3327 = vmatpush.bf16.msrb.mxu0 %v11477_v2  ;;  %3353 = vmatpush.bf16.msrb.mxu2 %v11478_v31  ;;  %v11488_v2 = vld [vmem:[#allocation118_spill] sm:$0xff] }
 0x47b   :  { %v11489_v31 = vld [vmem:[#allocation138_spill] sm:$0xff] }
 0x47c   :  { %3339 = vmatpush.bf16.msra.mxu1 %v11479_v43  ;;  %3365 = vmatpush.bf16.msrb.mxu3 %v11480_v21  ;;  %v11490_v43 = vld [vmem:[#allocation113_spill] sm:$0xff]  ;;  %v11503_v21 = vld [vmem:[#allocation152_spill] sm:$0xff] }
 0x47e   :  { %3328 = vmatpush.bf16.msrb.mxu0 %v11481_v12  ;;  %3354 = vmatpush.bf16.msrb.mxu2 %v11482_v60  ;;  %v11491_v60 = vld [vmem:[#allocation100_spill] sm:$0xff] }
 0x480   :  { %3340 = vmatpush.bf16.msra.mxu1 %v11483_v4  ;;  %3366 = vmatpush.bf16.msrb.mxu3 %v11484_v30  ;;  %v11492_v4 = vld [vmem:[#allocation127_spill] sm:$0xff]  ;;  %v11493_v30 = vld [vmem:[#allocation142_spill] sm:$0xff] }
 0x482   :  { %3329 = vmatpush.bf16.msrb.mxu0 %v11485_v62  ;;  %3355 = vmatpush.bf16.msrb.mxu2 %v11486_v26  ;;  %v11494_v62 = vld [vmem:[#allocation117_spill] sm:$0xff]  ;;  %v11495_v26 = vld [vmem:[#allocation143_spill] sm:$0xff] }
 0x484   :  { %3341 = vmatpush.bf16.msra.mxu1 %v11489_v31  ;;  %3367 = vmatpush.bf16.msrb.mxu3 %v11490_v43  ;;  %v11497_v43 = vld [vmem:[#allocation106_spill] sm:$0xff]  ;;  %v11498_v31 = vld [vmem:[#allocation131_spill] sm:$0xff] }
 0x485   :  { %3330 = vmatmul.bf16.vlgmr.msrb.gmra.mxu0 %v8772_v13  ;;  %3356 = vmatmul.bf16.vlgmr.msrb.gmra.mxu2 %v8772_v13 }
 0x486   :  { %3374 = vmatpush.bf16.msra.mxu0 %v11487_v28  ;;  %3400 = vmatpush.bf16.msra.mxu2 %v11488_v2  ;;  %v11496_v28 = vld [vmem:[#allocation122_spill] sm:$0xff]  ;;  %v3040_v2 = vpop.f32.mrf.mxu0 }
 0x488   :  { %3342 = vmatpush.bf16.msra.mxu1 %v11493_v30  ;;  %3368 = vmatpush.bf16.msrb.mxu3 %v11494_v62  ;;  %v3053_v30 = vpop.f32.mrf.mxu1  ;;  %v3066_v12 = vpop.f32.mrf.mxu2  ;;  %v11501_v62 = vld [vmem:[#allocation114_spill] sm:$0xff] }
 0x48a   :  { %3375 = vmatpush.bf16.msra.mxu0 %v11491_v60  ;;  %3401 = vmatpush.bf16.msra.mxu2 %v11492_v4  ;;  %v11499_v60 = vld [vmem:[#allocation149_spill] sm:$0xff]  ;;  %v11500_v4 = vld [vmem:[#allocation128_spill] sm:$0xff] }
 0x48b   :  { %3343 = vmatmul.bf16.vlgmr.msra.gmra.mxu1 %v8780_v44  ;;  %3369 = vmatmul.bf16.vlgmr.msrb.gmra.mxu3 %v8780_v44 }
 0x48c   :  { %3387 = vmatpush.bf16.msrb.mxu1 %v11495_v26  ;;  %3413 = vmatpush.bf16.msra.mxu3 %v11496_v28  ;;  %v11502_v26 = vld [vmem:[#allocation139_spill] sm:$0xff]  ;;  %v3054_v28 = vadd.f32 %v3053_v30, %v3040_v2  ;;  %v11510_v2 = vld [vmem:[#allocation150_spill] sm:$0xff] }
 0x48d   :  { %v11511_v30 = vld [vmem:[#allocation162_spill] sm:$0xff] }
 0x48e   :  { %3376 = vmatpush.bf16.msra.mxu0 %v11497_v43  ;;  %3402 = vmatpush.bf16.msra.mxu2 %v11498_v31  ;;  %v3042_v3 = vpop.f32.mrf.mxu0  ;;  %v11506_v43 = vld [vmem:[#allocation144_spill] sm:$0xff]  ;;  %v11507_v31 = vld [vmem:[#allocation159_spill] sm:$0xff] }
 0x490   :  { %3388 = vmatpush.bf16.msrb.mxu1 %v11499_v60  ;;  %3414 = vmatpush.bf16.msra.mxu3 %v11500_v4  ;;  %v11508_v60 = vld [vmem:[#allocation140_spill] sm:$0xff]  ;;  %v3079_v4 = vpop.f32.mrf.mxu3  ;;  %v3055_v8 = vpop.f32.mrf.mxu1 }
 0x491   :  { %v3080_v53 = vadd.f32 %v3079_v4, %v3066_v12 }
 0x492   :  { %3377 = vmatpush.bf16.msra.mxu0 %v11501_v62  ;;  %3403 = vmatpush.bf16.msra.mxu2 %v11502_v26  ;;  %v3068_v62 = vpop.f32.mrf.mxu2  ;;  %v11538_v26 = vld [vmem:[#allocation223_spill] sm:$0xff] }
 0x493   :  { %v11517_v62 = vld [vmem:[#allocation141_spill] sm:$0xff] }
 0x494   :  { %3389 = vmatpush.bf16.msrb.mxu1 %v11503_v21  ;;  %3415 = vmatpush.bf16.msra.mxu3 %v11504_v34  ;;  %v11512_v34 = vld [vmem:[#allocation147_spill] sm:$0xff] }
 0x496   :  { %3378 = vmatpush.bf16.msra.mxu0 %v11505_v50  ;;  %3404 = vmatpush.bf16.msra.mxu2 %v11506_v43  ;;  %v3092_v3 = vpop.f32.mrf.mxu0  ;;  %v11513_v50 = vld [vmem:[#allocation137_spill] sm:$0xff] }
 0x497   :  { %v11514_v43 = vld [vmem:[#allocation153_spill] sm:$0xff] }
 0x498   :  { %3390 = vmatpush.bf16.msrb.mxu1 %v11507_v31  ;;  %3416 = vmatpush.bf16.msra.mxu3 %v11508_v60  ;;  %v11515_v31 = vld [vmem:[#allocation168_spill] sm:$0xff]  ;;  %v11516_v60 = vld [vmem:[#allocation151_spill] sm:$0xff]  ;;  %v3081_v12 = vpop.f32.mrf.mxu3  ;;  %v3105_v8 = vpop.f32.mrf.mxu1 }
 0x499   :  { %v11523_v12 = vld [vmem:[#allocation172_spill] sm:$0xff] }
 0x49a   :  { %3379 = vmatpush.bf16.msra.mxu0 %v11509_v29  ;;  %3405 = vmatpush.bf16.msra.mxu2 %v11510_v2  ;;  %v3118_v4 = vpop.f32.mrf.mxu2  ;;  %v11518_v29 = vld [vmem:[#allocation160_spill] sm:$0xff]  ;;  %v3106_v2 = vadd.f32 %v3105_v8, %v3092_v3  ;;  %v11525_v3 = vld [vmem:[#allocation211_spill] sm:$0xff] }
 0x49b   :  { %v11526_v8 = vld [vmem:[#allocation212_spill] sm:$0xff] }
 0x49c   :  { %3391 = vmatpush.bf16.msrb.mxu1 %v11511_v30  ;;  %3417 = vmatpush.bf16.msra.mxu3 %v11512_v34  ;;  %v11519_v30 = vld [vmem:[#allocation169_spill] sm:$0xff]  ;;  %v11520_v34 = vld [vmem:[#allocation154_spill] sm:$0xff] }
 0x49e   :  { %3380 = vmatpush.bf16.msra.mxu0 %v11513_v50  ;;  %3406 = vmatpush.bf16.msra.mxu2 %v11514_v43  ;;  %v3094_v21 = vpop.f32.mrf.mxu0  ;;  %v11521_v50 = vld [vmem:[#allocation207_spill] sm:$0xff]  ;;  %v11522_v43 = vld [vmem:[#allocation208_spill] sm:$0xff] }
 0x4a0   :  { %3392 = vmatpush.bf16.msrb.mxu1 %v11515_v31  ;;  %3418 = vmatpush.bf16.msra.mxu3 %v11516_v60  ;;  %v11524_v60 = vld [vmem:[#allocation161_spill] sm:$0xff] }
 0x4a2   :  { %3381 = vmatpush.bf16.msra.mxu0 %v11517_v62  ;;  %3407 = vmatpush.bf16.msra.mxu2 %v11518_v29  ;;  %v3131_v62 = vpop.f32.mrf.mxu3  ;;  %v3120_v21 = vpop.f32.mrf.mxu2 }
 0x4a3   :  { %v3132_v29 = vadd.f32 %v3131_v62, %v3118_v4  ;;  %v11531_v4 = vld [vmem:[#allocation203_spill] sm:$0xff]  ;;  %v11532_v62 = vld [vmem:[#allocation204_spill] sm:$0xff] }
 0x4a4   :  { %3393 = vmatpush.bf16.msrb.mxu1 %v11519_v30  ;;  %3419 = vmatpush.bf16.msra.mxu3 %v11520_v34  ;;  %v3107_v34 = vpop.f32.mrf.mxu1  ;;  %v11527_v30 = vld [vmem:[#allocation200_spill] sm:$0xff] }
 0x4a5   :  { %3382 = vmatmul.bf16.vlgmr.msra.gmra.mxu0 %v8772_v13  ;;  %3408 = vmatmul.bf16.vlgmr.msra.gmra.mxu2 %v8772_v13  ;;  %v11533_v34 = vld [vmem:[#allocation290_spill] sm:$0xff] }
 0x4a6   :  { %3472 = vmatpush.bf16.msrb.mxu0 %v11521_v50  ;;  %3498 = vmatpush.bf16.msrb.mxu2 %v11522_v43  ;;  %v11528_v50 = vld [vmem:[#allocation201_spill] sm:$0xff]  ;;  %v3144_v13 = vpop.f32.mrf.mxu0  ;;  %v11529_v43 = vld [vmem:[#allocation215_spill] sm:$0xff] }
 0x4a8   :  { %3394 = vmatpush.bf16.msrb.mxu1 %v11523_v12  ;;  %3420 = vmatpush.bf16.msra.mxu3 %v11524_v60  ;;  %v3145_v12 = vadd.f32 %v3144_v13, %v3054_v28  ;;  %v11530_v60 = vld [vmem:[#allocation216_spill] sm:$0xff]  ;;  %v11537_v28 = vld [vmem:[#allocation206_spill] sm:$0xff] }
 0x4aa   :  { %3473 = vmatpush.bf16.msrb.mxu0 %v11525_v3  ;;  %3499 = vmatpush.bf16.msrb.mxu2 %v11526_v8  ;;  %v3187_v21 = vadd.f32 %v3145_v12, %v11533_v34  ;;  %v3133_v8 = vpop.f32.mrf.mxu3  ;;  %v3170_v31 = vpop.f32.mrf.mxu2  ;;  %v11540_v12 = vld [vmem:[#allocation289_spill] sm:$0xff] }
 0x4ab   :  { %3395 = vmatmul.bf16.vlgmr.msrb.gmra.mxu1 %v8780_v44  ;;  %3421 = vmatmul.bf16.vlgmr.msra.gmra.mxu3 %v8780_v44  ;;  %v11536_v44 = vld [vmem:[#allocation205_spill] sm:$0xff] }
 0x4ac   :  { %3485 = vmatpush.bf16.msra.mxu1 %v11527_v30  ;;  %3511 = vmatpush.bf16.msrb.mxu3 %v11528_v50  ;;  %v11534_v30 = vld [vmem:[#allocation219_spill] sm:$0xff]  ;;  %v11535_v50 = vld [vmem:[#allocation220_spill] sm:$0xff]  ;;  %v3191_v3 = vmul.f32 0.5, %v3187_v21  ;;  %v3157_v13 = vpop.f32.mrf.mxu1  ;;  %v11542_v21 = vld [vmem:[#allocation210_spill] sm:$0xff] }
 0x4ad   :  { %v11543_v34 = vld [vmem:[#allocation229_spill] sm:$0xff] }
 0x4ae   :  { %3474 = vmatpush.bf16.msrb.mxu0 %v11529_v43  ;;  %3500 = vmatpush.bf16.msrb.mxu2 %v11530_v60  ;;  %v8978_v43 = vadd.f32 %v3170_v31, %v3106_v2  ;;  %v3158_v60 = vadd.f32 %v3157_v13, %v3080_v53  ;;  %6805 = vtanh.f32 %v3191_v3  ;;  %v11545_v2 = vld [vmem:[#allocation213_spill] sm:$0xff] }
 0x4b0   :  { %3486 = vmatpush.bf16.msra.mxu1 %v11531_v4  ;;  %3512 = vmatpush.bf16.msrb.mxu3 %v11532_v62  ;;  %v3146_v4 = vpop.f32.mrf.mxu0  ;;  %v11539_v62 = vld [vmem:[#allocation224_spill] sm:$0xff]  ;;  %v3188_v8 = vadd.f32 %v3158_v60, %v11540_v12  ;;  %v11547_v60 = vld [vmem:[#allocation291_spill] sm:$0xff] }
 0x4b1   :  { %v11546_v4 = vld [vmem:[#allocation214_spill] sm:$0xff] }
 0x4b2   :  { %3475 = vmatpush.bf16.msrb.mxu0 %v11534_v30  ;;  %3501 = vmatpush.bf16.msrb.mxu2 %v11535_v50  ;;  %v11541_v30 = vld [vmem:[#allocation209_spill] sm:$0xff]  ;;  %v3192_v50 = vmul.f32 0.5, %v3188_v8  ;;  %v3172_v31 = vpop.f32.mrf.mxu2 }
 0x4b3   :  { %v11550_v8 = vld [vmem:[#allocation217_spill] sm:$0xff] }
 0x4b4   :  { %3487 = vmatpush.bf16.msra.mxu1 %v11536_v44  ;;  %3513 = vmatpush.bf16.msrb.mxu3 %v11537_v28  ;;  %v3183_v44 = vpop.f32.mrf.mxu3  ;;  %v11544_v28 = vld [vmem:[#allocation230_spill] sm:$0xff]  ;;  %6807 = vtanh.f32 %v3192_v50  ;;  %v3159_v3 = vpop.f32.mrf.mxu1 }
 0x4b5   :  { %v3184_v53 = vadd.f32 %v3183_v44, %v3132_v29  ;;  %v6806_v13 = vpop.eup %6805  ;;  %v11554_v3 = vld [vmem:[#allocation239_spill] sm:$0xff] }
 0x4b6   :  { %3476 = vmatpush.bf16.msrb.mxu0 %v11538_v26  ;;  %3502 = vmatpush.bf16.msrb.mxu2 %v11539_v62  ;;  %v3197_v50 = vmul.f32 0.5, %v6806_v13  ;;  %v11578_v62 = vld [vmem:[#allocation119_spill] sm:$0xff] }
 0x4b7   :  { %v3190_v12 = vadd.f32 %v3184_v53, %v11547_v60  ;;  %v11555_v53 = vld [vmem:[#allocation240_spill] sm:$0xff]  ;;  %v11579_v26 = vld [vmem:[#allocation135_spill] sm:$0xff] }
 0x4b8   :  { %3488 = vmatpush.bf16.msra.mxu1 %v11541_v30  ;;  %3514 = vmatpush.bf16.msrb.mxu3 %v11542_v21  ;;  %v11548_v30 = vld [vmem:[#allocation233_spill] sm:$0xff]  ;;  %v11549_v21 = vld [vmem:[#allocation234_spill] sm:$0xff]  ;;  %v283_v15 = vadd.f32 %v11579_v26, %v11578_v62 }
 0x4b9   :  { %6809 = vtanh.f32 %v3190_v12  ;;  %v11557_v12 = vld [vmem:[#allocation222_spill] sm:$0xff] }
 0x4ba   :  { %3477 = vmatpush.bf16.msrb.mxu0 %v11543_v34  ;;  %3503 = vmatpush.bf16.msrb.mxu2 %v11544_v28  ;;  %v11551_v34 = vld [vmem:[#allocation218_spill] sm:$0xff]  ;;  %v6808_v29 = vpop.eup %6807  ;;  %v11574_v28 = vld [vmem:[#allocation255_spill] sm:$0xff] }
 0x4bb   :  { %v3198_v44 = vmul.f32 0.5, %v6808_v29  ;;  %v11558_v29 = vld [vmem:[#allocation243_spill] sm:$0xff] }
 0x4bc   :  { %3489 = vmatpush.bf16.msra.mxu1 %v11545_v2  ;;  %3515 = vmatpush.bf16.msrb.mxu3 %v11546_v4  ;;  %v3185_v31 = vpop.f32.mrf.mxu3  ;;  %v11552_v2 = vld [vmem:[#allocation237_spill] sm:$0xff]  ;;  %v11553_v4 = vld [vmem:[#allocation238_spill] sm:$0xff] }
 0x4bd   :  { %v3201_v60 = vadd.f32 0.5, %v3198_v44  ;;  %v11559_v31 = vld [vmem:[#allocation244_spill] sm:$0xff] }
 0x4be   :  { %3478 = vmatpush.bf16.msrb.mxu0 %v11548_v30  ;;  %3504 = vmatpush.bf16.msrb.mxu2 %v11549_v21  ;;  %v3200_v30 = vadd.f32 0.5, %v3197_v50  ;;  %v11556_v21 = vld [vmem:[#allocation221_spill] sm:$0xff]  ;;  %v11562_v50 = vld [vmem:[#allocation227_spill] sm:$0xff]  ;;  %v11563_v44 = vld [vmem:[#allocation228_spill] sm:$0xff] }
 0x4bf   :  { %v3204_v13 = vmul.f32 %v3201_v60, %v8724_v45  ;;  %v11566_v45 = vld [vmem:[#allocation231_spill] sm:$0xff] }
 0x4c0   :  { %3490 = vmatpush.bf16.msra.mxu1 %v11550_v8  ;;  %3516 = vmatpush.bf16.msrb.mxu3 %v11551_v34  ;;  %v6810_v8 = vpop.eup %6809  ;;  %v11568_v60 = vld [vmem:[#allocation251_spill] sm:$0xff] }
 0x4c1   :  { %v3205_v34 = vmul.f32 %v6810_v8, %v3200_v30  ;;  %v11567_v30 = vld [vmem:[#allocation232_spill] sm:$0xff] }
 0x4c2   :  { %3479 = vmatpush.bf16.msrb.mxu0 %v11552_v2  ;;  %3505 = vmatpush.bf16.msrb.mxu2 %v11553_v4  ;;  %v11560_v4 = vld [vmem:[#allocation225_spill] sm:$0xff] }
 0x4c3   :  { %v9003_v2 = vadd.f32 %v3205_v34, %v3204_v13  ;;  %v11569_v34 = vld [vmem:[#allocation252_spill] sm:$0xff] }
 0x4c4   :  { %3491 = vmatpush.bf16.msra.mxu1 %v11556_v21  ;;  %3517 = vmatpush.bf16.msrb.mxu3 %v11557_v12  ;;  %v3227_v21 = vpop.f32.mrf.mxu0  ;;  %v11564_v12 = vld [vmem:[#allocation247_spill] sm:$0xff] }
 0x4c6   :  { %3524 = vmatpush.bf16.msra.mxu0 %v11554_v3  ;;  %3550 = vmatpush.bf16.msra.mxu2 %v11555_v53  ;;  %v11561_v3 = vld [vmem:[#allocation226_spill] sm:$0xff]  ;;  %v11565_v53 = vld [vmem:[#allocation248_spill] sm:$0xff] }
 0x4c8   :  { %3492 = vmatpush.bf16.msra.mxu1 %v11560_v4  ;;  %3518 = vmatpush.bf16.msrb.mxu3 %v11561_v3  ;;  %v3240_v8 = vpop.f32.mrf.mxu1  ;;  %v3253_v13 = vpop.f32.mrf.mxu2  ;;  %v11570_v3 = vld [vmem:[#allocation76_spill] sm:$0xff]  ;;  %v11571_v4 = vld [vmem:[#allocation110_spill] sm:$0xff] }
 0x4ca   :  { %3525 = vmatpush.bf16.msra.mxu0 %v11558_v29  ;;  %3551 = vmatpush.bf16.msra.mxu2 %v11559_v31  ;;  %v3241_v31 = vadd.f32 %v3240_v8, %v3227_v21  ;;  %v11573_v29 = vld [vmem:[#allocation236_spill] sm:$0xff]  ;;  %v11580_v21 = vld [vmem:[#allocation259_spill] sm:$0xff] }
 0x4cb   :  { %v11581_v8 = vld [vmem:[#allocation260_spill] sm:$0xff] }
 0x4cc   :  { %3537 = vmatpush.bf16.msrb.mxu1 %v11562_v50  ;;  %3563 = vmatpush.bf16.msra.mxu3 %v11563_v44  ;;  %v254_v50 = vadd.f32 %v11571_v4, %v11570_v3  ;;  %v11572_v44 = vld [vmem:[#allocation235_spill] sm:$0xff] }
 0x4ce   :  { %3526 = vmatpush.bf16.msra.mxu0 %v11564_v12  ;;  %3552 = vmatpush.bf16.msra.mxu2 %v11565_v53  ;;  %v3229_v12 = vpop.f32.mrf.mxu0  ;;  %v3426_v53 = vadd.f32 %v3241_v31, %v254_v50  ;;  %v11582_v50 = vld [vmem:[#allocation245_spill] sm:$0xff] }
 0x4d0   :  { %3538 = vmatpush.bf16.msrb.mxu1 %v11566_v45  ;;  %3564 = vmatpush.bf16.msra.mxu3 %v11567_v30  ;;  %v11575_v45 = vld [vmem:[#allocation256_spill] sm:$0xff]  ;;  %v11576_v30 = vld [vmem:[#allocation241_spill] sm:$0xff]  ;;  %v3242_v3 = vpop.f32.mrf.mxu1  ;;  %v3255_v12 = vpop.f32.mrf.mxu2 }
 0x4d1   :  { %v11590_v3 = vld [vmem:[#allocation253_spill] sm:$0xff]  ;;  %v11593_v12 = vld [vmem:[#allocation258_spill] sm:$0xff] }
 0x4d2   :  { %3527 = vmatpush.bf16.msra.mxu0 %v11568_v60  ;;  %3553 = vmatpush.bf16.msra.mxu2 %v11569_v34  ;;  %v11577_v60 = vld [vmem:[#allocation242_spill] sm:$0xff]  ;;  %v3266_v34 = vpop.f32.mrf.mxu3 }
 0x4d3   :  { %v3267_v4 = vadd.f32 %v3266_v34, %v3253_v13  ;;  %v11588_v34 = vld [vmem:[#allocation263_spill] sm:$0xff]  ;;  %v11589_v13 = vld [vmem:[#allocation264_spill] sm:$0xff] }
 0x4d4   :  { %3539 = vmatpush.bf16.msrb.mxu1 %v11572_v44  ;;  %3565 = vmatpush.bf16.msra.mxu3 %v11573_v29  ;;  %v11587_v29 = vld [vmem:[#allocation250_spill] sm:$0xff] }
 0x4d5   :  { %v3427_v31 = vadd.f32 %v3267_v4, %v283_v15  ;;  %v11591_v15 = vld [vmem:[#allocation254_spill] sm:$0xff]  ;;  %v11592_v4 = vld [vmem:[#allocation257_spill] sm:$0xff] }
 0x4d6   :  { %3528 = vmatpush.bf16.msra.mxu0 %v11574_v28  ;;  %3554 = vmatpush.bf16.msra.mxu2 %v11575_v45  ;;  %v11583_v28 = vld [vmem:[#allocation246_spill] sm:$0xff]  ;;  %v11584_v45 = vld [vmem:[#allocation261_spill] sm:$0xff] }
 0x4d8   :  { %3540 = vmatpush.bf16.msrb.mxu1 %v11576_v30  ;;  %3566 = vmatpush.bf16.msra.mxu3 %v11577_v60  ;;  %v11585_v30 = vld [vmem:[#allocation262_spill] sm:$0xff]  ;;  %v11586_v60 = vld [vmem:[#allocation249_spill] sm:$0xff] }
 0x4da   :  { %3529 = vmatpush.bf16.msra.mxu0 %v11580_v21  ;;  %3555 = vmatpush.bf16.msra.mxu2 %v11581_v8  ;;  %v3268_v26 = vpop.f32.mrf.mxu3 }
 0x4dc   :  { %3541 = vmatpush.bf16.msrb.mxu1 %v11582_v50  ;;  %3567 = vmatpush.bf16.msra.mxu3 %v11583_v28 }
 0x4de   :  { %3530 = vmatpush.bf16.msra.mxu0 %v11584_v45  ;;  %3556 = vmatpush.bf16.msra.mxu2 %v11585_v30 }
 0x4e0   :  { %3542 = vmatpush.bf16.msrb.mxu1 %v11586_v60  ;;  %3568 = vmatpush.bf16.msra.mxu3 %v11587_v29 }
 0x4e2   :  { %3531 = vmatpush.bf16.msra.mxu0 %v11588_v34  ;;  %3557 = vmatpush.bf16.msra.mxu2 %v11589_v13  ;;  %v3279_v62 = vpop.f32.mrf.mxu0 }
 0x4e4   :  { %3543 = vmatpush.bf16.msrb.mxu1 %v11590_v3  ;;  %3569 = vmatpush.bf16.msra.mxu3 %v11591_v15 }
 0x4e8   :  { %3544 = vmatpush.bf16.msrb.mxu1 %v11592_v4  ;;  %3570 = vmatpush.bf16.msra.mxu3 %v11593_v12  ;;  %v3292_v45 = vpop.f32.mrf.mxu1  ;;  %v3305_v30 = vpop.f32.mrf.mxu2  ;;  %v11595_v4 = vld [vmem:[#allocation120_spill] sm:$0xff] }
 0x4e9   :  { %v3293_v15 = vadd.f32 %v3292_v45, %v3279_v62  ;;  %v312_v52 = vadd.f32 %v11595_v4, %v11594_v61  ;;  %v3435_v45 = vmul.f32 0.5, %v3427_v31  ;;  %v11633_v61 = vld [vmem:[#allocation26_spill] sm:$0xff] }
 0x4ea   :  { %v3281_v28 = vpop.f32.mrf.mxu0 }
 0x4eb   :  { %v3428_v16 = vadd.f32 %v3293_v15, %v312_v52  ;;  %v11597_v28 = vld [vmem:[#allocation121_spill] sm:$0xff]  ;;  %v11600_v52 = vld [vmem:[#allocation176_spill] sm:$0xff] }
 0x4ec   :  { %v341_v55 = vadd.f32 %v11597_v28, %v11596_v9  ;;  %v11603_v28 = vld [vmem:[#allocation189_spill] sm:$0xff]  ;;  %v11632_v9 = vld [vmem:[#allocation42_spill] sm:$0xff] }
 0x4ee   :  { %v3318_v60 = vpop.f32.mrf.mxu3 }
 0x4ef   :  { %v3319_v17 = vadd.f32 %v3318_v60, %v3305_v30  ;;  %v11601_v30 = vld [vmem:[#allocation183_spill] sm:$0xff] }
 0x4f0   :  { %v3294_v50 = vpop.f32.mrf.mxu1  ;;  %v3307_v29 = vpop.f32.mrf.mxu2  ;;  %v428_v60 = vadd.f32 %v11601_v30, %v11600_v52  ;;  %v11605_v30 = vld [vmem:[#allocation184_spill] sm:$0xff]  ;;  %v11631_v52 = vld [vmem:[#allocation29_spill] sm:$0xff] }
 0x4f1   :  { %v3436_v50 = vmul.f32 0.5, %v3428_v16  ;;  %v3434_v29 = vmul.f32 0.5, %v3426_v53 }
 0x4f3   :  { %6811 = vtanh.f32 %v3436_v50 }
 0x4f4   :  { %6813 = vtanh.f32 %v3434_v29 }
 0x4f6   :  { %v3320_v26 = vpop.f32.mrf.mxu3 }
 0x4f7   :  { %v3429_v26 = vadd.f32 %v3319_v17, %v341_v55 }
 0x502   :  { %v3331_v8 = vpop.f32.mrf.mxu0 }
 0x508   :  { %v3344_v34 = vpop.f32.mrf.mxu1  ;;  %v3357_v21 = vpop.f32.mrf.mxu2 }
 0x509   :  { %v3345_v39 = vadd.f32 %v3344_v34, %v3331_v8  ;;  %v11602_v34 = vld [vmem:[#allocation182_spill] sm:$0xff] }
 0x50a   :  { %v3333_v13 = vpop.f32.mrf.mxu0  ;;  %v399_v50 = vadd.f32 %v11603_v28, %v11602_v34  ;;  %v11630_v34 = vld [vmem:[#allocation37_spill] sm:$0xff] }
 0x50b   :  { %v3437_v13 = vmul.f32 0.5, %v3429_v26 }
 0x50d   :  { %6815 = vtanh.f32 %v3437_v13 }
 0x50e   :  { %v3370_v44 = vpop.f32.mrf.mxu3  ;;  %6817 = vtanh.f32 %v3435_v45 }
 0x50f   :  { %v3371_v53 = vadd.f32 %v3370_v44, %v3357_v21 }
 0x510   :  { %v3346_v3 = vpop.f32.mrf.mxu1  ;;  %v3359_v37 = vpop.f32.mrf.mxu2 }
 0x511   :  { %v11598_v3 = vld [vmem:[#allocation165_spill] sm:$0xff]  ;;  %v11599_v37 = vld [vmem:[#allocation171_spill] sm:$0xff]  ;;  %v3431_v31 = vadd.f32 %v3371_v53, %v399_v50 }
 0x512   :  { %v370_v62 = vadd.f32 %v11599_v37, %v11598_v3  ;;  %v11604_v3 = vld [vmem:[#allocation177_spill] sm:$0xff] }
 0x513   :  { %v457_v13 = vadd.f32 %v11605_v30, %v11604_v3  ;;  %v3439_v28 = vmul.f32 0.5, %v3431_v31  ;;  %v11629_v3 = vld [vmem:[#allocation22_spill] sm:$0xff] }
 0x514   :  { %v3430_v19 = vadd.f32 %v3345_v39, %v370_v62 }
 0x516   :  { %v3372_v12 = vpop.f32.mrf.mxu3  ;;  %v3438_v26 = vmul.f32 0.5, %v3430_v19 }
 0x517   :  { %v6812_v12 = vpop.eup %6811 }
 0x518   :  { %v6814_v55 = vpop.eup %6813  ;;  %v3448_v29 = vmul.f32 0.5, %v6812_v12 }
 0x519   :  { %v3446_v39 = vmul.f32 0.5, %v6814_v55  ;;  %v6816_v62 = vpop.eup %6815 }
 0x51a   :  { %v6818_v21 = vpop.eup %6817 }
 0x51b   :  { %v3447_v19 = vmul.f32 0.5, %v6818_v21 }
 0x522   :  { %v3383_v38 = vpop.f32.mrf.mxu0 }
 0x528   :  { %v3396_v4 = vpop.f32.mrf.mxu1  ;;  %v3409_v16 = vpop.f32.mrf.mxu2 }
 0x529   :  { %v3397_v15 = vadd.f32 %v3396_v4, %v3383_v38  ;;  %v3454_v4 = vadd.f32 0.5, %v3448_v29  ;;  %v3453_v29 = vadd.f32 0.5, %v3447_v19 }
 0x52a   :  { %v3385_v8 = vpop.f32.mrf.mxu0 }
 0x52b   :  { %v3432_v17 = vadd.f32 %v3397_v15, %v428_v60  ;;  %v3452_v15 = vadd.f32 0.5, %v3446_v39  ;;  %v3449_v8 = vmul.f32 0.5, %v6816_v62  ;;  %v3460_v53 = vmul.f32 %v3454_v4, %v8765_v23 }
 0x52d   :  { %6819 = vtanh.f32 %v3432_v17  ;;  %v3455_v50 = vadd.f32 0.5, %v3449_v8 }
 0x52e   :  { %v3422_v37 = vpop.f32.mrf.mxu3  ;;  %6821 = vtanh.f32 %v3438_v26 }
 0x52f   :  { %v3423_v38 = vadd.f32 %v3422_v37, %v3409_v16  ;;  %v3461_v39 = vmul.f32 %v3455_v50, %v8769_v41  ;;  %v11606_v50 = vld [vmem:[#allocation285_spill] sm:$0xff] }
 0x530   :  { %v3398_v44 = vpop.f32.mrf.mxu1  ;;  %v3411_v60 = vpop.f32.mrf.mxu2 }
 0x531   :  { %v3433_v45 = vadd.f32 %v3423_v38, %v457_v13 }
 0x533   :  { %v6820_v12 = vpop.eup %6819  ;;  %6823 = vtanh.f32 %v3433_v45 }
 0x534   :  { %v3462_v55 = vmul.f32 %v6820_v12, %v3452_v15  ;;  %v6822_v17 = vpop.eup %6821  ;;  %6825 = vtanh.f32 %v3439_v28  ;;  %v3189_v15 = vadd.f32 %v8978_v43, %v8493_v32 }
 0x535   :  { %v3450_v37 = vmul.f32 0.5, %v6822_v17 }
 0x536   :  { %v9052_v30 = vadd.f32 %v3462_v55, %v3460_v53  ;;  %v3424_v16 = vpop.f32.mrf.mxu3  ;;  %v3193_v28 = vmul.f32 0.5, %v3189_v15  ;;  %v11621_v15 = vld [vmem:[#allocation15_spill] sm:$0xff] }
 0x537   :  { %v3456_v38 = vadd.f32 0.5, %v3450_v37  ;;  %v11607_v16 = vld [vmem:[#allocation286_spill] sm:$0xff]  ;;  %v11610_v37 = vld [vmem:[#allocation287_spill] sm:$0xff] }
 0x538   :  { %6827 = vtanh.f32 %v9052_v30 }
 0x539   :  { %v6824_v26 = vpop.eup %6823 }
 0x53a   :  { %v3463_v31 = vmul.f32 %v6824_v26, %v3453_v29  ;;  %v6826_v62 = vpop.eup %6825  ;;  %v11608_v29 = vld [vmem:[#allocation16_spill] sm:$0xff] }
 0x53b   :  { %v3451_v4 = vmul.f32 0.5, %v6826_v62  ;;  %v11609_v26 = vld [vmem:[#allocation12_spill] sm:$0xff]  ;;  %v11613_v62 = vld [vmem:[#allocation11_spill] sm:$0xff] }
 0x53c   :  { %v9056_v13 = vadd.f32 %v3463_v31, %v3461_v39  ;;  %v11611_v39 = vld [vmem:[#allocation288_spill] sm:$0xff] }
 0x53d   :  { %v3457_v45 = vadd.f32 0.5, %v3451_v4  ;;  %v11612_v31 = vld [vmem:[#allocation20_spill] sm:$0xff]  ;;  %v11616_v4 = vld [vmem:[#allocation23_spill] sm:$0xff] }
 0x53e   :  { %v6828_v23 = vpop.eup %6827  ;;  %6829 = vtanh.f32 %v9056_v13 }
 0x53f   :  { %v3468_v44 = vmul.f32 %v6828_v23, %v3456_v38  ;;  %6831 = vtanh.f32 %v3193_v28  ;;  %v11614_v38 = vld [vmem:[#allocation19_spill] sm:$0xff]  ;;  %v11615_v23 = vld [vmem:[#allocation14_spill] sm:$0xff]  ;;  %v11622_v28 = vld [vmem:[#allocation28_spill] sm:$0xff] }
 0x540   :  { %6833 = vtanh.f32 %v9003_v2 }
 0x541   :  { %v9059_v21 = vpack.c.bf16 %v3468_v44, %v3468_v44  ;;  %v11617_v44 = vld [vmem:[#allocation13_spill] sm:$0xff] }
 0x543   :  { %3480 = vmatmul.bf16.vlgmr.msrb.gmra.mxu0 %v9059_v21  ;;  %3506 = vmatmul.bf16.vlgmr.msrb.gmra.mxu2 %v9059_v21 }
 0x544   :  { %v6830_v60 = vpop.eup %6829  ;;  %3576 = vmatpush.bf16.msrb.mxu0 %v11191_v58  ;;  %3602 = vmatpush.bf16.msrb.mxu2 %v11192_v22 }
 0x545   :  { %v3469_v41 = vmul.f32 %v6830_v60, %v3457_v45  ;;  %v6832_v43 = vpop.eup %6831  ;;  %v11618_v45 = vld [vmem:[#allocation24_spill] sm:$0xff]  ;;  %v11619_v60 = vld [vmem:[#allocation17_spill] sm:$0xff] }
 0x546   :  { %v3199_v12 = vmul.f32 0.5, %v6832_v43  ;;  %v6834_v19 = vpop.eup %6833  ;;  %v11623_v43 = vld [vmem:[#allocation21_spill] sm:$0xff] }
 0x547   :  { %v9067_v8 = vpack.c.bf16 %v3469_v41, %v3469_v41  ;;  %v11620_v41 = vld [vmem:[#allocation27_spill] sm:$0xff] }
 0x548   :  { %3577 = vmatpush.bf16.msrb.mxu0 %v11193_v7  ;;  %3603 = vmatpush.bf16.msrb.mxu2 %v11194_v47  ;;  %v3202_v53 = vadd.f32 0.5, %v3199_v12  ;;  %v11624_v12 = vld [vmem:[#allocation32_spill] sm:$0xff] }
 0x549   :  { %3493 = vmatmul.bf16.vlgmr.msra.gmra.mxu1 %v9067_v8  ;;  %3519 = vmatmul.bf16.vlgmr.msrb.gmra.mxu3 %v9067_v8 }
 0x54a   :  { %3589 = vmatpush.bf16.msra.mxu1 %v11195_v56  ;;  %3615 = vmatpush.bf16.msrb.mxu3 %v11196_v14  ;;  %v3208_v55 = vmul.f32 %v6834_v19, %v3202_v53  ;;  %v11625_v19 = vld [vmem:[#allocation18_spill] sm:$0xff]  ;;  %v11626_v53 = vld [vmem:[#allocation31_spill] sm:$0xff] }
 0x54c   :  { %3578 = vmatpush.bf16.msrb.mxu0 %v11197_v54  ;;  %3604 = vmatpush.bf16.msrb.mxu2 %v11198_v42  ;;  %v3209_v17 = vpack.c.bf16 %v3208_v55, %v3208_v55  ;;  %v11627_v55 = vld [vmem:[#allocation25_spill] sm:$0xff] }
 0x54e   :  { %3590 = vmatpush.bf16.msra.mxu1 %v11199_v33  ;;  %3616 = vmatpush.bf16.msrb.mxu3 %v11200_v18 }
 0x550   :  { %3579 = vmatpush.bf16.msrb.mxu0 %v8184_v48  ;;  %3605 = vmatpush.bf16.msrb.mxu2 %v8186_v24 }
 0x552   :  { %3591 = vmatpush.bf16.msra.mxu1 %v11201_v25  ;;  %3617 = vmatpush.bf16.msrb.mxu3 %v11202_v20 }
 0x553   :  { %3532 = vmatmul.bf16.vlgmr.msra.gmra.mxu0 %v9059_v21  ;;  %3558 = vmatmul.bf16.vlgmr.msra.gmra.mxu2 %v9059_v21 }
 0x554   :  { %3580 = vmatpush.bf16.msrb.mxu0 %v8196_v35  ;;  %3606 = vmatpush.bf16.msrb.mxu2 %v8198_v57 }
 0x556   :  { %3592 = vmatpush.bf16.msra.mxu1 %v11203_v0  ;;  %3618 = vmatpush.bf16.msrb.mxu3 %v11204_v46 }
 0x558   :  { %3581 = vmatpush.bf16.msrb.mxu0 %v8210_v1  ;;  %3607 = vmatpush.bf16.msrb.mxu2 %v8212_v59 }
 0x559   :  { %3545 = vmatmul.bf16.vlgmr.msrb.gmra.mxu1 %v9067_v8  ;;  %3571 = vmatmul.bf16.vlgmr.msra.gmra.mxu3 %v9067_v8 }
 0x55a   :  { %3593 = vmatpush.bf16.msra.mxu1 %v11205_v40  ;;  %3619 = vmatpush.bf16.msrb.mxu3 %v11206_v49 }
 0x55c   :  { %3582 = vmatpush.bf16.msrb.mxu0 %v8220_v11  ;;  %3608 = vmatpush.bf16.msrb.mxu2 %v8222_v10 }
 0x55e   :  { %3594 = vmatpush.bf16.msra.mxu1 %v11207_v63  ;;  %3620 = vmatpush.bf16.msrb.mxu3 %v11208_v36 }
 0x560   :  { %3583 = vmatpush.bf16.msrb.mxu0 %v8230_v6  ;;  %3609 = vmatpush.bf16.msrb.mxu2 %v8232_v27 }
 0x562   :  { %3595 = vmatpush.bf16.msra.mxu1 %v11606_v50  ;;  %3621 = vmatpush.bf16.msrb.mxu3 %v11607_v16 }
 0x563   :  { %3584 = vmatmul.bf16.vlgmr.msrb.gmra.mxu0 %v3209_v17  ;;  %3610 = vmatmul.bf16.vlgmr.msrb.gmra.mxu2 %v3209_v17 }
 0x564   :  { %3659 = vmatpush.bf16.msra.mxu0 %v7261_v5  ;;  %3685 = vmatpush.bf16.msra.mxu2 %v7239_v51 }
 0x566   :  { %3596 = vmatpush.bf16.msra.mxu1 %v11610_v37  ;;  %3622 = vmatpush.bf16.msrb.mxu3 %v11611_v39  ;;  %v11806_v37 = vld [vmem:[#allocation134_spill] sm:$0xff] }
 0x568   :  { %3660 = vmatpush.bf16.msra.mxu0 %v11608_v29  ;;  %3686 = vmatpush.bf16.msra.mxu2 %v11609_v26  ;;  %v11807_v29 = vld [vmem:[#allocation175_spill] sm:$0xff] }
 0x569   :  { %3597 = vmatmul.bf16.vlgmr.msra.gmra.mxu1 %v3209_v17  ;;  %3623 = vmatmul.bf16.vlgmr.msrb.gmra.mxu3 %v3209_v17  ;;  %v11628_v17 = vld [vmem:[#allocation38_spill] sm:$0xff] }
 0x56a   :  { %3672 = vmatpush.bf16.msrb.mxu1 %v11612_v31  ;;  %3698 = vmatpush.bf16.msra.mxu3 %v11613_v62 }
 0x56c   :  { %3661 = vmatpush.bf16.msra.mxu0 %v11614_v38  ;;  %3687 = vmatpush.bf16.msra.mxu2 %v11615_v23 }
 0x56e   :  { %3673 = vmatpush.bf16.msrb.mxu1 %v11616_v4  ;;  %3699 = vmatpush.bf16.msra.mxu3 %v11617_v44  ;;  %v11722_v44 = vld [vmem:[#allocation129_spill] sm:$0xff] }
 0x570   :  { %3662 = vmatpush.bf16.msra.mxu0 %v11618_v45  ;;  %3688 = vmatpush.bf16.msra.mxu2 %v11619_v60 }
 0x572   :  { %3674 = vmatpush.bf16.msrb.mxu1 %v11620_v41  ;;  %3700 = vmatpush.bf16.msra.mxu3 %v11621_v15  ;;  %v11718_v41 = vld [vmem:[#allocation123_spill] sm:$0xff] }
 0x574   :  { %3663 = vmatpush.bf16.msra.mxu0 %v11622_v28  ;;  %3689 = vmatpush.bf16.msra.mxu2 %v11623_v43  ;;  %v11634_v43 = vld [vmem:[#allocation41_spill] sm:$0xff]  ;;  %v11717_v28 = vld [vmem:[#allocation132_spill] sm:$0xff] }
 0x576   :  { %3675 = vmatpush.bf16.msrb.mxu1 %v11624_v12  ;;  %3701 = vmatpush.bf16.msra.mxu3 %v11625_v19  ;;  %v11635_v12 = vld [vmem:[#allocation33_spill] sm:$0xff]  ;;  %v11636_v19 = vld [vmem:[#allocation43_spill] sm:$0xff] }
 0x578   :  { %3664 = vmatpush.bf16.msra.mxu0 %v11626_v53  ;;  %3690 = vmatpush.bf16.msra.mxu2 %v11627_v55  ;;  %v11637_v53 = vld [vmem:[#allocation35_spill] sm:$0xff]  ;;  %v11638_v55 = vld [vmem:[#allocation46_spill] sm:$0xff] }
 0x57a   :  { %3676 = vmatpush.bf16.msrb.mxu1 %v11628_v17  ;;  %3702 = vmatpush.bf16.msra.mxu3 %v11629_v3  ;;  %v11639_v17 = vld [vmem:[#allocation30_spill] sm:$0xff]  ;;  %v11656_v3 = vld [vmem:[#allocation64_spill] sm:$0xff] }
 0x57c   :  { %3665 = vmatpush.bf16.msra.mxu0 %v11630_v34  ;;  %3691 = vmatpush.bf16.msra.mxu2 %v11631_v52  ;;  %v11640_v52 = vld [vmem:[#allocation47_spill] sm:$0xff]  ;;  %v11655_v34 = vld [vmem:[#allocation53_spill] sm:$0xff] }
 0x57e   :  { %3677 = vmatpush.bf16.msrb.mxu1 %v11632_v9  ;;  %3703 = vmatpush.bf16.msra.mxu3 %v11633_v61  ;;  %v11641_v9 = vld [vmem:[#allocation39_spill] sm:$0xff]  ;;  %v11642_v61 = vld [vmem:[#allocation50_spill] sm:$0xff] }
 0x580   :  { %3666 = vmatpush.bf16.msra.mxu0 %v11634_v43  ;;  %3692 = vmatpush.bf16.msra.mxu2 %v11635_v12  ;;  %v11643_v43 = vld [vmem:[#allocation34_spill] sm:$0xff]  ;;  %v11644_v12 = vld [vmem:[#allocation52_spill] sm:$0xff] }
 0x582   :  { %3678 = vmatpush.bf16.msrb.mxu1 %v11638_v55  ;;  %3704 = vmatpush.bf16.msra.mxu3 %v11639_v17  ;;  %v11646_v17 = vld [vmem:[#allocation51_spill] sm:$0xff]  ;;  %v11647_v55 = vld [vmem:[#allocation44_spill] sm:$0xff] }
 0x583   :  { %3667 = vmatmul.bf16.vlgmr.msra.gmra.mxu0 %v9059_v21  ;;  %3693 = vmatmul.bf16.vlgmr.msra.gmra.mxu2 %v9059_v21 }
 0x584   :  { %3711 = vmatpush.bf16.msrb.mxu0 %v11636_v19  ;;  %3737 = vmatpush.bf16.msrb.mxu2 %v11637_v53  ;;  %v11645_v19 = vld [vmem:[#allocation36_spill] sm:$0xff] }
 0x585   :  { %v11648_v53 = vld [vmem:[#allocation56_spill] sm:$0xff] }
 0x586   :  { %3679 = vmatpush.bf16.msrb.mxu1 %v11642_v61  ;;  %3705 = vmatpush.bf16.msra.mxu3 %v11643_v43  ;;  %v11651_v61 = vld [vmem:[#allocation48_spill] sm:$0xff] }
 0x587   :  { %v11652_v43 = vld [vmem:[#allocation60_spill] sm:$0xff] }
 0x588   :  { %3712 = vmatpush.bf16.msrb.mxu0 %v11640_v52  ;;  %3738 = vmatpush.bf16.msrb.mxu2 %v11641_v9  ;;  %v11649_v52 = vld [vmem:[#allocation40_spill] sm:$0xff]  ;;  %v11650_v9 = vld [vmem:[#allocation55_spill] sm:$0xff] }
 0x589   :  { %3680 = vmatmul.bf16.vlgmr.msrb.gmra.mxu1 %v9067_v8  ;;  %3706 = vmatmul.bf16.vlgmr.msra.gmra.mxu3 %v9067_v8 }
 0x58a   :  { %3724 = vmatpush.bf16.msra.mxu1 %v11644_v12  ;;  %3750 = vmatpush.bf16.msrb.mxu3 %v11645_v19  ;;  %v11653_v12 = vld [vmem:[#allocation45_spill] sm:$0xff]  ;;  %v11654_v19 = vld [vmem:[#allocation59_spill] sm:$0xff] }
 0x58c   :  { %3713 = vmatpush.bf16.msrb.mxu0 %v11646_v17  ;;  %3739 = vmatpush.bf16.msrb.mxu2 %v11647_v55  ;;  %v11657_v17 = vld [vmem:[#allocation49_spill] sm:$0xff]  ;;  %v11658_v55 = vld [vmem:[#allocation63_spill] sm:$0xff] }
 0x58e   :  { %3725 = vmatpush.bf16.msra.mxu1 %v11648_v53  ;;  %3751 = vmatpush.bf16.msrb.mxu3 %v11649_v52  ;;  %v11659_v53 = vld [vmem:[#allocation57_spill] sm:$0xff]  ;;  %v11660_v52 = vld [vmem:[#allocation68_spill] sm:$0xff] }
 0x590   :  { %3714 = vmatpush.bf16.msrb.mxu0 %v11650_v9  ;;  %3740 = vmatpush.bf16.msrb.mxu2 %v11651_v61  ;;  %v11661_v9 = vld [vmem:[#allocation54_spill] sm:$0xff]  ;;  %v11662_v61 = vld [vmem:[#allocation67_spill] sm:$0xff] }
 0x592   :  { %3726 = vmatpush.bf16.msra.mxu1 %v11652_v43  ;;  %3752 = vmatpush.bf16.msrb.mxu3 %v11653_v12  ;;  %v11663_v43 = vld [vmem:[#allocation61_spill] sm:$0xff]  ;;  %v11664_v12 = vld [vmem:[#allocation70_spill] sm:$0xff] }
 0x594   :  { %3715 = vmatpush.bf16.msrb.mxu0 %v11654_v19  ;;  %3741 = vmatpush.bf16.msrb.mxu2 %v11655_v34  ;;  %v11665_v19 = vld [vmem:[#allocation58_spill] sm:$0xff]  ;;  %v11666_v34 = vld [vmem:[#allocation69_spill] sm:$0xff] }
 0x596   :  { %3727 = vmatpush.bf16.msra.mxu1 %v11656_v3  ;;  %3753 = vmatpush.bf16.msrb.mxu3 %v11657_v17  ;;  %v11667_v3 = vld [vmem:[#allocation65_spill] sm:$0xff]  ;;  %v11668_v17 = vld [vmem:[#allocation72_spill] sm:$0xff] }
 0x598   :  { %3716 = vmatpush.bf16.msrb.mxu0 %v11658_v55  ;;  %3742 = vmatpush.bf16.msrb.mxu2 %v11659_v53  ;;  %v11669_v55 = vld [vmem:[#allocation79_spill] sm:$0xff] }
 0x599   :  { %v11670_v53 = vld [vmem:[#allocation71_spill] sm:$0xff] }
 0x59a   :  { %3728 = vmatpush.bf16.msra.mxu1 %v11660_v52  ;;  %3754 = vmatpush.bf16.msrb.mxu3 %v11661_v9  ;;  %v11671_v52 = vld [vmem:[#allocation62_spill] sm:$0xff]  ;;  %v11688_v9 = vld [vmem:[#allocation115_spill] sm:$0xff] }
 0x59c   :  { %3717 = vmatpush.bf16.msrb.mxu0 %v11662_v61  ;;  %3743 = vmatpush.bf16.msrb.mxu2 %v11663_v43  ;;  %v11672_v43 = vld [vmem:[#allocation74_spill] sm:$0xff]  ;;  %v11687_v61 = vld [vmem:[#allocation97_spill] sm:$0xff] }
 0x59e   :  { %3729 = vmatpush.bf16.msra.mxu1 %v11664_v12  ;;  %3755 = vmatpush.bf16.msrb.mxu3 %v11665_v19  ;;  %v11673_v12 = vld [vmem:[#allocation82_spill] sm:$0xff]  ;;  %v11674_v19 = vld [vmem:[#allocation73_spill] sm:$0xff] }
 0x5a0   :  { %3718 = vmatpush.bf16.msrb.mxu0 %v11666_v34  ;;  %3744 = vmatpush.bf16.msrb.mxu2 %v11667_v3  ;;  %v11675_v34 = vld [vmem:[#allocation66_spill] sm:$0xff]  ;;  %v11676_v3 = vld [vmem:[#allocation96_spill] sm:$0xff] }
 0x5a2   :  { %3730 = vmatpush.bf16.msra.mxu1 %v11670_v53  ;;  %3756 = vmatpush.bf16.msrb.mxu3 %v11671_v52  ;;  %v11678_v52 = vld [vmem:[#allocation75_spill] sm:$0xff] }
 0x5a3   :  { %3719 = vmatmul.bf16.vlgmr.msrb.gmra.mxu0 %v9059_v21  ;;  %3745 = vmatmul.bf16.vlgmr.msrb.gmra.mxu2 %v9059_v21  ;;  %v11679_v53 = vld [vmem:[#allocation87_spill] sm:$0xff] }
 0x5a4   :  { %3763 = vmatpush.bf16.msra.mxu0 %v11668_v17  ;;  %3789 = vmatpush.bf16.msra.mxu2 %v11669_v55  ;;  %v11677_v17 = vld [vmem:[#allocation80_spill] sm:$0xff]  ;;  %v11680_v55 = vld [vmem:[#allocation103_spill] sm:$0xff] }
 0x5a6   :  { %3731 = vmatpush.bf16.msra.mxu1 %v11674_v19  ;;  %3757 = vmatpush.bf16.msrb.mxu3 %v11675_v34  ;;  %v11683_v19 = vld [vmem:[#allocation90_spill] sm:$0xff]  ;;  %v11684_v34 = vld [vmem:[#allocation111_spill] sm:$0xff] }
 0x5a8   :  { %3764 = vmatpush.bf16.msra.mxu0 %v11672_v43  ;;  %3790 = vmatpush.bf16.msra.mxu2 %v11673_v12  ;;  %v11681_v43 = vld [vmem:[#allocation83_spill] sm:$0xff]  ;;  %v11682_v12 = vld [vmem:[#allocation77_spill] sm:$0xff] }
 0x5a9   :  { %3732 = vmatmul.bf16.vlgmr.msra.gmra.mxu1 %v9067_v8  ;;  %3758 = vmatmul.bf16.vlgmr.msrb.gmra.mxu3 %v9067_v8 }
 0x5aa   :  { %3776 = vmatpush.bf16.msrb.mxu1 %v11676_v3  ;;  %3802 = vmatpush.bf16.msra.mxu3 %v11677_v17  ;;  %v11685_v3 = vld [vmem:[#allocation88_spill] sm:$0xff]  ;;  %v11686_v17 = vld [vmem:[#allocation81_spill] sm:$0xff] }
 0x5ac   :  { %3765 = vmatpush.bf16.msra.mxu0 %v11678_v52  ;;  %3791 = vmatpush.bf16.msra.mxu2 %v11679_v53  ;;  %v11689_v52 = vld [vmem:[#allocation91_spill] sm:$0xff]  ;;  %v11690_v53 = vld [vmem:[#allocation84_spill] sm:$0xff] }
 0x5ae   :  { %3777 = vmatpush.bf16.msrb.mxu1 %v11680_v55  ;;  %3803 = vmatpush.bf16.msra.mxu3 %v11681_v43  ;;  %v11691_v55 = vld [vmem:[#allocation104_spill] sm:$0xff]  ;;  %v11692_v43 = vld [vmem:[#allocation125_spill] sm:$0xff] }
 0x5b0   :  { %3766 = vmatpush.bf16.msra.mxu0 %v11682_v12  ;;  %3792 = vmatpush.bf16.msra.mxu2 %v11683_v19  ;;  %v11693_v12 = vld [vmem:[#allocation99_spill] sm:$0xff]  ;;  %v11694_v19 = vld [vmem:[#allocation89_spill] sm:$0xff] }
 0x5b2   :  { %3778 = vmatpush.bf16.msrb.mxu1 %v11684_v34  ;;  %3804 = vmatpush.bf16.msra.mxu3 %v11685_v3  ;;  %v11695_v34 = vld [vmem:[#allocation112_spill] sm:$0xff]  ;;  %v11696_v3 = vld [vmem:[#allocation130_spill] sm:$0xff] }
 0x5b4   :  { %3767 = vmatpush.bf16.msra.mxu0 %v11686_v17  ;;  %3793 = vmatpush.bf16.msra.mxu2 %v11687_v61  ;;  %v11697_v17 = vld [vmem:[#allocation105_spill] sm:$0xff]  ;;  %v11698_v61 = vld [vmem:[#allocation92_spill] sm:$0xff] }
 0x5b6   :  { %3779 = vmatpush.bf16.msrb.mxu1 %v11688_v9  ;;  %3805 = vmatpush.bf16.msra.mxu3 %v11689_v52  ;;  %v11699_v9 = vld [vmem:[#allocation116_spill] sm:$0xff]  ;;  %v11700_v52 = vld [vmem:[#allocation95_spill] sm:$0xff] }
 0x5b8   :  { %3768 = vmatpush.bf16.msra.mxu0 %v11690_v53  ;;  %3794 = vmatpush.bf16.msra.mxu2 %v11691_v55  ;;  %v11701_v53 = vld [vmem:[#allocation118_spill] sm:$0xff] }
 0x5b9   :  { %v11702_v55 = vld [vmem:[#allocation138_spill] sm:$0xff] }
 0x5ba   :  { %3780 = vmatpush.bf16.msrb.mxu1 %v11692_v43  ;;  %3806 = vmatpush.bf16.msra.mxu3 %v11693_v12  ;;  %v11703_v43 = vld [vmem:[#allocation113_spill] sm:$0xff]  ;;  %v11716_v12 = vld [vmem:[#allocation152_spill] sm:$0xff] }
 0x5bc   :  { %3769 = vmatpush.bf16.msra.mxu0 %v11694_v19  ;;  %3795 = vmatpush.bf16.msra.mxu2 %v11695_v34  ;;  %v11704_v34 = vld [vmem:[#allocation100_spill] sm:$0xff] }
 0x5be   :  { %3781 = vmatpush.bf16.msrb.mxu1 %v11696_v3  ;;  %3807 = vmatpush.bf16.msra.mxu3 %v11697_v17  ;;  %v11705_v3 = vld [vmem:[#allocation127_spill] sm:$0xff]  ;;  %v11706_v17 = vld [vmem:[#allocation142_spill] sm:$0xff] }
 0x5c0   :  { %3770 = vmatpush.bf16.msra.mxu0 %v11698_v61  ;;  %3796 = vmatpush.bf16.msra.mxu2 %v11699_v9  ;;  %v11707_v61 = vld [vmem:[#allocation117_spill] sm:$0xff]  ;;  %v11708_v9 = vld [vmem:[#allocation143_spill] sm:$0xff] }
 0x5c2   :  { %3782 = vmatpush.bf16.msrb.mxu1 %v11702_v55  ;;  %3808 = vmatpush.bf16.msra.mxu3 %v11703_v43  ;;  %v11710_v43 = vld [vmem:[#allocation106_spill] sm:$0xff]  ;;  %v11711_v55 = vld [vmem:[#allocation131_spill] sm:$0xff] }
 0x5c3   :  { %3771 = vmatmul.bf16.vlgmr.msra.gmra.mxu0 %v9059_v21  ;;  %3797 = vmatmul.bf16.vlgmr.msra.gmra.mxu2 %v9059_v21 }
 0x5c4   :  { %3815 = vmatpush.bf16.msrb.mxu0 %v11700_v52  ;;  %3841 = vmatpush.bf16.msrb.mxu2 %v11701_v53  ;;  %v11709_v52 = vld [vmem:[#allocation122_spill] sm:$0xff]  ;;  %v3481_v53 = vpop.f32.mrf.mxu0 }
 0x5c6   :  { %3783 = vmatpush.bf16.msrb.mxu1 %v11706_v17  ;;  %3809 = vmatpush.bf16.msra.mxu3 %v11707_v61  ;;  %v3494_v17 = vpop.f32.mrf.mxu1  ;;  %v3507_v19 = vpop.f32.mrf.mxu2  ;;  %v11714_v61 = vld [vmem:[#allocation114_spill] sm:$0xff] }
 0x5c8   :  { %3816 = vmatpush.bf16.msrb.mxu0 %v11704_v34  ;;  %3842 = vmatpush.bf16.msrb.mxu2 %v11705_v3  ;;  %v11712_v34 = vld [vmem:[#allocation149_spill] sm:$0xff]  ;;  %v11713_v3 = vld [vmem:[#allocation128_spill] sm:$0xff] }
 0x5c9   :  { %3784 = vmatmul.bf16.vlgmr.msrb.gmra.mxu1 %v9067_v8  ;;  %3810 = vmatmul.bf16.vlgmr.msra.gmra.mxu3 %v9067_v8 }
 0x5ca   :  { %3828 = vmatpush.bf16.msra.mxu1 %v11708_v9  ;;  %3854 = vmatpush.bf16.msrb.mxu3 %v11709_v52  ;;  %v11715_v9 = vld [vmem:[#allocation139_spill] sm:$0xff]  ;;  %v3495_v52 = vadd.f32 %v3494_v17, %v3481_v53  ;;  %v11723_v53 = vld [vmem:[#allocation150_spill] sm:$0xff] }
 0x5cb   :  { %v11724_v17 = vld [vmem:[#allocation162_spill] sm:$0xff] }
 0x5cc   :  { %3817 = vmatpush.bf16.msrb.mxu0 %v11710_v43  ;;  %3843 = vmatpush.bf16.msrb.mxu2 %v11711_v55  ;;  %v3483_v15 = vpop.f32.mrf.mxu0  ;;  %v11719_v43 = vld [vmem:[#allocation144_spill] sm:$0xff]  ;;  %v11720_v55 = vld [vmem:[#allocation159_spill] sm:$0xff] }
 0x5ce   :  { %3829 = vmatpush.bf16.msra.mxu1 %v11712_v34  ;;  %3855 = vmatpush.bf16.msrb.mxu3 %v11713_v3  ;;  %v11721_v34 = vld [vmem:[#allocation140_spill] sm:$0xff]  ;;  %v3520_v3 = vpop.f32.mrf.mxu3  ;;  %v3496_v45 = vpop.f32.mrf.mxu1 }
 0x5cf   :  { %v3521_v60 = vadd.f32 %v3520_v3, %v3507_v19  ;;  %v11730_v19 = vld [vmem:[#allocation141_spill] sm:$0xff] }
 0x5d0   :  { %3818 = vmatpush.bf16.msrb.mxu0 %v11714_v61  ;;  %3844 = vmatpush.bf16.msrb.mxu2 %v11715_v9  ;;  %v3509_v61 = vpop.f32.mrf.mxu2  ;;  %v11751_v9 = vld [vmem:[#allocation223_spill] sm:$0xff] }
 0x5d2   :  { %3830 = vmatpush.bf16.msra.mxu1 %v11716_v12  ;;  %3856 = vmatpush.bf16.msrb.mxu3 %v11717_v28  ;;  %v11725_v28 = vld [vmem:[#allocation147_spill] sm:$0xff] }
 0x5d4   :  { %3819 = vmatpush.bf16.msrb.mxu0 %v11718_v41  ;;  %3845 = vmatpush.bf16.msrb.mxu2 %v11719_v43  ;;  %v3533_v15 = vpop.f32.mrf.mxu0  ;;  %v11726_v41 = vld [vmem:[#allocation137_spill] sm:$0xff] }
 0x5d5   :  { %v11727_v43 = vld [vmem:[#allocation153_spill] sm:$0xff] }
 0x5d6   :  { %3831 = vmatpush.bf16.msra.mxu1 %v11720_v55  ;;  %3857 = vmatpush.bf16.msrb.mxu3 %v11721_v34  ;;  %v11728_v55 = vld [vmem:[#allocation168_spill] sm:$0xff]  ;;  %v11729_v34 = vld [vmem:[#allocation151_spill] sm:$0xff]  ;;  %v3522_v3 = vpop.f32.mrf.mxu3  ;;  %v3546_v45 = vpop.f32.mrf.mxu1 }
 0x5d7   :  { %v11736_v3 = vld [vmem:[#allocation172_spill] sm:$0xff] }
 0x5d8   :  { %3820 = vmatpush.bf16.msrb.mxu0 %v11722_v44  ;;  %3846 = vmatpush.bf16.msrb.mxu2 %v11723_v53  ;;  %v3559_v61 = vpop.f32.mrf.mxu2  ;;  %v11731_v44 = vld [vmem:[#allocation160_spill] sm:$0xff]  ;;  %v3547_v53 = vadd.f32 %v3546_v45, %v3533_v15  ;;  %v11738_v15 = vld [vmem:[#allocation211_spill] sm:$0xff] }
 0x5d9   :  { %v11739_v45 = vld [vmem:[#allocation212_spill] sm:$0xff] }
 0x5da   :  { %3832 = vmatpush.bf16.msra.mxu1 %v11724_v17  ;;  %3858 = vmatpush.bf16.msrb.mxu3 %v11725_v28  ;;  %v11732_v17 = vld [vmem:[#allocation169_spill] sm:$0xff]  ;;  %v11733_v28 = vld [vmem:[#allocation154_spill] sm:$0xff] }
 0x5dc   :  { %3821 = vmatpush.bf16.msrb.mxu0 %v11726_v41  ;;  %3847 = vmatpush.bf16.msrb.mxu2 %v11727_v43  ;;  %v3535_v12 = vpop.f32.mrf.mxu0  ;;  %v11734_v41 = vld [vmem:[#allocation207_spill] sm:$0xff]  ;;  %v11735_v43 = vld [vmem:[#allocation208_spill] sm:$0xff] }
 0x5de   :  { %3833 = vmatpush.bf16.msra.mxu1 %v11728_v55  ;;  %3859 = vmatpush.bf16.msrb.mxu3 %v11729_v34  ;;  %v11737_v34 = vld [vmem:[#allocation161_spill] sm:$0xff] }
 0x5e0   :  { %3822 = vmatpush.bf16.msrb.mxu0 %v11730_v19  ;;  %3848 = vmatpush.bf16.msrb.mxu2 %v11731_v44  ;;  %v3572_v19 = vpop.f32.mrf.mxu3  ;;  %v3561_v12 = vpop.f32.mrf.mxu2 }
 0x5e1   :  { %v3573_v44 = vadd.f32 %v3572_v19, %v3559_v61  ;;  %v11744_v61 = vld [vmem:[#allocation203_spill] sm:$0xff]  ;;  %v11745_v19 = vld [vmem:[#allocation204_spill] sm:$0xff] }
 0x5e2   :  { %3834 = vmatpush.bf16.msra.mxu1 %v11732_v17  ;;  %3860 = vmatpush.bf16.msrb.mxu3 %v11733_v28  ;;  %v3548_v28 = vpop.f32.mrf.mxu1  ;;  %v11740_v17 = vld [vmem:[#allocation200_spill] sm:$0xff] }
 0x5e3   :  { %3823 = vmatmul.bf16.vlgmr.msrb.gmra.mxu0 %v9059_v21  ;;  %3849 = vmatmul.bf16.vlgmr.msrb.gmra.mxu2 %v9059_v21  ;;  %v11746_v28 = vld [vmem:[#allocation290_spill] sm:$0xff] }
 0x5e4   :  { %3913 = vmatpush.bf16.msra.mxu0 %v11734_v41  ;;  %3939 = vmatpush.bf16.msra.mxu2 %v11735_v43  ;;  %v11741_v41 = vld [vmem:[#allocation201_spill] sm:$0xff]  ;;  %v3585_v21 = vpop.f32.mrf.mxu0  ;;  %v11742_v43 = vld [vmem:[#allocation215_spill] sm:$0xff] }
 0x5e6   :  { %3835 = vmatpush.bf16.msra.mxu1 %v11736_v3  ;;  %3861 = vmatpush.bf16.msrb.mxu3 %v11737_v34  ;;  %v3586_v3 = vadd.f32 %v3585_v21, %v3495_v52  ;;  %v11743_v34 = vld [vmem:[#allocation216_spill] sm:$0xff]  ;;  %v11750_v52 = vld [vmem:[#allocation206_spill] sm:$0xff] }
 0x5e8   :  { %3914 = vmatpush.bf16.msra.mxu0 %v11738_v15  ;;  %3940 = vmatpush.bf16.msra.mxu2 %v11739_v45  ;;  %v3628_v12 = vadd.f32 %v3586_v3, %v11746_v28  ;;  %v3574_v45 = vpop.f32.mrf.mxu3  ;;  %v3611_v55 = vpop.f32.mrf.mxu2  ;;  %v11753_v3 = vld [vmem:[#allocation289_spill] sm:$0xff] }
 0x5e9   :  { %3836 = vmatmul.bf16.vlgmr.msra.gmra.mxu1 %v9067_v8  ;;  %3862 = vmatmul.bf16.vlgmr.msrb.gmra.mxu3 %v9067_v8  ;;  %v11749_v8 = vld [vmem:[#allocation205_spill] sm:$0xff] }
 0x5ea   :  { %3926 = vmatpush.bf16.msrb.mxu1 %v11740_v17  ;;  %3952 = vmatpush.bf16.msra.mxu3 %v11741_v41  ;;  %v11747_v17 = vld [vmem:[#allocation219_spill] sm:$0xff]  ;;  %v11748_v41 = vld [vmem:[#allocation220_spill] sm:$0xff]  ;;  %v3632_v15 = vmul.f32 0.5, %v3628_v12  ;;  %v3598_v21 = vpop.f32.mrf.mxu1  ;;  %v11755_v12 = vld [vmem:[#allocation210_spill] sm:$0xff] }
 0x5eb   :  { %v11756_v28 = vld [vmem:[#allocation229_spill] sm:$0xff] }
 0x5ec   :  { %3915 = vmatpush.bf16.msra.mxu0 %v11742_v43  ;;  %3941 = vmatpush.bf16.msra.mxu2 %v11743_v34  ;;  %v9265_v43 = vadd.f32 %v3611_v55, %v3547_v53  ;;  %v3599_v34 = vadd.f32 %v3598_v21, %v3521_v60  ;;  %6835 = vtanh.f32 %v3632_v15  ;;  %v11758_v53 = vld [vmem:[#allocation213_spill] sm:$0xff] }
 0x5ee   :  { %3927 = vmatpush.bf16.msrb.mxu1 %v11744_v61  ;;  %3953 = vmatpush.bf16.msra.mxu3 %v11745_v19  ;;  %v3587_v61 = vpop.f32.mrf.mxu0  ;;  %v11752_v19 = vld [vmem:[#allocation224_spill] sm:$0xff]  ;;  %v3629_v45 = vadd.f32 %v3599_v34, %v11753_v3  ;;  %v11760_v34 = vld [vmem:[#allocation291_spill] sm:$0xff] }
 0x5ef   :  { %v11759_v61 = vld [vmem:[#allocation214_spill] sm:$0xff] }
 0x5f0   :  { %3916 = vmatpush.bf16.msra.mxu0 %v11747_v17  ;;  %3942 = vmatpush.bf16.msra.mxu2 %v11748_v41  ;;  %v11754_v17 = vld [vmem:[#allocation209_spill] sm:$0xff]  ;;  %v3633_v41 = vmul.f32 0.5, %v3629_v45  ;;  %v3613_v55 = vpop.f32.mrf.mxu2 }
 0x5f1   :  { %v11763_v45 = vld [vmem:[#allocation217_spill] sm:$0xff] }
 0x5f2   :  { %3928 = vmatpush.bf16.msrb.mxu1 %v11749_v8  ;;  %3954 = vmatpush.bf16.msra.mxu3 %v11750_v52  ;;  %v3624_v8 = vpop.f32.mrf.mxu3  ;;  %v11757_v52 = vld [vmem:[#allocation230_spill] sm:$0xff]  ;;  %6837 = vtanh.f32 %v3633_v41  ;;  %v3600_v15 = vpop.f32.mrf.mxu1 }
 0x5f3   :  { %v3625_v60 = vadd.f32 %v3624_v8, %v3573_v44  ;;  %v6836_v21 = vpop.eup %6835  ;;  %v11767_v15 = vld [vmem:[#allocation239_spill] sm:$0xff] }
 0x5f4   :  { %3917 = vmatpush.bf16.msra.mxu0 %v11751_v9  ;;  %3943 = vmatpush.bf16.msra.mxu2 %v11752_v19  ;;  %v3638_v41 = vmul.f32 0.5, %v6836_v21  ;;  %v11793_v19 = vld [vmem:[#allocation245_spill] sm:$0xff] }
 0x5f5   :  { %v3631_v3 = vadd.f32 %v3625_v60, %v11760_v34  ;;  %v11768_v60 = vld [vmem:[#allocation240_spill] sm:$0xff] }
 0x5f6   :  { %3929 = vmatpush.bf16.msrb.mxu1 %v11754_v17  ;;  %3955 = vmatpush.bf16.msra.mxu3 %v11755_v12  ;;  %v11761_v17 = vld [vmem:[#allocation233_spill] sm:$0xff]  ;;  %v11762_v12 = vld [vmem:[#allocation234_spill] sm:$0xff] }
 0x5f7   :  { %6839 = vtanh.f32 %v3631_v3  ;;  %v11770_v3 = vld [vmem:[#allocation222_spill] sm:$0xff] }
 0x5f8   :  { %3918 = vmatpush.bf16.msra.mxu0 %v11756_v28  ;;  %3944 = vmatpush.bf16.msra.mxu2 %v11757_v52  ;;  %v11764_v28 = vld [vmem:[#allocation218_spill] sm:$0xff]  ;;  %v6838_v44 = vpop.eup %6837  ;;  %v11790_v52 = vld [vmem:[#allocation259_spill] sm:$0xff] }
 0x5f9   :  { %v3639_v8 = vmul.f32 0.5, %v6838_v44  ;;  %v11771_v44 = vld [vmem:[#allocation243_spill] sm:$0xff] }
 0x5fa   :  { %3930 = vmatpush.bf16.msrb.mxu1 %v11758_v53  ;;  %3956 = vmatpush.bf16.msra.mxu3 %v11759_v61  ;;  %v3626_v55 = vpop.f32.mrf.mxu3  ;;  %v11765_v53 = vld [vmem:[#allocation237_spill] sm:$0xff]  ;;  %v11766_v61 = vld [vmem:[#allocation238_spill] sm:$0xff] }
 0x5fb   :  { %v3642_v34 = vadd.f32 0.5, %v3639_v8  ;;  %v11772_v55 = vld [vmem:[#allocation244_spill] sm:$0xff] }
 0x5fc   :  { %3919 = vmatpush.bf16.msra.mxu0 %v11761_v17  ;;  %3945 = vmatpush.bf16.msra.mxu2 %v11762_v12  ;;  %v3641_v17 = vadd.f32 0.5, %v3638_v41  ;;  %v11769_v12 = vld [vmem:[#allocation221_spill] sm:$0xff]  ;;  %v11775_v41 = vld [vmem:[#allocation227_spill] sm:$0xff]  ;;  %v11776_v8 = vld [vmem:[#allocation228_spill] sm:$0xff] }
 0x5fd   :  { %v3645_v21 = vmul.f32 %v3642_v34, %v9003_v2  ;;  %v11779_v2 = vld [vmem:[#allocation231_spill] sm:$0xff] }
 0x5fe   :  { %3931 = vmatpush.bf16.msrb.mxu1 %v11763_v45  ;;  %3957 = vmatpush.bf16.msra.mxu3 %v11764_v28  ;;  %v6840_v45 = vpop.eup %6839  ;;  %v11781_v34 = vld [vmem:[#allocation251_spill] sm:$0xff] }
 0x5ff   :  { %v3646_v28 = vmul.f32 %v6840_v45, %v3641_v17  ;;  %v11780_v17 = vld [vmem:[#allocation232_spill] sm:$0xff] }
 0x600   :  { %3920 = vmatpush.bf16.msra.mxu0 %v11765_v53  ;;  %3946 = vmatpush.bf16.msra.mxu2 %v11766_v61  ;;  %v11773_v61 = vld [vmem:[#allocation225_spill] sm:$0xff] }
 0x601   :  { %v9290_v53 = vadd.f32 %v3646_v28, %v3645_v21  ;;  %v11782_v28 = vld [vmem:[#allocation252_spill] sm:$0xff] }
 0x602   :  { %3932 = vmatpush.bf16.msrb.mxu1 %v11769_v12  ;;  %3958 = vmatpush.bf16.msra.mxu3 %v11770_v3  ;;  %v3668_v12 = vpop.f32.mrf.mxu0  ;;  %v11777_v3 = vld [vmem:[#allocation247_spill] sm:$0xff] }
 0x604   :  { %3965 = vmatpush.bf16.msrb.mxu0 %v11767_v15  ;;  %3991 = vmatpush.bf16.msrb.mxu2 %v11768_v60  ;;  %v11774_v15 = vld [vmem:[#allocation226_spill] sm:$0xff]  ;;  %v11778_v60 = vld [vmem:[#allocation248_spill] sm:$0xff] }
 0x606   :  { %3933 = vmatpush.bf16.msrb.mxu1 %v11773_v61  ;;  %3959 = vmatpush.bf16.msra.mxu3 %v11774_v15  ;;  %v3681_v45 = vpop.f32.mrf.mxu1  ;;  %v3694_v21 = vpop.f32.mrf.mxu2  ;;  %v11783_v61 = vld [vmem:[#allocation235_spill] sm:$0xff] }
 0x607   :  { %v3682_v15 = vadd.f32 %v3681_v45, %v3668_v12  ;;  %v11791_v12 = vld [vmem:[#allocation260_spill] sm:$0xff] }
 0x608   :  { %3966 = vmatpush.bf16.msrb.mxu0 %v11771_v44  ;;  %3992 = vmatpush.bf16.msrb.mxu2 %v11772_v55  ;;  %v11785_v55 = vld [vmem:[#allocation126_spill] sm:$0xff]  ;;  %v11786_v44 = vld [vmem:[#allocation255_spill] sm:$0xff] }
 0x60a   :  { %3978 = vmatpush.bf16.msra.mxu1 %v11775_v41  ;;  %4004 = vmatpush.bf16.msrb.mxu3 %v11776_v8  ;;  %v11784_v41 = vld [vmem:[#allocation236_spill] sm:$0xff]  ;;  %v3670_v8 = vpop.f32.mrf.mxu0 }
 0x60c   :  { %3967 = vmatpush.bf16.msrb.mxu0 %v11777_v3  ;;  %3993 = vmatpush.bf16.msrb.mxu2 %v11778_v60  ;;  %v3867_v3 = vadd.f32 %v3682_v15, %v11785_v55  ;;  %v11787_v60 = vld [vmem:[#allocation256_spill] sm:$0xff]  ;;  %v11794_v15 = vld [vmem:[#allocation246_spill] sm:$0xff]  ;;  %v11795_v55 = vld [vmem:[#allocation261_spill] sm:$0xff] }
 0x60e   :  { %3979 = vmatpush.bf16.msra.mxu1 %v11779_v2  ;;  %4005 = vmatpush.bf16.msrb.mxu3 %v11780_v17  ;;  %v11788_v2 = vld [vmem:[#allocation241_spill] sm:$0xff]  ;;  %v11789_v17 = vld [vmem:[#allocation242_spill] sm:$0xff]  ;;  %v3683_v45 = vpop.f32.mrf.mxu1  ;;  %v3875_v39 = vmul.f32 0.5, %v3867_v3 }
 0x60f   :  { %v11804_v45 = vld [vmem:[#allocation258_spill] sm:$0xff] }
 0x610   :  { %3968 = vmatpush.bf16.msrb.mxu0 %v11781_v34  ;;  %3994 = vmatpush.bf16.msrb.mxu2 %v11782_v28  ;;  %v3707_v34 = vpop.f32.mrf.mxu3 }
 0x611   :  { %v3708_v28 = vadd.f32 %v3707_v34, %v3694_v21  ;;  %v11799_v21 = vld [vmem:[#allocation263_spill] sm:$0xff] }
 0x612   :  { %3980 = vmatpush.bf16.msra.mxu1 %v11783_v61  ;;  %4006 = vmatpush.bf16.msrb.mxu3 %v11784_v41  ;;  %v3696_v61 = vpop.f32.mrf.mxu2  ;;  %v11792_v41 = vld [vmem:[#allocation148_spill] sm:$0xff] }
 0x613   :  { %v3868_v8 = vadd.f32 %v3708_v28, %v11792_v41  ;;  %v11801_v61 = vld [vmem:[#allocation253_spill] sm:$0xff]  ;;  %v11802_v41 = vld [vmem:[#allocation254_spill] sm:$0xff] }
 0x614   :  { %3969 = vmatpush.bf16.msrb.mxu0 %v11786_v44  ;;  %3995 = vmatpush.bf16.msrb.mxu2 %v11787_v60  ;;  %v11796_v60 = vld [vmem:[#allocation262_spill] sm:$0xff]  ;;  %v11803_v28 = vld [vmem:[#allocation257_spill] sm:$0xff] }
 0x615   :  { %v3876_v26 = vmul.f32 0.5, %v3868_v8 }
 0x616   :  { %3981 = vmatpush.bf16.msra.mxu1 %v11788_v2  ;;  %4007 = vmatpush.bf16.msrb.mxu3 %v11789_v17  ;;  %v11797_v2 = vld [vmem:[#allocation249_spill] sm:$0xff]  ;;  %v11798_v17 = vld [vmem:[#allocation250_spill] sm:$0xff] }
 0x618   :  { %3970 = vmatpush.bf16.msrb.mxu0 %v11790_v52  ;;  %3996 = vmatpush.bf16.msrb.mxu2 %v11791_v12  ;;  %v3709_v34 = vpop.f32.mrf.mxu3  ;;  %v11800_v12 = vld [vmem:[#allocation264_spill] sm:$0xff] }
 0x61a   :  { %3982 = vmatpush.bf16.msra.mxu1 %v11793_v19  ;;  %4008 = vmatpush.bf16.msrb.mxu3 %v11794_v15 }
 0x61c   :  { %3971 = vmatpush.bf16.msrb.mxu0 %v11795_v55  ;;  %3997 = vmatpush.bf16.msrb.mxu2 %v11796_v60 }
 0x61e   :  { %3983 = vmatpush.bf16.msra.mxu1 %v11797_v2  ;;  %4009 = vmatpush.bf16.msrb.mxu3 %v11798_v17 }
 0x620   :  { %3972 = vmatpush.bf16.msrb.mxu0 %v11799_v21  ;;  %3998 = vmatpush.bf16.msrb.mxu2 %v11800_v12  ;;  %v3720_v55 = vpop.f32.mrf.mxu0 }
 0x622   :  { %3984 = vmatpush.bf16.msra.mxu1 %v11801_v61  ;;  %4010 = vmatpush.bf16.msrb.mxu3 %v11802_v41 }
 0x626   :  { %3985 = vmatpush.bf16.msra.mxu1 %v11803_v28  ;;  %4011 = vmatpush.bf16.msrb.mxu3 %v11804_v45  ;;  %v3733_v15 = vpop.f32.mrf.mxu1  ;;  %v3746_v60 = vpop.f32.mrf.mxu2  ;;  %v11805_v28 = vld [vmem:[#allocation133_spill] sm:$0xff] }
 0x627   :  { %v3734_v41 = vadd.f32 %v3733_v15, %v3720_v55 }
 0x628   :  { %v3722_v19 = vpop.f32.mrf.mxu0 }
 0x629   :  { %v3869_v62 = vadd.f32 %v3734_v41, %v11805_v28 }
 0x62b   :  { %v3877_v31 = vmul.f32 0.5, %v3869_v62  ;;  %v11808_v62 = vld [vmem:[#allocation187_spill] sm:$0xff] }
 0x62c   :  { %v3759_v2 = vpop.f32.mrf.mxu3 }
 0x62d   :  { %v3760_v45 = vadd.f32 %v3759_v2, %v3746_v60  ;;  %6841 = vtanh.f32 %v3877_v31 }
 0x62e   :  { %v3735_v52 = vpop.f32.mrf.mxu1  ;;  %v3748_v17 = vpop.f32.mrf.mxu2  ;;  %6843 = vtanh.f32 %v3875_v39  ;;  %v11809_v39 = vld [vmem:[#allocation193_spill] sm:$0xff] }
 0x62f   :  { %v3870_v19 = vadd.f32 %v3760_v45, %v11806_v37  ;;  %v11810_v45 = vld [vmem:[#allocation188_spill] sm:$0xff] }
 0x634   :  { %v3761_v34 = vpop.f32.mrf.mxu3 }
 0x635   :  { %v3878_v34 = vmul.f32 0.5, %v3870_v19 }
 0x637   :  { %6845 = vtanh.f32 %v3878_v34 }
 0x638   :  { %6847 = vtanh.f32 %v3876_v26 }
 0x640   :  { %v3772_v44 = vpop.f32.mrf.mxu0 }
 0x646   :  { %v3785_v21 = vpop.f32.mrf.mxu1  ;;  %v3798_v9 = vpop.f32.mrf.mxu2 }
 0x647   :  { %v3786_v17 = vadd.f32 %v3785_v21, %v3772_v44 }
 0x648   :  { %v3774_v12 = vpop.f32.mrf.mxu0 }
 0x649   :  { %v3871_v12 = vadd.f32 %v3786_v17, %v11807_v29 }
 0x64b   :  { %v3879_v31 = vmul.f32 0.5, %v3871_v12 }
 0x64c   :  { %v3811_v4 = vpop.f32.mrf.mxu3 }
 0x64d   :  { %v3812_v15 = vadd.f32 %v3811_v4, %v3798_v9 }
 0x64e   :  { %v3787_v61 = vpop.f32.mrf.mxu1  ;;  %v3800_v23 = vpop.f32.mrf.mxu2 }
 0x64f   :  { %v6842_v61 = vpop.eup %6841  ;;  %v3872_v2 = vadd.f32 %v3812_v15, %v11809_v39 }
 0x650   :  { %v6844_v55 = vpop.eup %6843  ;;  %v3889_v37 = vmul.f32 0.5, %v6842_v61 }
 0x651   :  { %v3887_v44 = vmul.f32 0.5, %v6844_v55  ;;  %v6846_v21 = vpop.eup %6845 }
 0x652   :  { %v3895_v41 = vadd.f32 0.5, %v3889_v37  ;;  %v3890_v19 = vmul.f32 0.5, %v6846_v21 }
 0x653   :  { %v3893_v26 = vadd.f32 0.5, %v3887_v44 }
 0x654   :  { %v3813_v38 = vpop.f32.mrf.mxu3  ;;  %v3901_v12 = vmul.f32 %v3895_v41, %v9052_v30  ;;  %v3896_v15 = vadd.f32 0.5, %v3890_v19 }
 0x656   :  { %v3902_v37 = vmul.f32 %v3896_v15, %v9056_v13  ;;  %v11815_v15 = vld [vmem:[#allocation288_spill] sm:$0xff] }
 0x660   :  { %v3824_v52 = vpop.f32.mrf.mxu0 }
 0x666   :  { %v3837_v16 = vpop.f32.mrf.mxu1  ;;  %v3850_v38 = vpop.f32.mrf.mxu2 }
 0x667   :  { %v3838_v23 = vadd.f32 %v3837_v16, %v3824_v52  ;;  %v6848_v16 = vpop.eup %6847  ;;  %v3880_v52 = vmul.f32 0.5, %v3872_v2 }
 0x668   :  { %v3826_v3 = vpop.f32.mrf.mxu0  ;;  %v3888_v34 = vmul.f32 0.5, %v6848_v16  ;;  %v3630_v16 = vadd.f32 %v9265_v43, %v8493_v32 }
 0x669   :  { %v3873_v60 = vadd.f32 %v3838_v23, %v11808_v62 }
 0x66a   :  { %v3894_v62 = vadd.f32 0.5, %v3888_v34  ;;  %v11811_v34 = vld [vmem:[#allocation286_spill] sm:$0xff] }
 0x66b   :  { %6849 = vtanh.f32 %v3873_v60 }
 0x66c   :  { %v3863_v8 = vpop.f32.mrf.mxu3  ;;  %6851 = vtanh.f32 %v3879_v31 }
 0x66d   :  { %v3864_v29 = vadd.f32 %v3863_v8, %v3850_v38 }
 0x66e   :  { %v3839_v28 = vpop.f32.mrf.mxu1  ;;  %v3852_v4 = vpop.f32.mrf.mxu2 }
 0x66f   :  { %v3874_v9 = vadd.f32 %v3864_v29, %v11810_v45 }
 0x671   :  { %v6850_v17 = vpop.eup %6849  ;;  %6853 = vtanh.f32 %v3874_v9  ;;  %v3634_v9 = vmul.f32 0.5, %v3630_v16  ;;  %v11830_v16 = vld [vmem:[#allocation31_spill] sm:$0xff] }
 0x672   :  { %v3903_v61 = vmul.f32 %v6850_v17, %v3893_v26  ;;  %v6852_v23 = vpop.eup %6851  ;;  %6855 = vtanh.f32 %v3880_v52 }
 0x673   :  { %v3891_v3 = vmul.f32 0.5, %v6852_v23  ;;  %v11814_v23 = vld [vmem:[#allocation287_spill] sm:$0xff] }
 0x674   :  { %v9331_v38 = vadd.f32 %v3903_v61, %v3901_v12  ;;  %v3865_v55 = vpop.f32.mrf.mxu3  ;;  %v11812_v12 = vld [vmem:[#allocation16_spill] sm:$0xff] }
 0x675   :  { %v3897_v2 = vadd.f32 0.5, %v3891_v3  ;;  %v11813_v61 = vld [vmem:[#allocation12_spill] sm:$0xff]  ;;  %v11819_v3 = vld [vmem:[#allocation14_spill] sm:$0xff] }
 0x676   :  { %6857 = vtanh.f32 %v9331_v38  ;;  %v11816_v55 = vld [vmem:[#allocation20_spill] sm:$0xff] }
 0x677   :  { %v6854_v60 = vpop.eup %6853 }
 0x678   :  { %v3904_v31 = vmul.f32 %v6854_v60, %v3894_v62  ;;  %v6856_v44 = vpop.eup %6855  ;;  %v11817_v62 = vld [vmem:[#allocation11_spill] sm:$0xff] }
 0x679   :  { %v3892_v8 = vmul.f32 0.5, %v6856_v44  ;;  %v11818_v60 = vld [vmem:[#allocation19_spill] sm:$0xff]  ;;  %v11822_v44 = vld [vmem:[#allocation24_spill] sm:$0xff] }
 0x67a   :  { %v9335_v39 = vadd.f32 %v3904_v31, %v3902_v37  ;;  %v11820_v37 = vld [vmem:[#allocation23_spill] sm:$0xff]  ;;  %v11821_v31 = vld [vmem:[#allocation13_spill] sm:$0xff] }
 0x67b   :  { %v3898_v41 = vadd.f32 0.5, %v3892_v8  ;;  %v11825_v8 = vld [vmem:[#allocation15_spill] sm:$0xff] }
 0x67c   :  { %v6858_v30 = vpop.eup %6857  ;;  %6859 = vtanh.f32 %v9335_v39 }
 0x67d   :  { %v3909_v21 = vmul.f32 %v6858_v30, %v3897_v2  ;;  %6861 = vtanh.f32 %v3634_v9  ;;  %v11823_v2 = vld [vmem:[#allocation17_spill] sm:$0xff]  ;;  %v11824_v30 = vld [vmem:[#allocation27_spill] sm:$0xff] }
 0x67e   :  { %6863 = vtanh.f32 %v9290_v53  ;;  %v11831_v9 = vld [vmem:[#allocation25_spill] sm:$0xff] }
 0x67f   :  { %v9338_v29 = vpack.c.bf16 %v3909_v21, %v3909_v21  ;;  %v11826_v21 = vld [vmem:[#allocation28_spill] sm:$0xff] }
 0x681   :  { %3921 = vmatmul.bf16.vlgmr.msra.gmra.mxu0 %v9338_v29  ;;  %3947 = vmatmul.bf16.vlgmr.msra.gmra.mxu2 %v9338_v29 }
 0x682   :  { %v6860_v28 = vpop.eup %6859  ;;  %4017 = vmatpush.bf16.msra.mxu0 %v11191_v58  ;;  %4043 = vmatpush.bf16.msra.mxu2 %v11192_v22 }
 0x683   :  { %v3910_v13 = vmul.f32 %v6860_v28, %v3898_v41  ;;  %v6862_v43 = vpop.eup %6861  ;;  %v11827_v41 = vld [vmem:[#allocation21_spill] sm:$0xff]  ;;  %v11828_v28 = vld [vmem:[#allocation32_spill] sm:$0xff] }
 0x684   :  { %v3640_v4 = vmul.f32 0.5, %v6862_v43  ;;  %v6864_v26 = vpop.eup %6863  ;;  %v11832_v43 = vld [vmem:[#allocation38_spill] sm:$0xff] }
 0x685   :  { %v9346_v45 = vpack.c.bf16 %v3910_v13, %v3910_v13  ;;  %v11829_v13 = vld [vmem:[#allocation18_spill] sm:$0xff] }
 0x686   :  { %4018 = vmatpush.bf16.msra.mxu0 %v11193_v7  ;;  %4044 = vmatpush.bf16.msra.mxu2 %v11194_v47  ;;  %v3643_v19 = vadd.f32 0.5, %v3640_v4  ;;  %v11833_v4 = vld [vmem:[#allocation22_spill] sm:$0xff] }
 0x687   :  { %3934 = vmatmul.bf16.vlgmr.msrb.gmra.mxu1 %v9346_v45  ;;  %3960 = vmatmul.bf16.vlgmr.msra.gmra.mxu3 %v9346_v45 }
 0x688   :  { %4030 = vmatpush.bf16.msrb.mxu1 %v11195_v56  ;;  %4056 = vmatpush.bf16.msra.mxu3 %v11196_v14  ;;  %v3649_v52 = vmul.f32 %v6864_v26, %v3643_v19  ;;  %v11834_v26 = vld [vmem:[#allocation37_spill] sm:$0xff] }
 0x689   :  { %v11835_v19 = vld [vmem:[#allocation29_spill] sm:$0xff] }
 0x68a   :  { %4019 = vmatpush.bf16.msra.mxu0 %v11197_v54  ;;  %4045 = vmatpush.bf16.msra.mxu2 %v11198_v42  ;;  %v3650_v17 = vpack.c.bf16 %v3649_v52, %v3649_v52  ;;  %v11836_v52 = vld [vmem:[#allocation42_spill] sm:$0xff] }
 0x68c   :  { %4031 = vmatpush.bf16.msrb.mxu1 %v11199_v33  ;;  %4057 = vmatpush.bf16.msra.mxu3 %v11200_v18 }
 0x68e   :  { %4020 = vmatpush.bf16.msra.mxu0 %v8184_v48  ;;  %4046 = vmatpush.bf16.msra.mxu2 %v8186_v24 }
 0x690   :  { %4032 = vmatpush.bf16.msrb.mxu1 %v11201_v25  ;;  %4058 = vmatpush.bf16.msra.mxu3 %v11202_v20 }
 0x691   :  { %3973 = vmatmul.bf16.vlgmr.msrb.gmra.mxu0 %v9338_v29  ;;  %3999 = vmatmul.bf16.vlgmr.msrb.gmra.mxu2 %v9338_v29 }
 0x692   :  { %4021 = vmatpush.bf16.msra.mxu0 %v8196_v35  ;;  %4047 = vmatpush.bf16.msra.mxu2 %v8198_v57 }
 0x694   :  { %4033 = vmatpush.bf16.msrb.mxu1 %v11203_v0  ;;  %4059 = vmatpush.bf16.msra.mxu3 %v11204_v46 }
 0x696   :  { %4022 = vmatpush.bf16.msra.mxu0 %v8210_v1  ;;  %4048 = vmatpush.bf16.msra.mxu2 %v8212_v59 }
 0x697   :  { %3986 = vmatmul.bf16.vlgmr.msra.gmra.mxu1 %v9346_v45  ;;  %4012 = vmatmul.bf16.vlgmr.msrb.gmra.mxu3 %v9346_v45 }
 0x698   :  { %4034 = vmatpush.bf16.msrb.mxu1 %v11205_v40  ;;  %4060 = vmatpush.bf16.msra.mxu3 %v11206_v49 }
 0x69a   :  { %4023 = vmatpush.bf16.msra.mxu0 %v8220_v11  ;;  %4049 = vmatpush.bf16.msra.mxu2 %v8222_v10 }
 0x69c   :  { %4035 = vmatpush.bf16.msrb.mxu1 %v11207_v63  ;;  %4061 = vmatpush.bf16.msra.mxu3 %v11208_v36 }
 0x69e   :  { %4024 = vmatpush.bf16.msra.mxu0 %v8230_v6  ;;  %4050 = vmatpush.bf16.msra.mxu2 %v8232_v27 }
 0x6a0   :  { %4036 = vmatpush.bf16.msrb.mxu1 %v11606_v50  ;;  %4062 = vmatpush.bf16.msra.mxu3 %v11811_v34 }
 0x6a1   :  { %4025 = vmatmul.bf16.vlgmr.msra.gmra.mxu0 %v3650_v17  ;;  %4051 = vmatmul.bf16.vlgmr.msra.gmra.mxu2 %v3650_v17 }
 0x6a2   :  { %4100 = vmatpush.bf16.msrb.mxu0 %v7261_v5  ;;  %4126 = vmatpush.bf16.msrb.mxu2 %v7239_v51 }
 0x6a4   :  { %4037 = vmatpush.bf16.msrb.mxu1 %v11814_v23  ;;  %4063 = vmatpush.bf16.msra.mxu3 %v11815_v15  ;;  %v12013_v23 = vld [vmem:[#allocation102_spill] sm:$0xff] }
 0x6a6   :  { %4101 = vmatpush.bf16.msrb.mxu0 %v11812_v12  ;;  %4127 = vmatpush.bf16.msrb.mxu2 %v11813_v61 }
 0x6a7   :  { %4038 = vmatmul.bf16.vlgmr.msrb.gmra.mxu1 %v3650_v17  ;;  %4064 = vmatmul.bf16.vlgmr.msra.gmra.mxu3 %v3650_v17  ;;  %v11837_v17 = vld [vmem:[#allocation26_spill] sm:$0xff] }
 0x6a8   :  { %4113 = vmatpush.bf16.msra.mxu1 %v11816_v55  ;;  %4139 = vmatpush.bf16.msrb.mxu3 %v11817_v62 }
 0x6aa   :  { %4102 = vmatpush.bf16.msrb.mxu0 %v11818_v60  ;;  %4128 = vmatpush.bf16.msrb.mxu2 %v11819_v3  ;;  %v12011_v60 = vld [vmem:[#allocation101_spill] sm:$0xff] }
 0x6ac   :  { %4114 = vmatpush.bf16.msra.mxu1 %v11820_v37  ;;  %4140 = vmatpush.bf16.msrb.mxu3 %v11821_v31  ;;  %v11926_v31 = vld [vmem:[#allocation129_spill] sm:$0xff] }
 0x6ae   :  { %4103 = vmatpush.bf16.msrb.mxu0 %v11822_v44  ;;  %4129 = vmatpush.bf16.msrb.mxu2 %v11823_v2 }
 0x6b0   :  { %4115 = vmatpush.bf16.msra.mxu1 %v11824_v30  ;;  %4141 = vmatpush.bf16.msrb.mxu3 %v11825_v8  ;;  %v11922_v30 = vld [vmem:[#allocation123_spill] sm:$0xff] }
 0x6b2   :  { %4104 = vmatpush.bf16.msrb.mxu0 %v11826_v21  ;;  %4130 = vmatpush.bf16.msrb.mxu2 %v11827_v41  ;;  %v11838_v41 = vld [vmem:[#allocation41_spill] sm:$0xff]  ;;  %v11921_v21 = vld [vmem:[#allocation132_spill] sm:$0xff] }
 0x6b4   :  { %4116 = vmatpush.bf16.msra.mxu1 %v11828_v28  ;;  %4142 = vmatpush.bf16.msrb.mxu3 %v11829_v13  ;;  %v11839_v28 = vld [vmem:[#allocation33_spill] sm:$0xff]  ;;  %v11840_v13 = vld [vmem:[#allocation43_spill] sm:$0xff] }
 0x6b6   :  { %4105 = vmatpush.bf16.msrb.mxu0 %v11830_v16  ;;  %4131 = vmatpush.bf16.msrb.mxu2 %v11831_v9  ;;  %v11841_v16 = vld [vmem:[#allocation35_spill] sm:$0xff]  ;;  %v11842_v9 = vld [vmem:[#allocation46_spill] sm:$0xff] }
 0x6b8   :  { %4117 = vmatpush.bf16.msra.mxu1 %v11832_v43  ;;  %4143 = vmatpush.bf16.msrb.mxu3 %v11833_v4  ;;  %v11843_v43 = vld [vmem:[#allocation30_spill] sm:$0xff]  ;;  %v11860_v4 = vld [vmem:[#allocation64_spill] sm:$0xff] }
 0x6ba   :  { %4106 = vmatpush.bf16.msrb.mxu0 %v11834_v26  ;;  %4132 = vmatpush.bf16.msrb.mxu2 %v11835_v19  ;;  %v11844_v19 = vld [vmem:[#allocation47_spill] sm:$0xff]  ;;  %v11859_v26 = vld [vmem:[#allocation53_spill] sm:$0xff] }
 0x6bc   :  { %4118 = vmatpush.bf16.msra.mxu1 %v11836_v52  ;;  %4144 = vmatpush.bf16.msrb.mxu3 %v11837_v17  ;;  %v11845_v52 = vld [vmem:[#allocation39_spill] sm:$0xff]  ;;  %v11846_v17 = vld [vmem:[#allocation50_spill] sm:$0xff] }
 0x6be   :  { %4107 = vmatpush.bf16.msrb.mxu0 %v11838_v41  ;;  %4133 = vmatpush.bf16.msrb.mxu2 %v11839_v28  ;;  %v11847_v41 = vld [vmem:[#allocation34_spill] sm:$0xff]  ;;  %v11848_v28 = vld [vmem:[#allocation52_spill] sm:$0xff] }
 0x6c0   :  { %4119 = vmatpush.bf16.msra.mxu1 %v11842_v9  ;;  %4145 = vmatpush.bf16.msrb.mxu3 %v11843_v43  ;;  %v11850_v43 = vld [vmem:[#allocation51_spill] sm:$0xff]  ;;  %v11851_v9 = vld [vmem:[#allocation44_spill] sm:$0xff] }
 0x6c1   :  { %4108 = vmatmul.bf16.vlgmr.msrb.gmra.mxu0 %v9338_v29  ;;  %4134 = vmatmul.bf16.vlgmr.msrb.gmra.mxu2 %v9338_v29 }
 0x6c2   :  { %4152 = vmatpush.bf16.msra.mxu0 %v11840_v13  ;;  %4178 = vmatpush.bf16.msra.mxu2 %v11841_v16  ;;  %v11849_v13 = vld [vmem:[#allocation36_spill] sm:$0xff] }
 0x6c3   :  { %v11852_v16 = vld [vmem:[#allocation56_spill] sm:$0xff] }
 0x6c4   :  { %4120 = vmatpush.bf16.msra.mxu1 %v11846_v17  ;;  %4146 = vmatpush.bf16.msrb.mxu3 %v11847_v41  ;;  %v11855_v17 = vld [vmem:[#allocation48_spill] sm:$0xff] }
 0x6c5   :  { %v11856_v41 = vld [vmem:[#allocation60_spill] sm:$0xff] }
 0x6c6   :  { %4153 = vmatpush.bf16.msra.mxu0 %v11844_v19  ;;  %4179 = vmatpush.bf16.msra.mxu2 %v11845_v52  ;;  %v11853_v19 = vld [vmem:[#allocation40_spill] sm:$0xff]  ;;  %v11854_v52 = vld [vmem:[#allocation55_spill] sm:$0xff] }
 0x6c7   :  { %4121 = vmatmul.bf16.vlgmr.msra.gmra.mxu1 %v9346_v45  ;;  %4147 = vmatmul.bf16.vlgmr.msrb.gmra.mxu3 %v9346_v45 }
 0x6c8   :  { %4165 = vmatpush.bf16.msrb.mxu1 %v11848_v28  ;;  %4191 = vmatpush.bf16.msra.mxu3 %v11849_v13  ;;  %v11857_v28 = vld [vmem:[#allocation45_spill] sm:$0xff]  ;;  %v11858_v13 = vld [vmem:[#allocation59_spill] sm:$0xff] }
 0x6ca   :  { %4154 = vmatpush.bf16.msra.mxu0 %v11850_v43  ;;  %4180 = vmatpush.bf16.msra.mxu2 %v11851_v9  ;;  %v11861_v43 = vld [vmem:[#allocation49_spill] sm:$0xff]  ;;  %v11862_v9 = vld [vmem:[#allocation63_spill] sm:$0xff] }
 0x6cc   :  { %4166 = vmatpush.bf16.msrb.mxu1 %v11852_v16  ;;  %4192 = vmatpush.bf16.msra.mxu3 %v11853_v19  ;;  %v11863_v16 = vld [vmem:[#allocation57_spill] sm:$0xff]  ;;  %v11864_v19 = vld [vmem:[#allocation68_spill] sm:$0xff] }
 0x6ce   :  { %4155 = vmatpush.bf16.msra.mxu0 %v11854_v52  ;;  %4181 = vmatpush.bf16.msra.mxu2 %v11855_v17  ;;  %v11865_v52 = vld [vmem:[#allocation54_spill] sm:$0xff]  ;;  %v11866_v17 = vld [vmem:[#allocation67_spill] sm:$0xff] }
 0x6d0   :  { %4167 = vmatpush.bf16.msrb.mxu1 %v11856_v41  ;;  %4193 = vmatpush.bf16.msra.mxu3 %v11857_v28  ;;  %v11867_v41 = vld [vmem:[#allocation61_spill] sm:$0xff]  ;;  %v11868_v28 = vld [vmem:[#allocation70_spill] sm:$0xff] }
 0x6d2   :  { %4156 = vmatpush.bf16.msra.mxu0 %v11858_v13  ;;  %4182 = vmatpush.bf16.msra.mxu2 %v11859_v26  ;;  %v11869_v13 = vld [vmem:[#allocation58_spill] sm:$0xff]  ;;  %v11870_v26 = vld [vmem:[#allocation69_spill] sm:$0xff] }
 0x6d4   :  { %4168 = vmatpush.bf16.msrb.mxu1 %v11860_v4  ;;  %4194 = vmatpush.bf16.msra.mxu3 %v11861_v43  ;;  %v11871_v4 = vld [vmem:[#allocation65_spill] sm:$0xff]  ;;  %v11872_v43 = vld [vmem:[#allocation72_spill] sm:$0xff] }
 0x6d6   :  { %4157 = vmatpush.bf16.msra.mxu0 %v11862_v9  ;;  %4183 = vmatpush.bf16.msra.mxu2 %v11863_v16  ;;  %v11873_v9 = vld [vmem:[#allocation79_spill] sm:$0xff] }
 0x6d7   :  { %v11874_v16 = vld [vmem:[#allocation71_spill] sm:$0xff] }
 0x6d8   :  { %4169 = vmatpush.bf16.msrb.mxu1 %v11864_v19  ;;  %4195 = vmatpush.bf16.msra.mxu3 %v11865_v52  ;;  %v11875_v19 = vld [vmem:[#allocation62_spill] sm:$0xff]  ;;  %v11892_v52 = vld [vmem:[#allocation115_spill] sm:$0xff] }
 0x6da   :  { %4158 = vmatpush.bf16.msra.mxu0 %v11866_v17  ;;  %4184 = vmatpush.bf16.msra.mxu2 %v11867_v41  ;;  %v11876_v41 = vld [vmem:[#allocation74_spill] sm:$0xff]  ;;  %v11891_v17 = vld [vmem:[#allocation97_spill] sm:$0xff] }
 0x6dc   :  { %4170 = vmatpush.bf16.msrb.mxu1 %v11868_v28  ;;  %4196 = vmatpush.bf16.msra.mxu3 %v11869_v13  ;;  %v11877_v28 = vld [vmem:[#allocation82_spill] sm:$0xff]  ;;  %v11878_v13 = vld [vmem:[#allocation73_spill] sm:$0xff] }
 0x6de   :  { %4159 = vmatpush.bf16.msra.mxu0 %v11870_v26  ;;  %4185 = vmatpush.bf16.msra.mxu2 %v11871_v4  ;;  %v11879_v26 = vld [vmem:[#allocation66_spill] sm:$0xff]  ;;  %v11880_v4 = vld [vmem:[#allocation96_spill] sm:$0xff] }
 0x6e0   :  { %4171 = vmatpush.bf16.msrb.mxu1 %v11874_v16  ;;  %4197 = vmatpush.bf16.msra.mxu3 %v11875_v19  ;;  %v11882_v19 = vld [vmem:[#allocation75_spill] sm:$0xff] }
 0x6e1   :  { %4160 = vmatmul.bf16.vlgmr.msra.gmra.mxu0 %v9338_v29  ;;  %4186 = vmatmul.bf16.vlgmr.msra.gmra.mxu2 %v9338_v29  ;;  %v11883_v16 = vld [vmem:[#allocation87_spill] sm:$0xff] }
 0x6e2   :  { %4204 = vmatpush.bf16.msrb.mxu0 %v11872_v43  ;;  %4230 = vmatpush.bf16.msrb.mxu2 %v11873_v9  ;;  %v11881_v43 = vld [vmem:[#allocation80_spill] sm:$0xff]  ;;  %v11884_v9 = vld [vmem:[#allocation103_spill] sm:$0xff] }
 0x6e4   :  { %4172 = vmatpush.bf16.msrb.mxu1 %v11878_v13  ;;  %4198 = vmatpush.bf16.msra.mxu3 %v11879_v26  ;;  %v11887_v13 = vld [vmem:[#allocation90_spill] sm:$0xff]  ;;  %v11888_v26 = vld [vmem:[#allocation111_spill] sm:$0xff] }
 0x6e6   :  { %4205 = vmatpush.bf16.msrb.mxu0 %v11876_v41  ;;  %4231 = vmatpush.bf16.msrb.mxu2 %v11877_v28  ;;  %v11885_v41 = vld [vmem:[#allocation83_spill] sm:$0xff]  ;;  %v11886_v28 = vld [vmem:[#allocation77_spill] sm:$0xff] }
 0x6e7   :  { %4173 = vmatmul.bf16.vlgmr.msrb.gmra.mxu1 %v9346_v45  ;;  %4199 = vmatmul.bf16.vlgmr.msra.gmra.mxu3 %v9346_v45 }
 0x6e8   :  { %4217 = vmatpush.bf16.msra.mxu1 %v11880_v4  ;;  %4243 = vmatpush.bf16.msrb.mxu3 %v11881_v43  ;;  %v11889_v4 = vld [vmem:[#allocation88_spill] sm:$0xff]  ;;  %v11890_v43 = vld [vmem:[#allocation81_spill] sm:$0xff] }
 0x6ea   :  { %4206 = vmatpush.bf16.msrb.mxu0 %v11882_v19  ;;  %4232 = vmatpush.bf16.msrb.mxu2 %v11883_v16  ;;  %v11893_v19 = vld [vmem:[#allocation91_spill] sm:$0xff]  ;;  %v11894_v16 = vld [vmem:[#allocation84_spill] sm:$0xff] }
 0x6ec   :  { %4218 = vmatpush.bf16.msra.mxu1 %v11884_v9  ;;  %4244 = vmatpush.bf16.msrb.mxu3 %v11885_v41  ;;  %v11895_v9 = vld [vmem:[#allocation104_spill] sm:$0xff]  ;;  %v11896_v41 = vld [vmem:[#allocation125_spill] sm:$0xff] }
 0x6ee   :  { %4207 = vmatpush.bf16.msrb.mxu0 %v11886_v28  ;;  %4233 = vmatpush.bf16.msrb.mxu2 %v11887_v13  ;;  %v11897_v28 = vld [vmem:[#allocation99_spill] sm:$0xff]  ;;  %v11898_v13 = vld [vmem:[#allocation89_spill] sm:$0xff] }
 0x6f0   :  { %4219 = vmatpush.bf16.msra.mxu1 %v11888_v26  ;;  %4245 = vmatpush.bf16.msrb.mxu3 %v11889_v4  ;;  %v11899_v26 = vld [vmem:[#allocation112_spill] sm:$0xff]  ;;  %v11900_v4 = vld [vmem:[#allocation130_spill] sm:$0xff] }
 0x6f2   :  { %4208 = vmatpush.bf16.msrb.mxu0 %v11890_v43  ;;  %4234 = vmatpush.bf16.msrb.mxu2 %v11891_v17  ;;  %v11901_v43 = vld [vmem:[#allocation105_spill] sm:$0xff]  ;;  %v11902_v17 = vld [vmem:[#allocation92_spill] sm:$0xff] }
 0x6f4   :  { %4220 = vmatpush.bf16.msra.mxu1 %v11892_v52  ;;  %4246 = vmatpush.bf16.msrb.mxu3 %v11893_v19  ;;  %v11903_v52 = vld [vmem:[#allocation116_spill] sm:$0xff]  ;;  %v11904_v19 = vld [vmem:[#allocation95_spill] sm:$0xff] }
 0x6f6   :  { %4209 = vmatpush.bf16.msrb.mxu0 %v11894_v16  ;;  %4235 = vmatpush.bf16.msrb.mxu2 %v11895_v9  ;;  %v11905_v16 = vld [vmem:[#allocation118_spill] sm:$0xff] }
 0x6f7   :  { %v11906_v9 = vld [vmem:[#allocation138_spill] sm:$0xff] }
 0x6f8   :  { %4221 = vmatpush.bf16.msra.mxu1 %v11896_v41  ;;  %4247 = vmatpush.bf16.msrb.mxu3 %v11897_v28  ;;  %v11907_v41 = vld [vmem:[#allocation113_spill] sm:$0xff]  ;;  %v11920_v28 = vld [vmem:[#allocation152_spill] sm:$0xff] }
 0x6fa   :  { %4210 = vmatpush.bf16.msrb.mxu0 %v11898_v13  ;;  %4236 = vmatpush.bf16.msrb.mxu2 %v11899_v26  ;;  %v11908_v26 = vld [vmem:[#allocation100_spill] sm:$0xff] }
 0x6fc   :  { %4222 = vmatpush.bf16.msra.mxu1 %v11900_v4  ;;  %4248 = vmatpush.bf16.msrb.mxu3 %v11901_v43  ;;  %v11909_v4 = vld [vmem:[#allocation127_spill] sm:$0xff]  ;;  %v11910_v43 = vld [vmem:[#allocation142_spill] sm:$0xff] }
 0x6fe   :  { %4211 = vmatpush.bf16.msrb.mxu0 %v11902_v17  ;;  %4237 = vmatpush.bf16.msrb.mxu2 %v11903_v52  ;;  %v11911_v17 = vld [vmem:[#allocation117_spill] sm:$0xff]  ;;  %v11912_v52 = vld [vmem:[#allocation143_spill] sm:$0xff] }
 0x700   :  { %4223 = vmatpush.bf16.msra.mxu1 %v11906_v9  ;;  %4249 = vmatpush.bf16.msrb.mxu3 %v11907_v41  ;;  %v11914_v41 = vld [vmem:[#allocation106_spill] sm:$0xff]  ;;  %v11915_v9 = vld [vmem:[#allocation131_spill] sm:$0xff] }
 0x701   :  { %4212 = vmatmul.bf16.vlgmr.msrb.gmra.mxu0 %v9338_v29  ;;  %4238 = vmatmul.bf16.vlgmr.msrb.gmra.mxu2 %v9338_v29 }
 0x702   :  { %4256 = vmatpush.bf16.msra.mxu0 %v11904_v19  ;;  %4282 = vmatpush.bf16.msra.mxu2 %v11905_v16  ;;  %v11913_v19 = vld [vmem:[#allocation122_spill] sm:$0xff]  ;;  %v3922_v16 = vpop.f32.mrf.mxu0 }
 0x704   :  { %4224 = vmatpush.bf16.msra.mxu1 %v11910_v43  ;;  %4250 = vmatpush.bf16.msrb.mxu3 %v11911_v17  ;;  %v3935_v43 = vpop.f32.mrf.mxu1  ;;  %v3948_v13 = vpop.f32.mrf.mxu2  ;;  %v11918_v17 = vld [vmem:[#allocation114_spill] sm:$0xff] }
 0x706   :  { %4257 = vmatpush.bf16.msra.mxu0 %v11908_v26  ;;  %4283 = vmatpush.bf16.msra.mxu2 %v11909_v4  ;;  %v11916_v26 = vld [vmem:[#allocation149_spill] sm:$0xff]  ;;  %v11917_v4 = vld [vmem:[#allocation128_spill] sm:$0xff] }
 0x707   :  { %4225 = vmatmul.bf16.vlgmr.msra.gmra.mxu1 %v9346_v45  ;;  %4251 = vmatmul.bf16.vlgmr.msrb.gmra.mxu3 %v9346_v45 }
 0x708   :  { %4269 = vmatpush.bf16.msrb.mxu1 %v11912_v52  ;;  %4295 = vmatpush.bf16.msra.mxu3 %v11913_v19  ;;  %v11919_v52 = vld [vmem:[#allocation139_spill] sm:$0xff]  ;;  %v3936_v19 = vadd.f32 %v3935_v43, %v3922_v16  ;;  %v11927_v16 = vld [vmem:[#allocation150_spill] sm:$0xff] }
 0x709   :  { %v11928_v43 = vld [vmem:[#allocation162_spill] sm:$0xff] }
 0x70a   :  { %4258 = vmatpush.bf16.msra.mxu0 %v11914_v41  ;;  %4284 = vmatpush.bf16.msra.mxu2 %v11915_v9  ;;  %v3924_v8 = vpop.f32.mrf.mxu0  ;;  %v11923_v41 = vld [vmem:[#allocation144_spill] sm:$0xff]  ;;  %v11924_v9 = vld [vmem:[#allocation159_spill] sm:$0xff] }
 0x70c   :  { %4270 = vmatpush.bf16.msrb.mxu1 %v11916_v26  ;;  %4296 = vmatpush.bf16.msra.mxu3 %v11917_v4  ;;  %v11925_v26 = vld [vmem:[#allocation140_spill] sm:$0xff]  ;;  %v3961_v4 = vpop.f32.mrf.mxu3  ;;  %v3937_v44 = vpop.f32.mrf.mxu1 }
 0x70d   :  { %v3962_v2 = vadd.f32 %v3961_v4, %v3948_v13 }
 0x70e   :  { %4259 = vmatpush.bf16.msra.mxu0 %v11918_v17  ;;  %4285 = vmatpush.bf16.msra.mxu2 %v11919_v52  ;;  %v3950_v17 = vpop.f32.mrf.mxu2  ;;  %v11955_v52 = vld [vmem:[#allocation223_spill] sm:$0xff] }
 0x70f   :  { %v11934_v17 = vld [vmem:[#allocation141_spill] sm:$0xff] }
 0x710   :  { %4271 = vmatpush.bf16.msrb.mxu1 %v11920_v28  ;;  %4297 = vmatpush.bf16.msra.mxu3 %v11921_v21  ;;  %v11929_v21 = vld [vmem:[#allocation147_spill] sm:$0xff] }
 0x712   :  { %4260 = vmatpush.bf16.msra.mxu0 %v11922_v30  ;;  %4286 = vmatpush.bf16.msra.mxu2 %v11923_v41  ;;  %v3974_v8 = vpop.f32.mrf.mxu0  ;;  %v11930_v30 = vld [vmem:[#allocation137_spill] sm:$0xff] }
 0x713   :  { %v11931_v41 = vld [vmem:[#allocation153_spill] sm:$0xff] }
 0x714   :  { %4272 = vmatpush.bf16.msrb.mxu1 %v11924_v9  ;;  %4298 = vmatpush.bf16.msra.mxu3 %v11925_v26  ;;  %v11932_v9 = vld [vmem:[#allocation168_spill] sm:$0xff]  ;;  %v11933_v26 = vld [vmem:[#allocation151_spill] sm:$0xff]  ;;  %v3963_v13 = vpop.f32.mrf.mxu3  ;;  %v3987_v44 = vpop.f32.mrf.mxu1 }
 0x715   :  { %v11940_v13 = vld [vmem:[#allocation172_spill] sm:$0xff] }
 0x716   :  { %4261 = vmatpush.bf16.msra.mxu0 %v11926_v31  ;;  %4287 = vmatpush.bf16.msra.mxu2 %v11927_v16  ;;  %v4000_v4 = vpop.f32.mrf.mxu2  ;;  %v11935_v31 = vld [vmem:[#allocation160_spill] sm:$0xff]  ;;  %v3988_v16 = vadd.f32 %v3987_v44, %v3974_v8  ;;  %v11942_v8 = vld [vmem:[#allocation211_spill] sm:$0xff] }
 0x717   :  { %v11943_v44 = vld [vmem:[#allocation212_spill] sm:$0xff] }
 0x718   :  { %4273 = vmatpush.bf16.msrb.mxu1 %v11928_v43  ;;  %4299 = vmatpush.bf16.msra.mxu3 %v11929_v21  ;;  %v11936_v43 = vld [vmem:[#allocation169_spill] sm:$0xff]  ;;  %v11937_v21 = vld [vmem:[#allocation154_spill] sm:$0xff] }
 0x71a   :  { %4262 = vmatpush.bf16.msra.mxu0 %v11930_v30  ;;  %4288 = vmatpush.bf16.msra.mxu2 %v11931_v41  ;;  %v3976_v28 = vpop.f32.mrf.mxu0  ;;  %v11938_v30 = vld [vmem:[#allocation207_spill] sm:$0xff]  ;;  %v11939_v41 = vld [vmem:[#allocation208_spill] sm:$0xff] }
 0x71c   :  { %4274 = vmatpush.bf16.msrb.mxu1 %v11932_v9  ;;  %4300 = vmatpush.bf16.msra.mxu3 %v11933_v26  ;;  %v11941_v26 = vld [vmem:[#allocation161_spill] sm:$0xff] }
 0x71e   :  { %4263 = vmatpush.bf16.msra.mxu0 %v11934_v17  ;;  %4289 = vmatpush.bf16.msra.mxu2 %v11935_v31  ;;  %v4013_v17 = vpop.f32.mrf.mxu3  ;;  %v4002_v28 = vpop.f32.mrf.mxu2 }
 0x71f   :  { %v4014_v31 = vadd.f32 %v4013_v17, %v4000_v4  ;;  %v11948_v4 = vld [vmem:[#allocation203_spill] sm:$0xff]  ;;  %v11949_v17 = vld [vmem:[#allocation204_spill] sm:$0xff] }
 0x720   :  { %4275 = vmatpush.bf16.msrb.mxu1 %v11936_v43  ;;  %4301 = vmatpush.bf16.msra.mxu3 %v11937_v21  ;;  %v3989_v21 = vpop.f32.mrf.mxu1  ;;  %v11944_v43 = vld [vmem:[#allocation200_spill] sm:$0xff] }
 0x721   :  { %4264 = vmatmul.bf16.vlgmr.msra.gmra.mxu0 %v9338_v29  ;;  %4290 = vmatmul.bf16.vlgmr.msra.gmra.mxu2 %v9338_v29  ;;  %v11950_v21 = vld [vmem:[#allocation290_spill] sm:$0xff] }
 0x722   :  { %4354 = vmatpush.bf16.msrb.mxu0 %v11938_v30  ;;  %4380 = vmatpush.bf16.msrb.mxu2 %v11939_v41  ;;  %v11945_v30 = vld [vmem:[#allocation201_spill] sm:$0xff]  ;;  %v4026_v29 = vpop.f32.mrf.mxu0  ;;  %v11946_v41 = vld [vmem:[#allocation215_spill] sm:$0xff] }
 0x724   :  { %4276 = vmatpush.bf16.msrb.mxu1 %v11940_v13  ;;  %4302 = vmatpush.bf16.msra.mxu3 %v11941_v26  ;;  %v4027_v13 = vadd.f32 %v4026_v29, %v3936_v19  ;;  %v11947_v26 = vld [vmem:[#allocation216_spill] sm:$0xff]  ;;  %v11954_v19 = vld [vmem:[#allocation206_spill] sm:$0xff] }
 0x726   :  { %4355 = vmatpush.bf16.msrb.mxu0 %v11942_v8  ;;  %4381 = vmatpush.bf16.msrb.mxu2 %v11943_v44  ;;  %v4069_v28 = vadd.f32 %v4027_v13, %v11950_v21  ;;  %v4015_v44 = vpop.f32.mrf.mxu3  ;;  %v4052_v9 = vpop.f32.mrf.mxu2  ;;  %v11957_v13 = vld [vmem:[#allocation289_spill] sm:$0xff] }
 0x727   :  { %4277 = vmatmul.bf16.vlgmr.msrb.gmra.mxu1 %v9346_v45  ;;  %4303 = vmatmul.bf16.vlgmr.msra.gmra.mxu3 %v9346_v45  ;;  %v11953_v45 = vld [vmem:[#allocation205_spill] sm:$0xff] }
 0x728   :  { %4367 = vmatpush.bf16.msra.mxu1 %v11944_v43  ;;  %4393 = vmatpush.bf16.msrb.mxu3 %v11945_v30  ;;  %v11951_v43 = vld [vmem:[#allocation219_spill] sm:$0xff]  ;;  %v11952_v30 = vld [vmem:[#allocation220_spill] sm:$0xff]  ;;  %v4073_v8 = vmul.f32 0.5, %v4069_v28  ;;  %v4039_v29 = vpop.f32.mrf.mxu1  ;;  %v11959_v28 = vld [vmem:[#allocation210_spill] sm:$0xff] }
 0x729   :  { %v11960_v21 = vld [vmem:[#allocation229_spill] sm:$0xff] }
 0x72a   :  { %4356 = vmatpush.bf16.msrb.mxu0 %v11946_v41  ;;  %4382 = vmatpush.bf16.msrb.mxu2 %v11947_v26  ;;  %v9544_v41 = vadd.f32 %v4052_v9, %v3988_v16  ;;  %v4040_v26 = vadd.f32 %v4039_v29, %v3962_v2  ;;  %6865 = vtanh.f32 %v4073_v8  ;;  %v11962_v16 = vld [vmem:[#allocation213_spill] sm:$0xff] }
 0x72c   :  { %4368 = vmatpush.bf16.msra.mxu1 %v11948_v4  ;;  %4394 = vmatpush.bf16.msrb.mxu3 %v11949_v17  ;;  %v4028_v4 = vpop.f32.mrf.mxu0  ;;  %v11956_v17 = vld [vmem:[#allocation224_spill] sm:$0xff]  ;;  %v4070_v44 = vadd.f32 %v4040_v26, %v11957_v13  ;;  %v11964_v26 = vld [vmem:[#allocation291_spill] sm:$0xff] }
 0x72d   :  { %v11963_v4 = vld [vmem:[#allocation214_spill] sm:$0xff] }
 0x72e   :  { %4357 = vmatpush.bf16.msrb.mxu0 %v11951_v43  ;;  %4383 = vmatpush.bf16.msrb.mxu2 %v11952_v30  ;;  %v11958_v43 = vld [vmem:[#allocation209_spill] sm:$0xff]  ;;  %v4074_v30 = vmul.f32 0.5, %v4070_v44  ;;  %v4054_v9 = vpop.f32.mrf.mxu2 }
 0x72f   :  { %v11967_v44 = vld [vmem:[#allocation217_spill] sm:$0xff] }
 0x730   :  { %4369 = vmatpush.bf16.msra.mxu1 %v11953_v45  ;;  %4395 = vmatpush.bf16.msrb.mxu3 %v11954_v19  ;;  %v4065_v45 = vpop.f32.mrf.mxu3  ;;  %v11961_v19 = vld [vmem:[#allocation230_spill] sm:$0xff]  ;;  %6867 = vtanh.f32 %v4074_v30  ;;  %v4041_v8 = vpop.f32.mrf.mxu1 }
 0x731   :  { %v4066_v2 = vadd.f32 %v4065_v45, %v4014_v31  ;;  %v6866_v29 = vpop.eup %6865  ;;  %v11971_v8 = vld [vmem:[#allocation239_spill] sm:$0xff] }
 0x732   :  { %4358 = vmatpush.bf16.msrb.mxu0 %v11955_v52  ;;  %4384 = vmatpush.bf16.msrb.mxu2 %v11956_v17  ;;  %v4079_v30 = vmul.f32 0.5, %v6866_v29  ;;  %v11995_v17 = vld [vmem:[#allocation119_spill] sm:$0xff]  ;;  %v11996_v52 = vld [vmem:[#allocation157_spill] sm:$0xff] }
 0x733   :  { %v4072_v13 = vadd.f32 %v4066_v2, %v11964_v26  ;;  %v11972_v2 = vld [vmem:[#allocation240_spill] sm:$0xff]  ;;  %v288_v37 = vadd.f32 %v11996_v52, %v11995_v17 }
 0x734   :  { %4370 = vmatpush.bf16.msra.mxu1 %v11958_v43  ;;  %4396 = vmatpush.bf16.msrb.mxu3 %v11959_v28  ;;  %v11965_v43 = vld [vmem:[#allocation233_spill] sm:$0xff]  ;;  %v11966_v28 = vld [vmem:[#allocation234_spill] sm:$0xff] }
 0x735   :  { %6869 = vtanh.f32 %v4072_v13  ;;  %v11974_v13 = vld [vmem:[#allocation222_spill] sm:$0xff] }
 0x736   :  { %4359 = vmatpush.bf16.msrb.mxu0 %v11960_v21  ;;  %4385 = vmatpush.bf16.msrb.mxu2 %v11961_v19  ;;  %v11968_v21 = vld [vmem:[#allocation218_spill] sm:$0xff]  ;;  %v6868_v31 = vpop.eup %6867  ;;  %v11991_v19 = vld [vmem:[#allocation255_spill] sm:$0xff] }
 0x737   :  { %v4080_v45 = vmul.f32 0.5, %v6868_v31  ;;  %v11975_v31 = vld [vmem:[#allocation243_spill] sm:$0xff] }
 0x738   :  { %4371 = vmatpush.bf16.msra.mxu1 %v11962_v16  ;;  %4397 = vmatpush.bf16.msrb.mxu3 %v11963_v4  ;;  %v4067_v9 = vpop.f32.mrf.mxu3  ;;  %v11969_v16 = vld [vmem:[#allocation237_spill] sm:$0xff]  ;;  %v11970_v4 = vld [vmem:[#allocation238_spill] sm:$0xff] }
 0x739   :  { %v4083_v26 = vadd.f32 0.5, %v4080_v45  ;;  %v11976_v9 = vld [vmem:[#allocation244_spill] sm:$0xff] }
 0x73a   :  { %4360 = vmatpush.bf16.msrb.mxu0 %v11965_v43  ;;  %4386 = vmatpush.bf16.msrb.mxu2 %v11966_v28  ;;  %v4082_v43 = vadd.f32 0.5, %v4079_v30  ;;  %v11973_v28 = vld [vmem:[#allocation221_spill] sm:$0xff]  ;;  %v11979_v30 = vld [vmem:[#allocation227_spill] sm:$0xff]  ;;  %v11980_v45 = vld [vmem:[#allocation228_spill] sm:$0xff] }
 0x73b   :  { %v4086_v29 = vmul.f32 %v4083_v26, %v9290_v53  ;;  %v11983_v53 = vld [vmem:[#allocation231_spill] sm:$0xff] }
 0x73c   :  { %4372 = vmatpush.bf16.msra.mxu1 %v11967_v44  ;;  %4398 = vmatpush.bf16.msrb.mxu3 %v11968_v21  ;;  %v6870_v44 = vpop.eup %6869  ;;  %v11985_v26 = vld [vmem:[#allocation251_spill] sm:$0xff] }
 0x73d   :  { %v4087_v21 = vmul.f32 %v6870_v44, %v4082_v43  ;;  %v11984_v43 = vld [vmem:[#allocation232_spill] sm:$0xff] }
 0x73e   :  { %4361 = vmatpush.bf16.msrb.mxu0 %v11969_v16  ;;  %4387 = vmatpush.bf16.msrb.mxu2 %v11970_v4  ;;  %v11977_v4 = vld [vmem:[#allocation225_spill] sm:$0xff] }
 0x73f   :  { %v9569_v16 = vadd.f32 %v4087_v21, %v4086_v29  ;;  %v11986_v21 = vld [vmem:[#allocation252_spill] sm:$0xff] }
 0x740   :  { %4373 = vmatpush.bf16.msra.mxu1 %v11973_v28  ;;  %4399 = vmatpush.bf16.msrb.mxu3 %v11974_v13  ;;  %v4109_v28 = vpop.f32.mrf.mxu0  ;;  %v11981_v13 = vld [vmem:[#allocation247_spill] sm:$0xff] }
 0x742   :  { %4406 = vmatpush.bf16.msra.mxu0 %v11971_v8  ;;  %4432 = vmatpush.bf16.msra.mxu2 %v11972_v2  ;;  %v11978_v8 = vld [vmem:[#allocation226_spill] sm:$0xff]  ;;  %v11982_v2 = vld [vmem:[#allocation248_spill] sm:$0xff] }
 0x744   :  { %4374 = vmatpush.bf16.msra.mxu1 %v11977_v4  ;;  %4400 = vmatpush.bf16.msrb.mxu3 %v11978_v8  ;;  %v4122_v44 = vpop.f32.mrf.mxu1  ;;  %v4135_v29 = vpop.f32.mrf.mxu2  ;;  %v11987_v8 = vld [vmem:[#allocation76_spill] sm:$0xff] }
 0x745   :  { %v11988_v4 = vld [vmem:[#allocation136_spill] sm:$0xff] }
 0x746   :  { %4407 = vmatpush.bf16.msra.mxu0 %v11975_v31  ;;  %4433 = vmatpush.bf16.msra.mxu2 %v11976_v9  ;;  %v4123_v9 = vadd.f32 %v4122_v44, %v4109_v28  ;;  %v11990_v31 = vld [vmem:[#allocation236_spill] sm:$0xff]  ;;  %v11997_v28 = vld [vmem:[#allocation259_spill] sm:$0xff] }
 0x747   :  { %v11998_v44 = vld [vmem:[#allocation260_spill] sm:$0xff] }
 0x748   :  { %4419 = vmatpush.bf16.msrb.mxu1 %v11979_v30  ;;  %4445 = vmatpush.bf16.msra.mxu3 %v11980_v45  ;;  %v259_v30 = vadd.f32 %v11988_v4, %v11987_v8  ;;  %v11989_v45 = vld [vmem:[#allocation235_spill] sm:$0xff] }
 0x74a   :  { %4408 = vmatpush.bf16.msra.mxu0 %v11981_v13  ;;  %4434 = vmatpush.bf16.msra.mxu2 %v11982_v2  ;;  %v4111_v13 = vpop.f32.mrf.mxu0  ;;  %v4308_v2 = vadd.f32 %v4123_v9, %v259_v30  ;;  %v11999_v30 = vld [vmem:[#allocation245_spill] sm:$0xff] }
 0x74c   :  { %4420 = vmatpush.bf16.msrb.mxu1 %v11983_v53  ;;  %4446 = vmatpush.bf16.msra.mxu3 %v11984_v43  ;;  %v11992_v53 = vld [vmem:[#allocation256_spill] sm:$0xff]  ;;  %v11993_v43 = vld [vmem:[#allocation241_spill] sm:$0xff]  ;;  %v4124_v8 = vpop.f32.mrf.mxu1  ;;  %v4137_v13 = vpop.f32.mrf.mxu2 }
 0x74d   :  { %v12007_v8 = vld [vmem:[#allocation253_spill] sm:$0xff]  ;;  %v12010_v13 = vld [vmem:[#allocation258_spill] sm:$0xff] }
 0x74e   :  { %4409 = vmatpush.bf16.msra.mxu0 %v11985_v26  ;;  %4435 = vmatpush.bf16.msra.mxu2 %v11986_v21  ;;  %v11994_v26 = vld [vmem:[#allocation242_spill] sm:$0xff]  ;;  %v4148_v21 = vpop.f32.mrf.mxu3 }
 0x74f   :  { %v4149_v4 = vadd.f32 %v4148_v21, %v4135_v29  ;;  %v12005_v21 = vld [vmem:[#allocation263_spill] sm:$0xff]  ;;  %v12006_v29 = vld [vmem:[#allocation264_spill] sm:$0xff] }
 0x750   :  { %4421 = vmatpush.bf16.msrb.mxu1 %v11989_v45  ;;  %4447 = vmatpush.bf16.msra.mxu3 %v11990_v31  ;;  %v12004_v31 = vld [vmem:[#allocation250_spill] sm:$0xff] }
 0x751   :  { %v4309_v9 = vadd.f32 %v4149_v4, %v288_v37  ;;  %v12008_v37 = vld [vmem:[#allocation254_spill] sm:$0xff]  ;;  %v12009_v4 = vld [vmem:[#allocation257_spill] sm:$0xff] }
 0x752   :  { %4410 = vmatpush.bf16.msra.mxu0 %v11991_v19  ;;  %4436 = vmatpush.bf16.msra.mxu2 %v11992_v53  ;;  %v12000_v19 = vld [vmem:[#allocation246_spill] sm:$0xff]  ;;  %v12001_v53 = vld [vmem:[#allocation261_spill] sm:$0xff] }
 0x754   :  { %4422 = vmatpush.bf16.msrb.mxu1 %v11993_v43  ;;  %4448 = vmatpush.bf16.msra.mxu3 %v11994_v26  ;;  %v12002_v43 = vld [vmem:[#allocation262_spill] sm:$0xff]  ;;  %v12003_v26 = vld [vmem:[#allocation249_spill] sm:$0xff] }
 0x756   :  { %4411 = vmatpush.bf16.msra.mxu0 %v11997_v28  ;;  %4437 = vmatpush.bf16.msra.mxu2 %v11998_v44  ;;  %v4150_v52 = vpop.f32.mrf.mxu3 }
 0x758   :  { %4423 = vmatpush.bf16.msrb.mxu1 %v11999_v30  ;;  %4449 = vmatpush.bf16.msra.mxu3 %v12000_v19 }
 0x75a   :  { %4412 = vmatpush.bf16.msra.mxu0 %v12001_v53  ;;  %4438 = vmatpush.bf16.msra.mxu2 %v12002_v43 }
 0x75c   :  { %4424 = vmatpush.bf16.msrb.mxu1 %v12003_v26  ;;  %4450 = vmatpush.bf16.msra.mxu3 %v12004_v31 }
 0x75e   :  { %4413 = vmatpush.bf16.msra.mxu0 %v12005_v21  ;;  %4439 = vmatpush.bf16.msra.mxu2 %v12006_v29  ;;  %v4161_v17 = vpop.f32.mrf.mxu0 }
 0x760   :  { %4425 = vmatpush.bf16.msrb.mxu1 %v12007_v8  ;;  %4451 = vmatpush.bf16.msra.mxu3 %v12008_v37 }
 0x764   :  { %4426 = vmatpush.bf16.msrb.mxu1 %v12009_v4  ;;  %4452 = vmatpush.bf16.msra.mxu3 %v12010_v13  ;;  %v4174_v53 = vpop.f32.mrf.mxu1  ;;  %v4187_v43 = vpop.f32.mrf.mxu2  ;;  %v12012_v4 = vld [vmem:[#allocation145_spill] sm:$0xff] }
 0x765   :  { %v4175_v37 = vadd.f32 %v4174_v53, %v4161_v17  ;;  %v317_v62 = vadd.f32 %v12012_v4, %v12011_v60  ;;  %v4317_v53 = vmul.f32 0.5, %v4309_v9  ;;  %v12050_v60 = vld [vmem:[#allocation26_spill] sm:$0xff] }
 0x766   :  { %v4163_v19 = vpop.f32.mrf.mxu0 }
 0x767   :  { %v4310_v55 = vadd.f32 %v4175_v37, %v317_v62  ;;  %v12014_v19 = vld [vmem:[#allocation146_spill] sm:$0xff]  ;;  %v12017_v62 = vld [vmem:[#allocation176_spill] sm:$0xff] }
 0x768   :  { %v346_v61 = vadd.f32 %v12014_v19, %v12013_v23  ;;  %v12020_v19 = vld [vmem:[#allocation196_spill] sm:$0xff]  ;;  %v12049_v23 = vld [vmem:[#allocation42_spill] sm:$0xff] }
 0x76a   :  { %v4200_v26 = vpop.f32.mrf.mxu3 }
 0x76b   :  { %v4201_v15 = vadd.f32 %v4200_v26, %v4187_v43  ;;  %v12018_v43 = vld [vmem:[#allocation191_spill] sm:$0xff] }
 0x76c   :  { %v4176_v30 = vpop.f32.mrf.mxu1  ;;  %v4189_v31 = vpop.f32.mrf.mxu2  ;;  %v433_v26 = vadd.f32 %v12018_v43, %v12017_v62  ;;  %v12022_v43 = vld [vmem:[#allocation192_spill] sm:$0xff]  ;;  %v12048_v62 = vld [vmem:[#allocation29_spill] sm:$0xff] }
 0x76d   :  { %v4318_v30 = vmul.f32 0.5, %v4310_v55  ;;  %v4316_v31 = vmul.f32 0.5, %v4308_v2 }
 0x76f   :  { %6871 = vtanh.f32 %v4318_v30 }
 0x770   :  { %6873 = vtanh.f32 %v4316_v31 }
 0x772   :  { %v4202_v52 = vpop.f32.mrf.mxu3 }
 0x773   :  { %v4311_v52 = vadd.f32 %v4201_v15, %v346_v61 }
 0x77e   :  { %v4213_v44 = vpop.f32.mrf.mxu0 }
 0x784   :  { %v4226_v21 = vpop.f32.mrf.mxu1  ;;  %v4239_v28 = vpop.f32.mrf.mxu2 }
 0x785   :  { %v4227_v34 = vadd.f32 %v4226_v21, %v4213_v44  ;;  %v12019_v21 = vld [vmem:[#allocation182_spill] sm:$0xff] }
 0x786   :  { %v4215_v29 = vpop.f32.mrf.mxu0  ;;  %v404_v30 = vadd.f32 %v12020_v19, %v12019_v21  ;;  %v12047_v21 = vld [vmem:[#allocation37_spill] sm:$0xff] }
 0x787   :  { %v4319_v29 = vmul.f32 0.5, %v4311_v52 }
 0x789   :  { %6875 = vtanh.f32 %v4319_v29 }
 0x78a   :  { %v4252_v45 = vpop.f32.mrf.mxu3  ;;  %6877 = vtanh.f32 %v4317_v53 }
 0x78b   :  { %v4253_v2 = vadd.f32 %v4252_v45, %v4239_v28 }
 0x78c   :  { %v4228_v8 = vpop.f32.mrf.mxu1  ;;  %v4241_v3 = vpop.f32.mrf.mxu2 }
 0x78d   :  { %v12015_v8 = vld [vmem:[#allocation165_spill] sm:$0xff]  ;;  %v4313_v9 = vadd.f32 %v4253_v2, %v404_v30 }
 0x78e   :  { %v12016_v3 = vld [vmem:[#allocation181_spill] sm:$0xff] }
 0x78f   :  { %v375_v17 = vadd.f32 %v12016_v3, %v12015_v8  ;;  %v12021_v8 = vld [vmem:[#allocation177_spill] sm:$0xff]  ;;  %v4321_v19 = vmul.f32 0.5, %v4313_v9 }
 0x790   :  { %v462_v29 = vadd.f32 %v12022_v43, %v12021_v8  ;;  %v12046_v8 = vld [vmem:[#allocation22_spill] sm:$0xff] }
 0x791   :  { %v4312_v50 = vadd.f32 %v4227_v34, %v375_v17 }
 0x792   :  { %v4254_v13 = vpop.f32.mrf.mxu3 }
 0x793   :  { %v6872_v13 = vpop.eup %6871  ;;  %v4320_v52 = vmul.f32 0.5, %v4312_v50 }
 0x794   :  { %v6874_v61 = vpop.eup %6873  ;;  %v4330_v31 = vmul.f32 0.5, %v6872_v13 }
 0x795   :  { %v4328_v34 = vmul.f32 0.5, %v6874_v61  ;;  %v6876_v17 = vpop.eup %6875 }
 0x796   :  { %v6878_v28 = vpop.eup %6877 }
 0x797   :  { %v4329_v50 = vmul.f32 0.5, %v6878_v28 }
 0x79e   :  { %v4265_v12 = vpop.f32.mrf.mxu0 }
 0x7a4   :  { %v4278_v4 = vpop.f32.mrf.mxu1  ;;  %v4291_v55 = vpop.f32.mrf.mxu2 }
 0x7a5   :  { %v4279_v37 = vadd.f32 %v4278_v4, %v4265_v12  ;;  %v4336_v4 = vadd.f32 0.5, %v4330_v31  ;;  %v4335_v31 = vadd.f32 0.5, %v4329_v50 }
 0x7a6   :  { %v4267_v44 = vpop.f32.mrf.mxu0 }
 0x7a7   :  { %v4314_v15 = vadd.f32 %v4279_v37, %v433_v26  ;;  %v4334_v37 = vadd.f32 0.5, %v4328_v34  ;;  %v4331_v44 = vmul.f32 0.5, %v6876_v17  ;;  %v4342_v2 = vmul.f32 %v4336_v4, %v9331_v38 }
 0x7a9   :  { %6879 = vtanh.f32 %v4314_v15  ;;  %v4337_v30 = vadd.f32 0.5, %v4331_v44 }
 0x7aa   :  { %v4304_v3 = vpop.f32.mrf.mxu3  ;;  %6881 = vtanh.f32 %v4320_v52 }
 0x7ab   :  { %v4305_v12 = vadd.f32 %v4304_v3, %v4291_v55  ;;  %v4343_v34 = vmul.f32 %v4337_v30, %v9335_v39  ;;  %v12023_v30 = vld [vmem:[#allocation285_spill] sm:$0xff] }
 0x7ac   :  { %v4280_v45 = vpop.f32.mrf.mxu1  ;;  %v4293_v26 = vpop.f32.mrf.mxu2 }
 0x7ad   :  { %v4315_v53 = vadd.f32 %v4305_v12, %v462_v29 }
 0x7af   :  { %v6880_v13 = vpop.eup %6879  ;;  %6883 = vtanh.f32 %v4315_v53 }
 0x7b0   :  { %v4344_v61 = vmul.f32 %v6880_v13, %v4334_v37  ;;  %v6882_v15 = vpop.eup %6881  ;;  %6885 = vtanh.f32 %v4321_v19  ;;  %v4071_v37 = vadd.f32 %v9544_v41, %v8493_v32 }
 0x7b1   :  { %v4332_v3 = vmul.f32 0.5, %v6882_v15 }
 0x7b2   :  { %v9618_v43 = vadd.f32 %v4344_v61, %v4342_v2  ;;  %v4306_v55 = vpop.f32.mrf.mxu3  ;;  %v4075_v19 = vmul.f32 0.5, %v4071_v37  ;;  %v12038_v37 = vld [vmem:[#allocation15_spill] sm:$0xff] }
 0x7b3   :  { %v4338_v12 = vadd.f32 0.5, %v4332_v3  ;;  %v12024_v55 = vld [vmem:[#allocation286_spill] sm:$0xff]  ;;  %v12027_v3 = vld [vmem:[#allocation287_spill] sm:$0xff] }
 0x7b4   :  { %6887 = vtanh.f32 %v9618_v43 }
 0x7b5   :  { %v6884_v52 = vpop.eup %6883 }
 0x7b6   :  { %v4345_v9 = vmul.f32 %v6884_v52, %v4335_v31  ;;  %v6886_v17 = vpop.eup %6885  ;;  %v12025_v31 = vld [vmem:[#allocation16_spill] sm:$0xff] }
 0x7b7   :  { %v4333_v4 = vmul.f32 0.5, %v6886_v17  ;;  %v12026_v52 = vld [vmem:[#allocation12_spill] sm:$0xff]  ;;  %v12030_v17 = vld [vmem:[#allocation11_spill] sm:$0xff] }
 0x7b8   :  { %v9622_v29 = vadd.f32 %v4345_v9, %v4343_v34  ;;  %v12028_v34 = vld [vmem:[#allocation288_spill] sm:$0xff] }
 0x7b9   :  { %v4339_v53 = vadd.f32 0.5, %v4333_v4  ;;  %v12029_v9 = vld [vmem:[#allocation20_spill] sm:$0xff]  ;;  %v12033_v4 = vld [vmem:[#allocation23_spill] sm:$0xff] }
 0x7ba   :  { %v6888_v38 = vpop.eup %6887  ;;  %6889 = vtanh.f32 %v9622_v29 }
 0x7bb   :  { %v4350_v45 = vmul.f32 %v6888_v38, %v4338_v12  ;;  %6891 = vtanh.f32 %v4075_v19  ;;  %v12031_v12 = vld [vmem:[#allocation19_spill] sm:$0xff]  ;;  %v12032_v38 = vld [vmem:[#allocation14_spill] sm:$0xff]  ;;  %v12039_v19 = vld [vmem:[#allocation28_spill] sm:$0xff] }
 0x7bc   :  { %6893 = vtanh.f32 %v9569_v16 }
 0x7bd   :  { %v9625_v28 = vpack.c.bf16 %v4350_v45, %v4350_v45  ;;  %v12034_v45 = vld [vmem:[#allocation13_spill] sm:$0xff] }
 0x7bf   :  { %4362 = vmatmul.bf16.vlgmr.msrb.gmra.mxu0 %v9625_v28  ;;  %4388 = vmatmul.bf16.vlgmr.msrb.gmra.mxu2 %v9625_v28 }
 0x7c0   :  { %v6890_v26 = vpop.eup %6889  ;;  %4458 = vmatpush.bf16.msrb.mxu0 %v11191_v58  ;;  %4484 = vmatpush.bf16.msrb.mxu2 %v11192_v22 }
 0x7c1   :  { %v4351_v39 = vmul.f32 %v6890_v26, %v4339_v53  ;;  %v6892_v41 = vpop.eup %6891  ;;  %v12035_v53 = vld [vmem:[#allocation24_spill] sm:$0xff]  ;;  %v12036_v26 = vld [vmem:[#allocation17_spill] sm:$0xff] }
 0x7c2   :  { %v4081_v13 = vmul.f32 0.5, %v6892_v41  ;;  %v6894_v50 = vpop.eup %6893  ;;  %v12040_v41 = vld [vmem:[#allocation21_spill] sm:$0xff] }
 0x7c3   :  { %v9633_v44 = vpack.c.bf16 %v4351_v39, %v4351_v39  ;;  %v12037_v39 = vld [vmem:[#allocation27_spill] sm:$0xff] }
 0x7c4   :  { %4459 = vmatpush.bf16.msrb.mxu0 %v11193_v7  ;;  %4485 = vmatpush.bf16.msrb.mxu2 %v11194_v47  ;;  %v4084_v2 = vadd.f32 0.5, %v4081_v13  ;;  %v12041_v13 = vld [vmem:[#allocation32_spill] sm:$0xff] }
 0x7c5   :  { %4375 = vmatmul.bf16.vlgmr.msra.gmra.mxu1 %v9633_v44  ;;  %4401 = vmatmul.bf16.vlgmr.msrb.gmra.mxu3 %v9633_v44 }
 0x7c6   :  { %4471 = vmatpush.bf16.msra.mxu1 %v11195_v56  ;;  %4497 = vmatpush.bf16.msrb.mxu3 %v11196_v14  ;;  %v4090_v61 = vmul.f32 %v6894_v50, %v4084_v2  ;;  %v12042_v50 = vld [vmem:[#allocation18_spill] sm:$0xff]  ;;  %v12043_v2 = vld [vmem:[#allocation31_spill] sm:$0xff] }
 0x7c8   :  { %4460 = vmatpush.bf16.msrb.mxu0 %v11197_v54  ;;  %4486 = vmatpush.bf16.msrb.mxu2 %v11198_v42  ;;  %v4091_v15 = vpack.c.bf16 %v4090_v61, %v4090_v61  ;;  %v12044_v61 = vld [vmem:[#allocation25_spill] sm:$0xff] }
 0x7ca   :  { %4472 = vmatpush.bf16.msra.mxu1 %v11199_v33  ;;  %4498 = vmatpush.bf16.msrb.mxu3 %v11200_v18 }
 0x7cc   :  { %4461 = vmatpush.bf16.msrb.mxu0 %v8184_v48  ;;  %4487 = vmatpush.bf16.msrb.mxu2 %v8186_v24 }
 0x7ce   :  { %4473 = vmatpush.bf16.msra.mxu1 %v11201_v25  ;;  %4499 = vmatpush.bf16.msrb.mxu3 %v11202_v20 }
 0x7cf   :  { %4414 = vmatmul.bf16.vlgmr.msra.gmra.mxu0 %v9625_v28  ;;  %4440 = vmatmul.bf16.vlgmr.msra.gmra.mxu2 %v9625_v28 }
 0x7d0   :  { %4462 = vmatpush.bf16.msrb.mxu0 %v8196_v35  ;;  %4488 = vmatpush.bf16.msrb.mxu2 %v8198_v57 }
 0x7d2   :  { %4474 = vmatpush.bf16.msra.mxu1 %v11203_v0  ;;  %4500 = vmatpush.bf16.msrb.mxu3 %v11204_v46 }
 0x7d4   :  { %4463 = vmatpush.bf16.msrb.mxu0 %v8210_v1  ;;  %4489 = vmatpush.bf16.msrb.mxu2 %v8212_v59 }
 0x7d5   :  { %4427 = vmatmul.bf16.vlgmr.msrb.gmra.mxu1 %v9633_v44  ;;  %4453 = vmatmul.bf16.vlgmr.msra.gmra.mxu3 %v9633_v44 }
 0x7d6   :  { %4475 = vmatpush.bf16.msra.mxu1 %v11205_v40  ;;  %4501 = vmatpush.bf16.msrb.mxu3 %v11206_v49 }
 0x7d8   :  { %4464 = vmatpush.bf16.msrb.mxu0 %v8220_v11  ;;  %4490 = vmatpush.bf16.msrb.mxu2 %v8222_v10 }
 0x7da   :  { %4476 = vmatpush.bf16.msra.mxu1 %v11207_v63  ;;  %4502 = vmatpush.bf16.msrb.mxu3 %v11208_v36 }
 0x7dc   :  { %4465 = vmatpush.bf16.msrb.mxu0 %v8230_v6  ;;  %4491 = vmatpush.bf16.msrb.mxu2 %v8232_v27 }
 0x7de   :  { %4477 = vmatpush.bf16.msra.mxu1 %v12023_v30  ;;  %4503 = vmatpush.bf16.msrb.mxu3 %v12024_v55 }
 0x7df   :  { %4466 = vmatmul.bf16.vlgmr.msrb.gmra.mxu0 %v4091_v15  ;;  %4492 = vmatmul.bf16.vlgmr.msrb.gmra.mxu2 %v4091_v15 }
 0x7e0   :  { %4541 = vmatpush.bf16.msra.mxu0 %v7261_v5  ;;  %4567 = vmatpush.bf16.msra.mxu2 %v7239_v51 }
 0x7e2   :  { %4478 = vmatpush.bf16.msra.mxu1 %v12027_v3  ;;  %4504 = vmatpush.bf16.msrb.mxu3 %v12028_v34  ;;  %v12223_v3 = vld [vmem:[#allocation156_spill] sm:$0xff] }
 0x7e4   :  { %4542 = vmatpush.bf16.msra.mxu0 %v12025_v31  ;;  %4568 = vmatpush.bf16.msra.mxu2 %v12026_v52  ;;  %v12224_v31 = vld [vmem:[#allocation186_spill] sm:$0xff] }
 0x7e5   :  { %4479 = vmatmul.bf16.vlgmr.msra.gmra.mxu1 %v4091_v15  ;;  %4505 = vmatmul.bf16.vlgmr.msrb.gmra.mxu3 %v4091_v15  ;;  %v12045_v15 = vld [vmem:[#allocation38_spill] sm:$0xff] }
 0x7e6   :  { %4554 = vmatpush.bf16.msrb.mxu1 %v12029_v9  ;;  %4580 = vmatpush.bf16.msra.mxu3 %v12030_v17 }
 0x7e8   :  { %4543 = vmatpush.bf16.msra.mxu0 %v12031_v12  ;;  %4569 = vmatpush.bf16.msra.mxu2 %v12032_v38 }
 0x7ea   :  { %4555 = vmatpush.bf16.msrb.mxu1 %v12033_v4  ;;  %4581 = vmatpush.bf16.msra.mxu3 %v12034_v45  ;;  %v12139_v45 = vld [vmem:[#allocation129_spill] sm:$0xff] }
 0x7ec   :  { %4544 = vmatpush.bf16.msra.mxu0 %v12035_v53  ;;  %4570 = vmatpush.bf16.msra.mxu2 %v12036_v26 }
 0x7ee   :  { %4556 = vmatpush.bf16.msrb.mxu1 %v12037_v39  ;;  %4582 = vmatpush.bf16.msra.mxu3 %v12038_v37  ;;  %v12135_v39 = vld [vmem:[#allocation123_spill] sm:$0xff] }
 0x7f0   :  { %4545 = vmatpush.bf16.msra.mxu0 %v12039_v19  ;;  %4571 = vmatpush.bf16.msra.mxu2 %v12040_v41  ;;  %v12051_v41 = vld [vmem:[#allocation41_spill] sm:$0xff]  ;;  %v12134_v19 = vld [vmem:[#allocation132_spill] sm:$0xff] }
 0x7f2   :  { %4557 = vmatpush.bf16.msrb.mxu1 %v12041_v13  ;;  %4583 = vmatpush.bf16.msra.mxu3 %v12042_v50  ;;  %v12052_v13 = vld [vmem:[#allocation33_spill] sm:$0xff]  ;;  %v12053_v50 = vld [vmem:[#allocation43_spill] sm:$0xff] }
 0x7f4   :  { %4546 = vmatpush.bf16.msra.mxu0 %v12043_v2  ;;  %4572 = vmatpush.bf16.msra.mxu2 %v12044_v61  ;;  %v12054_v2 = vld [vmem:[#allocation35_spill] sm:$0xff]  ;;  %v12055_v61 = vld [vmem:[#allocation46_spill] sm:$0xff] }
 0x7f6   :  { %4558 = vmatpush.bf16.msrb.mxu1 %v12045_v15  ;;  %4584 = vmatpush.bf16.msra.mxu3 %v12046_v8  ;;  %v12056_v15 = vld [vmem:[#allocation30_spill] sm:$0xff]  ;;  %v12073_v8 = vld [vmem:[#allocation64_spill] sm:$0xff] }
 0x7f8   :  { %4547 = vmatpush.bf16.msra.mxu0 %v12047_v21  ;;  %4573 = vmatpush.bf16.msra.mxu2 %v12048_v62  ;;  %v12057_v62 = vld [vmem:[#allocation47_spill] sm:$0xff]  ;;  %v12072_v21 = vld [vmem:[#allocation53_spill] sm:$0xff] }
 0x7fa   :  { %4559 = vmatpush.bf16.msrb.mxu1 %v12049_v23  ;;  %4585 = vmatpush.bf16.msra.mxu3 %v12050_v60  ;;  %v12058_v23 = vld [vmem:[#allocation39_spill] sm:$0xff]  ;;  %v12059_v60 = vld [vmem:[#allocation50_spill] sm:$0xff] }
 0x7fc   :  { %4548 = vmatpush.bf16.msra.mxu0 %v12051_v41  ;;  %4574 = vmatpush.bf16.msra.mxu2 %v12052_v13  ;;  %v12060_v41 = vld [vmem:[#allocation34_spill] sm:$0xff]  ;;  %v12061_v13 = vld [vmem:[#allocation52_spill] sm:$0xff] }
 0x7fe   :  { %4560 = vmatpush.bf16.msrb.mxu1 %v12055_v61  ;;  %4586 = vmatpush.bf16.msra.mxu3 %v12056_v15  ;;  %v12063_v15 = vld [vmem:[#allocation51_spill] sm:$0xff]  ;;  %v12064_v61 = vld [vmem:[#allocation44_spill] sm:$0xff] }
 0x7ff   :  { %4549 = vmatmul.bf16.vlgmr.msra.gmra.mxu0 %v9625_v28  ;;  %4575 = vmatmul.bf16.vlgmr.msra.gmra.mxu2 %v9625_v28 }
 0x800   :  { %4593 = vmatpush.bf16.msrb.mxu0 %v12053_v50  ;;  %4619 = vmatpush.bf16.msrb.mxu2 %v12054_v2  ;;  %v12062_v50 = vld [vmem:[#allocation36_spill] sm:$0xff] }
 0x801   :  { %v12065_v2 = vld [vmem:[#allocation56_spill] sm:$0xff] }
 0x802   :  { %4561 = vmatpush.bf16.msrb.mxu1 %v12059_v60  ;;  %4587 = vmatpush.bf16.msra.mxu3 %v12060_v41  ;;  %v12068_v60 = vld [vmem:[#allocation48_spill] sm:$0xff] }
 0x803   :  { %v12069_v41 = vld [vmem:[#allocation60_spill] sm:$0xff] }
 0x804   :  { %4594 = vmatpush.bf16.msrb.mxu0 %v12057_v62  ;;  %4620 = vmatpush.bf16.msrb.mxu2 %v12058_v23  ;;  %v12066_v62 = vld [vmem:[#allocation40_spill] sm:$0xff]  ;;  %v12067_v23 = vld [vmem:[#allocation55_spill] sm:$0xff] }
 0x805   :  { %4562 = vmatmul.bf16.vlgmr.msrb.gmra.mxu1 %v9633_v44  ;;  %4588 = vmatmul.bf16.vlgmr.msra.gmra.mxu3 %v9633_v44 }
 0x806   :  { %4606 = vmatpush.bf16.msra.mxu1 %v12061_v13  ;;  %4632 = vmatpush.bf16.msrb.mxu3 %v12062_v50  ;;  %v12070_v13 = vld [vmem:[#allocation45_spill] sm:$0xff]  ;;  %v12071_v50 = vld [vmem:[#allocation59_spill] sm:$0xff] }
 0x808   :  { %4595 = vmatpush.bf16.msrb.mxu0 %v12063_v15  ;;  %4621 = vmatpush.bf16.msrb.mxu2 %v12064_v61  ;;  %v12074_v15 = vld [vmem:[#allocation49_spill] sm:$0xff]  ;;  %v12075_v61 = vld [vmem:[#allocation63_spill] sm:$0xff] }
 0x80a   :  { %4607 = vmatpush.bf16.msra.mxu1 %v12065_v2  ;;  %4633 = vmatpush.bf16.msrb.mxu3 %v12066_v62  ;;  %v12076_v2 = vld [vmem:[#allocation57_spill] sm:$0xff]  ;;  %v12077_v62 = vld [vmem:[#allocation68_spill] sm:$0xff] }
 0x80c   :  { %4596 = vmatpush.bf16.msrb.mxu0 %v12067_v23  ;;  %4622 = vmatpush.bf16.msrb.mxu2 %v12068_v60  ;;  %v12078_v23 = vld [vmem:[#allocation54_spill] sm:$0xff]  ;;  %v12079_v60 = vld [vmem:[#allocation67_spill] sm:$0xff] }
 0x80e   :  { %4608 = vmatpush.bf16.msra.mxu1 %v12069_v41  ;;  %4634 = vmatpush.bf16.msrb.mxu3 %v12070_v13  ;;  %v12080_v41 = vld [vmem:[#allocation61_spill] sm:$0xff]  ;;  %v12081_v13 = vld [vmem:[#allocation70_spill] sm:$0xff] }
 0x810   :  { %4597 = vmatpush.bf16.msrb.mxu0 %v12071_v50  ;;  %4623 = vmatpush.bf16.msrb.mxu2 %v12072_v21  ;;  %v12082_v50 = vld [vmem:[#allocation58_spill] sm:$0xff]  ;;  %v12083_v21 = vld [vmem:[#allocation69_spill] sm:$0xff] }
 0x812   :  { %4609 = vmatpush.bf16.msra.mxu1 %v12073_v8  ;;  %4635 = vmatpush.bf16.msrb.mxu3 %v12074_v15  ;;  %v12084_v8 = vld [vmem:[#allocation65_spill] sm:$0xff]  ;;  %v12085_v15 = vld [vmem:[#allocation72_spill] sm:$0xff] }
 0x814   :  { %4598 = vmatpush.bf16.msrb.mxu0 %v12075_v61  ;;  %4624 = vmatpush.bf16.msrb.mxu2 %v12076_v2  ;;  %v12086_v61 = vld [vmem:[#allocation79_spill] sm:$0xff] }
 0x815   :  { %v12087_v2 = vld [vmem:[#allocation71_spill] sm:$0xff] }
 0x816   :  { %4610 = vmatpush.bf16.msra.mxu1 %v12077_v62  ;;  %4636 = vmatpush.bf16.msrb.mxu3 %v12078_v23  ;;  %v12088_v62 = vld [vmem:[#allocation62_spill] sm:$0xff]  ;;  %v12105_v23 = vld [vmem:[#allocation115_spill] sm:$0xff] }
 0x818   :  { %4599 = vmatpush.bf16.msrb.mxu0 %v12079_v60  ;;  %4625 = vmatpush.bf16.msrb.mxu2 %v12080_v41  ;;  %v12089_v41 = vld [vmem:[#allocation74_spill] sm:$0xff]  ;;  %v12104_v60 = vld [vmem:[#allocation97_spill] sm:$0xff] }
 0x81a   :  { %4611 = vmatpush.bf16.msra.mxu1 %v12081_v13  ;;  %4637 = vmatpush.bf16.msrb.mxu3 %v12082_v50  ;;  %v12090_v13 = vld [vmem:[#allocation82_spill] sm:$0xff]  ;;  %v12091_v50 = vld [vmem:[#allocation73_spill] sm:$0xff] }
 0x81c   :  { %4600 = vmatpush.bf16.msrb.mxu0 %v12083_v21  ;;  %4626 = vmatpush.bf16.msrb.mxu2 %v12084_v8  ;;  %v12092_v21 = vld [vmem:[#allocation66_spill] sm:$0xff]  ;;  %v12093_v8 = vld [vmem:[#allocation96_spill] sm:$0xff] }
 0x81e   :  { %4612 = vmatpush.bf16.msra.mxu1 %v12087_v2  ;;  %4638 = vmatpush.bf16.msrb.mxu3 %v12088_v62  ;;  %v12095_v62 = vld [vmem:[#allocation75_spill] sm:$0xff] }
 0x81f   :  { %4601 = vmatmul.bf16.vlgmr.msrb.gmra.mxu0 %v9625_v28  ;;  %4627 = vmatmul.bf16.vlgmr.msrb.gmra.mxu2 %v9625_v28  ;;  %v12096_v2 = vld [vmem:[#allocation87_spill] sm:$0xff] }
 0x820   :  { %4645 = vmatpush.bf16.msra.mxu0 %v12085_v15  ;;  %4671 = vmatpush.bf16.msra.mxu2 %v12086_v61  ;;  %v12094_v15 = vld [vmem:[#allocation80_spill] sm:$0xff]  ;;  %v12097_v61 = vld [vmem:[#allocation103_spill] sm:$0xff] }
 0x822   :  { %4613 = vmatpush.bf16.msra.mxu1 %v12091_v50  ;;  %4639 = vmatpush.bf16.msrb.mxu3 %v12092_v21  ;;  %v12100_v50 = vld [vmem:[#allocation90_spill] sm:$0xff]  ;;  %v12101_v21 = vld [vmem:[#allocation111_spill] sm:$0xff] }
 0x824   :  { %4646 = vmatpush.bf16.msra.mxu0 %v12089_v41  ;;  %4672 = vmatpush.bf16.msra.mxu2 %v12090_v13  ;;  %v12098_v41 = vld [vmem:[#allocation83_spill] sm:$0xff]  ;;  %v12099_v13 = vld [vmem:[#allocation77_spill] sm:$0xff] }
 0x825   :  { %4614 = vmatmul.bf16.vlgmr.msra.gmra.mxu1 %v9633_v44  ;;  %4640 = vmatmul.bf16.vlgmr.msrb.gmra.mxu3 %v9633_v44 }
 0x826   :  { %4658 = vmatpush.bf16.msrb.mxu1 %v12093_v8  ;;  %4684 = vmatpush.bf16.msra.mxu3 %v12094_v15  ;;  %v12102_v8 = vld [vmem:[#allocation88_spill] sm:$0xff]  ;;  %v12103_v15 = vld [vmem:[#allocation81_spill] sm:$0xff] }
 0x828   :  { %4647 = vmatpush.bf16.msra.mxu0 %v12095_v62  ;;  %4673 = vmatpush.bf16.msra.mxu2 %v12096_v2  ;;  %v12106_v62 = vld [vmem:[#allocation91_spill] sm:$0xff]  ;;  %v12107_v2 = vld [vmem:[#allocation84_spill] sm:$0xff] }
 0x82a   :  { %4659 = vmatpush.bf16.msrb.mxu1 %v12097_v61  ;;  %4685 = vmatpush.bf16.msra.mxu3 %v12098_v41  ;;  %v12108_v61 = vld [vmem:[#allocation104_spill] sm:$0xff]  ;;  %v12109_v41 = vld [vmem:[#allocation125_spill] sm:$0xff] }
 0x82c   :  { %4648 = vmatpush.bf16.msra.mxu0 %v12099_v13  ;;  %4674 = vmatpush.bf16.msra.mxu2 %v12100_v50  ;;  %v12110_v13 = vld [vmem:[#allocation99_spill] sm:$0xff]  ;;  %v12111_v50 = vld [vmem:[#allocation89_spill] sm:$0xff] }
 0x82e   :  { %4660 = vmatpush.bf16.msrb.mxu1 %v12101_v21  ;;  %4686 = vmatpush.bf16.msra.mxu3 %v12102_v8  ;;  %v12112_v21 = vld [vmem:[#allocation112_spill] sm:$0xff]  ;;  %v12113_v8 = vld [vmem:[#allocation130_spill] sm:$0xff] }
 0x830   :  { %4649 = vmatpush.bf16.msra.mxu0 %v12103_v15  ;;  %4675 = vmatpush.bf16.msra.mxu2 %v12104_v60  ;;  %v12114_v15 = vld [vmem:[#allocation105_spill] sm:$0xff]  ;;  %v12115_v60 = vld [vmem:[#allocation92_spill] sm:$0xff] }
 0x832   :  { %4661 = vmatpush.bf16.msrb.mxu1 %v12105_v23  ;;  %4687 = vmatpush.bf16.msra.mxu3 %v12106_v62  ;;  %v12116_v23 = vld [vmem:[#allocation116_spill] sm:$0xff]  ;;  %v12117_v62 = vld [vmem:[#allocation95_spill] sm:$0xff] }
 0x834   :  { %4650 = vmatpush.bf16.msra.mxu0 %v12107_v2  ;;  %4676 = vmatpush.bf16.msra.mxu2 %v12108_v61  ;;  %v12118_v2 = vld [vmem:[#allocation118_spill] sm:$0xff] }
 0x835   :  { %v12119_v61 = vld [vmem:[#allocation138_spill] sm:$0xff] }
 0x836   :  { %4662 = vmatpush.bf16.msrb.mxu1 %v12109_v41  ;;  %4688 = vmatpush.bf16.msra.mxu3 %v12110_v13  ;;  %v12120_v41 = vld [vmem:[#allocation113_spill] sm:$0xff]  ;;  %v12133_v13 = vld [vmem:[#allocation152_spill] sm:$0xff] }
 0x838   :  { %4651 = vmatpush.bf16.msra.mxu0 %v12111_v50  ;;  %4677 = vmatpush.bf16.msra.mxu2 %v12112_v21  ;;  %v12121_v21 = vld [vmem:[#allocation100_spill] sm:$0xff] }
 0x83a   :  { %4663 = vmatpush.bf16.msrb.mxu1 %v12113_v8  ;;  %4689 = vmatpush.bf16.msra.mxu3 %v12114_v15  ;;  %v12122_v8 = vld [vmem:[#allocation127_spill] sm:$0xff]  ;;  %v12123_v15 = vld [vmem:[#allocation142_spill] sm:$0xff] }
 0x83c   :  { %4652 = vmatpush.bf16.msra.mxu0 %v12115_v60  ;;  %4678 = vmatpush.bf16.msra.mxu2 %v12116_v23  ;;  %v12124_v60 = vld [vmem:[#allocation117_spill] sm:$0xff]  ;;  %v12125_v23 = vld [vmem:[#allocation143_spill] sm:$0xff] }
 0x83e   :  { %4664 = vmatpush.bf16.msrb.mxu1 %v12119_v61  ;;  %4690 = vmatpush.bf16.msra.mxu3 %v12120_v41  ;;  %v12127_v41 = vld [vmem:[#allocation106_spill] sm:$0xff]  ;;  %v12128_v61 = vld [vmem:[#allocation131_spill] sm:$0xff] }
 0x83f   :  { %4653 = vmatmul.bf16.vlgmr.msra.gmra.mxu0 %v9625_v28  ;;  %4679 = vmatmul.bf16.vlgmr.msra.gmra.mxu2 %v9625_v28 }
 0x840   :  { %4697 = vmatpush.bf16.msrb.mxu0 %v12117_v62  ;;  %4723 = vmatpush.bf16.msrb.mxu2 %v12118_v2  ;;  %v12126_v62 = vld [vmem:[#allocation122_spill] sm:$0xff]  ;;  %v4363_v2 = vpop.f32.mrf.mxu0 }
 0x842   :  { %4665 = vmatpush.bf16.msrb.mxu1 %v12123_v15  ;;  %4691 = vmatpush.bf16.msra.mxu3 %v12124_v60  ;;  %v4376_v15 = vpop.f32.mrf.mxu1  ;;  %v4389_v50 = vpop.f32.mrf.mxu2  ;;  %v12131_v60 = vld [vmem:[#allocation114_spill] sm:$0xff] }
 0x844   :  { %4698 = vmatpush.bf16.msrb.mxu0 %v12121_v21  ;;  %4724 = vmatpush.bf16.msrb.mxu2 %v12122_v8  ;;  %v12129_v21 = vld [vmem:[#allocation149_spill] sm:$0xff]  ;;  %v12130_v8 = vld [vmem:[#allocation128_spill] sm:$0xff] }
 0x845   :  { %4666 = vmatmul.bf16.vlgmr.msrb.gmra.mxu1 %v9633_v44  ;;  %4692 = vmatmul.bf16.vlgmr.msra.gmra.mxu3 %v9633_v44 }
 0x846   :  { %4710 = vmatpush.bf16.msra.mxu1 %v12125_v23  ;;  %4736 = vmatpush.bf16.msrb.mxu3 %v12126_v62  ;;  %v12132_v23 = vld [vmem:[#allocation139_spill] sm:$0xff]  ;;  %v4377_v62 = vadd.f32 %v4376_v15, %v4363_v2  ;;  %v12140_v2 = vld [vmem:[#allocation150_spill] sm:$0xff] }
 0x847   :  { %v12141_v15 = vld [vmem:[#allocation162_spill] sm:$0xff] }
 0x848   :  { %4699 = vmatpush.bf16.msrb.mxu0 %v12127_v41  ;;  %4725 = vmatpush.bf16.msrb.mxu2 %v12128_v61  ;;  %v4365_v37 = vpop.f32.mrf.mxu0  ;;  %v12136_v41 = vld [vmem:[#allocation144_spill] sm:$0xff]  ;;  %v12137_v61 = vld [vmem:[#allocation159_spill] sm:$0xff] }
 0x84a   :  { %4711 = vmatpush.bf16.msra.mxu1 %v12129_v21  ;;  %4737 = vmatpush.bf16.msrb.mxu3 %v12130_v8  ;;  %v12138_v21 = vld [vmem:[#allocation140_spill] sm:$0xff]  ;;  %v4402_v8 = vpop.f32.mrf.mxu3  ;;  %v4378_v53 = vpop.f32.mrf.mxu1 }
 0x84b   :  { %v4403_v26 = vadd.f32 %v4402_v8, %v4389_v50  ;;  %v12147_v50 = vld [vmem:[#allocation141_spill] sm:$0xff] }
 0x84c   :  { %4700 = vmatpush.bf16.msrb.mxu0 %v12131_v60  ;;  %4726 = vmatpush.bf16.msrb.mxu2 %v12132_v23  ;;  %v4391_v60 = vpop.f32.mrf.mxu2  ;;  %v12168_v23 = vld [vmem:[#allocation223_spill] sm:$0xff] }
 0x84e   :  { %4712 = vmatpush.bf16.msra.mxu1 %v12133_v13  ;;  %4738 = vmatpush.bf16.msrb.mxu3 %v12134_v19  ;;  %v12142_v19 = vld [vmem:[#allocation147_spill] sm:$0xff] }
 0x850   :  { %4701 = vmatpush.bf16.msrb.mxu0 %v12135_v39  ;;  %4727 = vmatpush.bf16.msrb.mxu2 %v12136_v41  ;;  %v4415_v37 = vpop.f32.mrf.mxu0  ;;  %v12143_v39 = vld [vmem:[#allocation137_spill] sm:$0xff] }
 0x851   :  { %v12144_v41 = vld [vmem:[#allocation153_spill] sm:$0xff] }
 0x852   :  { %4713 = vmatpush.bf16.msra.mxu1 %v12137_v61  ;;  %4739 = vmatpush.bf16.msrb.mxu3 %v12138_v21  ;;  %v12145_v61 = vld [vmem:[#allocation168_spill] sm:$0xff]  ;;  %v12146_v21 = vld [vmem:[#allocation151_spill] sm:$0xff]  ;;  %v4404_v8 = vpop.f32.mrf.mxu3  ;;  %v4428_v53 = vpop.f32.mrf.mxu1 }
 0x853   :  { %v12153_v8 = vld [vmem:[#allocation172_spill] sm:$0xff] }
 0x854   :  { %4702 = vmatpush.bf16.msrb.mxu0 %v12139_v45  ;;  %4728 = vmatpush.bf16.msrb.mxu2 %v12140_v2  ;;  %v4441_v60 = vpop.f32.mrf.mxu2  ;;  %v12148_v45 = vld [vmem:[#allocation160_spill] sm:$0xff]  ;;  %v4429_v2 = vadd.f32 %v4428_v53, %v4415_v37  ;;  %v12155_v37 = vld [vmem:[#allocation211_spill] sm:$0xff] }
 0x855   :  { %v12156_v53 = vld [vmem:[#allocation212_spill] sm:$0xff] }
 0x856   :  { %4714 = vmatpush.bf16.msra.mxu1 %v12141_v15  ;;  %4740 = vmatpush.bf16.msrb.mxu3 %v12142_v19  ;;  %v12149_v15 = vld [vmem:[#allocation169_spill] sm:$0xff]  ;;  %v12150_v19 = vld [vmem:[#allocation154_spill] sm:$0xff] }
 0x858   :  { %4703 = vmatpush.bf16.msrb.mxu0 %v12143_v39  ;;  %4729 = vmatpush.bf16.msrb.mxu2 %v12144_v41  ;;  %v4417_v13 = vpop.f32.mrf.mxu0  ;;  %v12151_v39 = vld [vmem:[#allocation207_spill] sm:$0xff]  ;;  %v12152_v41 = vld [vmem:[#allocation208_spill] sm:$0xff] }
 0x85a   :  { %4715 = vmatpush.bf16.msra.mxu1 %v12145_v61  ;;  %4741 = vmatpush.bf16.msrb.mxu3 %v12146_v21  ;;  %v12154_v21 = vld [vmem:[#allocation161_spill] sm:$0xff] }
 0x85c   :  { %4704 = vmatpush.bf16.msrb.mxu0 %v12147_v50  ;;  %4730 = vmatpush.bf16.msrb.mxu2 %v12148_v45  ;;  %v4454_v50 = vpop.f32.mrf.mxu3  ;;  %v4443_v13 = vpop.f32.mrf.mxu2 }
 0x85d   :  { %v4455_v45 = vadd.f32 %v4454_v50, %v4441_v60  ;;  %v12161_v60 = vld [vmem:[#allocation203_spill] sm:$0xff]  ;;  %v12162_v50 = vld [vmem:[#allocation204_spill] sm:$0xff] }
 0x85e   :  { %4716 = vmatpush.bf16.msra.mxu1 %v12149_v15  ;;  %4742 = vmatpush.bf16.msrb.mxu3 %v12150_v19  ;;  %v4430_v19 = vpop.f32.mrf.mxu1  ;;  %v12157_v15 = vld [vmem:[#allocation200_spill] sm:$0xff] }
 0x85f   :  { %4705 = vmatmul.bf16.vlgmr.msrb.gmra.mxu0 %v9625_v28  ;;  %4731 = vmatmul.bf16.vlgmr.msrb.gmra.mxu2 %v9625_v28  ;;  %v12163_v19 = vld [vmem:[#allocation290_spill] sm:$0xff] }
 0x860   :  { %4795 = vmatpush.bf16.msra.mxu0 %v12151_v39  ;;  %4821 = vmatpush.bf16.msra.mxu2 %v12152_v41  ;;  %v12158_v39 = vld [vmem:[#allocation201_spill] sm:$0xff]  ;;  %v4467_v28 = vpop.f32.mrf.mxu0  ;;  %v12159_v41 = vld [vmem:[#allocation215_spill] sm:$0xff] }
 0x862   :  { %4717 = vmatpush.bf16.msra.mxu1 %v12153_v8  ;;  %4743 = vmatpush.bf16.msrb.mxu3 %v12154_v21  ;;  %v4468_v8 = vadd.f32 %v4467_v28, %v4377_v62  ;;  %v12160_v21 = vld [vmem:[#allocation216_spill] sm:$0xff]  ;;  %v12167_v62 = vld [vmem:[#allocation206_spill] sm:$0xff] }
 0x864   :  { %4796 = vmatpush.bf16.msra.mxu0 %v12155_v37  ;;  %4822 = vmatpush.bf16.msra.mxu2 %v12156_v53  ;;  %v4510_v13 = vadd.f32 %v4468_v8, %v12163_v19  ;;  %v4456_v53 = vpop.f32.mrf.mxu3  ;;  %v4493_v61 = vpop.f32.mrf.mxu2  ;;  %v12170_v8 = vld [vmem:[#allocation289_spill] sm:$0xff] }
 0x865   :  { %4718 = vmatmul.bf16.vlgmr.msra.gmra.mxu1 %v9633_v44  ;;  %4744 = vmatmul.bf16.vlgmr.msrb.gmra.mxu3 %v9633_v44  ;;  %v12166_v44 = vld [vmem:[#allocation205_spill] sm:$0xff] }
 0x866   :  { %4808 = vmatpush.bf16.msrb.mxu1 %v12157_v15  ;;  %4834 = vmatpush.bf16.msra.mxu3 %v12158_v39  ;;  %v12164_v15 = vld [vmem:[#allocation219_spill] sm:$0xff]  ;;  %v12165_v39 = vld [vmem:[#allocation220_spill] sm:$0xff]  ;;  %v4514_v37 = vmul.f32 0.5, %v4510_v13  ;;  %v4480_v28 = vpop.f32.mrf.mxu1  ;;  %v12172_v13 = vld [vmem:[#allocation210_spill] sm:$0xff] }
 0x867   :  { %v12173_v19 = vld [vmem:[#allocation229_spill] sm:$0xff] }
 0x868   :  { %4797 = vmatpush.bf16.msra.mxu0 %v12159_v41  ;;  %4823 = vmatpush.bf16.msra.mxu2 %v12160_v21  ;;  %v9831_v41 = vadd.f32 %v4493_v61, %v4429_v2  ;;  %v4481_v21 = vadd.f32 %v4480_v28, %v4403_v26  ;;  %6895 = vtanh.f32 %v4514_v37  ;;  %v12175_v2 = vld [vmem:[#allocation213_spill] sm:$0xff] }
 0x86a   :  { %4809 = vmatpush.bf16.msrb.mxu1 %v12161_v60  ;;  %4835 = vmatpush.bf16.msra.mxu3 %v12162_v50  ;;  %v4469_v60 = vpop.f32.mrf.mxu0  ;;  %v12169_v50 = vld [vmem:[#allocation224_spill] sm:$0xff]  ;;  %v4511_v53 = vadd.f32 %v4481_v21, %v12170_v8  ;;  %v12177_v21 = vld [vmem:[#allocation291_spill] sm:$0xff] }
 0x86b   :  { %v12176_v60 = vld [vmem:[#allocation214_spill] sm:$0xff] }
 0x86c   :  { %4798 = vmatpush.bf16.msra.mxu0 %v12164_v15  ;;  %4824 = vmatpush.bf16.msra.mxu2 %v12165_v39  ;;  %v12171_v15 = vld [vmem:[#allocation209_spill] sm:$0xff]  ;;  %v4515_v39 = vmul.f32 0.5, %v4511_v53  ;;  %v4495_v61 = vpop.f32.mrf.mxu2 }
 0x86d   :  { %v12180_v53 = vld [vmem:[#allocation217_spill] sm:$0xff] }
 0x86e   :  { %4810 = vmatpush.bf16.msrb.mxu1 %v12166_v44  ;;  %4836 = vmatpush.bf16.msra.mxu3 %v12167_v62  ;;  %v4506_v44 = vpop.f32.mrf.mxu3  ;;  %v12174_v62 = vld [vmem:[#allocation230_spill] sm:$0xff]  ;;  %6897 = vtanh.f32 %v4515_v39  ;;  %v4482_v37 = vpop.f32.mrf.mxu1 }
 0x86f   :  { %v4507_v26 = vadd.f32 %v4506_v44, %v4455_v45  ;;  %v6896_v28 = vpop.eup %6895  ;;  %v12184_v37 = vld [vmem:[#allocation239_spill] sm:$0xff] }
 0x870   :  { %4799 = vmatpush.bf16.msra.mxu0 %v12168_v23  ;;  %4825 = vmatpush.bf16.msra.mxu2 %v12169_v50  ;;  %v4520_v39 = vmul.f32 0.5, %v6896_v28  ;;  %v12210_v50 = vld [vmem:[#allocation245_spill] sm:$0xff] }
 0x871   :  { %v4513_v8 = vadd.f32 %v4507_v26, %v12177_v21  ;;  %v12185_v26 = vld [vmem:[#allocation240_spill] sm:$0xff] }
 0x872   :  { %4811 = vmatpush.bf16.msrb.mxu1 %v12171_v15  ;;  %4837 = vmatpush.bf16.msra.mxu3 %v12172_v13  ;;  %v12178_v15 = vld [vmem:[#allocation233_spill] sm:$0xff]  ;;  %v12179_v13 = vld [vmem:[#allocation234_spill] sm:$0xff] }
 0x873   :  { %6899 = vtanh.f32 %v4513_v8  ;;  %v12187_v8 = vld [vmem:[#allocation222_spill] sm:$0xff] }
 0x874   :  { %4800 = vmatpush.bf16.msra.mxu0 %v12173_v19  ;;  %4826 = vmatpush.bf16.msra.mxu2 %v12174_v62  ;;  %v12181_v19 = vld [vmem:[#allocation218_spill] sm:$0xff]  ;;  %v6898_v45 = vpop.eup %6897  ;;  %v12207_v62 = vld [vmem:[#allocation259_spill] sm:$0xff] }
 0x875   :  { %v4521_v44 = vmul.f32 0.5, %v6898_v45  ;;  %v12188_v45 = vld [vmem:[#allocation243_spill] sm:$0xff] }
 0x876   :  { %4812 = vmatpush.bf16.msrb.mxu1 %v12175_v2  ;;  %4838 = vmatpush.bf16.msra.mxu3 %v12176_v60  ;;  %v4508_v61 = vpop.f32.mrf.mxu3  ;;  %v12182_v2 = vld [vmem:[#allocation237_spill] sm:$0xff]  ;;  %v12183_v60 = vld [vmem:[#allocation238_spill] sm:$0xff] }
 0x877   :  { %v4524_v21 = vadd.f32 0.5, %v4521_v44  ;;  %v12189_v61 = vld [vmem:[#allocation244_spill] sm:$0xff] }
 0x878   :  { %4801 = vmatpush.bf16.msra.mxu0 %v12178_v15  ;;  %4827 = vmatpush.bf16.msra.mxu2 %v12179_v13  ;;  %v4523_v15 = vadd.f32 0.5, %v4520_v39  ;;  %v12186_v13 = vld [vmem:[#allocation221_spill] sm:$0xff]  ;;  %v12192_v39 = vld [vmem:[#allocation227_spill] sm:$0xff]  ;;  %v12193_v44 = vld [vmem:[#allocation228_spill] sm:$0xff] }
 0x879   :  { %v4527_v28 = vmul.f32 %v4524_v21, %v9569_v16  ;;  %v12196_v16 = vld [vmem:[#allocation231_spill] sm:$0xff] }
 0x87a   :  { %4813 = vmatpush.bf16.msrb.mxu1 %v12180_v53  ;;  %4839 = vmatpush.bf16.msra.mxu3 %v12181_v19  ;;  %v6900_v53 = vpop.eup %6899  ;;  %v12198_v21 = vld [vmem:[#allocation251_spill] sm:$0xff] }
 0x87b   :  { %v4528_v19 = vmul.f32 %v6900_v53, %v4523_v15  ;;  %v12197_v15 = vld [vmem:[#allocation232_spill] sm:$0xff] }
 0x87c   :  { %4802 = vmatpush.bf16.msra.mxu0 %v12182_v2  ;;  %4828 = vmatpush.bf16.msra.mxu2 %v12183_v60  ;;  %v12190_v60 = vld [vmem:[#allocation225_spill] sm:$0xff] }
 0x87d   :  { %v9856_v2 = vadd.f32 %v4528_v19, %v4527_v28  ;;  %v12199_v19 = vld [vmem:[#allocation252_spill] sm:$0xff] }
 0x87e   :  { %4814 = vmatpush.bf16.msrb.mxu1 %v12186_v13  ;;  %4840 = vmatpush.bf16.msra.mxu3 %v12187_v8  ;;  %v4550_v13 = vpop.f32.mrf.mxu0  ;;  %v12194_v8 = vld [vmem:[#allocation247_spill] sm:$0xff] }
 0x880   :  { %4847 = vmatpush.bf16.msrb.mxu0 %v12184_v37  ;;  %4873 = vmatpush.bf16.msrb.mxu2 %v12185_v26  ;;  %v12191_v37 = vld [vmem:[#allocation226_spill] sm:$0xff]  ;;  %v12195_v26 = vld [vmem:[#allocation248_spill] sm:$0xff] }
 0x882   :  { %4815 = vmatpush.bf16.msrb.mxu1 %v12190_v60  ;;  %4841 = vmatpush.bf16.msra.mxu3 %v12191_v37  ;;  %v4563_v53 = vpop.f32.mrf.mxu1  ;;  %v4576_v28 = vpop.f32.mrf.mxu2  ;;  %v12200_v60 = vld [vmem:[#allocation235_spill] sm:$0xff] }
 0x883   :  { %v4564_v37 = vadd.f32 %v4563_v53, %v4550_v13  ;;  %v12208_v13 = vld [vmem:[#allocation260_spill] sm:$0xff] }
 0x884   :  { %4848 = vmatpush.bf16.msrb.mxu0 %v12188_v45  ;;  %4874 = vmatpush.bf16.msrb.mxu2 %v12189_v61  ;;  %v12202_v61 = vld [vmem:[#allocation78_spill] sm:$0xff]  ;;  %v12203_v45 = vld [vmem:[#allocation255_spill] sm:$0xff] }
 0x886   :  { %4860 = vmatpush.bf16.msra.mxu1 %v12192_v39  ;;  %4886 = vmatpush.bf16.msrb.mxu3 %v12193_v44  ;;  %v12201_v39 = vld [vmem:[#allocation236_spill] sm:$0xff]  ;;  %v4552_v44 = vpop.f32.mrf.mxu0 }
 0x888   :  { %4849 = vmatpush.bf16.msrb.mxu0 %v12194_v8  ;;  %4875 = vmatpush.bf16.msrb.mxu2 %v12195_v26  ;;  %v4749_v8 = vadd.f32 %v4564_v37, %v12202_v61  ;;  %v12204_v26 = vld [vmem:[#allocation256_spill] sm:$0xff]  ;;  %v12211_v37 = vld [vmem:[#allocation246_spill] sm:$0xff]  ;;  %v12212_v61 = vld [vmem:[#allocation261_spill] sm:$0xff] }
 0x88a   :  { %4861 = vmatpush.bf16.msra.mxu1 %v12196_v16  ;;  %4887 = vmatpush.bf16.msrb.mxu3 %v12197_v15  ;;  %v12205_v16 = vld [vmem:[#allocation241_spill] sm:$0xff]  ;;  %v12206_v15 = vld [vmem:[#allocation242_spill] sm:$0xff]  ;;  %v4565_v53 = vpop.f32.mrf.mxu1  ;;  %v4757_v34 = vmul.f32 0.5, %v4749_v8 }
 0x88b   :  { %v12221_v53 = vld [vmem:[#allocation258_spill] sm:$0xff] }
 0x88c   :  { %4850 = vmatpush.bf16.msrb.mxu0 %v12198_v21  ;;  %4876 = vmatpush.bf16.msrb.mxu2 %v12199_v19  ;;  %v4589_v21 = vpop.f32.mrf.mxu3 }
 0x88d   :  { %v4590_v19 = vadd.f32 %v4589_v21, %v4576_v28  ;;  %v12216_v28 = vld [vmem:[#allocation263_spill] sm:$0xff] }
 0x88e   :  { %4862 = vmatpush.bf16.msra.mxu1 %v12200_v60  ;;  %4888 = vmatpush.bf16.msrb.mxu3 %v12201_v39  ;;  %v4578_v60 = vpop.f32.mrf.mxu2  ;;  %v12209_v39 = vld [vmem:[#allocation166_spill] sm:$0xff] }
 0x88f   :  { %v4750_v44 = vadd.f32 %v4590_v19, %v12209_v39  ;;  %v12218_v60 = vld [vmem:[#allocation253_spill] sm:$0xff]  ;;  %v12219_v39 = vld [vmem:[#allocation254_spill] sm:$0xff] }
 0x890   :  { %4851 = vmatpush.bf16.msrb.mxu0 %v12203_v45  ;;  %4877 = vmatpush.bf16.msrb.mxu2 %v12204_v26  ;;  %v12213_v26 = vld [vmem:[#allocation262_spill] sm:$0xff]  ;;  %v12220_v19 = vld [vmem:[#allocation257_spill] sm:$0xff] }
 0x891   :  { %v4758_v52 = vmul.f32 0.5, %v4750_v44 }
 0x892   :  { %4863 = vmatpush.bf16.msra.mxu1 %v12205_v16  ;;  %4889 = vmatpush.bf16.msrb.mxu3 %v12206_v15  ;;  %v12214_v16 = vld [vmem:[#allocation249_spill] sm:$0xff]  ;;  %v12215_v15 = vld [vmem:[#allocation250_spill] sm:$0xff] }
 0x894   :  { %4852 = vmatpush.bf16.msrb.mxu0 %v12207_v62  ;;  %4878 = vmatpush.bf16.msrb.mxu2 %v12208_v13  ;;  %v4591_v21 = vpop.f32.mrf.mxu3  ;;  %v12217_v13 = vld [vmem:[#allocation264_spill] sm:$0xff] }
 0x896   :  { %4864 = vmatpush.bf16.msra.mxu1 %v12210_v50  ;;  %4890 = vmatpush.bf16.msrb.mxu3 %v12211_v37 }
 0x898   :  { %4853 = vmatpush.bf16.msrb.mxu0 %v12212_v61  ;;  %4879 = vmatpush.bf16.msrb.mxu2 %v12213_v26 }
 0x89a   :  { %4865 = vmatpush.bf16.msra.mxu1 %v12214_v16  ;;  %4891 = vmatpush.bf16.msrb.mxu3 %v12215_v15 }
 0x89c   :  { %4854 = vmatpush.bf16.msrb.mxu0 %v12216_v28  ;;  %4880 = vmatpush.bf16.msrb.mxu2 %v12217_v13  ;;  %v4602_v61 = vpop.f32.mrf.mxu0 }
 0x89e   :  { %4866 = vmatpush.bf16.msra.mxu1 %v12218_v60  ;;  %4892 = vmatpush.bf16.msrb.mxu3 %v12219_v39 }
 0x8a2   :  { %4867 = vmatpush.bf16.msra.mxu1 %v12220_v19  ;;  %4893 = vmatpush.bf16.msrb.mxu3 %v12221_v53  ;;  %v4615_v37 = vpop.f32.mrf.mxu1  ;;  %v4628_v26 = vpop.f32.mrf.mxu2  ;;  %v12222_v19 = vld [vmem:[#allocation155_spill] sm:$0xff] }
 0x8a3   :  { %v4616_v39 = vadd.f32 %v4615_v37, %v4602_v61 }
 0x8a4   :  { %v4604_v50 = vpop.f32.mrf.mxu0 }
 0x8a5   :  { %v4751_v17 = vadd.f32 %v4616_v39, %v12222_v19 }
 0x8a7   :  { %v4759_v9 = vmul.f32 0.5, %v4751_v17  ;;  %v12225_v17 = vld [vmem:[#allocation194_spill] sm:$0xff] }
 0x8a8   :  { %v4641_v16 = vpop.f32.mrf.mxu3 }
 0x8a9   :  { %v4642_v53 = vadd.f32 %v4641_v16, %v4628_v26  ;;  %6901 = vtanh.f32 %v4759_v9 }
 0x8aa   :  { %v4617_v62 = vpop.f32.mrf.mxu1  ;;  %v4630_v15 = vpop.f32.mrf.mxu2  ;;  %6903 = vtanh.f32 %v4757_v34  ;;  %v12226_v34 = vld [vmem:[#allocation199_spill] sm:$0xff] }
 0x8ab   :  { %v4752_v50 = vadd.f32 %v4642_v53, %v12223_v3  ;;  %v12227_v53 = vld [vmem:[#allocation195_spill] sm:$0xff] }
 0x8b0   :  { %v4643_v21 = vpop.f32.mrf.mxu3 }
 0x8b1   :  { %v4760_v21 = vmul.f32 0.5, %v4752_v50 }
 0x8b3   :  { %6905 = vtanh.f32 %v4760_v21 }
 0x8b4   :  { %6907 = vtanh.f32 %v4758_v52 }
 0x8bc   :  { %v4654_v45 = vpop.f32.mrf.mxu0 }
 0x8c2   :  { %v4667_v28 = vpop.f32.mrf.mxu1  ;;  %v4680_v23 = vpop.f32.mrf.mxu2 }
 0x8c3   :  { %v4668_v15 = vadd.f32 %v4667_v28, %v4654_v45 }
 0x8c4   :  { %v4656_v13 = vpop.f32.mrf.mxu0 }
 0x8c5   :  { %v4753_v13 = vadd.f32 %v4668_v15, %v12224_v31 }
 0x8c7   :  { %v4761_v9 = vmul.f32 0.5, %v4753_v13 }
 0x8c8   :  { %v4693_v4 = vpop.f32.mrf.mxu3 }
 0x8c9   :  { %v4694_v37 = vadd.f32 %v4693_v4, %v4680_v23 }
 0x8ca   :  { %v4669_v60 = vpop.f32.mrf.mxu1  ;;  %v4682_v38 = vpop.f32.mrf.mxu2 }
 0x8cb   :  { %v6902_v60 = vpop.eup %6901  ;;  %v4754_v16 = vadd.f32 %v4694_v37, %v12226_v34 }
 0x8cc   :  { %v6904_v61 = vpop.eup %6903  ;;  %v4771_v3 = vmul.f32 0.5, %v6902_v60 }
 0x8cd   :  { %v4769_v45 = vmul.f32 0.5, %v6904_v61  ;;  %v6906_v28 = vpop.eup %6905 }
 0x8ce   :  { %v4777_v39 = vadd.f32 0.5, %v4771_v3  ;;  %v4772_v50 = vmul.f32 0.5, %v6906_v28 }
 0x8cf   :  { %v4775_v52 = vadd.f32 0.5, %v4769_v45 }
 0x8d0   :  { %v4695_v12 = vpop.f32.mrf.mxu3  ;;  %v4783_v13 = vmul.f32 %v4777_v39, %v9618_v43  ;;  %v4778_v37 = vadd.f32 0.5, %v4772_v50 }
 0x8d2   :  { %v4784_v3 = vmul.f32 %v4778_v37, %v9622_v29  ;;  %v12232_v37 = vld [vmem:[#allocation288_spill] sm:$0xff] }
 0x8dc   :  { %v4706_v62 = vpop.f32.mrf.mxu0 }
 0x8e2   :  { %v4719_v55 = vpop.f32.mrf.mxu1  ;;  %v4732_v12 = vpop.f32.mrf.mxu2 }
 0x8e3   :  { %v4720_v38 = vadd.f32 %v4719_v55, %v4706_v62  ;;  %v6908_v55 = vpop.eup %6907  ;;  %v4762_v62 = vmul.f32 0.5, %v4754_v16 }
 0x8e4   :  { %v4708_v8 = vpop.f32.mrf.mxu0  ;;  %v4770_v21 = vmul.f32 0.5, %v6908_v55  ;;  %v4512_v55 = vadd.f32 %v9831_v41, %v8493_v32 }
 0x8e5   :  { %v4755_v26 = vadd.f32 %v4720_v38, %v12225_v17 }
 0x8e6   :  { %v4776_v17 = vadd.f32 0.5, %v4770_v21  ;;  %v12228_v21 = vld [vmem:[#allocation286_spill] sm:$0xff] }
 0x8e7   :  { %6909 = vtanh.f32 %v4755_v26 }
 0x8e8   :  { %v4745_v44 = vpop.f32.mrf.mxu3  ;;  %6911 = vtanh.f32 %v4761_v9 }
 0x8e9   :  { %v4746_v31 = vadd.f32 %v4745_v44, %v4732_v12 }
 0x8ea   :  { %v4721_v19 = vpop.f32.mrf.mxu1  ;;  %v4734_v4 = vpop.f32.mrf.mxu2 }
 0x8eb   :  { %v4756_v23 = vadd.f32 %v4746_v31, %v12227_v53 }
 0x8ed   :  { %v6910_v15 = vpop.eup %6909  ;;  %6913 = vtanh.f32 %v4756_v23  ;;  %v4516_v23 = vmul.f32 0.5, %v4512_v55  ;;  %v12249_v55 = vld [vmem:[#allocation38_spill] sm:$0xff] }
 0x8ee   :  { %v4785_v60 = vmul.f32 %v6910_v15, %v4775_v52  ;;  %v6912_v38 = vpop.eup %6911  ;;  %6915 = vtanh.f32 %v4762_v62 }
 0x8ef   :  { %v4773_v8 = vmul.f32 0.5, %v6912_v38  ;;  %v12231_v38 = vld [vmem:[#allocation287_spill] sm:$0xff] }
 0x8f0   :  { %v9897_v12 = vadd.f32 %v4785_v60, %v4783_v13  ;;  %v4747_v61 = vpop.f32.mrf.mxu3  ;;  %v12229_v13 = vld [vmem:[#allocation16_spill] sm:$0xff] }
 0x8f1   :  { %v4779_v16 = vadd.f32 0.5, %v4773_v8  ;;  %v12230_v60 = vld [vmem:[#allocation12_spill] sm:$0xff]  ;;  %v12238_v8 = vld [vmem:[#allocation13_spill] sm:$0xff] }
 0x8f2   :  { %6917 = vtanh.f32 %v9897_v12  ;;  %v12233_v61 = vld [vmem:[#allocation20_spill] sm:$0xff] }
 0x8f3   :  { %v6914_v26 = vpop.eup %6913 }
 0x8f4   :  { %v4786_v9 = vmul.f32 %v6914_v26, %v4776_v17  ;;  %v6916_v45 = vpop.eup %6915  ;;  %v12236_v17 = vld [vmem:[#allocation14_spill] sm:$0xff]  ;;  %v12237_v26 = vld [vmem:[#allocation23_spill] sm:$0xff] }
 0x8f5   :  { %v4774_v44 = vmul.f32 0.5, %v6916_v45  ;;  %v12241_v45 = vld [vmem:[#allocation27_spill] sm:$0xff] }
 0x8f6   :  { %v9901_v34 = vadd.f32 %v4786_v9, %v4784_v3  ;;  %v12239_v3 = vld [vmem:[#allocation24_spill] sm:$0xff]  ;;  %v12240_v9 = vld [vmem:[#allocation17_spill] sm:$0xff] }
 0x8f7   :  { %v4780_v39 = vadd.f32 0.5, %v4774_v44  ;;  %v12244_v44 = vld [vmem:[#allocation21_spill] sm:$0xff] }
 0x8f8   :  { %v6918_v43 = vpop.eup %6917  ;;  %6919 = vtanh.f32 %v9901_v34 }
 0x8f9   :  { %v4791_v28 = vmul.f32 %v6918_v43, %v4779_v16  ;;  %6921 = vtanh.f32 %v4516_v23  ;;  %v12242_v16 = vld [vmem:[#allocation15_spill] sm:$0xff]  ;;  %v12243_v43 = vld [vmem:[#allocation28_spill] sm:$0xff]  ;;  %v12250_v23 = vld [vmem:[#allocation22_spill] sm:$0xff] }
 0x8fa   :  { %6923 = vtanh.f32 %v9856_v2 }
 0x8fb   :  { %v9904_v31 = vpack.c.bf16 %v4791_v28, %v4791_v28  ;;  %v12245_v28 = vld [vmem:[#allocation32_spill] sm:$0xff] }
 0x8fd   :  { %4803 = vmatmul.bf16.vlgmr.msra.gmra.mxu0 %v9904_v31  ;;  %4829 = vmatmul.bf16.vlgmr.msra.gmra.mxu2 %v9904_v31 }
 0x8fe   :  { %v6920_v19 = vpop.eup %6919  ;;  %4899 = vmatpush.bf16.msra.mxu0 %v11191_v58  ;;  %4925 = vmatpush.bf16.msra.mxu2 %v11192_v22 }
 0x8ff   :  { %v4792_v29 = vmul.f32 %v6920_v19, %v4780_v39  ;;  %v6922_v41 = vpop.eup %6921  ;;  %v12246_v39 = vld [vmem:[#allocation18_spill] sm:$0xff]  ;;  %v12247_v19 = vld [vmem:[#allocation31_spill] sm:$0xff] }
 0x900   :  { %v4522_v4 = vmul.f32 0.5, %v6922_v41  ;;  %v6924_v52 = vpop.eup %6923  ;;  %v12251_v41 = vld [vmem:[#allocation37_spill] sm:$0xff] }
 0x901   :  { %v9912_v53 = vpack.c.bf16 %v4792_v29, %v4792_v29  ;;  %v12248_v29 = vld [vmem:[#allocation25_spill] sm:$0xff] }
 0x902   :  { %4900 = vmatpush.bf16.msra.mxu0 %v11193_v7  ;;  %4926 = vmatpush.bf16.msra.mxu2 %v11194_v47  ;;  %v4525_v50 = vadd.f32 0.5, %v4522_v4  ;;  %v12252_v4 = vld [vmem:[#allocation29_spill] sm:$0xff] }
 0x903   :  { %4816 = vmatmul.bf16.vlgmr.msrb.gmra.mxu1 %v9912_v53  ;;  %4842 = vmatmul.bf16.vlgmr.msra.gmra.mxu3 %v9912_v53 }
 0x904   :  { %4912 = vmatpush.bf16.msrb.mxu1 %v11195_v56  ;;  %4938 = vmatpush.bf16.msra.mxu3 %v11196_v14  ;;  %v4531_v62 = vmul.f32 %v6924_v52, %v4525_v50  ;;  %v12253_v52 = vld [vmem:[#allocation42_spill] sm:$0xff] }
 0x905   :  { %v12254_v50 = vld [vmem:[#allocation26_spill] sm:$0xff] }
 0x906   :  { %4901 = vmatpush.bf16.msra.mxu0 %v11197_v54  ;;  %4927 = vmatpush.bf16.msra.mxu2 %v11198_v42  ;;  %v4532_v15 = vpack.c.bf16 %v4531_v62, %v4531_v62  ;;  %v12255_v62 = vld [vmem:[#allocation41_spill] sm:$0xff] }
 0x908   :  { %4913 = vmatpush.bf16.msrb.mxu1 %v11199_v33  ;;  %4939 = vmatpush.bf16.msra.mxu3 %v11200_v18 }
 0x90a   :  { %4902 = vmatpush.bf16.msra.mxu0 %v8184_v48  ;;  %4928 = vmatpush.bf16.msra.mxu2 %v8186_v24 }
 0x90c   :  { %4914 = vmatpush.bf16.msrb.mxu1 %v11201_v25  ;;  %4940 = vmatpush.bf16.msra.mxu3 %v11202_v20 }
 0x90d   :  { %4855 = vmatmul.bf16.vlgmr.msrb.gmra.mxu0 %v9904_v31  ;;  %4881 = vmatmul.bf16.vlgmr.msrb.gmra.mxu2 %v9904_v31 }
 0x90e   :  { %4903 = vmatpush.bf16.msra.mxu0 %v8196_v35  ;;  %4929 = vmatpush.bf16.msra.mxu2 %v8198_v57 }
 0x910   :  { %4915 = vmatpush.bf16.msrb.mxu1 %v11203_v0  ;;  %4941 = vmatpush.bf16.msra.mxu3 %v11204_v46 }
 0x912   :  { %4904 = vmatpush.bf16.msra.mxu0 %v8210_v1  ;;  %4930 = vmatpush.bf16.msra.mxu2 %v8212_v59 }
 0x913   :  { %4868 = vmatmul.bf16.vlgmr.msra.gmra.mxu1 %v9912_v53  ;;  %4894 = vmatmul.bf16.vlgmr.msrb.gmra.mxu3 %v9912_v53 }
 0x914   :  { %4916 = vmatpush.bf16.msrb.mxu1 %v11205_v40  ;;  %4942 = vmatpush.bf16.msra.mxu3 %v11206_v49 }
 0x916   :  { %4905 = vmatpush.bf16.msra.mxu0 %v8220_v11  ;;  %4931 = vmatpush.bf16.msra.mxu2 %v8222_v10 }
 0x918   :  { %4917 = vmatpush.bf16.msrb.mxu1 %v11207_v63  ;;  %4943 = vmatpush.bf16.msra.mxu3 %v11208_v36 }
 0x91a   :  { %4906 = vmatpush.bf16.msra.mxu0 %v8230_v6  ;;  %4932 = vmatpush.bf16.msra.mxu2 %v8232_v27 }
 0x91c   :  { %4918 = vmatpush.bf16.msrb.mxu1 %v12023_v30  ;;  %4944 = vmatpush.bf16.msra.mxu3 %v12228_v21 }
 0x91d   :  { %4907 = vmatmul.bf16.vlgmr.msra.gmra.mxu0 %v4532_v15  ;;  %4933 = vmatmul.bf16.vlgmr.msra.gmra.mxu2 %v4532_v15 }
 0x91e   :  { %4982 = vmatpush.bf16.msrb.mxu0 %v7261_v5  ;;  %5008 = vmatpush.bf16.msrb.mxu2 %v7239_v51  ;;  %v12234_v5 = vld [vmem:[#allocation11_spill] sm:$0xff] }
 0x91f   :  { %v12235_v51 = vld [vmem:[#allocation19_spill] sm:$0xff] }
 0x920   :  { %4919 = vmatpush.bf16.msrb.mxu1 %v12231_v38  ;;  %4945 = vmatpush.bf16.msra.mxu3 %v12232_v37 }
 0x922   :  { %4983 = vmatpush.bf16.msrb.mxu0 %v12229_v13  ;;  %5009 = vmatpush.bf16.msrb.mxu2 %v12230_v60  ;;  %v12257_v13 = vld [vmem:[#allocation43_spill] sm:$0xff] }
 0x923   :  { %4920 = vmatmul.bf16.vlgmr.msrb.gmra.mxu1 %v4532_v15  ;;  %4946 = vmatmul.bf16.vlgmr.msra.gmra.mxu3 %v4532_v15  ;;  %v12256_v15 = vld [vmem:[#allocation33_spill] sm:$0xff]  ;;  %v12258_v60 = vld [vmem:[#allocation35_spill] sm:$0xff] }
 0x924   :  { %4995 = vmatpush.bf16.msra.mxu1 %v12233_v61  ;;  %5021 = vmatpush.bf16.msrb.mxu3 %v12234_v5  ;;  %v12259_v61 = vld [vmem:[#allocation46_spill] sm:$0xff] }
 0x925   :  { %v12260_v5 = vld [vmem:[#allocation30_spill] sm:$0xff] }
 0x926   :  { %4984 = vmatpush.bf16.msrb.mxu0 %v12235_v51  ;;  %5010 = vmatpush.bf16.msrb.mxu2 %v12236_v17  ;;  %v12261_v51 = vld [vmem:[#allocation47_spill] sm:$0xff] }
 0x927   :  { %v12262_v17 = vld [vmem:[#allocation39_spill] sm:$0xff] }
 0x928   :  { %4996 = vmatpush.bf16.msra.mxu1 %v12237_v26  ;;  %5022 = vmatpush.bf16.msrb.mxu3 %v12238_v8  ;;  %v12263_v26 = vld [vmem:[#allocation50_spill] sm:$0xff] }
 0x929   :  { %v12264_v8 = vld [vmem:[#allocation34_spill] sm:$0xff] }
 0x92a   :  { %4985 = vmatpush.bf16.msrb.mxu0 %v12239_v3  ;;  %5011 = vmatpush.bf16.msrb.mxu2 %v12240_v9  ;;  %v12265_v3 = vld [vmem:[#allocation52_spill] sm:$0xff] }
 0x92b   :  { %v12266_v9 = vld [vmem:[#allocation36_spill] sm:$0xff] }
 0x92c   :  { %4997 = vmatpush.bf16.msra.mxu1 %v12241_v45  ;;  %5023 = vmatpush.bf16.msrb.mxu3 %v12242_v16  ;;  %v12267_v45 = vld [vmem:[#allocation51_spill] sm:$0xff]  ;;  %v12268_v16 = vld [vmem:[#allocation44_spill] sm:$0xff] }
 0x92e   :  { %4986 = vmatpush.bf16.msrb.mxu0 %v12243_v43  ;;  %5012 = vmatpush.bf16.msrb.mxu2 %v12244_v44  ;;  %v12269_v43 = vld [vmem:[#allocation56_spill] sm:$0xff] }
 0x92f   :  { %v12270_v44 = vld [vmem:[#allocation40_spill] sm:$0xff] }
 0x930   :  { %4998 = vmatpush.bf16.msra.mxu1 %v12245_v28  ;;  %5024 = vmatpush.bf16.msrb.mxu3 %v12246_v39  ;;  %v12271_v28 = vld [vmem:[#allocation55_spill] sm:$0xff]  ;;  %v12272_v39 = vld [vmem:[#allocation48_spill] sm:$0xff] }
 0x932   :  { %4987 = vmatpush.bf16.msrb.mxu0 %v12247_v19  ;;  %5013 = vmatpush.bf16.msrb.mxu2 %v12248_v29  ;;  %v12273_v19 = vld [vmem:[#allocation60_spill] sm:$0xff]  ;;  %v12274_v29 = vld [vmem:[#allocation45_spill] sm:$0xff] }
 0x934   :  { %4999 = vmatpush.bf16.msra.mxu1 %v12249_v55  ;;  %5025 = vmatpush.bf16.msrb.mxu3 %v12250_v23  ;;  %v12275_v55 = vld [vmem:[#allocation59_spill] sm:$0xff]  ;;  %v12276_v23 = vld [vmem:[#allocation53_spill] sm:$0xff] }
 0x936   :  { %4988 = vmatpush.bf16.msrb.mxu0 %v12251_v41  ;;  %5014 = vmatpush.bf16.msrb.mxu2 %v12252_v4  ;;  %v12277_v41 = vld [vmem:[#allocation64_spill] sm:$0xff]  ;;  %v12278_v4 = vld [vmem:[#allocation49_spill] sm:$0xff] }
 0x938   :  { %5000 = vmatpush.bf16.msra.mxu1 %v12253_v52  ;;  %5026 = vmatpush.bf16.msrb.mxu3 %v12254_v50  ;;  %v12279_v52 = vld [vmem:[#allocation63_spill] sm:$0xff]  ;;  %v12280_v50 = vld [vmem:[#allocation57_spill] sm:$0xff] }
 0x93a   :  { %4989 = vmatpush.bf16.msrb.mxu0 %v12255_v62  ;;  %5015 = vmatpush.bf16.msrb.mxu2 %v12256_v15  ;;  %v12281_v62 = vld [vmem:[#allocation68_spill] sm:$0xff]  ;;  %v12282_v15 = vld [vmem:[#allocation54_spill] sm:$0xff] }
 0x93c   :  { %5001 = vmatpush.bf16.msra.mxu1 %v12259_v61  ;;  %5027 = vmatpush.bf16.msrb.mxu3 %v12260_v5  ;;  %v12285_v61 = vld [vmem:[#allocation70_spill] sm:$0xff] }
 0x93d   :  { %4990 = vmatmul.bf16.vlgmr.msrb.gmra.mxu0 %v9904_v31  ;;  %5016 = vmatmul.bf16.vlgmr.msrb.gmra.mxu2 %v9904_v31  ;;  %v12286_v5 = vld [vmem:[#allocation58_spill] sm:$0xff] }
 0x93e   :  { %5034 = vmatpush.bf16.msra.mxu0 %v12257_v13  ;;  %5060 = vmatpush.bf16.msra.mxu2 %v12258_v60  ;;  %v12283_v13 = vld [vmem:[#allocation67_spill] sm:$0xff]  ;;  %v12284_v60 = vld [vmem:[#allocation61_spill] sm:$0xff] }
 0x940   :  { %5002 = vmatpush.bf16.msra.mxu1 %v12263_v26  ;;  %5028 = vmatpush.bf16.msrb.mxu3 %v12264_v8  ;;  %v12289_v26 = vld [vmem:[#allocation72_spill] sm:$0xff]  ;;  %v12290_v8 = vld [vmem:[#allocation79_spill] sm:$0xff] }
 0x942   :  { %5035 = vmatpush.bf16.msra.mxu0 %v12261_v51  ;;  %5061 = vmatpush.bf16.msra.mxu2 %v12262_v17  ;;  %v12287_v51 = vld [vmem:[#allocation69_spill] sm:$0xff] }
 0x943   :  { %5003 = vmatmul.bf16.vlgmr.msra.gmra.mxu1 %v9912_v53  ;;  %5029 = vmatmul.bf16.vlgmr.msrb.gmra.mxu3 %v9912_v53  ;;  %v12288_v17 = vld [vmem:[#allocation65_spill] sm:$0xff] }
 0x944   :  { %5047 = vmatpush.bf16.msrb.mxu1 %v12265_v3  ;;  %5073 = vmatpush.bf16.msra.mxu3 %v12266_v9  ;;  %v12291_v3 = vld [vmem:[#allocation71_spill] sm:$0xff]  ;;  %v12292_v9 = vld [vmem:[#allocation62_spill] sm:$0xff] }
 0x946   :  { %5036 = vmatpush.bf16.msra.mxu0 %v12267_v45  ;;  %5062 = vmatpush.bf16.msra.mxu2 %v12268_v16  ;;  %v12293_v45 = vld [vmem:[#allocation74_spill] sm:$0xff] }
 0x947   :  { %v12294_v16 = vld [vmem:[#allocation82_spill] sm:$0xff] }
 0x948   :  { %5048 = vmatpush.bf16.msrb.mxu1 %v12269_v43  ;;  %5074 = vmatpush.bf16.msra.mxu3 %v12270_v44  ;;  %v12295_v43 = vld [vmem:[#allocation73_spill] sm:$0xff]  ;;  %v12296_v44 = vld [vmem:[#allocation66_spill] sm:$0xff] }
 0x94a   :  { %5037 = vmatpush.bf16.msra.mxu0 %v12271_v28  ;;  %5063 = vmatpush.bf16.msra.mxu2 %v12272_v39  ;;  %v12297_v28 = vld [vmem:[#allocation96_spill] sm:$0xff] }
 0x94b   :  { %v12298_v39 = vld [vmem:[#allocation80_spill] sm:$0xff] }
 0x94c   :  { %5049 = vmatpush.bf16.msrb.mxu1 %v12273_v19  ;;  %5075 = vmatpush.bf16.msra.mxu3 %v12274_v29  ;;  %v12299_v19 = vld [vmem:[#allocation75_spill] sm:$0xff] }
 0x94d   :  { %v12300_v29 = vld [vmem:[#allocation87_spill] sm:$0xff] }
 0x94e   :  { %5038 = vmatpush.bf16.msra.mxu0 %v12275_v55  ;;  %5064 = vmatpush.bf16.msra.mxu2 %v12276_v23  ;;  %v12301_v55 = vld [vmem:[#allocation103_spill] sm:$0xff] }
 0x94f   :  { %v12302_v23 = vld [vmem:[#allocation83_spill] sm:$0xff] }
 0x950   :  { %5050 = vmatpush.bf16.msrb.mxu1 %v12277_v41  ;;  %5076 = vmatpush.bf16.msra.mxu3 %v12278_v4  ;;  %v12303_v41 = vld [vmem:[#allocation77_spill] sm:$0xff]  ;;  %v12304_v4 = vld [vmem:[#allocation90_spill] sm:$0xff] }
 0x952   :  { %5039 = vmatpush.bf16.msra.mxu0 %v12279_v52  ;;  %5065 = vmatpush.bf16.msra.mxu2 %v12280_v50  ;;  %v12305_v52 = vld [vmem:[#allocation111_spill] sm:$0xff]  ;;  %v12306_v50 = vld [vmem:[#allocation88_spill] sm:$0xff] }
 0x954   :  { %5051 = vmatpush.bf16.msrb.mxu1 %v12281_v62  ;;  %5077 = vmatpush.bf16.msra.mxu3 %v12282_v15  ;;  %v12307_v62 = vld [vmem:[#allocation81_spill] sm:$0xff] }
 0x955   :  { %v12308_v15 = vld [vmem:[#allocation97_spill] sm:$0xff] }
 0x956   :  { %5040 = vmatpush.bf16.msra.mxu0 %v12283_v13  ;;  %5066 = vmatpush.bf16.msra.mxu2 %v12284_v60  ;;  %v12309_v13 = vld [vmem:[#allocation115_spill] sm:$0xff] }
 0x957   :  { %v12310_v60 = vld [vmem:[#allocation91_spill] sm:$0xff] }
 0x958   :  { %5052 = vmatpush.bf16.msrb.mxu1 %v12285_v61  ;;  %5078 = vmatpush.bf16.msra.mxu3 %v12286_v5  ;;  %v12311_v61 = vld [vmem:[#allocation84_spill] sm:$0xff] }
 0x959   :  { %v12312_v5 = vld [vmem:[#allocation104_spill] sm:$0xff] }
 0x95a   :  { %5041 = vmatpush.bf16.msra.mxu0 %v12287_v51  ;;  %5067 = vmatpush.bf16.msra.mxu2 %v12288_v17  ;;  %v12313_v51 = vld [vmem:[#allocation125_spill] sm:$0xff]  ;;  %v12314_v17 = vld [vmem:[#allocation99_spill] sm:$0xff] }
 0x95c   :  { %5053 = vmatpush.bf16.msrb.mxu1 %v12291_v3  ;;  %5079 = vmatpush.bf16.msra.mxu3 %v12292_v9  ;;  %v12317_v3 = vld [vmem:[#allocation130_spill] sm:$0xff]  ;;  %v12318_v9 = vld [vmem:[#allocation105_spill] sm:$0xff] }
 0x95d   :  { %5042 = vmatmul.bf16.vlgmr.msra.gmra.mxu0 %v9904_v31  ;;  %5068 = vmatmul.bf16.vlgmr.msra.gmra.mxu2 %v9904_v31 }
 0x95e   :  { %5086 = vmatpush.bf16.msrb.mxu0 %v12289_v26  ;;  %5112 = vmatpush.bf16.msrb.mxu2 %v12290_v8  ;;  %v12315_v26 = vld [vmem:[#allocation89_spill] sm:$0xff]  ;;  %v12316_v8 = vld [vmem:[#allocation112_spill] sm:$0xff] }
 0x960   :  { %5054 = vmatpush.bf16.msrb.mxu1 %v12295_v43  ;;  %5080 = vmatpush.bf16.msra.mxu3 %v12296_v44  ;;  %v12321_v43 = vld [vmem:[#allocation95_spill] sm:$0xff]  ;;  %v12322_v44 = vld [vmem:[#allocation118_spill] sm:$0xff] }
 0x962   :  { %5087 = vmatpush.bf16.msrb.mxu0 %v12293_v45  ;;  %5113 = vmatpush.bf16.msrb.mxu2 %v12294_v16  ;;  %v12319_v45 = vld [vmem:[#allocation92_spill] sm:$0xff] }
 0x963   :  { %5055 = vmatmul.bf16.vlgmr.msrb.gmra.mxu1 %v9912_v53  ;;  %5081 = vmatmul.bf16.vlgmr.msra.gmra.mxu3 %v9912_v53  ;;  %v12320_v16 = vld [vmem:[#allocation116_spill] sm:$0xff] }
 0x964   :  { %5099 = vmatpush.bf16.msra.mxu1 %v12297_v28  ;;  %5125 = vmatpush.bf16.msrb.mxu3 %v12298_v39  ;;  %v12323_v28 = vld [vmem:[#allocation138_spill] sm:$0xff]  ;;  %v12324_v39 = vld [vmem:[#allocation113_spill] sm:$0xff] }
 0x966   :  { %5088 = vmatpush.bf16.msrb.mxu0 %v12299_v19  ;;  %5114 = vmatpush.bf16.msrb.mxu2 %v12300_v29  ;;  %v12325_v19 = vld [vmem:[#allocation100_spill] sm:$0xff]  ;;  %v12326_v29 = vld [vmem:[#allocation127_spill] sm:$0xff] }
 0x968   :  { %5100 = vmatpush.bf16.msra.mxu1 %v12301_v55  ;;  %5126 = vmatpush.bf16.msrb.mxu3 %v12302_v23  ;;  %v12327_v55 = vld [vmem:[#allocation142_spill] sm:$0xff]  ;;  %v12328_v23 = vld [vmem:[#allocation117_spill] sm:$0xff] }
 0x96a   :  { %5089 = vmatpush.bf16.msrb.mxu0 %v12303_v41  ;;  %5115 = vmatpush.bf16.msrb.mxu2 %v12304_v4  ;;  %v12329_v41 = vld [vmem:[#allocation143_spill] sm:$0xff]  ;;  %v12330_v4 = vld [vmem:[#allocation122_spill] sm:$0xff] }
 0x96c   :  { %5101 = vmatpush.bf16.msra.mxu1 %v12305_v52  ;;  %5127 = vmatpush.bf16.msrb.mxu3 %v12306_v50  ;;  %v12331_v50 = vld [vmem:[#allocation106_spill] sm:$0xff] }
 0x96e   :  { %5090 = vmatpush.bf16.msrb.mxu0 %v12307_v62  ;;  %5116 = vmatpush.bf16.msrb.mxu2 %v12308_v15  ;;  %v12332_v62 = vld [vmem:[#allocation131_spill] sm:$0xff]  ;;  %v12333_v15 = vld [vmem:[#allocation149_spill] sm:$0xff] }
 0x970   :  { %5102 = vmatpush.bf16.msra.mxu1 %v12309_v13  ;;  %5128 = vmatpush.bf16.msrb.mxu3 %v12310_v60  ;;  %v12334_v13 = vld [vmem:[#allocation128_spill] sm:$0xff] }
 0x972   :  { %5091 = vmatpush.bf16.msrb.mxu0 %v12311_v61  ;;  %5117 = vmatpush.bf16.msrb.mxu2 %v12312_v5  ;;  %v12335_v5 = vld [vmem:[#allocation114_spill] sm:$0xff] }
 0x974   :  { %5103 = vmatpush.bf16.msra.mxu1 %v12313_v51  ;;  %5129 = vmatpush.bf16.msrb.mxu3 %v12314_v17  ;;  %v12336_v51 = vld [vmem:[#allocation139_spill] sm:$0xff] }
 0x976   :  { %5092 = vmatpush.bf16.msrb.mxu0 %v12315_v26  ;;  %5118 = vmatpush.bf16.msrb.mxu2 %v12316_v8  ;;  %v12337_v26 = vld [vmem:[#allocation152_spill] sm:$0xff] }
 0x977   :  { %v12338_v8 = vld [vmem:[#allocation132_spill] sm:$0xff] }
 0x978   :  { %5104 = vmatpush.bf16.msra.mxu1 %v12317_v3  ;;  %5130 = vmatpush.bf16.msrb.mxu3 %v12318_v9  ;;  %v12339_v9 = vld [vmem:[#allocation123_spill] sm:$0xff] }
 0x97a   :  { %5093 = vmatpush.bf16.msrb.mxu0 %v12319_v45  ;;  %5119 = vmatpush.bf16.msrb.mxu2 %v12320_v16  ;;  %v4804_v52 = vpop.f32.mrf.mxu0  ;;  %v12340_v45 = vld [vmem:[#allocation144_spill] sm:$0xff]  ;;  %v12341_v16 = vld [vmem:[#allocation159_spill] sm:$0xff] }
 0x97c   :  { %5105 = vmatpush.bf16.msra.mxu1 %v12323_v28  ;;  %5131 = vmatpush.bf16.msrb.mxu3 %v12324_v39 }
 0x97d   :  { %5094 = vmatmul.bf16.vlgmr.msrb.gmra.mxu0 %v9904_v31  ;;  %5120 = vmatmul.bf16.vlgmr.msrb.gmra.mxu2 %v9904_v31 }
 0x97e   :  { %5138 = vmatpush.bf16.msra.mxu0 %v12321_v43  ;;  %5164 = vmatpush.bf16.msra.mxu2 %v12322_v44  ;;  %v12342_v43 = vld [vmem:[#allocation140_spill] sm:$0xff] }
 0x980   :  { %5106 = vmatpush.bf16.msra.mxu1 %v12327_v55  ;;  %5132 = vmatpush.bf16.msrb.mxu3 %v12328_v23  ;;  %v4817_v60 = vpop.f32.mrf.mxu1  ;;  %v4830_v61 = vpop.f32.mrf.mxu2  ;;  %v12344_v55 = vld [vmem:[#allocation150_spill] sm:$0xff] }
 0x981   :  { %v4818_v17 = vadd.f32 %v4817_v60, %v4804_v52  ;;  %v12345_v23 = vld [vmem:[#allocation162_spill] sm:$0xff]  ;;  %v12347_v52 = vld [vmem:[#allocation137_spill] sm:$0xff] }
 0x982   :  { %5139 = vmatpush.bf16.msra.mxu0 %v12325_v19  ;;  %5165 = vmatpush.bf16.msra.mxu2 %v12326_v29  ;;  %v4806_v3 = vpop.f32.mrf.mxu0  ;;  %v12343_v29 = vld [vmem:[#allocation129_spill] sm:$0xff] }
 0x983   :  { %5107 = vmatmul.bf16.vlgmr.msra.gmra.mxu1 %v9912_v53  ;;  %5133 = vmatmul.bf16.vlgmr.msrb.gmra.mxu3 %v9912_v53  ;;  %v12354_v3 = vld [vmem:[#allocation154_spill] sm:$0xff] }
 0x984   :  { %5151 = vmatpush.bf16.msrb.mxu1 %v12329_v41  ;;  %5177 = vmatpush.bf16.msra.mxu3 %v12330_v4  ;;  %v12346_v41 = vld [vmem:[#allocation147_spill] sm:$0xff] }
 0x986   :  { %5140 = vmatpush.bf16.msra.mxu0 %v12331_v50  ;;  %5166 = vmatpush.bf16.msra.mxu2 %v12332_v62  ;;  %v4843_v44 = vpop.f32.mrf.mxu3  ;;  %v12348_v50 = vld [vmem:[#allocation153_spill] sm:$0xff]  ;;  %v12349_v62 = vld [vmem:[#allocation168_spill] sm:$0xff] }
 0x987   :  { %v4844_v28 = vadd.f32 %v4843_v44, %v4830_v61  ;;  %v12358_v44 = vld [vmem:[#allocation161_spill] sm:$0xff] }
 0x988   :  { %5152 = vmatpush.bf16.msrb.mxu1 %v12333_v15  ;;  %5178 = vmatpush.bf16.msra.mxu3 %v12334_v13  ;;  %v4819_v39 = vpop.f32.mrf.mxu1  ;;  %v4832_v19 = vpop.f32.mrf.mxu2  ;;  %v12350_v15 = vld [vmem:[#allocation151_spill] sm:$0xff] }
 0x98a   :  { %5141 = vmatpush.bf16.msra.mxu0 %v12335_v5  ;;  %5167 = vmatpush.bf16.msra.mxu2 %v12336_v51  ;;  %v4856_v4 = vpop.f32.mrf.mxu0  ;;  %v12351_v5 = vld [vmem:[#allocation141_spill] sm:$0xff]  ;;  %v12352_v51 = vld [vmem:[#allocation160_spill] sm:$0xff] }
 0x98c   :  { %5153 = vmatpush.bf16.msrb.mxu1 %v12337_v26  ;;  %5179 = vmatpush.bf16.msra.mxu3 %v12338_v8  ;;  %v12353_v8 = vld [vmem:[#allocation169_spill] sm:$0xff] }
 0x98e   :  { %5142 = vmatpush.bf16.msra.mxu0 %v12339_v9  ;;  %5168 = vmatpush.bf16.msra.mxu2 %v12340_v45  ;;  %v4845_v13 = vpop.f32.mrf.mxu3  ;;  %v12355_v45 = vld [vmem:[#allocation207_spill] sm:$0xff] }
 0x98f   :  { %v12365_v13 = vld [vmem:[#allocation203_spill] sm:$0xff] }
 0x990   :  { %5154 = vmatpush.bf16.msrb.mxu1 %v12341_v16  ;;  %5180 = vmatpush.bf16.msra.mxu3 %v12342_v43  ;;  %v4869_v60 = vpop.f32.mrf.mxu1  ;;  %v4882_v61 = vpop.f32.mrf.mxu2  ;;  %v12356_v16 = vld [vmem:[#allocation208_spill] sm:$0xff] }
 0x991   :  { %v4870_v26 = vadd.f32 %v4869_v60, %v4856_v4  ;;  %v12357_v43 = vld [vmem:[#allocation172_spill] sm:$0xff] }
 0x992   :  { %5143 = vmatpush.bf16.msra.mxu0 %v12343_v29  ;;  %5169 = vmatpush.bf16.msra.mxu2 %v12344_v55  ;;  %v4858_v9 = vpop.f32.mrf.mxu0  ;;  %v12359_v29 = vld [vmem:[#allocation211_spill] sm:$0xff]  ;;  %v12360_v55 = vld [vmem:[#allocation212_spill] sm:$0xff] }
 0x993   :  { %v12361_v4 = vld [vmem:[#allocation200_spill] sm:$0xff] }
 0x994   :  { %5155 = vmatpush.bf16.msrb.mxu1 %v12345_v23  ;;  %5181 = vmatpush.bf16.msra.mxu3 %v12346_v41  ;;  %v12366_v60 = vld [vmem:[#allocation204_spill] sm:$0xff] }
 0x996   :  { %5144 = vmatpush.bf16.msra.mxu0 %v12347_v52  ;;  %5170 = vmatpush.bf16.msra.mxu2 %v12348_v50  ;;  %v4895_v39 = vpop.f32.mrf.mxu3  ;;  %v12362_v52 = vld [vmem:[#allocation201_spill] sm:$0xff] }
 0x997   :  { %v4896_v19 = vadd.f32 %v4895_v39, %v4882_v61  ;;  %v12367_v61 = vld [vmem:[#allocation290_spill] sm:$0xff] }
 0x998   :  { %5156 = vmatpush.bf16.msrb.mxu1 %v12349_v62  ;;  %5182 = vmatpush.bf16.msra.mxu3 %v12350_v15  ;;  %v4871_v23 = vpop.f32.mrf.mxu1  ;;  %v4884_v41 = vpop.f32.mrf.mxu2  ;;  %v12363_v62 = vld [vmem:[#allocation215_spill] sm:$0xff]  ;;  %v12364_v15 = vld [vmem:[#allocation216_spill] sm:$0xff] }
 0x999   :  { %v12374_v23 = vld [vmem:[#allocation289_spill] sm:$0xff] }
 0x99a   :  { %5145 = vmatpush.bf16.msra.mxu0 %v12351_v5  ;;  %5171 = vmatpush.bf16.msra.mxu2 %v12352_v51 }
 0x99c   :  { %5157 = vmatpush.bf16.msrb.mxu1 %v12353_v8  ;;  %5183 = vmatpush.bf16.msra.mxu3 %v12354_v3  ;;  %v12368_v8 = vld [vmem:[#allocation219_spill] sm:$0xff]  ;;  %v12369_v3 = vld [vmem:[#allocation220_spill] sm:$0xff] }
 0x99d   :  { %5146 = vmatmul.bf16.vlgmr.msra.gmra.mxu0 %v9904_v31  ;;  %5172 = vmatmul.bf16.vlgmr.msra.gmra.mxu2 %v9904_v31  ;;  %v4908_v31 = vpop.f32.mrf.mxu0 }
 0x99e   :  { %5236 = vmatpush.bf16.msrb.mxu0 %v12355_v45  ;;  %5262 = vmatpush.bf16.msrb.mxu2 %v12356_v16  ;;  %v4909_v50 = vadd.f32 %v4908_v31, %v4818_v17  ;;  %v4897_v51 = vpop.f32.mrf.mxu3  ;;  %v12371_v17 = vld [vmem:[#allocation206_spill] sm:$0xff] }
 0x9a0   :  { %5158 = vmatpush.bf16.msrb.mxu1 %v12357_v43  ;;  %5184 = vmatpush.bf16.msra.mxu3 %v12358_v44  ;;  %v4951_v5 = vadd.f32 %v4909_v50, %v12367_v61  ;;  %v4934_v45 = vpop.f32.mrf.mxu2  ;;  %v4921_v16 = vpop.f32.mrf.mxu1 }
 0x9a1   :  { %v10110_v43 = vadd.f32 %v4934_v45, %v4870_v26  ;;  %v4922_v44 = vadd.f32 %v4921_v16, %v4844_v28  ;;  %v12383_v45 = vld [vmem:[#allocation234_spill] sm:$0xff] }
 0x9a2   :  { %5237 = vmatpush.bf16.msrb.mxu0 %v12359_v29  ;;  %5263 = vmatpush.bf16.msrb.mxu2 %v12360_v55  ;;  %v4955_v9 = vmul.f32 0.5, %v4951_v5  ;;  %v12372_v29 = vld [vmem:[#allocation223_spill] sm:$0xff]  ;;  %v12373_v55 = vld [vmem:[#allocation224_spill] sm:$0xff] }
 0x9a3   :  { %5159 = vmatmul.bf16.vlgmr.msrb.gmra.mxu1 %v9912_v53  ;;  %5185 = vmatmul.bf16.vlgmr.msra.gmra.mxu3 %v9912_v53  ;;  %v12370_v53 = vld [vmem:[#allocation205_spill] sm:$0xff]  ;;  %v4952_v41 = vadd.f32 %v4922_v44, %v12374_v23 }
 0x9a4   :  { %5249 = vmatpush.bf16.msra.mxu1 %v12361_v4  ;;  %5275 = vmatpush.bf16.msrb.mxu3 %v12362_v52  ;;  %6925 = vtanh.f32 %v4955_v9  ;;  %v12375_v4 = vld [vmem:[#allocation209_spill] sm:$0xff]  ;;  %v12376_v52 = vld [vmem:[#allocation210_spill] sm:$0xff] }
 0x9a5   :  { %v4910_v39 = vpop.f32.mrf.mxu0  ;;  %v4956_v31 = vmul.f32 0.5, %v4952_v41  ;;  %v12382_v9 = vld [vmem:[#allocation233_spill] sm:$0xff]  ;;  %v12388_v41 = vld [vmem:[#allocation239_spill] sm:$0xff] }
 0x9a6   :  { %5238 = vmatpush.bf16.msrb.mxu0 %v12363_v62  ;;  %5264 = vmatpush.bf16.msrb.mxu2 %v12364_v15  ;;  %v4947_v50 = vpop.f32.mrf.mxu3  ;;  %v12377_v62 = vld [vmem:[#allocation229_spill] sm:$0xff]  ;;  %v12378_v15 = vld [vmem:[#allocation230_spill] sm:$0xff] }
 0x9a7   :  { %6927 = vtanh.f32 %v4956_v31  ;;  %v4948_v28 = vadd.f32 %v4947_v50, %v4896_v19  ;;  %v12390_v50 = vld [vmem:[#allocation221_spill] sm:$0xff] }
 0x9a8   :  { %5250 = vmatpush.bf16.msra.mxu1 %v12365_v13  ;;  %5276 = vmatpush.bf16.msrb.mxu3 %v12366_v60  ;;  %v4936_v26 = vpop.f32.mrf.mxu2  ;;  %v12379_v13 = vld [vmem:[#allocation213_spill] sm:$0xff]  ;;  %v12380_v60 = vld [vmem:[#allocation214_spill] sm:$0xff]  ;;  %v4923_v5 = vpop.f32.mrf.mxu1 }
 0x9aa   :  { %5239 = vmatpush.bf16.msrb.mxu0 %v12368_v8  ;;  %5265 = vmatpush.bf16.msrb.mxu2 %v12369_v3  ;;  %v6926_v51 = vpop.eup %6925  ;;  %v12381_v8 = vld [vmem:[#allocation291_spill] sm:$0xff] }
 0x9ab   :  { %v4954_v3 = vadd.f32 %v4948_v28, %v12381_v8  ;;  %v4961_v16 = vmul.f32 0.5, %v6926_v51  ;;  %v12394_v51 = vld [vmem:[#allocation225_spill] sm:$0xff]  ;;  %v12430_v8 = vld [vmem:[#allocation102_spill] sm:$0xff] }
 0x9ac   :  { %5251 = vmatpush.bf16.msra.mxu1 %v12370_v53  ;;  %5277 = vmatpush.bf16.msrb.mxu3 %v12371_v17  ;;  %v12384_v53 = vld [vmem:[#allocation217_spill] sm:$0xff]  ;;  %v12385_v17 = vld [vmem:[#allocation218_spill] sm:$0xff] }
 0x9ad   :  { %6929 = vtanh.f32 %v4954_v3  ;;  %v6928_v19 = vpop.eup %6927  ;;  %v12395_v3 = vld [vmem:[#allocation226_spill] sm:$0xff] }
 0x9ae   :  { %5240 = vmatpush.bf16.msrb.mxu0 %v12372_v29  ;;  %5266 = vmatpush.bf16.msrb.mxu2 %v12373_v55  ;;  %v4962_v44 = vmul.f32 0.5, %v6928_v19  ;;  %v4949_v39 = vpop.f32.mrf.mxu3  ;;  %v12386_v29 = vld [vmem:[#allocation237_spill] sm:$0xff]  ;;  %v12387_v55 = vld [vmem:[#allocation238_spill] sm:$0xff]  ;;  %v12401_v19 = vld [vmem:[#allocation232_spill] sm:$0xff] }
 0x9af   :  { %v12403_v39 = vld [vmem:[#allocation252_spill] sm:$0xff] }
 0x9b0   :  { %5252 = vmatpush.bf16.msra.mxu1 %v12375_v4  ;;  %5278 = vmatpush.bf16.msrb.mxu3 %v12376_v52  ;;  %v12389_v4 = vld [vmem:[#allocation240_spill] sm:$0xff]  ;;  %v4964_v52 = vadd.f32 0.5, %v4961_v16  ;;  %v4965_v31 = vadd.f32 0.5, %v4962_v44  ;;  %v12402_v44 = vld [vmem:[#allocation251_spill] sm:$0xff] }
 0x9b1   :  { %v12399_v16 = vld [vmem:[#allocation248_spill] sm:$0xff] }
 0x9b2   :  { %5241 = vmatpush.bf16.msrb.mxu0 %v12377_v62  ;;  %5267 = vmatpush.bf16.msrb.mxu2 %v12378_v15  ;;  %v12391_v62 = vld [vmem:[#allocation222_spill] sm:$0xff]  ;;  %v4968_v28 = vmul.f32 %v4965_v31, %v9856_v2  ;;  %v12400_v2 = vld [vmem:[#allocation231_spill] sm:$0xff] }
 0x9b3   :  { %v6930_v15 = vpop.eup %6929 }
 0x9b4   :  { %5253 = vmatpush.bf16.msra.mxu1 %v12379_v13  ;;  %5279 = vmatpush.bf16.msrb.mxu3 %v12380_v60  ;;  %v4969_v26 = vmul.f32 %v6930_v15, %v4964_v52  ;;  %v12392_v13 = vld [vmem:[#allocation243_spill] sm:$0xff]  ;;  %v12393_v60 = vld [vmem:[#allocation244_spill] sm:$0xff] }
 0x9b6   :  { %5242 = vmatpush.bf16.msrb.mxu0 %v12382_v9  ;;  %5268 = vmatpush.bf16.msrb.mxu2 %v12383_v45  ;;  %v10135_v5 = vadd.f32 %v4969_v26, %v4968_v28  ;;  %v12396_v9 = vld [vmem:[#allocation227_spill] sm:$0xff]  ;;  %v12397_v45 = vld [vmem:[#allocation228_spill] sm:$0xff] }
 0x9b7   :  { %v12408_v26 = vld [vmem:[#allocation255_spill] sm:$0xff] }
 0x9b8   :  { %5254 = vmatpush.bf16.msra.mxu1 %v12384_v53  ;;  %5280 = vmatpush.bf16.msrb.mxu3 %v12385_v17  ;;  %v12398_v17 = vld [vmem:[#allocation247_spill] sm:$0xff] }
 0x9ba   :  { %5243 = vmatpush.bf16.msrb.mxu0 %v12386_v29  ;;  %5269 = vmatpush.bf16.msrb.mxu2 %v12387_v55  ;;  %v4991_v53 = vpop.f32.mrf.mxu0 }
 0x9bc   :  { %5255 = vmatpush.bf16.msra.mxu1 %v12390_v50  ;;  %5281 = vmatpush.bf16.msrb.mxu3 %v12391_v62  ;;  %v12406_v50 = vld [vmem:[#allocation235_spill] sm:$0xff]  ;;  %v12407_v62 = vld [vmem:[#allocation236_spill] sm:$0xff] }
 0x9be   :  { %5288 = vmatpush.bf16.msra.mxu0 %v12388_v41  ;;  %5314 = vmatpush.bf16.msra.mxu2 %v12389_v4  ;;  %v12404_v41 = vld [vmem:[#allocation76_spill] sm:$0xff]  ;;  %v12405_v4 = vld [vmem:[#allocation85_spill] sm:$0xff] }
 0x9bf   :  { %v264_v52 = vadd.f32 %v12405_v4, %v12404_v41  ;;  %v12417_v41 = vld [vmem:[#allocation246_spill] sm:$0xff]  ;;  %v12418_v4 = vld [vmem:[#allocation261_spill] sm:$0xff] }
 0x9c0   :  { %5256 = vmatpush.bf16.msra.mxu1 %v12394_v51  ;;  %5282 = vmatpush.bf16.msrb.mxu3 %v12395_v3  ;;  %v5004_v29 = vpop.f32.mrf.mxu1  ;;  %v5017_v55 = vpop.f32.mrf.mxu2  ;;  %v12411_v51 = vld [vmem:[#allocation242_spill] sm:$0xff] }
 0x9c1   :  { %v5005_v31 = vadd.f32 %v5004_v29, %v4991_v53  ;;  %v12414_v53 = vld [vmem:[#allocation259_spill] sm:$0xff]  ;;  %v12416_v29 = vld [vmem:[#allocation245_spill] sm:$0xff] }
 0x9c2   :  { %5289 = vmatpush.bf16.msra.mxu0 %v12392_v13  ;;  %5315 = vmatpush.bf16.msra.mxu2 %v12393_v60  ;;  %v4993_v15 = vpop.f32.mrf.mxu0  ;;  %v12409_v13 = vld [vmem:[#allocation256_spill] sm:$0xff]  ;;  %v12410_v60 = vld [vmem:[#allocation241_spill] sm:$0xff] }
 0x9c3   :  { %v5190_v28 = vadd.f32 %v5005_v31, %v264_v52  ;;  %v12419_v52 = vld [vmem:[#allocation262_spill] sm:$0xff]  ;;  %v12420_v31 = vld [vmem:[#allocation249_spill] sm:$0xff]  ;;  %v12423_v15 = vld [vmem:[#allocation264_spill] sm:$0xff] }
 0x9c4   :  { %5301 = vmatpush.bf16.msrb.mxu1 %v12396_v9  ;;  %5327 = vmatpush.bf16.msra.mxu3 %v12397_v45  ;;  %v12412_v9 = vld [vmem:[#allocation119_spill] sm:$0xff]  ;;  %v12413_v45 = vld [vmem:[#allocation170_spill] sm:$0xff] }
 0x9c6   :  { %5290 = vmatpush.bf16.msra.mxu0 %v12398_v17  ;;  %5316 = vmatpush.bf16.msra.mxu2 %v12399_v16  ;;  %v5030_v3 = vpop.f32.mrf.mxu3  ;;  %v293_v17 = vadd.f32 %v12413_v45, %v12412_v9 }
 0x9c7   :  { %v5031_v16 = vadd.f32 %v5030_v3, %v5017_v55 }
 0x9c8   :  { %5302 = vmatpush.bf16.msrb.mxu1 %v12400_v2  ;;  %5328 = vmatpush.bf16.msra.mxu3 %v12401_v19  ;;  %v12415_v2 = vld [vmem:[#allocation260_spill] sm:$0xff]  ;;  %v5006_v19 = vpop.f32.mrf.mxu1 }
 0x9ca   :  { %5291 = vmatpush.bf16.msra.mxu0 %v12402_v44  ;;  %5317 = vmatpush.bf16.msra.mxu2 %v12403_v39  ;;  %v5019_v44 = vpop.f32.mrf.mxu2  ;;  %v5191_v39 = vadd.f32 %v5031_v16, %v293_v17 }
 0x9cc   :  { %5303 = vmatpush.bf16.msrb.mxu1 %v12406_v50  ;;  %5329 = vmatpush.bf16.msra.mxu3 %v12407_v62  ;;  %v12421_v50 = vld [vmem:[#allocation250_spill] sm:$0xff]  ;;  %v12422_v62 = vld [vmem:[#allocation263_spill] sm:$0xff] }
 0x9ce   :  { %5292 = vmatpush.bf16.msra.mxu0 %v12408_v26  ;;  %5318 = vmatpush.bf16.msra.mxu2 %v12409_v13  ;;  %v5032_v55 = vpop.f32.mrf.mxu3  ;;  %v12424_v26 = vld [vmem:[#allocation253_spill] sm:$0xff]  ;;  %v12425_v13 = vld [vmem:[#allocation254_spill] sm:$0xff] }
 0x9d0   :  { %5304 = vmatpush.bf16.msrb.mxu1 %v12410_v60  ;;  %5330 = vmatpush.bf16.msra.mxu3 %v12411_v51  ;;  %v12426_v60 = vld [vmem:[#allocation257_spill] sm:$0xff]  ;;  %v12427_v51 = vld [vmem:[#allocation258_spill] sm:$0xff] }
 0x9d2   :  { %5293 = vmatpush.bf16.msra.mxu0 %v12414_v53  ;;  %5319 = vmatpush.bf16.msra.mxu2 %v12415_v2 }
 0x9d4   :  { %5305 = vmatpush.bf16.msrb.mxu1 %v12416_v29  ;;  %5331 = vmatpush.bf16.msra.mxu3 %v12417_v41 }
 0x9d6   :  { %5294 = vmatpush.bf16.msra.mxu0 %v12418_v4  ;;  %5320 = vmatpush.bf16.msra.mxu2 %v12419_v52 }
 0x9d8   :  { %5306 = vmatpush.bf16.msrb.mxu1 %v12420_v31  ;;  %5332 = vmatpush.bf16.msra.mxu3 %v12421_v50 }
 0x9da   :  { %5295 = vmatpush.bf16.msra.mxu0 %v12422_v62  ;;  %5321 = vmatpush.bf16.msra.mxu2 %v12423_v15  ;;  %v5043_v3 = vpop.f32.mrf.mxu0  ;;  %v12428_v62 = vld [vmem:[#allocation101_spill] sm:$0xff]  ;;  %v12429_v15 = vld [vmem:[#allocation163_spill] sm:$0xff] }
 0x9dc   :  { %5307 = vmatpush.bf16.msrb.mxu1 %v12424_v26  ;;  %5333 = vmatpush.bf16.msra.mxu3 %v12425_v13  ;;  %v322_v26 = vadd.f32 %v12429_v15, %v12428_v62 }
 0x9e0   :  { %5308 = vmatpush.bf16.msrb.mxu1 %v12426_v60  ;;  %5334 = vmatpush.bf16.msra.mxu3 %v12427_v51  ;;  %v5056_v9 = vpop.f32.mrf.mxu1  ;;  %v5069_v45 = vpop.f32.mrf.mxu2 }
 0x9e1   :  { %v5057_v55 = vadd.f32 %v5056_v9, %v5043_v3  ;;  %v5199_v9 = vmul.f32 0.5, %v5191_v39 }
 0x9e2   :  { %v5045_v17 = vpop.f32.mrf.mxu0 }
 0x9e3   :  { %v5192_v60 = vadd.f32 %v5057_v55, %v322_v26  ;;  %v12431_v17 = vld [vmem:[#allocation164_spill] sm:$0xff] }
 0x9e4   :  { %v351_v23 = vadd.f32 %v12431_v17, %v12430_v8  ;;  %v12434_v55 = vld [vmem:[#allocation176_spill] sm:$0xff] }
 0x9e6   :  { %v5082_v16 = vpop.f32.mrf.mxu3 }
 0x9e7   :  { %v5083_v51 = vadd.f32 %v5082_v16, %v5069_v45  ;;  %v12435_v45 = vld [vmem:[#allocation197_spill] sm:$0xff] }
 0x9e8   :  { %v5058_v53 = vpop.f32.mrf.mxu1  ;;  %v5071_v2 = vpop.f32.mrf.mxu2  ;;  %v438_v16 = vadd.f32 %v12435_v45, %v12434_v55 }
 0x9e9   :  { %v5200_v53 = vmul.f32 0.5, %v5192_v60  ;;  %v5198_v2 = vmul.f32 0.5, %v5190_v28  ;;  %v12437_v60 = vld [vmem:[#allocation202_spill] sm:$0xff] }
 0x9eb   :  { %6931 = vtanh.f32 %v5200_v53 }
 0x9ec   :  { %6933 = vtanh.f32 %v5198_v2 }
 0x9ee   :  { %v5084_v19 = vpop.f32.mrf.mxu3 }
 0x9ef   :  { %v5193_v19 = vadd.f32 %v5083_v51, %v351_v23 }
 0x9f1   :  { %v6932_v15 = vpop.eup %6931 }
 0x9f2   :  { %v6934_v23 = vpop.eup %6933  ;;  %v5212_v17 = vmul.f32 0.5, %v6932_v15 }
 0x9fa   :  { %v5095_v44 = vpop.f32.mrf.mxu0 }
 0xa00   :  { %v5108_v29 = vpop.f32.mrf.mxu1  ;;  %v5121_v41 = vpop.f32.mrf.mxu2 }
 0xa01   :  { %v5109_v37 = vadd.f32 %v5108_v29, %v5095_v44  ;;  %v12436_v29 = vld [vmem:[#allocation182_spill] sm:$0xff] }
 0xa02   :  { %v5097_v4 = vpop.f32.mrf.mxu0  ;;  %v409_v51 = vadd.f32 %v12437_v60, %v12436_v29 }
 0xa03   :  { %v5201_v4 = vmul.f32 0.5, %v5193_v19 }
 0xa05   :  { %6935 = vtanh.f32 %v5201_v4 }
 0xa06   :  { %v5134_v52 = vpop.f32.mrf.mxu3  ;;  %6937 = vtanh.f32 %v5199_v9 }
 0xa07   :  { %v5135_v28 = vadd.f32 %v5134_v52, %v5121_v41 }
 0xa08   :  { %v5110_v31 = vpop.f32.mrf.mxu1  ;;  %v5123_v50 = vpop.f32.mrf.mxu2 }
 0xa09   :  { %v12432_v31 = vld [vmem:[#allocation165_spill] sm:$0xff]  ;;  %v12433_v50 = vld [vmem:[#allocation190_spill] sm:$0xff]  ;;  %v5195_v39 = vadd.f32 %v5135_v28, %v409_v51 }
 0xa0a   :  { %v380_v3 = vadd.f32 %v12433_v50, %v12432_v31  ;;  %v12438_v31 = vld [vmem:[#allocation177_spill] sm:$0xff]  ;;  %v12439_v50 = vld [vmem:[#allocation198_spill] sm:$0xff] }
 0xa0b   :  { %v6936_v19 = vpop.eup %6935  ;;  %v467_v4 = vadd.f32 %v12439_v50, %v12438_v31 }
 0xa0c   :  { %v5194_v38 = vadd.f32 %v5109_v37, %v380_v3  ;;  %v5210_v37 = vmul.f32 0.5, %v6934_v23  ;;  %v5218_v3 = vadd.f32 0.5, %v5212_v17  ;;  %v6938_v52 = vpop.eup %6937  ;;  %v5213_v45 = vmul.f32 0.5, %v6936_v19 }
 0xa0e   :  { %v5136_v13 = vpop.f32.mrf.mxu3  ;;  %v5202_v53 = vmul.f32 0.5, %v5194_v38  ;;  %v5216_v55 = vadd.f32 0.5, %v5210_v37  ;;  %v5211_v38 = vmul.f32 0.5, %v6938_v52 }
 0xa10   :  { %v5217_v29 = vadd.f32 0.5, %v5211_v38 }
 0xa1a   :  { %v5147_v61 = vpop.f32.mrf.mxu0 }
 0xa20   :  { %v5160_v62 = vpop.f32.mrf.mxu1  ;;  %v5173_v26 = vpop.f32.mrf.mxu2 }
 0xa21   :  { %v5161_v8 = vadd.f32 %v5160_v62, %v5147_v61 }
 0xa22   :  { %v5149_v44 = vpop.f32.mrf.mxu0 }
 0xa23   :  { %v5196_v13 = vadd.f32 %v5161_v8, %v438_v16  ;;  %v5203_v16 = vmul.f32 0.5, %v5195_v39  ;;  %v5224_v8 = vmul.f32 %v5218_v3, %v9897_v12 }
 0xa25   :  { %6939 = vtanh.f32 %v5196_v13  ;;  %v5219_v13 = vadd.f32 0.5, %v5213_v45 }
 0xa26   :  { %v5186_v2 = vpop.f32.mrf.mxu3  ;;  %6941 = vtanh.f32 %v5202_v53 }
 0xa27   :  { %v5187_v61 = vadd.f32 %v5186_v2, %v5173_v26  ;;  %v5225_v17 = vmul.f32 %v5219_v13, %v9901_v34  ;;  %v4953_v34 = vadd.f32 %v10110_v43, %v8493_v32  ;;  %v5419_v43 = vld [vmem:[%s10283_s7 + $0x28] sm:$0xff]  ;;  %v5414_v13 = vld [vmem:[%s10283_s7] sm:$0xff] }
 0xa28   :  { %v5162_v41 = vpop.f32.mrf.mxu1  ;;  %v5175_v62 = vpop.f32.mrf.mxu2 }
 0xa29   :  { %v5197_v9 = vadd.f32 %v5187_v61, %v467_v4  ;;  %v4957_v52 = vmul.f32 0.5, %v4953_v34  ;;  %v5418_v62 = vld [vmem:[%s10283_s7 + $0x20] sm:$0xff] }
 0xa2b   :  { %v6940_v15 = vpop.eup %6939  ;;  %6943 = vtanh.f32 %v5197_v9 }
 0xa2c   :  { %v5226_v28 = vmul.f32 %v6940_v15, %v5216_v55  ;;  %v6942_v23 = vpop.eup %6941  ;;  %6945 = vtanh.f32 %v5203_v16  ;;  %v5417_v55 = vld [vmem:[%s10283_s7 + $0x18] sm:$0xff]  ;;  %v5416_v15 = vld [vmem:[%s10283_s7 + $0x10] sm:$0xff] }
 0xa2d   :  { %v5214_v51 = vmul.f32 0.5, %v6942_v23 }
 0xa2e   :  { %v5228_v44 = vadd.f32 %v5226_v28, %v5224_v8  ;;  %v5188_v26 = vpop.f32.mrf.mxu3  ;;  %v5415_v28 = vld [vmem:[%s10283_s7 + $0x8] sm:$0xff] }
 0xa2f   :  { %v5220_v2 = vadd.f32 0.5, %v5214_v51 }
 0xa30   :  { %6947 = vtanh.f32 %v5228_v44  ;;  %v12442_v44 = vld [vmem:[#allocation290_spill] sm:$0xff] }
 0xa31   :  { %v6944_v60 = vpop.eup %6943 }
 0xa32   :  { %v5227_v53 = vmul.f32 %v6944_v60, %v5217_v29  ;;  %v6946_v37 = vpop.eup %6945 }
 0xa33   :  { %v5215_v31 = vmul.f32 0.5, %v6946_v37 }
 0xa34   :  { %v5229_v39 = vadd.f32 %v5227_v53, %v5225_v17 }
 0xa35   :  { %v5221_v4 = vadd.f32 0.5, %v5215_v31  ;;  %v12443_v31 = vld [vmem:[#allocation289_spill] sm:$0xff] }
 0xa36   :  { %v6948_v19 = vpop.eup %6947  ;;  %6949 = vtanh.f32 %v5229_v39 }
 0xa37   :  { %v5232_v12 = vmul.f32 %v6948_v19, %v5220_v2  ;;  %6951 = vtanh.f32 %v4957_v52 }
 0xa38   :  { %6953 = vtanh.f32 %v10135_v5 }
 0xa39   :  { %v5234_v50 = vpack.c.bf16 %v5232_v12, %v5232_v12 }
 0xa3b   :  { %5244 = vmatmul.bf16.vlgmr.msrb.gmra.mxu0 %v5234_v50  ;;  %5270 = vmatmul.bf16.vlgmr.msrb.gmra.mxu2 %v5234_v50 }
 0xa3c   :  { %v6950_v61 = vpop.eup %6949  ;;  %5340 = vmatpush.bf16.msrb.mxu0 %v11191_v58  ;;  %5366 = vmatpush.bf16.msrb.mxu2 %v11192_v22 }
 0xa3d   :  { %v5233_v3 = vmul.f32 %v6950_v61, %v5221_v4  ;;  %v6952_v58 = vpop.eup %6951 }
 0xa3f   :  { %v5235_v41 = vpack.c.bf16 %v5233_v3, %v5233_v3 }
 0xa40   :  { %5341 = vmatpush.bf16.msrb.mxu0 %v11193_v7  ;;  %5367 = vmatpush.bf16.msrb.mxu2 %v11194_v47  ;;  %v5428_v47 = vld [vmem:[%s10283_s7 + $0x70] sm:$0xff] }
 0xa41   :  { %5257 = vmatmul.bf16.vlgmr.msra.gmra.mxu1 %v5235_v41  ;;  %5283 = vmatmul.bf16.vlgmr.msrb.gmra.mxu3 %v5235_v41 }
 0xa42   :  { %5353 = vmatpush.bf16.msra.mxu1 %v11195_v56  ;;  %5379 = vmatpush.bf16.msrb.mxu3 %v11196_v14  ;;  %v5427_v56 = vld [vmem:[%s10283_s7 + $0x68] sm:$0xff] }
 0xa44   :  { %5342 = vmatpush.bf16.msrb.mxu0 %v11197_v54  ;;  %5368 = vmatpush.bf16.msrb.mxu2 %v11198_v42  ;;  %v5426_v54 = vld [vmem:[%s10283_s7 + $0x60] sm:$0xff] }
 0xa46   :  { %5354 = vmatpush.bf16.msra.mxu1 %v11199_v33  ;;  %5380 = vmatpush.bf16.msrb.mxu3 %v11200_v18  ;;  %v5425_v18 = vld [vmem:[%s10283_s7 + $0x58] sm:$0xff] }
 0xa48   :  { %5343 = vmatpush.bf16.msrb.mxu0 %v8184_v48  ;;  %5369 = vmatpush.bf16.msrb.mxu2 %v8186_v24  ;;  %v4963_v48 = vmul.f32 0.5, %v6952_v58  ;;  %v6954_v24 = vpop.eup %6953 }
 0xa4a   :  { %5355 = vmatpush.bf16.msra.mxu1 %v11201_v25  ;;  %5381 = vmatpush.bf16.msrb.mxu3 %v11202_v20  ;;  %v4966_v22 = vadd.f32 0.5, %v4963_v48  ;;  %v5424_v20 = vld [vmem:[%s10283_s7 + $0x50] sm:$0xff]  ;;  %v12444_v48 = vld [vmem:[#allocation291_spill] sm:$0xff] }
 0xa4b   :  { %5296 = vmatmul.bf16.vlgmr.msra.gmra.mxu0 %v5234_v50  ;;  %5322 = vmatmul.bf16.vlgmr.msra.gmra.mxu2 %v5234_v50 }
 0xa4c   :  { %5344 = vmatpush.bf16.msrb.mxu0 %v8196_v35  ;;  %5370 = vmatpush.bf16.msrb.mxu2 %v8198_v57  ;;  %v4972_v35 = vmul.f32 %v6954_v24, %v4966_v22 }
 0xa4e   :  { %5356 = vmatpush.bf16.msra.mxu1 %v11203_v0  ;;  %5382 = vmatpush.bf16.msrb.mxu3 %v11204_v46  ;;  %v4973_v57 = vpack.c.bf16 %v4972_v35, %v4972_v35  ;;  %v5423_v0 = vld [vmem:[%s10283_s7 + $0x48] sm:$0xff] }
 0xa50   :  { %5345 = vmatpush.bf16.msrb.mxu0 %v8210_v1  ;;  %5371 = vmatpush.bf16.msrb.mxu2 %v8212_v59  ;;  %v12440_v1 = vld [vmem:[#allocation287_spill] sm:$0xff]  ;;  %v12441_v59 = vld [vmem:[#allocation288_spill] sm:$0xff] }
 0xa51   :  { %5309 = vmatmul.bf16.vlgmr.msrb.gmra.mxu1 %v5235_v41  ;;  %5335 = vmatmul.bf16.vlgmr.msra.gmra.mxu3 %v5235_v41 }
 0xa52   :  { %5357 = vmatpush.bf16.msra.mxu1 %v11205_v40  ;;  %5383 = vmatpush.bf16.msrb.mxu3 %v11206_v49  ;;  %v5422_v40 = vld [vmem:[%s10283_s7 + $0x40] sm:$0xff] }
 0xa54   :  { %5346 = vmatpush.bf16.msrb.mxu0 %v8220_v11  ;;  %5372 = vmatpush.bf16.msrb.mxu2 %v8222_v10 }
 0xa56   :  { %5358 = vmatpush.bf16.msra.mxu1 %v11207_v63  ;;  %5384 = vmatpush.bf16.msrb.mxu3 %v11208_v36  ;;  %v5421_v36 = vld [vmem:[%s10283_s7 + $0x38] sm:$0xff] }
 0xa58   :  { %5347 = vmatpush.bf16.msrb.mxu0 %v8230_v6  ;;  %5373 = vmatpush.bf16.msrb.mxu2 %v8232_v27  ;;  %v5429_v6 = vld [vmem:[%s10283_s7 + $0x78] sm:$0xff] }
 0xa5a   :  { %5359 = vmatpush.bf16.msra.mxu1 %v12023_v30  ;;  %5385 = vmatpush.bf16.msrb.mxu3 %v12228_v21  ;;  %v5420_v21 = vld [vmem:[%s10283_s7 + $0x30] sm:$0xff] }
 0xa5b   :  { %5348 = vmatmul.bf16.vlgmr.msrb.gmra.mxu0 %v4973_v57  ;;  %5374 = vmatmul.bf16.vlgmr.msrb.gmra.mxu2 %v4973_v57 }
 0xa5c   :  { %5434 = vmatpush.msra.mxu0 %v5429_v6 }
 0xa5e   :  { %5360 = vmatpush.bf16.msra.mxu1 %v12440_v1  ;;  %5386 = vmatpush.bf16.msrb.mxu3 %v12441_v59 }
 0xa5f   :  { %5435 = vmatpush.msra.mxu0 %v5428_v47 }
 0xa61   :  { %5361 = vmatmul.bf16.vlgmr.msra.gmra.mxu1 %v4973_v57  ;;  %5387 = vmatmul.bf16.vlgmr.msrb.gmra.mxu3 %v4973_v57 }
 0xa62   :  { %5436 = vmatpush.msra.mxu0 %v5427_v56 }
 0xa64   :  { %5437 = vmatpush.msra.mxu0 %v5426_v54 }
 0xa66   :  { %5438 = vmatpush.msra.mxu0 %v5425_v18 }
 0xa68   :  { %5439 = vmatpush.msra.mxu0 %v5424_v20 }
 0xa6a   :  { %5440 = vmatpush.msra.mxu0 %v5423_v0 }
 0xa6c   :  { %5441 = vmatpush.msra.mxu0 %v5422_v40 }
 0xa6e   :  { %5442 = vmatpush.msra.mxu0 %v5421_v36 }
 0xa70   :  { %5443 = vmatpush.msra.mxu0 %v5420_v21 }
 0xa72   :  { %5444 = vmatpush.msra.mxu0 %v5419_v43 }
 0xa74   :  { %5445 = vmatpush.msra.mxu0 %v5418_v62 }
 0xa76   :  { %5446 = vmatpush.msra.mxu0 %v5417_v55 }
 0xa78   :  { %5447 = vmatpush.msra.mxu0 %v5416_v15 }
 0xa7a   :  { %5448 = vmatpush.msra.mxu0 %v5415_v28 }
 0xa7c   :  { %5449 = vmatpush.msra.mxu0 %v5414_v13 }
 0xab8   :  { %v5245_v11 = vpop.f32.mrf.mxu0 }
 0xabe   :  { %v5258_v10 = vpop.f32.mrf.mxu1  ;;  %v5271_v7 = vpop.f32.mrf.mxu2 }
 0xabf   :  { %v5259_v38 = vadd.f32 %v5258_v10, %v5245_v11 }
 0xac0   :  { %v5247_v27 = vpop.f32.mrf.mxu0 }
 0xac4   :  { %v5284_v14 = vpop.f32.mrf.mxu3 }
 0xac5   :  { %v5285_v60 = vadd.f32 %v5284_v14, %v5271_v7 }
 0xac6   :  { %v5260_v42 = vpop.f32.mrf.mxu1  ;;  %v5273_v33 = vpop.f32.mrf.mxu2 }
 0xac7   :  { %v6724_v33 = vld [vmem:[#allocation3] ss:$0 sm:$0xff] }
 0xac8   :  { %v5297_v25 = vpop.f32.mrf.mxu0 }
 0xacc   :  { %v5286_v46 = vpop.f32.mrf.mxu3 }
 0xace   :  { %v5310_v49 = vpop.f32.mrf.mxu1  ;;  %v5323_v63 = vpop.f32.mrf.mxu2 }
 0xacf   :  { %v5311_v17 = vadd.f32 %v5310_v49, %v5297_v25 }
 0xad0   :  { %v5299_v30 = vpop.f32.mrf.mxu0 }
 0xad4   :  { %v5336_v9 = vpop.f32.mrf.mxu3 }
 0xad5   :  { %v5337_v50 = vadd.f32 %v5336_v9, %v5323_v63 }
 0xad6   :  { %v5312_v45 = vpop.f32.mrf.mxu1  ;;  %v5325_v16 = vpop.f32.mrf.mxu2 }
 0xad8   :  { %v5349_v8 = vpop.f32.mrf.mxu0 }
 0xad9   :  { %v5350_v23 = vadd.f32 %v5349_v8, %v5259_v38 }
 0xadb   :  { %v5392_v26 = vadd.f32 %v5350_v23, %v12442_v44 }
 0xadc   :  { %v5338_v29 = vpop.f32.mrf.mxu3 }
 0xadd   :  { %v5396_v51 = vmul.f32 0.5, %v5392_v26 }
 0xade   :  { %v5362_v53 = vpop.f32.mrf.mxu1  ;;  %v5375_v37 = vpop.f32.mrf.mxu2 }
 0xadf   :  { %v5363_v39 = vadd.f32 %v5362_v53, %v5285_v60  ;;  %v5376_v2 = vadd.f32 %v5375_v37, %v5311_v17  ;;  %6955 = vtanh.f32 %v5396_v51 }
 0xae0   :  { %v5351_v19 = vpop.f32.mrf.mxu0 }
 0xae1   :  { %v5393_v12 = vadd.f32 %v5363_v39, %v12443_v31  ;;  %v5394_v61 = vadd.f32 %v5376_v2, %v8493_v32 }
 0xae3   :  { %v5397_v4 = vmul.f32 0.5, %v5393_v12  ;;  %v5398_v22 = vmul.f32 0.5, %v5394_v61 }
 0xae4   :  { %v5388_v3 = vpop.f32.mrf.mxu3 }
 0xae5   :  { %6957 = vtanh.f32 %v5397_v4  ;;  %v5389_v34 = vadd.f32 %v5388_v3, %v5337_v50  ;;  %v6956_v58 = vpop.eup %6955 }
 0xae6   :  { %v5364_v41 = vpop.f32.mrf.mxu1  ;;  %v5377_v52 = vpop.f32.mrf.mxu2  ;;  %v5402_v35 = vmul.f32 0.5, %v6956_v58 }
 0xae7   :  { %v5395_v24 = vadd.f32 %v5389_v34, %v12444_v48 }
 0xae8   :  { %v5405_v11 = vadd.f32 0.5, %v5402_v35 }
 0xae9   :  { %6959 = vtanh.f32 %v5395_v24 }
 0xaea   :  { %6961 = vtanh.f32 %v5398_v22 }
 0xaeb   :  { %v6958_v57 = vpop.eup %6957 }
 0xaec   :  { %v5403_v1 = vmul.f32 0.5, %v6958_v57  ;;  %v5390_v59 = vpop.f32.mrf.mxu3 }
 0xaee   :  { %v5406_v10 = vadd.f32 0.5, %v5403_v1 }
 0xaef   :  { %v6960_v7 = vpop.eup %6959 }
 0xaf0   :  { %v5409_v32 = vmul.f32 %v5406_v10, %v10135_v5  ;;  %v5410_v6 = vmul.f32 %v6960_v7, %v5405_v11  ;;  %v6962_v27 = vpop.eup %6961 }
 0xaf1   :  { %v5404_v56 = vmul.f32 0.5, %v6962_v27 }
 0xaf2   :  { %v5411_v47 = vadd.f32 %v5410_v6, %v5409_v32 }
 0xaf3   :  { %v5407_v14 = vadd.f32 0.5, %v5404_v56 }
 0xaf4   :  { %6963 = vtanh.f32 %v5411_v47 }
 0xafa   :  { %v6964_v54 = vpop.eup %6963 }
 0xafb   :  { %v5413_v42 = vmul.f32 %v6964_v54, %v5407_v14 }
 0xafd   :  { %5450 = vmatmul.f32.vlgmr.msra.gmra.mxu0 %v5413_v42 }
 0xb7a   :  { %v5451_v18 = vpop.f32.mrf.mxu0 }
 0xb7b   :  { %v5452_v25 = vadd.f32 %v6724_v33, %v5451_v18 }
 0xb7d   :  { %5455 = vst.msk [vmem:[%s10285_s9] sm:$0xff] %vm5454_vm1, %v5452_v25 }
 0xb7e   :  { %5460 = vsyncpa [#allocation5], 1 }
 0xb7f   :  { %5461 = vsyncpa [#allocation7], 1 }

</bundles_post_ra>
